<compile_context>
chip_gen: v7x
topology: tpu7x:2x2x1
jax: 0.10.0
libtpu: 0.0.40
codegen_flags: <defaults>
</compile_context>

<pallas_src>
import functools

import jax
import jax.numpy as jnp
from jax import lax
from jax.experimental import pallas as pl
from jax.experimental.pallas import tpu as pltpu

INPUT_DIM = 3000
HIDDEN_DIM = 500
BOTTLENECK_DIM = 256
BN_EPS = 1e-5


def _round_up(n, m):
    return (n + m - 1) // m * m


IN_PAD = _round_up(INPUT_DIM, 128)    # 3072
HID_PAD = _round_up(HIDDEN_DIM, 128)  # 512
STATS_ROWS = 8                        # sublane-aligned partial-stats block


# ---------------------------------------------------------------- kernel 1 --
def linear_stats_kernel(x_ref, w1_ref, b1_ref, w2_ref, b2_ref,
                        z_ref, part_ref, *, n_valid, tb):
    """z = (x @ W1 + b1) @ W2 + b2 for one batch tile (bf16 MXU, f32 accum),
    plus masked per-tile partial BN statistics (row 0 = sum, row 1 = sum sq)."""
    i = pl.program_id(0)

    x = x_ref[...]                                                    # [TB, IN_PAD] bf16
    h = jnp.dot(x, w1_ref[...], preferred_element_type=jnp.float32)   # [TB, HID_PAD] f32
    h = h + b1_ref[...]
    z = jnp.dot(h.astype(jnp.bfloat16), w2_ref[...],
                preferred_element_type=jnp.float32) + b2_ref[...]     # [TB, 256] f32
    z_ref[...] = z

    # Masked partial statistics for this tile (padded rows contribute 0).
    row = i * tb + lax.broadcasted_iota(jnp.int32, (tb, 1), 0)
    zm = jnp.where(row < n_valid, z, 0.0)
    s = jnp.sum(zm, axis=0, keepdims=True)                            # (1, 256)
    sq = jnp.sum(zm * zm, axis=0, keepdims=True)                      # (1, 256)
    r = lax.broadcasted_iota(jnp.int32, (STATS_ROWS, BOTTLENECK_DIM), 0)
    stats = jnp.where(r == 0, s, 0.0) + jnp.where(r == 1, sq, 0.0)    # (8, 256)
    part_ref[...] = stats[None]


# ---------------------------------------------------------------- kernel 2 --
def bn_apply_kernel(z_ref, scale_ref, shift_ref, o_ref):
    """y = z * scale + shift  (scale/shift already fold mean/rstd/gamma/beta)."""
    o_ref[...] = (z_ref[...] * scale_ref[...] + shift_ref[...]).astype(o_ref.dtype)
    # Dropout(p=0.3) is identity in inference mode.


# ------------------------------------------------------------------ wrapper --
def prepare_params(w1, b1, w2, b2, gamma, beta):
    """Zero-pad to TPU-aligned shapes and store matmul weights as bf16 in HBM."""
    w1p = jnp.zeros((IN_PAD, HID_PAD), jnp.bfloat16)
    w1p = w1p.at[:INPUT_DIM, :HIDDEN_DIM].set(w1.astype(jnp.bfloat16))
    b1p = jnp.zeros((1, HID_PAD), jnp.float32).at[:, :HIDDEN_DIM].set(b1)
    w2p = jnp.zeros((HID_PAD, BOTTLENECK_DIM), jnp.bfloat16)
    w2p = w2p.at[:HIDDEN_DIM, :].set(w2.astype(jnp.bfloat16))
    return (w1p, b1p, w2p, b2.astype(jnp.float32),
            gamma.astype(jnp.float32), beta.astype(jnp.float32))


@jax.jit
def mlp_forward(x, w1p, b1p, w2p, b2, gamma, beta):
    B = x.shape[0]
    TB = 256 if B > 256 else _round_up(B, 16)   # bf16-friendly batch tile
    B_pad = _round_up(B, TB)
    n_tiles = B_pad // TB

    # Host-side pad: batch -> multiple of TB, features -> 3072, cast to bf16.
    x_pad = jnp.zeros((B_pad, IN_PAD), jnp.bfloat16)
    x_pad = x_pad.at[:B, :INPUT_DIM].set(x.astype(jnp.bfloat16))

    resident = lambda shape: pl.BlockSpec(shape, lambda i: (0, 0))

    # 1) Fused: z = (x @ W1 + b1) @ W2 + b2  +  per-tile masked BN partials.
    z, partials = pl.pallas_call(
        functools.partial(linear_stats_kernel, n_valid=B, tb=TB),
        out_shape=(
            jax.ShapeDtypeStruct((B_pad, BOTTLENECK_DIM), jnp.float32),
            jax.ShapeDtypeStruct((n_tiles, STATS_ROWS, BOTTLENECK_DIM),
                                 jnp.float32),
        ),
        grid=(n_tiles,),
        in_specs=[
            pl.BlockSpec((TB, IN_PAD), lambda i: (i, 0)),       # x tile
            resident((IN_PAD, HID_PAD)),                        # W1 (bf16, resident)
            resident((1, HID_PAD)),                             # b1
            resident((HID_PAD, BOTTLENECK_DIM)),                # W2 (bf16, resident)
            resident((1, BOTTLENECK_DIM)),                      # b2
        ],
        out_specs=(
            pl.BlockSpec((TB, BOTTLENECK_DIM), lambda i: (i, 0)),
            pl.BlockSpec((1, STATS_ROWS, BOTTLENECK_DIM), lambda i: (i, 0, 0)),
        ),
        compiler_params=pltpu.CompilerParams(
            dimension_semantics=("parallel",),
            vmem_limit_bytes=32 << 20,
        ),
    )(x_pad, w1p, b1p, w2p, b2)

    # 2) Tiny finalize (n_tiles x 256 reduce): fold mean/var/gamma/beta into a
    #    single per-feature scale & shift.
    total = jnp.sum(partials[:, 0, :], axis=0, keepdims=True)      # sum z
    total_sq = jnp.sum(partials[:, 1, :], axis=0, keepdims=True)   # sum z^2
    mean = total / B
    var = total_sq / B - mean * mean                               # biased variance
    rstd = lax.rsqrt(var + BN_EPS)
    scale = gamma * rstd
    shift = beta - mean * scale

    # 3) Normalize + affine, batch-tiled.
    y = pl.pallas_call(
        bn_apply_kernel,
        out_shape=jax.ShapeDtypeStruct((B_pad, BOTTLENECK_DIM), jnp.float32),
        grid=(n_tiles,),
        in_specs=[
            pl.BlockSpec((TB, BOTTLENECK_DIM), lambda i: (i, 0)),
            resident((1, BOTTLENECK_DIM)),
            resident((1, BOTTLENECK_DIM)),
        ],
        out_specs=pl.BlockSpec((TB, BOTTLENECK_DIM), lambda i: (i, 0)),
        compiler_params=pltpu.CompilerParams(
            dimension_semantics=("parallel",),
        ),
    )(z, scale, shift)

    return y[:B]


# ---------------------------------------------------------------- reference --
def init_params(key):
    """Mirror init_weights(): Linear weights xavier_normal, biases 0;
    BN weight ~ N(1, 0.02), bias 0.  Linear weights stored as [in, out]."""
    k1, k2, k3 = jax.random.split(key, 3)
    std1 = (2.0 / (INPUT_DIM + HIDDEN_DIM)) ** 0.5
    std2 = (2.0 / (HIDDEN_DIM + BOTTLENECK_DIM)) ** 0.5
    w1 = jax.random.normal(k1, (INPUT_DIM, HIDDEN_DIM), jnp.float32) * std1
    b1 = jnp.zeros((1, HIDDEN_DIM), jnp.float32)
    w2 = jax.random.normal(k2, (HIDDEN_DIM, BOTTLENECK_DIM), jnp.float32) * std2
    b2 = jnp.zeros((1, BOTTLENECK_DIM), jnp.float32)
    gamma = 1.0 + 0.02 * jax.random.normal(k3, (1, BOTTLENECK_DIM), jnp.float32)
    beta = jnp.zeros((1, BOTTLENECK_DIM), jnp.float32)
    return w1, b1, w2, b2, gamma, beta


def reference_forward(x, w1, b1, w2, b2, gamma, beta):
    """Pure-JAX reference mirroring the kernel math (bf16 dots, f32 accum/BN)."""
    h = jnp.dot(x.astype(jnp.bfloat16), w1.astype(jnp.bfloat16),
                preferred_element_type=jnp.float32) + b1
    z = jnp.dot(h.astype(jnp.bfloat16), w2.astype(jnp.bfloat16),
                preferred_element_type=jnp.float32) + b2
    mean = jnp.mean(z, axis=0, keepdims=True)
    var = jnp.mean((z - mean) ** 2, axis=0, keepdims=True)
    return (z - mean) * lax.rsqrt(var + BN_EPS) * gamma + beta


if __name__ == "__main__":
    key = jax.random.PRNGKey(0)
    k_x, k_p = jax.random.split(key)

    # B=300 exercises batch tiling (2 tiles of 256), padded-row masking in the
    # BN partial-statistics path, and the multi-tile finalize reduce.
    B = 300
    x = jax.random.normal(k_x, (B, INPUT_DIM), jnp.float32)
    w1, b1, w2, b2, gamma, beta = init_params(k_p)
    params = prepare_params(w1, b1, w2, b2, gamma, beta)

    out = mlp_forward(x, *params)
    out = jax.block_until_ready(out)

    ref = reference_forward(x, w1, b1, w2, b2, gamma, beta)
    assert out.shape == (B, BOTTLENECK_DIM)
    max_err = jnp.max(jnp.abs(out - ref))
    assert jnp.allclose(out, ref, atol=1e-2, rtol=1e-2), (
        f"mismatch vs JAX reference (max abs err {max_err})")

    print("KERNEL_OK")
</pallas_src>

<mosaic_0001>
module attributes {stable_mosaic.version = 11 : i64} {
  func.func @linear_stats_kernel(%arg0: i32, %arg1: memref<256x3072xbf16, #tpu.memory_space<vmem>>, %arg2: memref<3072x512xbf16, #tpu.memory_space<vmem>>, %arg3: memref<1x512xf32, #tpu.memory_space<vmem>>, %arg4: memref<512x256xbf16, #tpu.memory_space<vmem>>, %arg5: memref<1x256xf32, #tpu.memory_space<vmem>>, %arg6: memref<256x256xf32, #tpu.memory_space<vmem>>, %arg7: memref<1x8x256xf32, #tpu.memory_space<vmem>>) attributes {dimension_semantics = [#tpu.dimension_semantics<parallel>], iteration_bounds = array<i64: 2>, scalar_prefetch = 0 : i64, scratch_operands = 0 : i64, tpu.core_type = #tpu.core_type<tc>, window_params = [{transform_indices = @transform_0, window_bounds = array<i64: 256, 3072>}, {pipeline_mode = #tpu.pipeline_mode<synchronous>, transform_indices = @transform_1, window_bounds = array<i64: 3072, 512>}, {pipeline_mode = #tpu.pipeline_mode<synchronous>, transform_indices = @transform_2, window_bounds = array<i64: 1, 512>}, {pipeline_mode = #tpu.pipeline_mode<synchronous>, transform_indices = @transform_3, window_bounds = array<i64: 512, 256>}, {pipeline_mode = #tpu.pipeline_mode<synchronous>, transform_indices = @transform_4, window_bounds = array<i64: 1, 256>}, {transform_indices = @transform_5, window_bounds = array<i64: 256, 256>}, {transform_indices = @transform_6, window_bounds = array<i64: 1, 8, 256>}]} {
    %c0 = arith.constant 0 : index
    %c0_0 = arith.constant 0 : index
    %0 = vector.load %arg1[%c0, %c0_0] : memref<256x3072xbf16, #tpu.memory_space<vmem>>, vector<256x3072xbf16>
    %c0_1 = arith.constant 0 : index
    %c0_2 = arith.constant 0 : index
    %1 = vector.load %arg2[%c0_1, %c0_2] : memref<3072x512xbf16, #tpu.memory_space<vmem>>, vector<3072x512xbf16>
    %cst = arith.constant dense<0.000000e+00> : vector<256x512xf32>
    %2 = tpu.matmul %0, %1, %cst {dimension_numbers = #tpu.dot_dimension_numbers<[1], [0], [0], [1], [0, 0, 1, 1], [], []>} : vector<256x3072xbf16>, vector<3072x512xbf16>, vector<256x512xf32> -> vector<256x512xf32>
    %c0_3 = arith.constant 0 : index
    %c0_4 = arith.constant 0 : index
    %3 = vector.load %arg3[%c0_3, %c0_4] : memref<1x512xf32, #tpu.memory_space<vmem>>, vector<1x512xf32>
    %4 = vector.broadcast %3 : vector<1x512xf32> to vector<256x512xf32>
    %5 = arith.addf %2, %4 : vector<256x512xf32>
    %6 = arith.truncf %5 : vector<256x512xf32> to vector<256x512xbf16>
    %c0_5 = arith.constant 0 : index
    %c0_6 = arith.constant 0 : index
    %7 = vector.load %arg4[%c0_5, %c0_6] : memref<512x256xbf16, #tpu.memory_space<vmem>>, vector<512x256xbf16>
    %cst_7 = arith.constant dense<0.000000e+00> : vector<256x256xf32>
    %8 = tpu.matmul %6, %7, %cst_7 {dimension_numbers = #tpu.dot_dimension_numbers<[1], [0], [0], [1], [0, 0, 1, 1], [], []>} : vector<256x512xbf16>, vector<512x256xbf16>, vector<256x256xf32> -> vector<256x256xf32>
    %c0_8 = arith.constant 0 : index
    %c0_9 = arith.constant 0 : index
    %9 = vector.load %arg5[%c0_8, %c0_9] : memref<1x256xf32, #tpu.memory_space<vmem>>, vector<1x256xf32>
    %10 = vector.broadcast %9 : vector<1x256xf32> to vector<256x256xf32>
    %11 = arith.addf %8, %10 : vector<256x256xf32>
    %c0_10 = arith.constant 0 : index
    %c0_11 = arith.constant 0 : index
    %12 = vector.load %arg6[%c0_10, %c0_11] : memref<256x256xf32, #tpu.memory_space<vmem>>, vector<256x256xf32>
    tpu.vector_store %arg6[%c0_10, %c0_11], %11 {strides = array<i32>} : memref<256x256xf32, #tpu.memory_space<vmem>>, vector<256x256xf32>,
    %c256_i32 = arith.constant 256 : i32
    %13 = arith.muli %arg0, %c256_i32 : i32
    %14 = tpu.iota {dimensions = array<i32: 0>} : vector<256x1xi32>
    %15 = vector.broadcast %13 : i32 to vector<256x1xi32>
    %16 = arith.addi %15, %14 : vector<256x1xi32>
    %c300_i32 = arith.constant 300 : i32
    %17 = vector.broadcast %c300_i32 : i32 to vector<256x1xi32>
    %18 = arith.cmpi slt, %16, %17 : vector<256x1xi32>
    %cst_12 = arith.constant 0.000000e+00 : f32
    %19 = vector.shape_cast %18 : vector<256x1xi1> to vector<256x1xi1>
    %20 = vector.broadcast %19 : vector<256x1xi1> to vector<256x256xi1>
    %21 = vector.broadcast %cst_12 : f32 to vector<256x256xf32>
    %22 = arith.select %20, %11, %21 : vector<256x256xi1>, vector<256x256xf32>
    %cst_13 = arith.constant dense<0.000000e+00> : vector<256xf32>
    %23 = vector.multi_reduction <add>, %22, %cst_13 [0] : vector<256x256xf32> to vector<256xf32>
    %24 = vector.shape_cast %23 : vector<256xf32> to vector<1x256xf32>
    %25 = arith.mulf %22, %22 : vector<256x256xf32>
    %cst_14 = arith.constant dense<0.000000e+00> : vector<256xf32>
    %26 = vector.multi_reduction <add>, %25, %cst_14 [0] : vector<256x256xf32> to vector<256xf32>
    %27 = vector.shape_cast %26 : vector<256xf32> to vector<1x256xf32>
    %28 = tpu.iota {dimensions = array<i32: 0>} : vector<8x256xi32>
    %c0_i32 = arith.constant 0 : i32
    %29 = vector.broadcast %c0_i32 : i32 to vector<8x256xi32>
    %30 = arith.cmpi eq, %28, %29 : vector<8x256xi32>
    %cst_15 = arith.constant 0.000000e+00 : f32
    %31 = vector.shape_cast %24 : vector<1x256xf32> to vector<1x256xf32>
    %32 = vector.broadcast %31 : vector<1x256xf32> to vector<8x256xf32>
    %33 = vector.broadcast %cst_15 : f32 to vector<8x256xf32>
    %34 = arith.select %30, %32, %33 : vector<8x256xi1>, vector<8x256xf32>
    %c1_i32 = arith.constant 1 : i32
    %35 = vector.broadcast %c1_i32 : i32 to vector<8x256xi32>
    %36 = arith.cmpi eq, %28, %35 : vector<8x256xi32>
    %cst_16 = arith.constant 0.000000e+00 : f32
    %37 = vector.shape_cast %27 : vector<1x256xf32> to vector<1x256xf32>
    %38 = vector.broadcast %37 : vector<1x256xf32> to vector<8x256xf32>
    %39 = vector.broadcast %cst_16 : f32 to vector<8x256xf32>
    %40 = arith.select %36, %38, %39 : vector<8x256xi1>, vector<8x256xf32>
    %41 = arith.addf %34, %40 : vector<8x256xf32>
    %42 = vector.shape_cast %41 : vector<8x256xf32> to vector<1x8x256xf32>
    %c0_17 = arith.constant 0 : index
    %c0_18 = arith.constant 0 : index
    %c0_19 = arith.constant 0 : index
    %43 = vector.load %arg7[%c0_17, %c0_18, %c0_19] : memref<1x8x256xf32, #tpu.memory_space<vmem>>, vector<1x8x256xf32>
    tpu.vector_store %arg7[%c0_17, %c0_18, %c0_19], %42 {strides = array<i32>} : memref<1x8x256xf32, #tpu.memory_space<vmem>>, vector<1x8x256xf32>,
    return
  }
  func.func @transform_0(%arg0: i32) -> (i32, i32) {
    %c0_i32 = arith.constant 0 : i32
    %c0_i32_0 = arith.constant 0 : i32
    return %arg0, %c0_i32 : i32, i32
  }
  func.func @transform_1(%arg0: i32) -> (i32, i32) {
    %c0_i32 = arith.constant 0 : i32
    %c0_i32_0 = arith.constant 0 : i32
    %c0_i32_1 = arith.constant 0 : i32
    return %c0_i32, %c0_i32_0 : i32, i32
  }
  func.func @transform_2(%arg0: i32) -> (i32, i32) {
    %c0_i32 = arith.constant 0 : i32
    %c0_i32_0 = arith.constant 0 : i32
    %c0_i32_1 = arith.constant 0 : i32
    return %c0_i32, %c0_i32_0 : i32, i32
  }
  func.func @transform_3(%arg0: i32) -> (i32, i32) {
    %c0_i32 = arith.constant 0 : i32
    %c0_i32_0 = arith.constant 0 : i32
    %c0_i32_1 = arith.constant 0 : i32
    return %c0_i32, %c0_i32_0 : i32, i32
  }
  func.func @transform_4(%arg0: i32) -> (i32, i32) {
    %c0_i32 = arith.constant 0 : i32
    %c0_i32_0 = arith.constant 0 : i32
    %c0_i32_1 = arith.constant 0 : i32
    return %c0_i32, %c0_i32_0 : i32, i32
  }
  func.func @transform_5(%arg0: i32) -> (i32, i32) {
    %c0_i32 = arith.constant 0 : i32
    %c0_i32_0 = arith.constant 0 : i32
    return %arg0, %c0_i32 : i32, i32
  }
  func.func @transform_6(%arg0: i32) -> (i32, i32, i32) {
    %c0_i32 = arith.constant 0 : i32
    %c0_i32_0 = arith.constant 0 : i32
    %c0_i32_1 = arith.constant 0 : i32
    return %arg0, %c0_i32, %c0_i32_0 : i32, i32, i32
  }
}

module attributes {stable_mosaic.version = 11 : i64} {
  func.func @bn_apply_kernel(%arg0: i32, %arg1: memref<256x256xf32, #tpu.memory_space<vmem>>, %arg2: memref<1x256xf32, #tpu.memory_space<vmem>>, %arg3: memref<1x256xf32, #tpu.memory_space<vmem>>, %arg4: memref<256x256xf32, #tpu.memory_space<vmem>>) attributes {dimension_semantics = [#tpu.dimension_semantics<parallel>], iteration_bounds = array<i64: 2>, scalar_prefetch = 0 : i64, scratch_operands = 0 : i64, tpu.core_type = #tpu.core_type<tc>, window_params = [{transform_indices = @transform_0, window_bounds = array<i64: 256, 256>}, {pipeline_mode = #tpu.pipeline_mode<synchronous>, transform_indices = @transform_1, window_bounds = array<i64: 1, 256>}, {pipeline_mode = #tpu.pipeline_mode<synchronous>, transform_indices = @transform_2, window_bounds = array<i64: 1, 256>}, {transform_indices = @transform_3, window_bounds = array<i64: 256, 256>}]} {
    %c0 = arith.constant 0 : index
    %c0_0 = arith.constant 0 : index
    %0 = vector.load %arg1[%c0, %c0_0] : memref<256x256xf32, #tpu.memory_space<vmem>>, vector<256x256xf32>
    %c0_1 = arith.constant 0 : index
    %c0_2 = arith.constant 0 : index
    %1 = vector.load %arg2[%c0_1, %c0_2] : memref<1x256xf32, #tpu.memory_space<vmem>>, vector<1x256xf32>
    %2 = vector.broadcast %1 : vector<1x256xf32> to vector<256x256xf32>
    %3 = arith.mulf %0, %2 : vector<256x256xf32>
    %c0_3 = arith.constant 0 : index
    %c0_4 = arith.constant 0 : index
    %4 = vector.load %arg3[%c0_3, %c0_4] : memref<1x256xf32, #tpu.memory_space<vmem>>, vector<1x256xf32>
    %5 = vector.broadcast %4 : vector<1x256xf32> to vector<256x256xf32>
    %6 = arith.addf %3, %5 : vector<256x256xf32>
    %c0_5 = arith.constant 0 : index
    %c0_6 = arith.constant 0 : index
    %7 = vector.load %arg4[%c0_5, %c0_6] : memref<256x256xf32, #tpu.memory_space<vmem>>, vector<256x256xf32>
    tpu.vector_store %arg4[%c0_5, %c0_6], %6 {strides = array<i32>} : memref<256x256xf32, #tpu.memory_space<vmem>>, vector<256x256xf32>,
    return
  }
  func.func @transform_0(%arg0: i32) -> (i32, i32) {
    %c0_i32 = arith.constant 0 : i32
    %c0_i32_0 = arith.constant 0 : i32
    return %arg0, %c0_i32 : i32, i32
  }
  func.func @transform_1(%arg0: i32) -> (i32, i32) {
    %c0_i32 = arith.constant 0 : i32
    %c0_i32_0 = arith.constant 0 : i32
    %c0_i32_1 = arith.constant 0 : i32
    return %c0_i32, %c0_i32_0 : i32, i32
  }
  func.func @transform_2(%arg0: i32) -> (i32, i32) {
    %c0_i32 = arith.constant 0 : i32
    %c0_i32_0 = arith.constant 0 : i32
    %c0_i32_1 = arith.constant 0 : i32
    return %c0_i32, %c0_i32_0 : i32, i32
  }
  func.func @transform_3(%arg0: i32) -> (i32, i32) {
    %c0_i32 = arith.constant 0 : i32
    %c0_i32_0 = arith.constant 0 : i32
    return %arg0, %c0_i32 : i32, i32
  }
}

</mosaic_0001>

<bundles_post_ra>
// kernel: mlp_forward.3
= control target key start
LH: loop header
LB: loop body
LE: loop exit
PB: predicated region body
PF: predicated region fallthrough
CT: control target
= control target key end

     0   :  { %s568_s12 = smov 0   ;;  %s859_s0 = inlined_call_operand.vmem [shape: f32[512,256], index: 0, kind: input, shape index: {}]   ;;  %s860_s1 = inlined_call_operand.vmem [shape: f32[1,256], index: 1, kind: input, shape index: {}]   ;;  %s861_s2 = inlined_call_operand.vmem [shape: f32[1,256], index: 2, kind: input, shape index: {}]   ;;  %s862_s3 = inlined_call_operand.vmem [shape: f32[512,256], index: 3, kind: output, shape index: {}]  }
   0x1 LB: > { %s517_s13 = sadd.s32 4294967295, %s546_s12   ;;  %p521_p0 = scmp.ge.s32.totalorder %s546_s12, 1  ;;  %s546_s12 = sphi %s568_s12, %s13_s12  }
   0x2   : > { %p139_p1 = scmp.lt.s32.totalorder %s546_s12, 3 }
   0x4   : > { %p140_p2 = pnand %p521_p0, %p139_p1 }
   0x5   : > { %s522_s14 = sshll.u32 (!%p140_p2), %s517_s13, 5  ;;  %v245_v0 = vlaneseq (!%p140_p2)  ;;  %v243_v2 = vld [vmem:[%s860_s1] sm:$0x3] (!%p140_p2) }
   0x6   : > { %143 = sbr.rel (%p140_p2) target bundleno = 59 (0x3b), region = 32  ;;  %p166_p3 = scmp.lt.s32.totalorder (!%p140_p2), %s522_s14, 63  ;;  %v319_v3 = vld [vmem:[%s861_s2] sm:$0x3] (!%p140_p2) }
   0x7   : > { %v246_v1 = vshrl.u32 (!%p140_p2), %v245_v0, 7 }
   0x9   : > { %v247_v4 = vsub.s32 (!%p140_p2), 0, %v246_v1  ;;  %v251_v5 = vsub.s32 (!%p140_p2), 1, %v246_v1 }
   0xb   : > { %v587_v6 = vrot.slane (!%p140_p2), %v243_v2, %v247_v4  ;;  %v589_v7 = vrot.slane (!%p140_p2), %v319_v3, %v247_v4  ;;  %v591_v8 = vrot.slane (!%p140_p2), %v243_v2, %v251_v5  ;;  %v593_v9 = vrot.slane (!%p140_p2), %v319_v3, %v251_v5 }
   0xd   : > { %s864_s14 = smov (!%p166_p3, %s522_s14), 63 }
   0xe   : > { %s530_s19 = sshll.u32 %s864_s14, 4 }
   0xf   : > { %s585_s22 = scalar_lea.vmem %s859_s0, %s530_s19  ;;  %s607_s25 = scalar_lea.vmem %s862_s3, %s530_s19 }
  0x10   : > { %v179_v10 = vld [vmem:[%s585_s22] sm:$0xff]  ;;  %v180_v11 = vld [vmem:[%s585_s22 + $0x8] sm:$0xff]  ;;  %v181_v12 = vld [vmem:[%s585_s22 + $0x10] sm:$0xff] }
  0x11   : > { %v255_v13 = vmul.f32 %v587_v6, %v179_v10  ;;  %v256_v14 = vmul.f32 %v591_v8, %v180_v11  ;;  %v257_v15 = vmul.f32 %v587_v6, %v181_v12  ;;  %v182_v16 = vld [vmem:[%s585_s22 + $0x18] sm:$0xff]  ;;  %v183_v17 = vld [vmem:[%s585_s22 + $0x20] sm:$0xff]  ;;  %v184_v18 = vld [vmem:[%s585_s22 + $0x28] sm:$0xff] }
  0x12   : > { %v258_v19 = vmul.f32 %v591_v8, %v182_v16  ;;  %v259_v20 = vmul.f32 %v587_v6, %v183_v17  ;;  %v260_v21 = vmul.f32 %v591_v8, %v184_v18  ;;  %v185_v22 = vld [vmem:[%s585_s22 + $0x30] sm:$0xff]  ;;  %v186_v23 = vld [vmem:[%s585_s22 + $0x38] sm:$0xff]  ;;  %v187_v24 = vld [vmem:[%s585_s22 + $0x40] sm:$0xff] }
  0x13   : > { %v331_v25 = vadd.f32 %v589_v7, %v255_v13  ;;  %v332_v26 = vadd.f32 %v593_v9, %v256_v14  ;;  %v333_v27 = vadd.f32 %v589_v7, %v257_v15  ;;  %v261_v28 = vmul.f32 %v587_v6, %v185_v22  ;;  %v188_v29 = vld [vmem:[%s585_s22 + $0x48] sm:$0xff]  ;;  %v189_v30 = vld [vmem:[%s585_s22 + $0x50] sm:$0xff]  ;;  %v190_v31 = vld [vmem:[%s585_s22 + $0x58] sm:$0xff] }
  0x14   : > { %v334_v32 = vadd.f32 %v593_v9, %v258_v19  ;;  %v335_v33 = vadd.f32 %v589_v7, %v259_v20  ;;  %v336_v34 = vadd.f32 %v593_v9, %v260_v21  ;;  %v262_v35 = vmul.f32 %v591_v8, %v186_v23  ;;  %v191_v36 = vld [vmem:[%s585_s22 + $0x60] sm:$0xff]  ;;  %v192_v37 = vld [vmem:[%s585_s22 + $0x68] sm:$0xff]  ;;  %v193_v38 = vld [vmem:[%s585_s22 + $0x70] sm:$0xff] }
  0x15   : > { %395 = vst [vmem:[%s607_s25] sm:$0xff] %v331_v25  ;;  %396 = vst [vmem:[%s607_s25 + $0x8] sm:$0xff] %v332_v26  ;;  %v337_v39 = vadd.f32 %v589_v7, %v261_v28  ;;  %v263_v40 = vmul.f32 %v587_v6, %v187_v24  ;;  %v264_v41 = vmul.f32 %v591_v8, %v188_v29  ;;  %v194_v43 = vld [vmem:[%s585_s22 + $0x78] sm:$0xff]  ;;  %v195_v48 = vld [vmem:[%s585_s22 + $0x80] sm:$0xff] }
  0x16   : > { %397 = vst [vmem:[%s607_s25 + $0x10] sm:$0xff] %v333_v27  ;;  %v265_v42 = vmul.f32 %v587_v6, %v189_v30  ;;  %398 = vst [vmem:[%s607_s25 + $0x18] sm:$0xff] %v334_v32  ;;  %v338_v44 = vadd.f32 %v593_v9, %v262_v35  ;;  %v266_v45 = vmul.f32 %v591_v8, %v190_v31  ;;  %v196_v49 = vld [vmem:[%s585_s22 + $0x88] sm:$0xff]  ;;  %v197_v50 = vld [vmem:[%s585_s22 + $0x90] sm:$0xff] }
  0x17   : > { %399 = vst [vmem:[%s607_s25 + $0x20] sm:$0xff] %v335_v33  ;;  %400 = vst [vmem:[%s607_s25 + $0x28] sm:$0xff] %v336_v34  ;;  %v267_v46 = vmul.f32 %v587_v6, %v191_v36  ;;  %v268_v47 = vmul.f32 %v591_v8, %v192_v37  ;;  %v339_v51 = vadd.f32 %v589_v7, %v263_v40  ;;  %v198_v55 = vld [vmem:[%s585_s22 + $0x98] sm:$0xff]  ;;  %v199_v56 = vld [vmem:[%s585_s22 + $0xa0] sm:$0xff] }
  0x18   : > { %401 = vst [vmem:[%s607_s25 + $0x30] sm:$0xff] %v337_v39  ;;  %v340_v52 = vadd.f32 %v593_v9, %v264_v41  ;;  %v341_v53 = vadd.f32 %v589_v7, %v265_v42  ;;  %v269_v54 = vmul.f32 %v587_v6, %v193_v38  ;;  %v200_v57 = vld [vmem:[%s585_s22 + $0xa8] sm:$0xff]  ;;  %402 = vst [vmem:[%s607_s25 + $0x38] sm:$0xff] %v338_v44  ;;  %v201_v62 = vld [vmem:[%s585_s22 + $0xb0] sm:$0xff] }
  0x19   : > { %v342_v58 = vadd.f32 %v593_v9, %v266_v45  ;;  %v343_v59 = vadd.f32 %v589_v7, %v267_v46  ;;  %v344_v60 = vadd.f32 %v593_v9, %v268_v47  ;;  %v270_v61 = vmul.f32 %v591_v8, %v194_v43  ;;  %403 = vst [vmem:[%s607_s25 + $0x40] sm:$0xff] %v339_v51  ;;  %v202_v3 = vld [vmem:[%s585_s22 + $0xb8] sm:$0xff]  ;;  %v203_v12 = vld [vmem:[%s585_s22 + $0xc0] sm:$0xff]  ;;  %v204_v13 = vld [vmem:[%s585_s22 + $0xc8] sm:$0xff] }
  0x1a   : > { %404 = vst [vmem:[%s607_s25 + $0x48] sm:$0xff] %v340_v52  ;;  %405 = vst [vmem:[%s607_s25 + $0x50] sm:$0xff] %v341_v53  ;;  %v345_v63 = vadd.f32 %v589_v7, %v269_v54  ;;  %v271_v0 = vmul.f32 %v587_v6, %v195_v48  ;;  %v272_v1 = vmul.f32 %v591_v8, %v196_v49  ;;  %v205_v14 = vld [vmem:[%s585_s22 + $0xd0] sm:$0xff]  ;;  %v206_v19 = vld [vmem:[%s585_s22 + $0xd8] sm:$0xff] }
  0x1b   : > { %v273_v2 = vmul.f32 %v587_v6, %v197_v50  ;;  %406 = vst [vmem:[%s607_s25 + $0x58] sm:$0xff] %v342_v58  ;;  %407 = vst [vmem:[%s607_s25 + $0x60] sm:$0xff] %v343_v59  ;;  %v346_v4 = vadd.f32 %v593_v9, %v270_v61  ;;  %v274_v5 = vmul.f32 %v591_v8, %v198_v55  ;;  %v207_v20 = vld [vmem:[%s585_s22 + $0xe0] sm:$0xff]  ;;  %v208_v21 = vld [vmem:[%s585_s22 + $0xe8] sm:$0xff] }
  0x1c   : > { %408 = vst [vmem:[%s607_s25 + $0x68] sm:$0xff] %v344_v60  ;;  %v275_v10 = vmul.f32 %v587_v6, %v199_v56  ;;  %v276_v11 = vmul.f32 %v591_v8, %v200_v57  ;;  %409 = vst [vmem:[%s607_s25 + $0x70] sm:$0xff] %v345_v63  ;;  %v347_v15 = vadd.f32 %v589_v7, %v271_v0  ;;  %v209_v26 = vld [vmem:[%s585_s22 + $0xf0] sm:$0xff]  ;;  %v210_v31 = vld [vmem:[%s585_s22 + $0xf8] sm:$0xff] }
  0x1d   : > { %v348_v16 = vadd.f32 %v593_v9, %v272_v1  ;;  %v349_v17 = vadd.f32 %v589_v7, %v273_v2  ;;  %v277_v18 = vmul.f32 %v587_v6, %v201_v62  ;;  %410 = vst [vmem:[%s607_s25 + $0x78] sm:$0xff] %v346_v4  ;;  %v350_v22 = vadd.f32 %v593_v9, %v274_v5  ;;  %v211_v36 = vld [vmem:[%s585_s22 + $0x100] sm:$0xff]  ;;  %v212_v37 = vld [vmem:[%s585_s22 + $0x108] sm:$0xff]  ;;  %v213_v38 = vld [vmem:[%s585_s22 + $0x110] sm:$0xff] }
  0x1e   : > { %v351_v23 = vadd.f32 %v589_v7, %v275_v10  ;;  %v352_v24 = vadd.f32 %v593_v9, %v276_v11  ;;  %v278_v25 = vmul.f32 %v591_v8, %v202_v3  ;;  %411 = vst [vmem:[%s607_s25 + $0x80] sm:$0xff] %v347_v15  ;;  %v279_v28 = vmul.f32 %v587_v6, %v203_v12  ;;  %v214_v43 = vld [vmem:[%s585_s22 + $0x118] sm:$0xff]  ;;  %v215_v44 = vld [vmem:[%s585_s22 + $0x120] sm:$0xff]  ;;  %v216_v45 = vld [vmem:[%s585_s22 + $0x128] sm:$0xff] }
  0x1f   : > { %412 = vst [vmem:[%s607_s25 + $0x88] sm:$0xff] %v348_v16  ;;  %413 = vst [vmem:[%s607_s25 + $0x90] sm:$0xff] %v349_v17  ;;  %v353_v27 = vadd.f32 %v589_v7, %v277_v18  ;;  %v280_v29 = vmul.f32 %v591_v8, %v204_v13  ;;  %v281_v30 = vmul.f32 %v587_v6, %v205_v14  ;;  %v217_v50 = vld [vmem:[%s585_s22 + $0x130] sm:$0xff]  ;;  %v218_v55 = vld [vmem:[%s585_s22 + $0x138] sm:$0xff] }
  0x20   : > { %414 = vst [vmem:[%s607_s25 + $0x98] sm:$0xff] %v350_v22  ;;  %415 = vst [vmem:[%s607_s25 + $0xa0] sm:$0xff] %v351_v23  ;;  %v354_v32 = vadd.f32 %v593_v9, %v278_v25  ;;  %v282_v33 = vmul.f32 %v591_v8, %v206_v19  ;;  %v283_v34 = vmul.f32 %v587_v6, %v207_v20  ;;  %v219_v60 = vld [vmem:[%s585_s22 + $0x140] sm:$0xff]  ;;  %v220_v61 = vld [vmem:[%s585_s22 + $0x148] sm:$0xff] }
  0x21   : > { %416 = vst [vmem:[%s607_s25 + $0xa8] sm:$0xff] %v352_v24  ;;  %v284_v35 = vmul.f32 %v591_v8, %v208_v21  ;;  %417 = vst [vmem:[%s607_s25 + $0xb0] sm:$0xff] %v353_v27  ;;  %v355_v39 = vadd.f32 %v589_v7, %v279_v28  ;;  %v356_v40 = vadd.f32 %v593_v9, %v280_v29  ;;  %v221_v62 = vld [vmem:[%s585_s22 + $0x150] sm:$0xff]  ;;  %v222_v3 = vld [vmem:[%s585_s22 + $0x158] sm:$0xff] }
  0x22   : > { %v357_v41 = vadd.f32 %v589_v7, %v281_v30  ;;  %v285_v42 = vmul.f32 %v587_v6, %v209_v26  ;;  %418 = vst [vmem:[%s607_s25 + $0xb8] sm:$0xff] %v354_v32  ;;  %v358_v46 = vadd.f32 %v593_v9, %v282_v33  ;;  %v359_v47 = vadd.f32 %v589_v7, %v283_v34  ;;  %v223_v4 = vld [vmem:[%s585_s22 + $0x160] sm:$0xff]  ;;  %v224_v5 = vld [vmem:[%s585_s22 + $0x168] sm:$0xff]  ;;  %v225_v14 = vld [vmem:[%s585_s22 + $0x170] sm:$0xff] }
  0x23   : > { %v360_v48 = vadd.f32 %v593_v9, %v284_v35  ;;  %v286_v49 = vmul.f32 %v591_v8, %v210_v31  ;;  %419 = vst [vmem:[%s607_s25 + $0xc0] sm:$0xff] %v355_v39  ;;  %420 = vst [vmem:[%s607_s25 + $0xc8] sm:$0xff] %v356_v40  ;;  %v287_v52 = vmul.f32 %v587_v6, %v211_v36  ;;  %v226_v19 = vld [vmem:[%s585_s22 + $0x178] sm:$0xff]  ;;  %v227_v24 = vld [vmem:[%s585_s22 + $0x180] sm:$0xff] }
  0x24   : > { %421 = vst [vmem:[%s607_s25 + $0xd0] sm:$0xff] %v357_v41  ;;  %v361_v51 = vadd.f32 %v589_v7, %v285_v42  ;;  %v288_v53 = vmul.f32 %v591_v8, %v212_v37  ;;  %v289_v54 = vmul.f32 %v587_v6, %v213_v38  ;;  %422 = vst [vmem:[%s607_s25 + $0xd8] sm:$0xff] %v358_v46  ;;  %v228_v25 = vld [vmem:[%s585_s22 + $0x188] sm:$0xff]  ;;  %v229_v26 = vld [vmem:[%s585_s22 + $0x190] sm:$0xff] }
  0x25   : > { %423 = vst [vmem:[%s607_s25 + $0xe0] sm:$0xff] %v359_v47  ;;  %424 = vst [vmem:[%s607_s25 + $0xe8] sm:$0xff] %v360_v48  ;;  %v362_v56 = vadd.f32 %v593_v9, %v286_v49  ;;  %v290_v57 = vmul.f32 %v591_v8, %v214_v43  ;;  %v291_v58 = vmul.f32 %v587_v6, %v215_v44  ;;  %v230_v31 = vld [vmem:[%s585_s22 + $0x198] sm:$0xff]  ;;  %v231_v32 = vld [vmem:[%s585_s22 + $0x1a0] sm:$0xff] }
  0x26   : > { %v292_v59 = vmul.f32 %v591_v8, %v216_v45  ;;  %425 = vst [vmem:[%s607_s25 + $0xf0] sm:$0xff] %v361_v51  ;;  %v363_v63 = vadd.f32 %v589_v7, %v287_v52  ;;  %v364_v0 = vadd.f32 %v593_v9, %v288_v53  ;;  %v365_v1 = vadd.f32 %v589_v7, %v289_v54  ;;  %v232_v33 = vld [vmem:[%s585_s22 + $0x1a8] sm:$0xff]  ;;  %v233_v38 = vld [vmem:[%s585_s22 + $0x1b0] sm:$0xff]  ;;  %v234_v43 = vld [vmem:[%s585_s22 + $0x1b8] sm:$0xff] }
  0x27   : > { %v293_v2 = vmul.f32 %v587_v6, %v217_v50  ;;  %426 = vst [vmem:[%s607_s25 + $0xf8] sm:$0xff] %v362_v56  ;;  %v366_v10 = vadd.f32 %v593_v9, %v290_v57  ;;  %v367_v11 = vadd.f32 %v589_v7, %v291_v58  ;;  %v294_v13 = vmul.f32 %v591_v8, %v218_v55  ;;  %v235_v48 = vld [vmem:[%s585_s22 + $0x1c0] sm:$0xff]  ;;  %v236_v49 = vld [vmem:[%s585_s22 + $0x1c8] sm:$0xff]  ;;  %v237_v50 = vld [vmem:[%s585_s22 + $0x1d0] sm:$0xff] }
  0x28   : > { %v368_v12 = vadd.f32 %v593_v9, %v292_v59  ;;  %427 = vst [vmem:[%s607_s25 + $0x100] sm:$0xff] %v363_v63  ;;  %428 = vst [vmem:[%s607_s25 + $0x108] sm:$0xff] %v364_v0  ;;  %v295_v16 = vmul.f32 %v587_v6, %v219_v60  ;;  %v296_v17 = vmul.f32 %v591_v8, %v220_v61  ;;  %v238_v55 = vld [vmem:[%s585_s22 + $0x1d8] sm:$0xff]  ;;  %v239_v56 = vld [vmem:[%s585_s22 + $0x1e0] sm:$0xff] }
  0x29   : > { %429 = vst [vmem:[%s607_s25 + $0x110] sm:$0xff] %v365_v1  ;;  %v369_v15 = vadd.f32 %v589_v7, %v293_v2  ;;  %v297_v18 = vmul.f32 %v587_v6, %v221_v62  ;;  %430 = vst [vmem:[%s607_s25 + $0x118] sm:$0xff] %v366_v10  ;;  %v370_v20 = vadd.f32 %v593_v9, %v294_v13  ;;  %v240_v57 = vld [vmem:[%s585_s22 + $0x1e8] sm:$0xff]  ;;  %v241_v62 = vld [vmem:[%s585_s22 + $0x1f0] sm:$0xff] }
  0x2a   : > { %431 = vst [vmem:[%s607_s25 + $0x120] sm:$0xff] %v367_v11  ;;  %432 = vst [vmem:[%s607_s25 + $0x128] sm:$0xff] %v368_v12  ;;  %v298_v21 = vmul.f32 %v591_v8, %v222_v3  ;;  %v299_v22 = vmul.f32 %v587_v6, %v223_v4  ;;  %v300_v23 = vmul.f32 %v591_v8, %v224_v5  ;;  %v242_v3 = vld [vmem:[%s585_s22 + $0x1f8] sm:$0xff] }
  0x2b   : > { %433 = vst [vmem:[%s607_s25 + $0x130] sm:$0xff] %v369_v15  ;;  %v371_v27 = vadd.f32 %v589_v7, %v295_v16  ;;  %v372_v28 = vadd.f32 %v593_v9, %v296_v17  ;;  %v373_v29 = vadd.f32 %v589_v7, %v297_v18  ;;  %v301_v30 = vmul.f32 %v587_v6, %v225_v14 }
  0x2c   : > { %434 = vst [vmem:[%s607_s25 + $0x138] sm:$0xff] %v370_v20  ;;  %v374_v34 = vadd.f32 %v593_v9, %v298_v21  ;;  %v375_v35 = vadd.f32 %v589_v7, %v299_v22  ;;  %v376_v36 = vadd.f32 %v593_v9, %v300_v23  ;;  %v302_v37 = vmul.f32 %v591_v8, %v226_v19 }
  0x2d   : > { %435 = vst [vmem:[%s607_s25 + $0x140] sm:$0xff] %v371_v27  ;;  %436 = vst [vmem:[%s607_s25 + $0x148] sm:$0xff] %v372_v28  ;;  %v377_v39 = vadd.f32 %v589_v7, %v301_v30  ;;  %v303_v40 = vmul.f32 %v587_v6, %v227_v24  ;;  %v304_v41 = vmul.f32 %v591_v8, %v228_v25 }
  0x2e   : > { %437 = vst [vmem:[%s607_s25 + $0x150] sm:$0xff] %v373_v29  ;;  %v305_v42 = vmul.f32 %v587_v6, %v229_v26  ;;  %438 = vst [vmem:[%s607_s25 + $0x158] sm:$0xff] %v374_v34  ;;  %v378_v44 = vadd.f32 %v593_v9, %v302_v37  ;;  %v306_v45 = vmul.f32 %v591_v8, %v230_v31 }
  0x2f   : > { %439 = vst [vmem:[%s607_s25 + $0x160] sm:$0xff] %v375_v35  ;;  %440 = vst [vmem:[%s607_s25 + $0x168] sm:$0xff] %v376_v36  ;;  %v307_v46 = vmul.f32 %v587_v6, %v231_v32  ;;  %v308_v47 = vmul.f32 %v591_v8, %v232_v33  ;;  %v379_v51 = vadd.f32 %v589_v7, %v303_v40 }
  0x30   : > { %441 = vst [vmem:[%s607_s25 + $0x170] sm:$0xff] %v377_v39  ;;  %v380_v52 = vadd.f32 %v593_v9, %v304_v41  ;;  %v381_v53 = vadd.f32 %v589_v7, %v305_v42  ;;  %v309_v54 = vmul.f32 %v587_v6, %v233_v38  ;;  %442 = vst [vmem:[%s607_s25 + $0x178] sm:$0xff] %v378_v44 }
  0x31   : > { %v382_v58 = vadd.f32 %v593_v9, %v306_v45  ;;  %v383_v59 = vadd.f32 %v589_v7, %v307_v46  ;;  %v384_v60 = vadd.f32 %v593_v9, %v308_v47  ;;  %v310_v61 = vmul.f32 %v591_v8, %v234_v43  ;;  %443 = vst [vmem:[%s607_s25 + $0x180] sm:$0xff] %v379_v51 }
  0x32   : > { %444 = vst [vmem:[%s607_s25 + $0x188] sm:$0xff] %v380_v52  ;;  %445 = vst [vmem:[%s607_s25 + $0x190] sm:$0xff] %v381_v53  ;;  %v385_v63 = vadd.f32 %v589_v7, %v309_v54  ;;  %v311_v0 = vmul.f32 %v587_v6, %v235_v48  ;;  %v312_v1 = vmul.f32 %v591_v8, %v236_v49 }
  0x33   : > { %v313_v2 = vmul.f32 %v587_v6, %v237_v50  ;;  %446 = vst [vmem:[%s607_s25 + $0x198] sm:$0xff] %v382_v58  ;;  %447 = vst [vmem:[%s607_s25 + $0x1a0] sm:$0xff] %v383_v59  ;;  %v386_v4 = vadd.f32 %v593_v9, %v310_v61  ;;  %v314_v5 = vmul.f32 %v591_v8, %v238_v55 }
  0x34   : > { %448 = vst [vmem:[%s607_s25 + $0x1a8] sm:$0xff] %v384_v60  ;;  %v315_v10 = vmul.f32 %v587_v6, %v239_v56  ;;  %v316_v11 = vmul.f32 %v591_v8, %v240_v57  ;;  %449 = vst [vmem:[%s607_s25 + $0x1b0] sm:$0xff] %v385_v63  ;;  %v387_v12 = vadd.f32 %v589_v7, %v311_v0 }
  0x35   : > { %v388_v13 = vadd.f32 %v593_v9, %v312_v1  ;;  %v389_v14 = vadd.f32 %v589_v7, %v313_v2  ;;  %v317_v15 = vmul.f32 %v587_v6, %v241_v62  ;;  %450 = vst [vmem:[%s607_s25 + $0x1b8] sm:$0xff] %v386_v4  ;;  %v390_v16 = vadd.f32 %v593_v9, %v314_v5 }
  0x36   : > { %v391_v17 = vadd.f32 %v589_v7, %v315_v10  ;;  %v392_v18 = vadd.f32 %v593_v9, %v316_v11  ;;  %v318_v19 = vmul.f32 %v591_v8, %v242_v3  ;;  %451 = vst [vmem:[%s607_s25 + $0x1c0] sm:$0xff] %v387_v12 }
  0x37   : > { %452 = vst [vmem:[%s607_s25 + $0x1c8] sm:$0xff] %v388_v13  ;;  %453 = vst [vmem:[%s607_s25 + $0x1d0] sm:$0xff] %v389_v14  ;;  %v393_v20 = vadd.f32 %v589_v7, %v317_v15 }
  0x38   : > { %454 = vst [vmem:[%s607_s25 + $0x1d8] sm:$0xff] %v390_v16  ;;  %455 = vst [vmem:[%s607_s25 + $0x1e0] sm:$0xff] %v391_v17  ;;  %v394_v21 = vadd.f32 %v593_v9, %v318_v19 }
  0x39   : > { %456 = vst [vmem:[%s607_s25 + $0x1e8] sm:$0xff] %v392_v18  ;;  %457 = vst [vmem:[%s607_s25 + $0x1f0] sm:$0xff] %v393_v20 }
  0x3a   : > { %458 = vst [vmem:[%s607_s25 + $0x1f8] sm:$0xff] %v394_v21 }
  0x3b PF: > { %s13_s12 = sadd.s32 1, %s546_s12  }
  0x3c   : > { %p10_p4 = scmp.ge.s32.totalorder %s13_s12, 4  }
  0x3e   :  { %12 = sbr.rel (!%p10_p4) target bundleno = 1 (0x1), region = 62 }

// kernel: mlp_forward.2
= control target key start
LH: loop header
LB: loop body
LE: loop exit
PB: predicated region body
PF: predicated region fallthrough
CT: control target
= control target key end

     0   :  { %s17486_s21 = smov 0   ;;  %s22550_s0 = inlined_call_operand.vmem [shape: bf16[512,3072], index: 0, kind: input, shape index: {}]   ;;  %s22551_s1 = inlined_call_operand.vmem [shape: bf16[3072,512], index: 1, kind: input, shape index: {}]   ;;  %s22552_s2 = inlined_call_operand.vmem [shape: f32[1,512], index: 2, kind: input, shape index: {}]   ;;  %s22553_s3 = inlined_call_operand.vmem [shape: bf16[512,256], index: 3, kind: input, shape index: {}]   ;;  %s22554_s4 = inlined_call_operand.vmem [shape: f32[1,256], index: 4, kind: input, shape index: {}]   ;;  %s22555_s5 = inlined_call_operand.vmem [shape: f32[512,256], index: 5, kind: output, shape index: {0}]   ;;  %s22556_s6 = inlined_call_operand.vmem [shape: f32[2,8,256], index: 6, kind: output, shape index: {1}]  }
   0x1 LB: > { %s17492_s22 = sadd.s32 4294967295, %s17449_s21   ;;  %p13293_p0 = scmp.ge.s32.totalorder %s17449_s21, 1  ;;  %s17449_s21 = sphi %s17486_s21, %s17_s21  }
   0x2   : > { %p217_p1 = scmp.lt.s32.totalorder %s17449_s21, 3 }
   0x4   : > { %p218_p2 = pnand %p13293_p0, %p217_p1 }
   0x6   : > { %221 = sbr.rel (%p218_p2) target bundleno = 2192 (0x890), region = 40 }
   0xd   : > { %v16195_v0 = vld [vmem:[%s22551_s1 + $0x4] ss:$16 sps:$4 sm:$0xff]   ;;  %v16199_v2 = vld [vmem:[%s22551_s1] ss:$16 sps:$4 sm:$0xff]   ;;  %s13294_s13 = sshll.u32 %s17492_s22, 5  ;;  %s14517_s17 = sshll.u32 %s17492_s22, 8 }
   0xe   : > { %v16197_v1 = vld [vmem:[%s22551_s1 + $0x204] ss:$16 sps:$4 sm:$0xff]   ;;  %7207 = vmatprep.subr.bf16.mxu1 %v16195_v0  ;;  %v16200_v3 = vld [vmem:[%s22551_s1 + $0x200] ss:$16 sps:$4 sm:$0xff]   ;;  %p255_p3 = scmp.lt.s32.totalorder %s13294_s13, 63  ;;  %p268_p4 = scmp.lt.s32.totalorder %s17492_s22, 1 }
   0xf   : > { %7400 = vmatprep.subr.bf16.mxu0 %v16197_v1  ;;  %v16201_v4 = vld [vmem:[%s22551_s1 + $0x24] ss:$16 sps:$4 sm:$0xff]   ;;  %7208 = vmatpush1.bf16.msra.mxu1 %v16199_v2  ;;  %v16205_v6 = vld [vmem:[%s22551_s1 + $0x20] ss:$16 sps:$4 sm:$0xff]  }
  0x10   : > { %7401 = vmatpush1.bf16.msra.mxu0 %v16200_v3  ;;  %v16203_v5 = vld [vmem:[%s22551_s1 + $0x224] ss:$16 sps:$4 sm:$0xff]   ;;  %7209 = vmatprep.subr.bf16.mxu1 %v16201_v4  ;;  %v16206_v7 = vld [vmem:[%s22551_s1 + $0x220] ss:$16 sps:$4 sm:$0xff]   ;;  %s22902_s13 = smov (!%p255_p3, %s13294_s13), 63  ;;  %s22904_s22 = smov (!%p268_p4, %s17492_s22), 1 }
  0x11   : > { %7402 = vmatprep.subr.bf16.mxu0 %v16203_v5  ;;  %v16207_v8 = vld [vmem:[%s22551_s1 + $0x44] ss:$16 sps:$4 sm:$0xff]   ;;  %v16211_v10 = vld [vmem:[%s22551_s1 + $0x40] ss:$16 sps:$4 sm:$0xff]   ;;  %s16186_s12 = smul.u32 96, %s22902_s13  ;;  %s14520_s20 = sshll.u32 %s22902_s13, 4 }
  0x12   : > { %v16209_v9 = vld [vmem:[%s22551_s1 + $0x244] ss:$16 sps:$4 sm:$0xff]   ;;  %v16212_v11 = vld [vmem:[%s22551_s1 + $0x240] ss:$16 sps:$4 sm:$0xff]   ;;  %s22290_s25 = scalar_lea.vmem %s22555_s5, %s14520_s20  ;;  %s14521_s13 = sshll.u32 %s22904_s22, 4 }
  0x13   : > { %7210 = vmatpush1.bf16.msra.mxu1 %v16205_v6  ;;  %v16213_v12 = vld [vmem:[%s22551_s1 + $0x64] ss:$16 sps:$4 sm:$0xff]   ;;  %v16217_v14 = vld [vmem:[%s22551_s1 + $0x60] ss:$16 sps:$4 sm:$0xff]   ;;  %s17635_s28 = scalar_lea.vmem %s22550_s0, %s16186_s12  ;;  %v16293_v6 = vld [vmem:[%s22551_s1 + $0xc] ss:$16 sps:$4 sm:$0xff]   ;;  %s272_s29 = scalar_lea.vmem %s22556_s6, %s14521_s13 }
  0x14   : > { %7403 = vmatpush1.bf16.msra.mxu0 %v16206_v7  ;;  %7211 = vmatprep.subr.bf16.mxu1 %v16207_v8  ;;  %v16215_v13 = vld [vmem:[%s22551_s1 + $0x264] ss:$16 sps:$4 sm:$0xff]   ;;  %v16218_v15 = vld [vmem:[%s22551_s1 + $0x260] ss:$16 sps:$4 sm:$0xff]   ;;  %v274_v49 = vld [vmem:[%s17635_s28 + $0x8] sm:$0xff] }
  0x15   : > { %7404 = vmatprep.subr.bf16.mxu0 %v16209_v9  ;;  %v16219_v16 = vld [vmem:[%s22551_s1 + $0x84] ss:$16 sps:$4 sm:$0xff]   ;;  %v16223_v18 = vld [vmem:[%s22551_s1 + $0x80] ss:$16 sps:$4 sm:$0xff]   ;;  %v286_v50 = vld [vmem:[%s17635_s28 + $0x68] sm:$0xff] }
  0x16   : > { %v16221_v17 = vld [vmem:[%s22551_s1 + $0x284] ss:$16 sps:$4 sm:$0xff]   ;;  %v16224_v19 = vld [vmem:[%s22551_s1 + $0x280] ss:$16 sps:$4 sm:$0xff]   ;;  %v17661_v55 = vcombine.high %v274_v49, %v286_v50  ;;  %v298_v9 = vld [vmem:[%s17635_s28 + $0xc8] sm:$0xff] }
  0x17   : > { %7212 = vmatpush1.bf16.msra.mxu1 %v16211_v10  ;;  %v16225_v20 = vld [vmem:[%s22551_s1 + $0xa4] ss:$16 sps:$4 sm:$0xff]   ;;  %v16229_v22 = vld [vmem:[%s22551_s1 + $0xa0] ss:$16 sps:$4 sm:$0xff]   ;;  %v310_v10 = vld [vmem:[%s17635_s28 + $0x128] sm:$0xff] }
  0x18   : > { %7405 = vmatpush1.bf16.msra.mxu0 %v16212_v11  ;;  %7213 = vmatprep.subr.bf16.mxu1 %v16213_v12  ;;  %v16227_v21 = vld [vmem:[%s22551_s1 + $0x2a4] ss:$16 sps:$4 sm:$0xff]   ;;  %v16230_v23 = vld [vmem:[%s22551_s1 + $0x2a0] ss:$16 sps:$4 sm:$0xff]   ;;  %v17716_v12 = vcombine.low %v274_v49, %v286_v50 }
  0x19   : > { %7406 = vmatprep.subr.bf16.mxu0 %v16215_v13  ;;  %v16231_v24 = vld [vmem:[%s22551_s1 + $0xc4] ss:$16 sps:$4 sm:$0xff]   ;;  %v16235_v26 = vld [vmem:[%s22551_s1 + $0xc0] ss:$16 sps:$4 sm:$0xff]   ;;  %7432 = vmatprep.mubr.bf16.mxu0 %v17661_v55  ;;  %v16291_v13 = vld [vmem:[%s22551_s1 + $0x8] ss:$16 sps:$4 sm:$0xff]  }
  0x1a   : > { %v16233_v25 = vld [vmem:[%s22551_s1 + $0x2c4] ss:$16 sps:$4 sm:$0xff]   ;;  %v16236_v27 = vld [vmem:[%s22551_s1 + $0x2c0] ss:$16 sps:$4 sm:$0xff]  }
  0x1b   : > { %7214 = vmatpush1.bf16.msra.mxu1 %v16217_v14  ;;  %v16237_v28 = vld [vmem:[%s22551_s1 + $0xe4] ss:$16 sps:$4 sm:$0xff]   ;;  %v16241_v30 = vld [vmem:[%s22551_s1 + $0xe0] ss:$16 sps:$4 sm:$0xff]  }
  0x1c   : > { %7407 = vmatpush1.bf16.msra.mxu0 %v16218_v15  ;;  %7215 = vmatprep.subr.bf16.mxu1 %v16219_v16  ;;  %v16239_v29 = vld [vmem:[%s22551_s1 + $0x2e4] ss:$16 sps:$4 sm:$0xff]   ;;  %v16242_v31 = vld [vmem:[%s22551_s1 + $0x2e0] ss:$16 sps:$4 sm:$0xff]   ;;  %v17723_v15 = vcombine.high %v298_v9, %v310_v10  ;;  %v16296_v16 = vld [vmem:[%s22551_s1 + $0x2c] ss:$16 sps:$4 sm:$0xff]  }
  0x1d   : > { %7408 = vmatprep.subr.bf16.mxu0 %v16221_v17  ;;  %v16243_v32 = vld [vmem:[%s22551_s1 + $0x104] ss:$16 sps:$4 sm:$0xff]   ;;  %v16247_v34 = vld [vmem:[%s22551_s1 + $0x100] ss:$16 sps:$4 sm:$0xff]   ;;  %v16294_v17 = vld [vmem:[%s22551_s1 + $0x28] ss:$16 sps:$4 sm:$0xff]  }
  0x1e   : > { %v16245_v33 = vld [vmem:[%s22551_s1 + $0x304] ss:$16 sps:$4 sm:$0xff]   ;;  %v16248_v35 = vld [vmem:[%s22551_s1 + $0x300] ss:$16 sps:$4 sm:$0xff]  }
  0x1f   : > { %7216 = vmatpush1.bf16.msra.mxu1 %v16223_v18  ;;  %v16249_v36 = vld [vmem:[%s22551_s1 + $0x124] ss:$16 sps:$4 sm:$0xff]   ;;  %v16253_v38 = vld [vmem:[%s22551_s1 + $0x120] ss:$16 sps:$4 sm:$0xff]  }
  0x20   : > { %7409 = vmatpush1.bf16.msra.mxu0 %v16224_v19  ;;  %7217 = vmatprep.subr.bf16.mxu1 %v16225_v20  ;;  %v16251_v37 = vld [vmem:[%s22551_s1 + $0x324] ss:$16 sps:$4 sm:$0xff]   ;;  %v16254_v39 = vld [vmem:[%s22551_s1 + $0x320] ss:$16 sps:$4 sm:$0xff]  }
  0x21   : > { %7410 = vmatprep.subr.bf16.mxu0 %v16227_v21  ;;  %v16255_v40 = vld [vmem:[%s22551_s1 + $0x144] ss:$16 sps:$4 sm:$0xff]   ;;  %v16259_v42 = vld [vmem:[%s22551_s1 + $0x140] ss:$16 sps:$4 sm:$0xff]  }
  0x22   : > { %v16257_v41 = vld [vmem:[%s22551_s1 + $0x344] ss:$16 sps:$4 sm:$0xff]   ;;  %v16260_v43 = vld [vmem:[%s22551_s1 + $0x340] ss:$16 sps:$4 sm:$0xff]  }
  0x23   : > { %7218 = vmatpush1.bf16.msra.mxu1 %v16229_v22  ;;  %v16261_v44 = vld [vmem:[%s22551_s1 + $0x164] ss:$16 sps:$4 sm:$0xff]   ;;  %v16265_v46 = vld [vmem:[%s22551_s1 + $0x160] ss:$16 sps:$4 sm:$0xff]   ;;  %v322_v22 = vld [vmem:[%s17635_s28 + $0x188] sm:$0xff] }
  0x24   : > { %7411 = vmatpush1.bf16.msra.mxu0 %v16230_v23  ;;  %7219 = vmatprep.subr.bf16.mxu1 %v16231_v24  ;;  %v16263_v45 = vld [vmem:[%s22551_s1 + $0x364] ss:$16 sps:$4 sm:$0xff]   ;;  %v16266_v51 = vld [vmem:[%s22551_s1 + $0x360] ss:$16 sps:$4 sm:$0xff]   ;;  %v334_v23 = vld [vmem:[%s17635_s28 + $0x1e8] sm:$0xff] }
  0x25   : > { %7412 = vmatprep.subr.bf16.mxu0 %v16233_v25  ;;  %v273_v47 = vld [vmem:[%s17635_s28] sm:$0xff]  ;;  %v16299_v24 = vld [vmem:[%s22551_s1 + $0x4c] ss:$16 sps:$4 sm:$0xff]  }
  0x26   : > { %v285_v48 = vld [vmem:[%s17635_s28 + $0x60] sm:$0xff] }
  0x27   : > { %7220 = vmatpush1.bf16.msra.mxu1 %v16235_v26  ;;  %v17653_v52 = vcombine.high %v273_v47, %v285_v48  ;;  %v16267_v53 = vld [vmem:[%s22551_s1 + $0x184] ss:$16 sps:$4 sm:$0xff]   ;;  %v16271_v56 = vld [vmem:[%s22551_s1 + $0x180] ss:$16 sps:$4 sm:$0xff]   ;;  %v17714_v11 = vcombine.low %v273_v47, %v285_v48  ;;  %v16308_v48 = vld [vmem:[%s22551_s1 + $0xac] ss:$16 sps:$4 sm:$0xff]  }
  0x28   : > { %7413 = vmatpush1.bf16.msra.mxu0 %v16236_v27  ;;  %7221 = vmatprep.subr.bf16.mxu1 %v16237_v28  ;;  %v16269_v54 = vld [vmem:[%s22551_s1 + $0x384] ss:$16 sps:$4 sm:$0xff]   ;;  %v16272_v57 = vld [vmem:[%s22551_s1 + $0x380] ss:$16 sps:$4 sm:$0xff]   ;;  %v17753_v27 = vcombine.low %v298_v9, %v310_v10  ;;  %v16320_v10 = vld [vmem:[%s22551_s1 + $0x10c] ss:$16 sps:$4 sm:$0xff]  }
  0x29   : > { %7414 = vmatprep.subr.bf16.mxu0 %v16239_v29  ;;  %7239 = vmatprep.mubr.bf16.mxu1 %v17653_v52  ;;  %v16273_v58 = vld [vmem:[%s22551_s1 + $0x1a4] ss:$16 sps:$4 sm:$0xff]   ;;  %v16277_v60 = vld [vmem:[%s22551_s1 + $0x1a0] ss:$16 sps:$4 sm:$0xff]   ;;  %v17757_v29 = vcombine.high %v322_v22, %v334_v23 }
  0x2a   : > { %v16275_v59 = vld [vmem:[%s22551_s1 + $0x3a4] ss:$16 sps:$4 sm:$0xff]   ;;  %v16278_v61 = vld [vmem:[%s22551_s1 + $0x3a0] ss:$16 sps:$4 sm:$0xff]  }
  0x2b   : > { %7222 = vmatpush1.bf16.msra.mxu1 %v16241_v30  ;;  %v16279_v62 = vld [vmem:[%s22551_s1 + $0x1c4] ss:$16 sps:$4 sm:$0xff]   ;;  %v16283_v0 = vld [vmem:[%s22551_s1 + $0x1c0] ss:$16 sps:$4 sm:$0xff]   ;;  %v16297_v30 = vld [vmem:[%s22551_s1 + $0x48] ss:$16 sps:$4 sm:$0xff]  }
  0x2c   : > { %7415 = vmatpush1.bf16.msra.mxu0 %v16242_v31  ;;  %7223 = vmatprep.subr.bf16.mxu1 %v16243_v32  ;;  %v16281_v63 = vld [vmem:[%s22551_s1 + $0x3c4] ss:$16 sps:$4 sm:$0xff]   ;;  %v16284_v1 = vld [vmem:[%s22551_s1 + $0x3c0] ss:$16 sps:$4 sm:$0xff]   ;;  %v16302_v32 = vld [vmem:[%s22551_s1 + $0x6c] ss:$16 sps:$4 sm:$0xff]  }
  0x2d   : > { %7416 = vmatprep.subr.bf16.mxu0 %v16245_v33  ;;  %v16285_v2 = vld [vmem:[%s22551_s1 + $0x1e4] ss:$16 sps:$4 sm:$0xff]   ;;  %v16289_v4 = vld [vmem:[%s22551_s1 + $0x1e0] ss:$16 sps:$4 sm:$0xff]  }
  0x2e   : > { %v16287_v3 = vld [vmem:[%s22551_s1 + $0x3e4] ss:$16 sps:$4 sm:$0xff]   ;;  %v16290_v5 = vld [vmem:[%s22551_s1 + $0x3e0] ss:$16 sps:$4 sm:$0xff]  }
  0x2f   : > { %7224 = vmatpush1.bf16.msra.mxu1 %v16247_v34  ;;  %v297_v7 = vld [vmem:[%s17635_s28 + $0xc0] sm:$0xff] }
  0x30   : > { %7417 = vmatpush1.bf16.msra.mxu0 %v16248_v35  ;;  %7225 = vmatprep.subr.bf16.mxu1 %v16249_v36  ;;  %v309_v8 = vld [vmem:[%s17635_s28 + $0x120] sm:$0xff]  ;;  %v346_v36 = vld [vmem:[%s17635_s28 + $0x248] sm:$0xff] }
  0x31   : > { %7418 = vmatprep.subr.bf16.mxu0 %v16251_v37  ;;  %v17721_v14 = vcombine.high %v297_v7, %v309_v8  ;;  %v16317_v18 = vld [vmem:[%s22551_s1 + $0x404] ss:$16 sps:$4 sm:$0xff]   ;;  %v16315_v21 = vld [vmem:[%s22551_s1 + $0x400] ss:$16 sps:$4 sm:$0xff]   ;;  %v17751_v26 = vcombine.low %v297_v7, %v309_v8  ;;  %v358_v37 = vld [vmem:[%s17635_s28 + $0x2a8] sm:$0xff] }
  0x32   : > { %v321_v19 = vld [vmem:[%s17635_s28 + $0x180] sm:$0xff]  ;;  %v406_v7 = vld [vmem:[%s17635_s28 + $0x428] sm:$0xff] }
  0x33   : > { %7226 = vmatpush1.bf16.msra.mxu1 %v16253_v38  ;;  %v333_v20 = vld [vmem:[%s17635_s28 + $0x1e0] sm:$0xff]  ;;  %v16300_v38 = vld [vmem:[%s22551_s1 + $0x68] ss:$16 sps:$4 sm:$0xff]  }
  0x34   : > { %7419 = vmatpush1.bf16.msra.mxu0 %v16254_v39  ;;  %7227 = vmatprep.subr.bf16.mxu1 %v16255_v40  ;;  %v16323_v25 = vld [vmem:[%s22551_s1 + $0x424] ss:$16 sps:$4 sm:$0xff]   ;;  %v17755_v28 = vcombine.high %v321_v19, %v333_v20  ;;  %v16321_v31 = vld [vmem:[%s22551_s1 + $0x420] ss:$16 sps:$4 sm:$0xff]   ;;  %v16305_v40 = vld [vmem:[%s22551_s1 + $0x8c] ss:$16 sps:$4 sm:$0xff]  }
  0x35   : > { %7420 = vmatprep.subr.bf16.mxu0 %v16257_v41  ;;  %v16326_v33 = vld [vmem:[%s22551_s1 + $0x444] ss:$16 sps:$4 sm:$0xff]   ;;  %v16324_v39 = vld [vmem:[%s22551_s1 + $0x440] ss:$16 sps:$4 sm:$0xff]   ;;  %v16312_v8 = vld [vmem:[%s22551_s1 + $0xe8] ss:$16 sps:$4 sm:$0xff]  }
  0x36   : > { %v345_v34 = vld [vmem:[%s17635_s28 + $0x240] sm:$0xff] }
  0x37   : > { %7228 = vmatpush1.bf16.msra.mxu1 %v16259_v42  ;;  %v357_v35 = vld [vmem:[%s17635_s28 + $0x2a0] sm:$0xff]  ;;  %v17791_v42 = vcombine.low %v321_v19, %v333_v20  ;;  %v16318_v20 = vld [vmem:[%s22551_s1 + $0x108] ss:$16 sps:$4 sm:$0xff]  }
  0x38   : > { %7421 = vmatpush1.bf16.msra.mxu0 %v16260_v43  ;;  %7229 = vmatprep.subr.bf16.mxu1 %v16261_v44  ;;  %v16332_v41 = vld [vmem:[%s22551_s1 + $0x464] ss:$16 sps:$4 sm:$0xff]   ;;  %v17793_v43 = vcombine.low %v322_v22, %v334_v23  ;;  %v17795_v44 = vcombine.high %v345_v34, %v357_v35  ;;  %v16330_v47 = vld [vmem:[%s22551_s1 + $0x460] ss:$16 sps:$4 sm:$0xff]   ;;  %v16329_v22 = vld [vmem:[%s22551_s1 + $0x12c] ss:$16 sps:$4 sm:$0xff]  }
  0x39   : > { %7422 = vmatprep.subr.bf16.mxu0 %v16263_v45  ;;  %v17797_v45 = vcombine.high %v346_v36, %v358_v37  ;;  %v16335_v49 = vld [vmem:[%s22551_s1 + $0x484] ss:$16 sps:$4 sm:$0xff]   ;;  %v16342_v9 = vld [vmem:[%s22551_s1 + $0x4c0] ss:$16 sps:$4 sm:$0xff]  }
  0x3a   : > { %v369_v50 = vld [vmem:[%s17635_s28 + $0x300] sm:$0xff] }
  0x3b   : > { %7230 = vmatpush1.bf16.msra.mxu1 %v16265_v46  ;;  %v16303_v46 = vld [vmem:[%s22551_s1 + $0x88] ss:$16 sps:$4 sm:$0xff]   ;;  %v16353_v23 = vld [vmem:[%s22551_s1 + $0x504] ss:$16 sps:$4 sm:$0xff]  }
  0x3c   : > { %7423 = vmatpush1.bf16.msra.mxu0 %v16266_v51  ;;  %7231 = vmatprep.subr.bf16.mxu1 %v16267_v53  ;;  %v381_v51 = vld [vmem:[%s17635_s28 + $0x360] sm:$0xff]  ;;  %v370_v53 = vld [vmem:[%s17635_s28 + $0x308] sm:$0xff] }
  0x3d   : > { %7424 = vmatprep.subr.bf16.mxu0 %v16269_v54  ;;  %v382_v54 = vld [vmem:[%s17635_s28 + $0x368] sm:$0xff] }
  0x3f   : > { %7232 = vmatpush1.bf16.msra.mxu1 %v16271_v56  ;;  %v16306_v56 = vld [vmem:[%s22551_s1 + $0xa8] ss:$16 sps:$4 sm:$0xff]  }
  0x40   : > { %7425 = vmatpush1.bf16.msra.mxu0 %v16272_v57  ;;  %7233 = vmatprep.subr.bf16.mxu1 %v16273_v58  ;;  %v16333_v57 = vld [vmem:[%s22551_s1 + $0x480] ss:$16 sps:$4 sm:$0xff]   ;;  %v16311_v58 = vld [vmem:[%s22551_s1 + $0xcc] ss:$16 sps:$4 sm:$0xff]  }
  0x41   : > { %7426 = vmatprep.subr.bf16.mxu0 %v16275_v59  ;;  %v16341_v59 = vld [vmem:[%s22551_s1 + $0x4a4] ss:$16 sps:$4 sm:$0xff]  }
  0x43   : > { %7234 = vmatpush1.bf16.msra.mxu1 %v16277_v60  ;;  %v17831_v60 = vcombine.low %v345_v34, %v357_v35  ;;  %v16338_v34 = vld [vmem:[%s22551_s1 + $0x14c] ss:$16 sps:$4 sm:$0xff]   ;;  %v16359_v35 = vld [vmem:[%s22551_s1 + $0x524] ss:$16 sps:$4 sm:$0xff]  }
  0x44   : > { %7427 = vmatpush1.bf16.msra.mxu0 %v16278_v61  ;;  %7235 = vmatprep.subr.bf16.mxu1 %v16279_v62  ;;  %v17833_v61 = vcombine.low %v346_v36, %v358_v37  ;;  %v17835_v62 = vcombine.high %v369_v50, %v381_v51 }
  0x45   : > { %7428 = vmatprep.subr.bf16.mxu0 %v16281_v63  ;;  %v17837_v63 = vcombine.high %v370_v53, %v382_v54 }
  0x47   : > { %7236 = vmatpush1.bf16.msra.mxu1 %v16283_v0  ;;  %v16309_v0 = vld [vmem:[%s22551_s1 + $0xc8] ss:$16 sps:$4 sm:$0xff]  }
  0x48   : > { %7429 = vmatpush1.bf16.msra.mxu0 %v16284_v1  ;;  %7237 = vmatprep.subr.bf16.mxu1 %v16285_v2  ;;  %v16339_v1 = vld [vmem:[%s22551_s1 + $0x4a0] ss:$16 sps:$4 sm:$0xff]   ;;  %v16314_v2 = vld [vmem:[%s22551_s1 + $0xec] ss:$16 sps:$4 sm:$0xff]  }
  0x49   : > { %7430 = vmatprep.subr.bf16.mxu0 %v16287_v3  ;;  %v16344_v3 = vld [vmem:[%s22551_s1 + $0x4c4] ss:$16 sps:$4 sm:$0xff]  }
  0x4b   : > { %7238 = vmatpush1.bf16.msra.mxu1 %v16289_v4  ;;  %v393_v4 = vld [vmem:[%s17635_s28 + $0x3c0] sm:$0xff] }
  0x4c   : > { %7431 = vmatpush1.bf16.msra.mxu0 %v16290_v5  ;;  %9523 = vmatprep.subr.bf16.mxu1 %v16293_v6  ;;  %v405_v5 = vld [vmem:[%s17635_s28 + $0x420] sm:$0xff]  ;;  %v394_v6 = vld [vmem:[%s17635_s28 + $0x3c8] sm:$0xff] }
  0x4d   : > { %7593 = vmatprep.subr.bf16.mxu0 %v16317_v18  ;;  %v17875_v18 = vcombine.high %v393_v4, %v405_v5  ;;  %v17877_v19 = vcombine.high %v394_v6, %v406_v7  ;;  %v17911_v36 = vcombine.low %v393_v4, %v405_v5  ;;  %v17913_v37 = vcombine.low %v394_v6, %v406_v7  ;;  %v16365_v4 = vld [vmem:[%s22551_s1 + $0x1ac] ss:$16 sps:$4 sm:$0xff]   ;;  %v16371_v5 = vld [vmem:[%s22551_s1 + $0x584] ss:$16 sps:$4 sm:$0xff]  }
  0x4e   : > { %7240 = vmatmul.mubr.bf16.vlgmr.msra.gmra.mrb[0].mxu1 %v17714_v11  ;;  %v465_v6 = vld [vmem:[%s17635_s28 + $0x600] sm:$0xff] }
  0x4f   : > { %7433 = vmatmul.mubr.bf16.vlgmr.msra.gmra.mrb[0].mxu0 %v17716_v12  ;;  %9524 = vmatpush1.bf16.msra.mxu1 %v16291_v13  ;;  %v16350_v13 = vld [vmem:[%s22551_s1 + $0x4e4] ss:$16 sps:$4 sm:$0xff]  }
  0x50   : > { %7249 = vmatprep.mubr.bf16.mxu1 %v17721_v14  ;;  %7442 = vmatprep.mubr.bf16.mxu0 %v17723_v15  ;;  %v477_v7 = vld [vmem:[%s17635_s28 + $0x660] sm:$0xff] }
  0x51   : > { %9525 = vmatprep.subr.bf16.mxu1 %v16296_v16  ;;  %7594 = vmatpush1.bf16.msra.mxu0 %v16315_v21  ;;  %v17871_v16 = vcombine.low %v369_v50, %v381_v51  ;;  %v16348_v21 = vld [vmem:[%s22551_s1 + $0x4e0] ss:$16 sps:$4 sm:$0xff]   ;;  %v442_v50 = vld [vmem:[%s17635_s28 + $0x548] sm:$0xff] }
  0x52   : > { %7595 = vmatprep.subr.bf16.mxu0 %v16323_v25  ;;  %v429_v25 = vld [vmem:[%s17635_s28 + $0x4e0] sm:$0xff]  ;;  %v454_v51 = vld [vmem:[%s17635_s28 + $0x5a8] sm:$0xff] }
  0x53   : > { %9526 = vmatpush1.bf16.msra.mxu1 %v16294_v17  ;;  %v17873_v17 = vcombine.low %v370_v53, %v382_v54  ;;  %v16345_v53 = vld [vmem:[%s22551_s1 + $0x168] ss:$16 sps:$4 sm:$0xff]   ;;  %v16360_v54 = vld [vmem:[%s22551_s1 + $0x540] ss:$16 sps:$4 sm:$0xff]  }
  0x54   : > { %9527 = vmatprep.subr.bf16.mxu1 %v16299_v24  ;;  %v417_v24 = vld [vmem:[%s17635_s28 + $0x480] sm:$0xff] }
  0x55   : > { %7596 = vmatpush1.bf16.msra.mxu0 %v16321_v31  ;;  %v430_v31 = vld [vmem:[%s17635_s28 + $0x4e8] sm:$0xff] }
  0x56   : > { %7250 = vmatmul.mubr.bf16.gmra.mrb[4].mxu1 %v17751_v26  ;;  %7597 = vmatprep.subr.bf16.mxu0 %v16326_v33  ;;  %v16351_v33 = vld [vmem:[%s22551_s1 + $0x500] ss:$16 sps:$4 sm:$0xff]  }
  0x57   : > { %7443 = vmatmul.mubr.bf16.gmra.mrb[4].mxu0 %v17753_v27  ;;  %7259 = vmatprep.mubr.bf16.mxu1 %v17755_v28 }
  0x58   : > { %7452 = vmatprep.mubr.bf16.mxu0 %v17757_v29  ;;  %9528 = vmatpush1.bf16.msra.mxu1 %v16297_v30  ;;  %v418_v30 = vld [vmem:[%s17635_s28 + $0x488] sm:$0xff] }
  0x59   : > { %9529 = vmatprep.subr.bf16.mxu1 %v16302_v32  ;;  %7598 = vmatpush1.bf16.msra.mxu0 %v16324_v39  ;;  %v16327_v32 = vld [vmem:[%s22551_s1 + $0x128] ss:$16 sps:$4 sm:$0xff]   ;;  %v17917_v39 = vcombine.high %v418_v30, %v430_v31 }
  0x5a   : > { %7599 = vmatprep.subr.bf16.mxu0 %v16332_v41  ;;  %v16357_v41 = vld [vmem:[%s22551_s1 + $0x520] ss:$16 sps:$4 sm:$0xff]  }
  0x5c   : > { %9530 = vmatpush1.bf16.msra.mxu1 %v16300_v38  ;;  %v17915_v38 = vcombine.high %v417_v24, %v429_v25 }
  0x5d   : > { %9531 = vmatprep.subr.bf16.mxu1 %v16305_v40  ;;  %7600 = vmatpush1.bf16.msra.mxu0 %v16330_v47  ;;  %v16336_v40 = vld [vmem:[%s22551_s1 + $0x148] ss:$16 sps:$4 sm:$0xff]   ;;  %v16362_v47 = vld [vmem:[%s22551_s1 + $0x544] ss:$16 sps:$4 sm:$0xff]  }
  0x5e   : > { %7260 = vmatmul.mubr.bf16.gmra.mrb[8].mxu1 %v17791_v42  ;;  %7601 = vmatprep.subr.bf16.mxu0 %v16335_v49  ;;  %v453_v49 = vld [vmem:[%s17635_s28 + $0x5a0] sm:$0xff] }
  0x5f   : > { %7453 = vmatmul.mubr.bf16.gmra.mrb[8].mxu0 %v17793_v43  ;;  %7269 = vmatprep.mubr.bf16.mxu1 %v17795_v44 }
  0x60   : > { %7462 = vmatprep.mubr.bf16.mxu0 %v17797_v45  ;;  %9532 = vmatpush1.bf16.msra.mxu1 %v16303_v46  ;;  %v16347_v46 = vld [vmem:[%s22551_s1 + $0x16c] ss:$16 sps:$4 sm:$0xff]  }
  0x61   : > { %9533 = vmatprep.subr.bf16.mxu1 %v16308_v48  ;;  %7602 = vmatpush1.bf16.msra.mxu0 %v16333_v57  ;;  %v441_v48 = vld [vmem:[%s17635_s28 + $0x540] sm:$0xff] }
  0x62   : > { %7603 = vmatprep.subr.bf16.mxu0 %v16341_v59  ;;  %v16368_v57 = vld [vmem:[%s22551_s1 + $0x564] ss:$16 sps:$4 sm:$0xff]   ;;  %v17953_v59 = vcombine.low %v418_v30, %v430_v31  ;;  %v16372_v30 = vld [vmem:[%s22551_s1 + $0x1c8] ss:$16 sps:$4 sm:$0xff]   ;;  %v16375_v31 = vld [vmem:[%s22551_s1 + $0x5a0] ss:$16 sps:$4 sm:$0xff]  }
  0x64   : > { %9534 = vmatpush1.bf16.msra.mxu1 %v16306_v56  ;;  %v16356_v56 = vld [vmem:[%s22551_s1 + $0x18c] ss:$16 sps:$4 sm:$0xff]  }
  0x65   : > { %9535 = vmatprep.subr.bf16.mxu1 %v16311_v58  ;;  %7604 = vmatpush1.bf16.msra.mxu0 %v16339_v1  ;;  %v17951_v58 = vcombine.low %v417_v24, %v429_v25  ;;  %v17957_v1 = vcombine.high %v442_v50, %v454_v51  ;;  %v17995_v24 = vcombine.high %v465_v6, %v477_v7 }
  0x66   : > { %7270 = vmatmul.mubr.bf16.gmra.mrb[12].mxu1 %v17831_v60  ;;  %7605 = vmatprep.subr.bf16.mxu0 %v16344_v3  ;;  %v16366_v3 = vld [vmem:[%s22551_s1 + $0x560] ss:$16 sps:$4 sm:$0xff]  }
  0x67   : > { %7463 = vmatmul.mubr.bf16.gmra.mrb[12].mxu0 %v17833_v61  ;;  %7279 = vmatprep.mubr.bf16.mxu1 %v17835_v62 }
  0x68   : > { %7472 = vmatprep.mubr.bf16.mxu0 %v17837_v63  ;;  %9536 = vmatpush1.bf16.msra.mxu1 %v16309_v0  ;;  %v17955_v0 = vcombine.high %v441_v48, %v453_v49 }
  0x69   : > { %9537 = vmatprep.subr.bf16.mxu1 %v16314_v2  ;;  %7606 = vmatpush1.bf16.msra.mxu0 %v16342_v9  ;;  %v16354_v2 = vld [vmem:[%s22551_s1 + $0x188] ss:$16 sps:$4 sm:$0xff]  }
  0x6a   : > { %7607 = vmatprep.subr.bf16.mxu0 %v16350_v13  ;;  %v478_v9 = vld [vmem:[%s17635_s28 + $0x668] sm:$0xff]  ;;  %v16369_v13 = vld [vmem:[%s22551_s1 + $0x580] ss:$16 sps:$4 sm:$0xff]  }
  0x6c   : > { %9538 = vmatpush1.bf16.msra.mxu1 %v16312_v8  ;;  %v466_v8 = vld [vmem:[%s17635_s28 + $0x608] sm:$0xff] }
  0x6d   : > { %9539 = vmatprep.subr.bf16.mxu1 %v16320_v10  ;;  %7608 = vmatpush1.bf16.msra.mxu0 %v16348_v21  ;;  %v16363_v10 = vld [vmem:[%s22551_s1 + $0x1a8] ss:$16 sps:$4 sm:$0xff]   ;;  %v16377_v21 = vld [vmem:[%s22551_s1 + $0x5a4] ss:$16 sps:$4 sm:$0xff]   ;;  %v17997_v25 = vcombine.high %v466_v8, %v478_v9 }
  0x6e   : > { %7280 = vmatmul.mubr.bf16.gmra.mrb[16].mxu1 %v17871_v16  ;;  %7609 = vmatprep.subr.bf16.mxu0 %v16353_v23  ;;  %v17993_v23 = vcombine.low %v442_v50, %v454_v51  ;;  %v18031_v50 = vcombine.low %v465_v6, %v477_v7  ;;  %v18033_v51 = vcombine.low %v466_v8, %v478_v9 }
  0x6f   : > { %7473 = vmatmul.mubr.bf16.gmra.mrb[16].mxu0 %v17873_v17  ;;  %7289 = vmatprep.mubr.bf16.mxu1 %v17875_v18 }
  0x70   : > { %7482 = vmatprep.mubr.bf16.mxu0 %v17877_v19  ;;  %9540 = vmatpush1.bf16.msra.mxu1 %v16318_v20  ;;  %v16374_v20 = vld [vmem:[%s22551_s1 + $0x1cc] ss:$16 sps:$4 sm:$0xff]  }
  0x71   : > { %9541 = vmatprep.subr.bf16.mxu1 %v16329_v22  ;;  %7610 = vmatpush1.bf16.msra.mxu0 %v16351_v33  ;;  %v17991_v22 = vcombine.low %v441_v48, %v453_v49  ;;  %v16383_v33 = vld [vmem:[%s22551_s1 + $0x1ec] ss:$16 sps:$4 sm:$0xff]   ;;  %v16386_v48 = vld [vmem:[%s22551_s1 + $0x5e4] ss:$16 sps:$4 sm:$0xff]  }
  0x72   : > { %7611 = vmatprep.subr.bf16.mxu0 %v16359_v35  ;;  %v501_v35 = vld [vmem:[%s17635_s28 + $0x720] sm:$0xff]  ;;  %v16389_v49 = vld [vmem:[%s22551_s1 + $0x20c] ss:$16 sps:$4 sm:$0xff]  }
  0x74   : > { %9542 = vmatpush1.bf16.msra.mxu1 %v16327_v32  ;;  %v16380_v32 = vld [vmem:[%s22551_s1 + $0x5c4] ss:$16 sps:$4 sm:$0xff]  }
  0x75   : > { %9543 = vmatprep.subr.bf16.mxu1 %v16338_v34  ;;  %7612 = vmatpush1.bf16.msra.mxu0 %v16357_v41  ;;  %v489_v34 = vld [vmem:[%s17635_s28 + $0x6c0] sm:$0xff]  ;;  %v502_v41 = vld [vmem:[%s17635_s28 + $0x728] sm:$0xff] }
  0x76   : > { %7290 = vmatmul.mubr.bf16.gmra.mrb[20].mxu1 %v17911_v36  ;;  %7613 = vmatprep.subr.bf16.mxu0 %v16362_v47  ;;  %v16381_v47 = vld [vmem:[%s22551_s1 + $0x1e8] ss:$16 sps:$4 sm:$0xff]   ;;  %v18053_v6 = vcombine.low %v489_v34, %v501_v35 }
  0x77   : > { %7483 = vmatmul.mubr.bf16.gmra.mrb[20].mxu0 %v17913_v37  ;;  %7299 = vmatprep.mubr.bf16.mxu1 %v17915_v38 }
  0x78   : > { %7492 = vmatprep.mubr.bf16.mxu0 %v17917_v39  ;;  %9544 = vmatpush1.bf16.msra.mxu1 %v16336_v40  ;;  %v490_v40 = vld [vmem:[%s17635_s28 + $0x6c8] sm:$0xff] }
  0x79   : > { %9545 = vmatprep.subr.bf16.mxu1 %v16347_v46  ;;  %7614 = vmatpush1.bf16.msra.mxu0 %v16360_v54  ;;  %v16378_v46 = vld [vmem:[%s22551_s1 + $0x5c0] ss:$16 sps:$4 sm:$0xff]   ;;  %v18037_v54 = vcombine.high %v490_v40, %v502_v41  ;;  %v18055_v7 = vcombine.low %v490_v40, %v502_v41  ;;  %v562_v40 = vld [vmem:[%s17635_s28 + $0x908] sm:$0xff] }
  0x7a   : > { %7615 = vmatprep.subr.bf16.mxu0 %v16368_v57  ;;  %v16413_v57 = vld [vmem:[%s22551_s1 + $0x604] ss:$16 sps:$4 sm:$0xff]   ;;  %v574_v41 = vld [vmem:[%s17635_s28 + $0x968] sm:$0xff] }
  0x7c   : > { %9546 = vmatpush1.bf16.msra.mxu1 %v16345_v53  ;;  %v18035_v53 = vcombine.high %v489_v34, %v501_v35  ;;  %v561_v34 = vld [vmem:[%s17635_s28 + $0x900] sm:$0xff] }
  0x7d   : > { %9547 = vmatprep.subr.bf16.mxu1 %v16356_v56  ;;  %7616 = vmatpush1.bf16.msra.mxu0 %v16366_v3  ;;  %v16384_v56 = vld [vmem:[%s22551_s1 + $0x5e0] ss:$16 sps:$4 sm:$0xff]  }
  0x7e   : > { %7300 = vmatmul.mubr.bf16.gmra.mrb[24].mxu1 %v17951_v58  ;;  %7617 = vmatprep.subr.bf16.mxu0 %v16371_v5  ;;  %v525_v3 = vld [vmem:[%s17635_s28 + $0x7e0] sm:$0xff]  ;;  %v526_v5 = vld [vmem:[%s17635_s28 + $0x7e8] sm:$0xff] }
  0x7f   : > { %7493 = vmatmul.mubr.bf16.gmra.mrb[24].mxu0 %v17953_v59  ;;  %7309 = vmatprep.mubr.bf16.mxu1 %v17955_v0  ;;  %v573_v35 = vld [vmem:[%s17635_s28 + $0x960] sm:$0xff] }
  0x80   : > { %7502 = vmatprep.mubr.bf16.mxu0 %v17957_v1  ;;  %9548 = vmatpush1.bf16.msra.mxu1 %v16354_v2  ;;  %v513_v2 = vld [vmem:[%s17635_s28 + $0x780] sm:$0xff] }
  0x81   : > { %9549 = vmatprep.subr.bf16.mxu1 %v16365_v4  ;;  %7618 = vmatpush1.bf16.msra.mxu0 %v16369_v13  ;;  %v514_v4 = vld [vmem:[%s17635_s28 + $0x788] sm:$0xff]  ;;  %v18057_v8 = vcombine.high %v513_v2, %v525_v3  ;;  %v549_v13 = vld [vmem:[%s17635_s28 + $0x8a0] sm:$0xff] }
  0x82   : > { %7619 = vmatprep.subr.bf16.mxu0 %v16377_v21  ;;  %v18059_v9 = vcombine.high %v514_v4, %v526_v5  ;;  %v550_v21 = vld [vmem:[%s17635_s28 + $0x8a8] sm:$0xff] }
  0x84   : > { %9550 = vmatpush1.bf16.msra.mxu1 %v16363_v10  ;;  %22629 = vst [vmem:[#allocation2_spill] sm:$0xff] %v18059_v9  ;;  %v537_v10 = vld [vmem:[%s17635_s28 + $0x840] sm:$0xff] }
  0x85   : > { %9551 = vmatprep.subr.bf16.mxu1 %v16374_v20  ;;  %7620 = vmatpush1.bf16.msra.mxu0 %v16375_v31  ;;  %v538_v20 = vld [vmem:[%s17635_s28 + $0x848] sm:$0xff]  ;;  %v18071_v31 = vcombine.low %v514_v4, %v526_v5  ;;  %v18101_v4 = vcombine.low %v561_v34, %v573_v35  ;;  %v18103_v5 = vcombine.low %v562_v40, %v574_v41 }
  0x86   : > { %7310 = vmatmul.mubr.bf16.gmra.mrb[28].mxu1 %v17991_v22  ;;  %7621 = vmatprep.subr.bf16.mxu0 %v16380_v32  ;;  %v18073_v32 = vcombine.high %v537_v10, %v549_v13 }
  0x87   : > { %7503 = vmatmul.mubr.bf16.gmra.mrb[28].mxu0 %v17993_v23  ;;  %7319 = vmatprep.mubr.bf16.mxu1 %v17995_v24  ;;  %22630 = vst [vmem:[#allocation3_spill] sm:$0xff] %v18071_v31  ;;  %22634 = vst [vmem:[#allocation7_spill] sm:$0xff] %v18103_v5 }
  0x88   : > { %7512 = vmatprep.mubr.bf16.mxu0 %v17997_v25  ;;  %9552 = vmatpush1.bf16.msra.mxu1 %v16372_v30  ;;  %v18069_v30 = vcombine.low %v513_v2, %v525_v3  ;;  %v586_v2 = vld [vmem:[%s17635_s28 + $0x9c8] sm:$0xff] }
  0x89   : > { %9553 = vmatprep.subr.bf16.mxu1 %v16383_v33  ;;  %7622 = vmatpush1.bf16.msra.mxu0 %v16378_v46  ;;  %v18075_v33 = vcombine.high %v538_v20, %v550_v21  ;;  %v18085_v46 = vcombine.low %v537_v10, %v549_v13  ;;  %v598_v3 = vld [vmem:[%s17635_s28 + $0xa28] sm:$0xff] }
  0x8a   : > { %7623 = vmatprep.subr.bf16.mxu0 %v16386_v48  ;;  %v18089_v48 = vcombine.high %v561_v34, %v573_v35  ;;  %v18107_v13 = vcombine.high %v586_v2, %v598_v3  ;;  %v622_v34 = vld [vmem:[%s17635_s28 + $0xae8] sm:$0xff] }
  0x8b   : > { %22631 = vst [vmem:[#allocation4_spill] sm:$0xff] %v18075_v33 }
  0x8c   : > { %9554 = vmatpush1.bf16.msra.mxu1 %v16381_v47  ;;  %v18087_v47 = vcombine.low %v538_v20, %v550_v21  ;;  %22635 = vst [vmem:[#allocation8_spill] sm:$0xff] %v18107_v13  ;;  %v609_v20 = vld [vmem:[%s17635_s28 + $0xa80] sm:$0xff] }
  0x8d   : > { %9716 = vmatprep.subr.bf16.mxu1 %v16389_v49  ;;  %7624 = vmatpush1.bf16.msra.mxu0 %v16384_v56  ;;  %v18091_v49 = vcombine.high %v562_v40, %v574_v41  ;;  %v585_v56 = vld [vmem:[%s17635_s28 + $0x9c0] sm:$0xff]  ;;  %v18119_v40 = vcombine.low %v586_v2, %v598_v3 }
  0x8e   : > { %7320 = vmatmul.mubr.bf16.gmra.mrb[32].mxu1 %v18031_v50  ;;  %7786 = vmatprep.subr.bf16.mxu0 %v16413_v57  ;;  %22632 = vst [vmem:[#allocation5_spill] sm:$0xff] %v18087_v47  ;;  %v597_v57 = vld [vmem:[%s17635_s28 + $0xa20] sm:$0xff] }
  0x8f   : > { %7513 = vmatmul.mubr.bf16.gmra.mrb[32].mxu0 %v18033_v51  ;;  %7329 = vmatprep.mubr.bf16.mxu1 %v18035_v53  ;;  %22633 = vst [vmem:[#allocation6_spill] sm:$0xff] %v18091_v49  ;;  %v18105_v10 = vcombine.high %v585_v56, %v597_v57  ;;  %v621_v21 = vld [vmem:[%s17635_s28 + $0xae0] sm:$0xff]  ;;  %v18117_v35 = vcombine.low %v585_v56, %v597_v57  ;;  %22636 = vst [vmem:[#allocation9_spill] sm:$0xff] %v18119_v40  ;;  %v646_v56 = vld [vmem:[%s17635_s28 + $0xba8] sm:$0xff] }
  0x90   : > { %7522 = vmatprep.mubr.bf16.mxu0 %v18037_v54  ;;  %v18121_v41 = vcombine.high %v609_v20, %v621_v21  ;;  %v18133_v57 = vcombine.low %v609_v20, %v621_v21  ;;  %v299_v21 = vld [vmem:[%s17635_s28 + $0xd0] sm:$0xff] }
  0x96   : > { %7330 = vmatmul.mubr.bf16.gmra.mrb[36].mxu1 %v18053_v6 }
  0x97   : > { %7523 = vmatmul.mubr.bf16.gmra.mrb[36].mxu0 %v18055_v7  ;;  %7339 = vmatprep.mubr.bf16.mxu1 %v18057_v8 }
  0x98   : > { %7532 = vmatprep.mubr.bf16.mxu0 %v18059_v9 }
  0x9e   : > { %7340 = vmatmul.mubr.bf16.gmra.mrb[40].mxu1 %v18069_v30 }
  0x9f   : > { %7533 = vmatmul.mubr.bf16.gmra.mrb[40].mxu0 %v18071_v31  ;;  %7349 = vmatprep.mubr.bf16.mxu1 %v18073_v32  ;;  %v634_v31 = vld [vmem:[%s17635_s28 + $0xb48] sm:$0xff] }
  0xa0   : > { %7542 = vmatprep.mubr.bf16.mxu0 %v18075_v33  ;;  %v645_v33 = vld [vmem:[%s17635_s28 + $0xba0] sm:$0xff]  ;;  %v18149_v20 = vcombine.low %v634_v31, %v646_v56 }
  0xa2   : > { %22640 = vst [vmem:[#allocation13_spill] sm:$0xff] %v18149_v20 }
  0xa6   : > { %7350 = vmatmul.mubr.bf16.gmra.mrb[44].mxu1 %v18085_v46 }
  0xa7   : > { %7543 = vmatmul.mubr.bf16.gmra.mrb[44].mxu0 %v18087_v47  ;;  %7359 = vmatprep.mubr.bf16.mxu1 %v18089_v48 }
  0xa8   : > { %7552 = vmatprep.mubr.bf16.mxu0 %v18091_v49  ;;  %v610_v49 = vld [vmem:[%s17635_s28 + $0xa88] sm:$0xff] }
  0xa9   : > { %v18123_v47 = vcombine.high %v610_v49, %v622_v34  ;;  %v18135_v2 = vcombine.low %v610_v49, %v622_v34  ;;  %v311_v34 = vld [vmem:[%s17635_s28 + $0x130] sm:$0xff] }
  0xab   : > { %22637 = vst [vmem:[#allocation10_spill] sm:$0xff] %v18123_v47  ;;  %22638 = vst [vmem:[#allocation11_spill] sm:$0xff] %v18135_v2 }
  0xae   : > { %7360 = vmatmul.mubr.bf16.gmra.mrb[48].mxu1 %v18101_v4 }
  0xaf   : > { %7553 = vmatmul.mubr.bf16.gmra.mrb[48].mxu0 %v18103_v5  ;;  %7369 = vmatprep.mubr.bf16.mxu1 %v18105_v10  ;;  %v633_v5 = vld [vmem:[%s17635_s28 + $0xb40] sm:$0xff] }
  0xb0   : > { %7562 = vmatprep.mubr.bf16.mxu0 %v18107_v13  ;;  %v18137_v3 = vcombine.high %v633_v5, %v645_v33  ;;  %v18139_v13 = vcombine.high %v634_v31, %v646_v56  ;;  %v18147_v9 = vcombine.low %v633_v5, %v645_v33  ;;  %v16387_v31 = vld [vmem:[%s22551_s1 + $0x208] ss:$16 sps:$4 sm:$0xff]   ;;  %v16392_v33 = vld [vmem:[%s22551_s1 + $0x22c] ss:$16 sps:$4 sm:$0xff]   ;;  %v18167_v5 = vcombine.high %v299_v21, %v311_v34  ;;  %v16411_v56 = vld [vmem:[%s22551_s1 + $0x600] ss:$16 sps:$4 sm:$0xff]  }
  0xb2   : > { %22639 = vst [vmem:[#allocation12_spill] sm:$0xff] %v18139_v13  ;;  %22643 = vst [vmem:[#allocation16_spill] sm:$0xff] %v18167_v5 }
  0xb6   : > { %7370 = vmatmul.mubr.bf16.gmra.mrb[52].mxu1 %v18117_v35 }
  0xb7   : > { %7563 = vmatmul.mubr.bf16.gmra.mrb[52].mxu0 %v18119_v40  ;;  %7379 = vmatprep.mubr.bf16.mxu1 %v18121_v41  ;;  %v275_v40 = vld [vmem:[%s17635_s28 + $0x10] sm:$0xff] }
  0xb8   : > { %7572 = vmatprep.mubr.bf16.mxu0 %v18123_v47  ;;  %v287_v47 = vld [vmem:[%s17635_s28 + $0x70] sm:$0xff] }
  0xb9   : > { %v18151_v49 = vcombine.high %v275_v40, %v287_v47 }
  0xbb   : > { %22641 = vst [vmem:[#allocation14_spill] sm:$0xff] %v18151_v49 }
  0xbe   : > { %7380 = vmatmul.mubr.bf16.gmra.mrb[56].mxu1 %v18133_v57 }
  0xbf   : > { %7573 = vmatmul.mubr.bf16.gmra.mrb[56].mxu0 %v18135_v2  ;;  %7389 = vmatprep.mubr.bf16.mxu1 %v18137_v3  ;;  %v16417_v2 = vld [vmem:[%s22551_s1 + $0x620] ss:$16 sps:$4 sm:$0xff]  }
  0xc0   : > { %7582 = vmatprep.mubr.bf16.mxu0 %v18139_v13  ;;  %v18159_v13 = vcombine.low %v275_v40, %v287_v47  ;;  %v323_v47 = vld [vmem:[%s17635_s28 + $0x190] sm:$0xff] }
  0xc1   : > { %v335_v40 = vld [vmem:[%s17635_s28 + $0x1f0] sm:$0xff] }
  0xc2   : > { %22642 = vst [vmem:[#allocation15_spill] sm:$0xff] %v18159_v13 }
  0xc6   : > { %7390 = vmatmul.mubr.bf16.gmra.mrb[60].mxu1 %v18147_v9 }
  0xc7   : > { %7583 = vmatmul.mubr.bf16.gmra.mrb[60].mxu0 %v18149_v20  ;;  %9555 = vmatprep.mubr.bf16.mxu1 %v17653_v52  ;;  %v16390_v52 = vld [vmem:[%s22551_s1 + $0x228] ss:$16 sps:$4 sm:$0xff]   ;;  %v16419_v20 = vld [vmem:[%s22551_s1 + $0x624] ss:$16 sps:$4 sm:$0xff]  }
  0xc8   : > { %7625 = vmatprep.mubr.bf16.mxu0 %v18151_v49  ;;  %v16395_v49 = vld [vmem:[%s22551_s1 + $0x24c] ss:$16 sps:$4 sm:$0xff]  }
  0xce   : > { %9556 = vmatmul.mubr.bf16.vlgmr.msra.gmra.mrb[64].mxu1 %v17714_v11  ;;  %v18190_v11 = vcombine.low %v299_v21, %v311_v34  ;;  %v16420_v21 = vld [vmem:[%s22551_s1 + $0x640] ss:$16 sps:$4 sm:$0xff]  }
  0xcf   : > { %7626 = vmatmul.mubr.bf16.vlgmr.msra.gmra.mrb[0].mxu0 %v18159_v13  ;;  %9717 = vmatpush1.bf16.msra.mxu1 %v16387_v31  ;;  %v16393_v13 = vld [vmem:[%s22551_s1 + $0x248] ss:$16 sps:$4 sm:$0xff]   ;;  %v16422_v31 = vld [vmem:[%s22551_s1 + $0x644] ss:$16 sps:$4 sm:$0xff]  }
  0xd0   : > { %7635 = vmatprep.mubr.bf16.mxu0 %v18167_v5  ;;  %9565 = vmatprep.mubr.bf16.mxu1 %v17721_v14  ;;  %v18198_v5 = vcombine.high %v323_v47, %v335_v40  ;;  %v16398_v14 = vld [vmem:[%s22551_s1 + $0x26c] ss:$16 sps:$4 sm:$0xff]   ;;  %v359_v34 = vld [vmem:[%s17635_s28 + $0x2b0] sm:$0xff] }
  0xd1   : > { %9718 = vmatprep.subr.bf16.mxu1 %v16392_v33  ;;  %7787 = vmatpush1.bf16.msra.mxu0 %v16411_v56  ;;  %v16396_v33 = vld [vmem:[%s22551_s1 + $0x268] ss:$16 sps:$4 sm:$0xff]   ;;  %v16428_v56 = vld [vmem:[%s22551_s1 + $0x664] ss:$16 sps:$4 sm:$0xff]  }
  0xd2   : > { %7788 = vmatprep.subr.bf16.mxu0 %v16419_v20  ;;  %22644 = vst [vmem:[#allocation17_spill] sm:$0xff] %v18198_v5  ;;  %v347_v20 = vld [vmem:[%s17635_s28 + $0x250] sm:$0xff] }
  0xd3   : > { %9719 = vmatpush1.bf16.msra.mxu1 %v16390_v52  ;;  %v16431_v52 = vld [vmem:[%s22551_s1 + $0x684] ss:$16 sps:$4 sm:$0xff]  }
  0xd4   : > { %9720 = vmatprep.subr.bf16.mxu1 %v16395_v49  ;;  %v18224_v49 = vcombine.low %v323_v47, %v335_v40  ;;  %v16429_v47 = vld [vmem:[%s22551_s1 + $0x680] ss:$16 sps:$4 sm:$0xff]  }
  0xd5   : > { %7789 = vmatpush1.bf16.msra.mxu0 %v16417_v2  ;;  %v16401_v2 = vld [vmem:[%s22551_s1 + $0x28c] ss:$16 sps:$4 sm:$0xff]   ;;  %v371_v40 = vld [vmem:[%s17635_s28 + $0x310] sm:$0xff] }
  0xd6   : > { %9566 = vmatmul.mubr.bf16.gmra.mrb[68].mxu1 %v17751_v26  ;;  %v16426_v26 = vld [vmem:[%s22551_s1 + $0x660] ss:$16 sps:$4 sm:$0xff]   ;;  %7790 = vmatprep.subr.bf16.mxu0 %v16422_v31 }
  0xd7   : > { %7636 = vmatmul.mubr.bf16.gmra.mrb[4].mxu0 %v18190_v11  ;;  %9575 = vmatprep.mubr.bf16.mxu1 %v17755_v28  ;;  %v16399_v28 = vld [vmem:[%s22551_s1 + $0x288] ss:$16 sps:$4 sm:$0xff]   ;;  %v383_v31 = vld [vmem:[%s17635_s28 + $0x370] sm:$0xff] }
  0xd8   : > { %7645 = vmatprep.mubr.bf16.mxu0 %v18198_v5  ;;  %9721 = vmatpush1.bf16.msra.mxu1 %v16393_v13  ;;  %v18232_v5 = vcombine.high %v347_v20, %v359_v34  ;;  %v16404_v13 = vld [vmem:[%s22551_s1 + $0x2ac] ss:$16 sps:$4 sm:$0xff]  }
  0xd9   : > { %9722 = vmatprep.subr.bf16.mxu1 %v16398_v14  ;;  %7791 = vmatpush1.bf16.msra.mxu0 %v16420_v21  ;;  %v16402_v14 = vld [vmem:[%s22551_s1 + $0x2a8] ss:$16 sps:$4 sm:$0xff]   ;;  %v16437_v21 = vld [vmem:[%s22551_s1 + $0x6a4] ss:$16 sps:$4 sm:$0xff]  }
  0xda   : > { %7792 = vmatprep.subr.bf16.mxu0 %v16428_v56  ;;  %v18258_v56 = vcombine.low %v347_v20, %v359_v34  ;;  %v16438_v20 = vld [vmem:[%s22551_s1 + $0x6c0] ss:$16 sps:$4 sm:$0xff]  }
  0xdb   : > { %v395_v34 = vld [vmem:[%s17635_s28 + $0x3d0] sm:$0xff] }
  0xdc   : > { %9723 = vmatpush1.bf16.msra.mxu1 %v16396_v33  ;;  %v16407_v33 = vld [vmem:[%s22551_s1 + $0x2cc] ss:$16 sps:$4 sm:$0xff]  }
  0xdd   : > { %9724 = vmatprep.subr.bf16.mxu1 %v16401_v2  ;;  %7793 = vmatpush1.bf16.msra.mxu0 %v16426_v26  ;;  %v16440_v2 = vld [vmem:[%s22551_s1 + $0x6c4] ss:$16 sps:$4 sm:$0xff]   ;;  %v18266_v26 = vcombine.high %v371_v40, %v383_v31 }
  0xde   : > { %9576 = vmatmul.mubr.bf16.gmra.mrb[72].mxu1 %v17791_v42  ;;  %v16435_v42 = vld [vmem:[%s22551_s1 + $0x6a0] ss:$16 sps:$4 sm:$0xff]   ;;  %7794 = vmatprep.subr.bf16.mxu0 %v16431_v52 }
  0xdf   : > { %7646 = vmatmul.mubr.bf16.gmra.mrb[8].mxu0 %v18224_v49  ;;  %9585 = vmatprep.mubr.bf16.mxu1 %v17795_v44  ;;  %v16405_v44 = vld [vmem:[%s22551_s1 + $0x2c8] ss:$16 sps:$4 sm:$0xff]   ;;  %v407_v52 = vld [vmem:[%s17635_s28 + $0x430] sm:$0xff] }
  0xe0   : > { %7655 = vmatprep.mubr.bf16.mxu0 %v18232_v5  ;;  %9725 = vmatpush1.bf16.msra.mxu1 %v16399_v28  ;;  %v16410_v28 = vld [vmem:[%s22551_s1 + $0x2ec] ss:$16 sps:$4 sm:$0xff]  }
  0xe1   : > { %9726 = vmatprep.subr.bf16.mxu1 %v16404_v13  ;;  %7795 = vmatpush1.bf16.msra.mxu0 %v16429_v47  ;;  %v16408_v13 = vld [vmem:[%s22551_s1 + $0x2e8] ss:$16 sps:$4 sm:$0xff]   ;;  %v16446_v47 = vld [vmem:[%s22551_s1 + $0x6e4] ss:$16 sps:$4 sm:$0xff]  }
  0xe2   : > { %7796 = vmatprep.subr.bf16.mxu0 %v16437_v21  ;;  %v18292_v21 = vcombine.low %v371_v40, %v383_v31  ;;  %v16447_v40 = vld [vmem:[%s22551_s1 + $0x700] ss:$16 sps:$4 sm:$0xff]  }
  0xe3   : > { %v419_v31 = vld [vmem:[%s17635_s28 + $0x490] sm:$0xff] }
  0xe4   : > { %9727 = vmatpush1.bf16.msra.mxu1 %v16402_v14  ;;  %v16416_v14 = vld [vmem:[%s22551_s1 + $0x30c] ss:$16 sps:$4 sm:$0xff]  }
  0xe5   : > { %9728 = vmatprep.subr.bf16.mxu1 %v16407_v33  ;;  %7797 = vmatpush1.bf16.msra.mxu0 %v16435_v42  ;;  %v16449_v33 = vld [vmem:[%s22551_s1 + $0x704] ss:$16 sps:$4 sm:$0xff]   ;;  %v18300_v42 = vcombine.high %v395_v34, %v407_v52 }
  0xe6   : > { %9586 = vmatmul.mubr.bf16.gmra.mrb[76].mxu1 %v17831_v60  ;;  %v16444_v60 = vld [vmem:[%s22551_s1 + $0x6e0] ss:$16 sps:$4 sm:$0xff]   ;;  %7798 = vmatprep.subr.bf16.mxu0 %v16440_v2 }
  0xe7   : > { %7656 = vmatmul.mubr.bf16.gmra.mrb[12].mxu0 %v18258_v56  ;;  %9595 = vmatprep.mubr.bf16.mxu1 %v17835_v62  ;;  %v16414_v62 = vld [vmem:[%s22551_s1 + $0x308] ss:$16 sps:$4 sm:$0xff]   ;;  %v431_v2 = vld [vmem:[%s17635_s28 + $0x4f0] sm:$0xff] }
  0xe8   : > { %7665 = vmatprep.mubr.bf16.mxu0 %v18266_v26  ;;  %9729 = vmatpush1.bf16.msra.mxu1 %v16405_v44  ;;  %v16425_v44 = vld [vmem:[%s22551_s1 + $0x32c] ss:$16 sps:$4 sm:$0xff]  }
  0xe9   : > { %9730 = vmatprep.subr.bf16.mxu1 %v16410_v28  ;;  %7799 = vmatpush1.bf16.msra.mxu0 %v16438_v20  ;;  %v16423_v28 = vld [vmem:[%s22551_s1 + $0x328] ss:$16 sps:$4 sm:$0xff]   ;;  %v16455_v20 = vld [vmem:[%s22551_s1 + $0x724] ss:$16 sps:$4 sm:$0xff]  }
  0xea   : > { %7800 = vmatprep.subr.bf16.mxu0 %v16446_v47  ;;  %v18326_v47 = vcombine.low %v395_v34, %v407_v52  ;;  %v16456_v34 = vld [vmem:[%s22551_s1 + $0x740] ss:$16 sps:$4 sm:$0xff]  }
  0xeb   : > { %v443_v52 = vld [vmem:[%s17635_s28 + $0x550] sm:$0xff] }
  0xec   : > { %9731 = vmatpush1.bf16.msra.mxu1 %v16408_v13  ;;  %v16434_v13 = vld [vmem:[%s22551_s1 + $0x34c] ss:$16 sps:$4 sm:$0xff]  }
  0xed   : > { %9732 = vmatprep.subr.bf16.mxu1 %v16416_v14  ;;  %7801 = vmatpush1.bf16.msra.mxu0 %v16444_v60  ;;  %v16458_v14 = vld [vmem:[%s22551_s1 + $0x744] ss:$16 sps:$4 sm:$0xff]   ;;  %v18334_v60 = vcombine.high %v419_v31, %v431_v2 }
  0xee   : > { %9596 = vmatmul.mubr.bf16.gmra.mrb[80].mxu1 %v17871_v16  ;;  %v16453_v16 = vld [vmem:[%s22551_s1 + $0x720] ss:$16 sps:$4 sm:$0xff]   ;;  %7802 = vmatprep.subr.bf16.mxu0 %v16449_v33 }
  0xef   : > { %7666 = vmatmul.mubr.bf16.gmra.mrb[16].mxu0 %v18292_v21  ;;  %9605 = vmatprep.mubr.bf16.mxu1 %v17875_v18  ;;  %v16432_v18 = vld [vmem:[%s22551_s1 + $0x348] ss:$16 sps:$4 sm:$0xff]   ;;  %v455_v33 = vld [vmem:[%s17635_s28 + $0x5b0] sm:$0xff] }
  0xf0   : > { %7675 = vmatprep.mubr.bf16.mxu0 %v18300_v42  ;;  %9733 = vmatpush1.bf16.msra.mxu1 %v16414_v62  ;;  %v16443_v62 = vld [vmem:[%s22551_s1 + $0x36c] ss:$16 sps:$4 sm:$0xff]  }
  0xf1   : > { %9734 = vmatprep.subr.bf16.mxu1 %v16425_v44  ;;  %7803 = vmatpush1.bf16.msra.mxu0 %v16447_v40  ;;  %v16441_v44 = vld [vmem:[%s22551_s1 + $0x368] ss:$16 sps:$4 sm:$0xff]   ;;  %v16464_v40 = vld [vmem:[%s22551_s1 + $0x764] ss:$16 sps:$4 sm:$0xff]  }
  0xf2   : > { %7804 = vmatprep.subr.bf16.mxu0 %v16455_v20  ;;  %v18360_v20 = vcombine.low %v419_v31, %v431_v2  ;;  %v16465_v31 = vld [vmem:[%s22551_s1 + $0x780] ss:$16 sps:$4 sm:$0xff]  }
  0xf3   : > { %v467_v2 = vld [vmem:[%s17635_s28 + $0x610] sm:$0xff] }
  0xf4   : > { %9735 = vmatpush1.bf16.msra.mxu1 %v16423_v28  ;;  %v16452_v28 = vld [vmem:[%s22551_s1 + $0x38c] ss:$16 sps:$4 sm:$0xff]  }
  0xf5   : > { %9736 = vmatprep.subr.bf16.mxu1 %v16434_v13  ;;  %7805 = vmatpush1.bf16.msra.mxu0 %v16453_v16  ;;  %v16467_v13 = vld [vmem:[%s22551_s1 + $0x784] ss:$16 sps:$4 sm:$0xff]   ;;  %v18368_v16 = vcombine.high %v443_v52, %v455_v33 }
  0xf6   : > { %9606 = vmatmul.mubr.bf16.gmra.mrb[84].mxu1 %v17911_v36  ;;  %v16462_v36 = vld [vmem:[%s22551_s1 + $0x760] ss:$16 sps:$4 sm:$0xff]   ;;  %7806 = vmatprep.subr.bf16.mxu0 %v16458_v14 }
  0xf7   : > { %7676 = vmatmul.mubr.bf16.gmra.mrb[20].mxu0 %v18326_v47  ;;  %9615 = vmatprep.mubr.bf16.mxu1 %v17915_v38  ;;  %v16450_v38 = vld [vmem:[%s22551_s1 + $0x388] ss:$16 sps:$4 sm:$0xff]   ;;  %v479_v14 = vld [vmem:[%s17635_s28 + $0x670] sm:$0xff] }
  0xf8   : > { %7685 = vmatprep.mubr.bf16.mxu0 %v18334_v60  ;;  %9737 = vmatpush1.bf16.msra.mxu1 %v16432_v18  ;;  %v16461_v18 = vld [vmem:[%s22551_s1 + $0x3ac] ss:$16 sps:$4 sm:$0xff]  }
  0xf9   : > { %9738 = vmatprep.subr.bf16.mxu1 %v16443_v62  ;;  %7807 = vmatpush1.bf16.msra.mxu0 %v16456_v34  ;;  %v16459_v62 = vld [vmem:[%s22551_s1 + $0x3a8] ss:$16 sps:$4 sm:$0xff]   ;;  %v16473_v34 = vld [vmem:[%s22551_s1 + $0x7a4] ss:$16 sps:$4 sm:$0xff]  }
  0xfa   : > { %7808 = vmatprep.subr.bf16.mxu0 %v16464_v40  ;;  %v18394_v40 = vcombine.low %v443_v52, %v455_v33  ;;  %v16479_v52 = vld [vmem:[%s22551_s1 + $0x3ec] ss:$16 sps:$4 sm:$0xff]   ;;  %v491_v33 = vld [vmem:[%s17635_s28 + $0x6d0] sm:$0xff] }
  0xfc   : > { %9739 = vmatpush1.bf16.msra.mxu1 %v16441_v44  ;;  %v16470_v44 = vld [vmem:[%s22551_s1 + $0x3cc] ss:$16 sps:$4 sm:$0xff]  }
  0xfd   : > { %9740 = vmatprep.subr.bf16.mxu1 %v16452_v28  ;;  %7809 = vmatpush1.bf16.msra.mxu0 %v16462_v36  ;;  %v16476_v28 = vld [vmem:[%s22551_s1 + $0x7c4] ss:$16 sps:$4 sm:$0xff]   ;;  %v18402_v36 = vcombine.high %v467_v2, %v479_v14 }
  0xfe   : > { %9616 = vmatmul.mubr.bf16.gmra.mrb[88].mxu1 %v17951_v58  ;;  %v16471_v58 = vld [vmem:[%s22551_s1 + $0x7a0] ss:$16 sps:$4 sm:$0xff]   ;;  %7810 = vmatprep.subr.bf16.mxu0 %v16467_v13 }
  0xff   : > { %7686 = vmatmul.mubr.bf16.gmra.mrb[24].mxu0 %v18360_v20  ;;  %9625 = vmatprep.mubr.bf16.mxu1 %v17955_v0  ;;  %v16468_v0 = vld [vmem:[%s22551_s1 + $0x3c8] ss:$16 sps:$4 sm:$0xff]   ;;  %v503_v13 = vld [vmem:[%s17635_s28 + $0x730] sm:$0xff] }
 0x100   : > { %7695 = vmatprep.mubr.bf16.mxu0 %v18368_v16  ;;  %9741 = vmatpush1.bf16.msra.mxu1 %v16450_v38  ;;  %v16474_v38 = vld [vmem:[%s22551_s1 + $0x7c0] ss:$16 sps:$4 sm:$0xff]  }
 0x101   : > { %9742 = vmatprep.subr.bf16.mxu1 %v16461_v18  ;;  %7811 = vmatpush1.bf16.msra.mxu0 %v16465_v31  ;;  %v16477_v18 = vld [vmem:[%s22551_s1 + $0x3e8] ss:$16 sps:$4 sm:$0xff]   ;;  %v16482_v31 = vld [vmem:[%s22551_s1 + $0x7e4] ss:$16 sps:$4 sm:$0xff]  }
 0x102   : > { %7812 = vmatprep.subr.bf16.mxu0 %v16473_v34  ;;  %v18428_v34 = vcombine.low %v467_v2, %v479_v14  ;;  %v527_v2 = vld [vmem:[%s17635_s28 + $0x7f0] sm:$0xff]  ;;  %v18441_v14 = vcombine.low %v491_v33, %v503_v13 }
 0x104   : > { %9743 = vmatpush1.bf16.msra.mxu1 %v16459_v62  ;;  %v16480_v62 = vld [vmem:[%s22551_s1 + $0x7e0] ss:$16 sps:$4 sm:$0xff]  }
 0x105   : > { %9744 = vmatprep.subr.bf16.mxu1 %v16470_v44  ;;  %7813 = vmatpush1.bf16.msra.mxu0 %v16471_v58  ;;  %v18430_v44 = vcombine.high %v491_v33, %v503_v13  ;;  %v515_v58 = vld [vmem:[%s17635_s28 + $0x790] sm:$0xff] }
 0x106   : > { %9626 = vmatmul.mubr.bf16.gmra.mrb[92].mxu1 %v17991_v22  ;;  %v16485_v22 = vld [vmem:[%s22551_s1 + $0x40c] ss:$16 sps:$4 sm:$0xff]   ;;  %7814 = vmatprep.subr.bf16.mxu0 %v16476_v28  ;;  %v539_v28 = vld [vmem:[%s17635_s28 + $0x850] sm:$0xff] }
 0x107   : > { %7696 = vmatmul.mubr.bf16.gmra.mrb[28].mxu0 %v18394_v40  ;;  %9635 = vmatprep.mubr.bf16.mxu1 %v17995_v24  ;;  %v16509_v24 = vld [vmem:[%s22551_s1 + $0x804] ss:$16 sps:$4 sm:$0xff]  }
 0x108   : > { %7705 = vmatprep.mubr.bf16.mxu0 %v18402_v36  ;;  %9745 = vmatpush1.bf16.msra.mxu1 %v16468_v0  ;;  %v18443_v0 = vcombine.high %v515_v58, %v527_v2 }
 0x109   : > { %9746 = vmatprep.subr.bf16.mxu1 %v16479_v52  ;;  %7815 = vmatpush1.bf16.msra.mxu0 %v16474_v38  ;;  %v18451_v38 = vcombine.low %v515_v58, %v527_v2  ;;  %v575_v52 = vld [vmem:[%s17635_s28 + $0x970] sm:$0xff] }
 0x10a   : > { %7816 = vmatprep.subr.bf16.mxu0 %v16482_v31 }
 0x10c   : > { %9747 = vmatpush1.bf16.msra.mxu1 %v16477_v18 }
 0x10d   : > { %7817 = vmatpush1.bf16.msra.mxu0 %v16480_v62  ;;  %9909 = vmatprep.subr.bf16.mxu1 %v16485_v22 }
 0x10e   : > { %9636 = vmatmul.mubr.bf16.gmra.mrb[96].mxu1 %v18031_v50  ;;  %7979 = vmatprep.subr.bf16.mxu0 %v16509_v24  ;;  %v551_v50 = vld [vmem:[%s17635_s28 + $0x8b0] sm:$0xff] }
 0x10f   : > { %7706 = vmatmul.mubr.bf16.gmra.mrb[32].mxu0 %v18428_v34  ;;  %9645 = vmatprep.mubr.bf16.mxu1 %v18035_v53  ;;  %v18453_v53 = vcombine.high %v539_v28, %v551_v50  ;;  %v18465_v13 = vcombine.low %v539_v28, %v551_v50 }
 0x110   : > { %7715 = vmatprep.mubr.bf16.mxu0 %v18430_v44 }
 0x116   : > { %9646 = vmatmul.mubr.bf16.gmra.mrb[100].mxu1 %v18053_v6  ;;  %v563_v6 = vld [vmem:[%s17635_s28 + $0x910] sm:$0xff] }
 0x117   : > { %7716 = vmatmul.mubr.bf16.gmra.mrb[36].mxu0 %v18441_v14  ;;  %9655 = vmatprep.mubr.bf16.mxu1 %v18057_v8  ;;  %v18469_v31 = vcombine.high %v563_v6, %v575_v52  ;;  %v18483_v58 = vcombine.low %v563_v6, %v575_v52 }
 0x118   : > { %7725 = vmatprep.mubr.bf16.mxu0 %v18443_v0 }
 0x11e   : > { %9656 = vmatmul.mubr.bf16.gmra.mrb[104].mxu1 %v18069_v30  ;;  %v587_v30 = vld [vmem:[%s17635_s28 + $0x9d0] sm:$0xff] }
 0x11f   : > { %7726 = vmatmul.mubr.bf16.gmra.mrb[40].mxu0 %v18451_v38  ;;  %9665 = vmatprep.mubr.bf16.mxu1 %v18073_v32  ;;  %v599_v32 = vld [vmem:[%s17635_s28 + $0xa30] sm:$0xff] }
 0x120   : > { %7735 = vmatprep.mubr.bf16.mxu0 %v18453_v53  ;;  %v18487_v28 = vcombine.high %v587_v30, %v599_v32 }
 0x121   : > { %v18461_v33 = vpop.f32.mrb[0].mxu1 }
 0x122   : > { %22645 = vst [vmem:[#allocation18_spill] sm:$0xff] %v18461_v33  ;;  %v18463_v8 = vpop.f32.mrb[1].mxu1  ;;  %v16518_v33 = vld [vmem:[%s22551_s1 + $0x844] ss:$16 sps:$4 sm:$0xff]  }
 0x123   : > { %22646 = vst [vmem:[#allocation19_spill] sm:$0xff] %v18463_v8  ;;  %v18467_v18 = vpop.f32.mrb[2].mxu1  ;;  %v16489_v8 = vld [vmem:[%s22551_s1 + $0x448] ss:$16 sps:$4 sm:$0xff]  }
 0x124   : > { %22647 = vst [vmem:[#allocation20_spill] sm:$0xff] %v18467_v18  ;;  %v18471_v62 = vpop.f32.mrb[3].mxu1 }
 0x125   : > { %22648 = vst [vmem:[#allocation21_spill] sm:$0xff] %v18471_v62  ;;  %v16513_v62 = vld [vmem:[%s22551_s1 + $0x820] ss:$16 sps:$4 sm:$0xff]  }
 0x126   : > { %9666 = vmatmul.mubr.bf16.gmra.mrb[108].mxu1 %v18085_v46  ;;  %v611_v46 = vld [vmem:[%s17635_s28 + $0xa90] sm:$0xff] }
 0x127   : > { %7736 = vmatmul.mubr.bf16.gmra.mrb[44].mxu0 %v18465_v13  ;;  %9675 = vmatprep.mubr.bf16.mxu1 %v18089_v48  ;;  %v623_v48 = vld [vmem:[%s17635_s28 + $0xaf0] sm:$0xff] }
 0x128   : > { %7745 = vmatprep.mubr.bf16.mxu0 %v18469_v31 }
 0x129   : > { %v18479_v22 = vpop.f32.mrb[4].mxu1 }
 0x12a   : > { %22649 = vst [vmem:[#allocation22_spill] sm:$0xff] %v18479_v22  ;;  %v18481_v24 = vpop.f32.mrb[5].mxu1 }
 0x12b   : > { %22650 = vst [vmem:[#allocation23_spill] sm:$0xff] %v18481_v24  ;;  %v18485_v2 = vpop.f32.mrb[6].mxu1 }
 0x12c   : > { %22651 = vst [vmem:[#allocation24_spill] sm:$0xff] %v18485_v2  ;;  %v18489_v50 = vpop.f32.mrb[7].mxu1  ;;  %v18501_v2 = vcombine.low %v587_v30, %v599_v32 }
 0x12d   : > { %22652 = vst [vmem:[#allocation25_spill] sm:$0xff] %v18489_v50  ;;  %v18505_v50 = vcombine.high %v611_v46, %v623_v48 }
 0x12e   : > { %9676 = vmatmul.mubr.bf16.gmra.mrb[112].mxu1 %v18101_v4  ;;  %v635_v4 = vld [vmem:[%s17635_s28 + $0xb50] sm:$0xff] }
 0x12f   : > { %7746 = vmatmul.mubr.bf16.gmra.mrb[48].mxu0 %v18483_v58  ;;  %9685 = vmatprep.mubr.bf16.mxu1 %v18105_v10  ;;  %v647_v10 = vld [vmem:[%s17635_s28 + $0xbb0] sm:$0xff] }
 0x130   : > { %7755 = vmatprep.mubr.bf16.mxu0 %v18487_v28 }
 0x131   : > { %v18497_v6 = vpop.f32.mrb[8].mxu1 }
 0x132   : > { %22653 = vst [vmem:[#allocation26_spill] sm:$0xff] %v18497_v6  ;;  %v18499_v52 = vpop.f32.mrb[9].mxu1 }
 0x133   : > { %22654 = vst [vmem:[#allocation27_spill] sm:$0xff] %v18499_v52  ;;  %v18503_v24 = vpop.f32.mrb[10].mxu1 }
 0x134   : > { %22655 = vst [vmem:[#allocation28_spill] sm:$0xff] %v18503_v24  ;;  %v18507_v22 = vpop.f32.mrb[11].mxu1  ;;  %v18519_v24 = vcombine.low %v611_v46, %v623_v48 }
 0x135   : > { %22656 = vst [vmem:[#allocation29_spill] sm:$0xff] %v18507_v22  ;;  %v18523_v22 = vcombine.high %v635_v4, %v647_v10 }
 0x136   : > { %9686 = vmatmul.mubr.bf16.gmra.mrb[116].mxu1 %v18117_v35  ;;  %v276_v35 = vld [vmem:[%s17635_s28 + $0x18] sm:$0xff] }
 0x137   : > { %7756 = vmatmul.mubr.bf16.gmra.mrb[52].mxu0 %v18501_v2  ;;  %9695 = vmatprep.mubr.bf16.mxu1 %v18121_v41  ;;  %v288_v41 = vld [vmem:[%s17635_s28 + $0x78] sm:$0xff] }
 0x138   : > { %7765 = vmatprep.mubr.bf16.mxu0 %v18505_v50 }
 0x139   : > { %v18515_v30 = vpop.f32.mrb[12].mxu1 }
 0x13a   : > { %22657 = vst [vmem:[#allocation30_spill] sm:$0xff] %v18515_v30  ;;  %v18517_v32 = vpop.f32.mrb[13].mxu1 }
 0x13b   : > { %22658 = vst [vmem:[#allocation31_spill] sm:$0xff] %v18517_v32  ;;  %v18521_v52 = vpop.f32.mrb[14].mxu1 }
 0x13c   : > { %22659 = vst [vmem:[#allocation32_spill] sm:$0xff] %v18521_v52  ;;  %v18525_v6 = vpop.f32.mrb[15].mxu1  ;;  %v18537_v52 = vcombine.low %v635_v4, %v647_v10  ;;  %v16483_v10 = vld [vmem:[%s22551_s1 + $0x408] ss:$16 sps:$4 sm:$0xff]  }
 0x13d   : > { %22660 = vst [vmem:[#allocation33_spill] sm:$0xff] %v18525_v6  ;;  %v18541_v6 = vcombine.high %v276_v35, %v288_v41 }
 0x13e   : > { %9696 = vmatmul.mubr.bf16.gmra.mrb[120].mxu1 %v18133_v57  ;;  %v300_v57 = vld [vmem:[%s17635_s28 + $0xd8] sm:$0xff] }
 0x13f   : > { %7766 = vmatmul.mubr.bf16.gmra.mrb[56].mxu0 %v18519_v24  ;;  %9705 = vmatprep.mubr.bf16.mxu1 %v18137_v3  ;;  %v312_v3 = vld [vmem:[%s17635_s28 + $0x138] sm:$0xff] }
 0x140   : > { %7775 = vmatprep.mubr.bf16.mxu0 %v18523_v22 }
 0x141   : > { %v18533_v46 = vpop.f32.mrb[16].mxu1 }
 0x142   : > { %22661 = vst [vmem:[#allocation34_spill] sm:$0xff] %v18533_v46  ;;  %v18535_v48 = vpop.f32.mrb[17].mxu1 }
 0x143   : > { %22662 = vst [vmem:[#allocation35_spill] sm:$0xff] %v18535_v48  ;;  %v18539_v32 = vpop.f32.mrb[18].mxu1 }
 0x144   : > { %22663 = vst [vmem:[#allocation36_spill] sm:$0xff] %v18539_v32  ;;  %v18543_v30 = vpop.f32.mrb[19].mxu1 }
 0x145   : > { %22664 = vst [vmem:[#allocation37_spill] sm:$0xff] %v18543_v30  ;;  %v18558_v30 = vcombine.low %v276_v35, %v288_v41  ;;  %v324_v35 = vld [vmem:[%s17635_s28 + $0x198] sm:$0xff] }
 0x146   : > { %9706 = vmatmul.mubr.bf16.gmra.mrb[124].mxu1 %v18147_v9  ;;  %v16488_v9 = vld [vmem:[%s22551_s1 + $0x42c] ss:$16 sps:$4 sm:$0xff]  }
 0x147   : > { %7776 = vmatmul.mubr.bf16.gmra.mrb[60].mxu0 %v18537_v52  ;;  %9748 = vmatprep.mubr.bf16.mxu1 %v17661_v55  ;;  %v18565_v55 = vcombine.high %v300_v57, %v312_v3  ;;  %v336_v41 = vld [vmem:[%s17635_s28 + $0x1f8] sm:$0xff] }
 0x148   : > { %7818 = vmatprep.mubr.bf16.mxu0 %v18541_v6 }
 0x149   : > { %v18551_v4 = vpop.f32.mrb[20].mxu1 }
 0x14a   : > { %22665 = vst [vmem:[#allocation38_spill] sm:$0xff] %v18551_v4  ;;  %v18556_v32 = vpop.f32.mrb[21].mxu1  ;;  %v16507_v4 = vld [vmem:[%s22551_s1 + $0x800] ss:$16 sps:$4 sm:$0xff]  }
 0x14b   : > { %22666 = vst [vmem:[#allocation39_spill] sm:$0xff] %v18556_v32  ;;  %v18563_v48 = vpop.f32.mrb[22].mxu1  ;;  %v16486_v32 = vld [vmem:[%s22551_s1 + $0x428] ss:$16 sps:$4 sm:$0xff]  }
 0x14c   : > { %22667 = vst [vmem:[#allocation40_spill] sm:$0xff] %v18563_v48  ;;  %v18570_v46 = vpop.f32.mrb[23].mxu1  ;;  %v16515_v48 = vld [vmem:[%s22551_s1 + $0x824] ss:$16 sps:$4 sm:$0xff]  }
 0x14d   : > { %22668 = vst [vmem:[#allocation41_spill] sm:$0xff] %v18570_v46  ;;  %v16491_v46 = vld [vmem:[%s22551_s1 + $0x44c] ss:$16 sps:$4 sm:$0xff]  }
 0x14e   : > { %9749 = vmatmul.mubr.bf16.vlgmr.msra.gmra.mrb[64].mxu1 %v17716_v12 }
 0x14f   : > { %7819 = vmatmul.mubr.bf16.vlgmr.msra.gmra.mrb[0].mxu0 %v18558_v30  ;;  %9910 = vmatpush1.bf16.msra.mxu1 %v16483_v10  ;;  %v18594_v10 = vcombine.low %v300_v57, %v312_v3  ;;  %v16516_v57 = vld [vmem:[%s22551_s1 + $0x840] ss:$16 sps:$4 sm:$0xff]  }
 0x150   : > { %7828 = vmatprep.mubr.bf16.mxu0 %v18565_v55  ;;  %9758 = vmatprep.mubr.bf16.mxu1 %v17723_v15 }
 0x151   : > { %9911 = vmatprep.subr.bf16.mxu1 %v16488_v9  ;;  %v18590_v12 = vpop.f32.mrb[24].mxu1  ;;  %7980 = vmatpush1.bf16.msra.mxu0 %v16507_v4  ;;  %v18604_v9 = vcombine.high %v324_v35, %v336_v41  ;;  %v16494_v4 = vld [vmem:[%s22551_s1 + $0x46c] ss:$16 sps:$4 sm:$0xff]  }
 0x152   : > { %22669 = vst [vmem:[#allocation42_spill] sm:$0xff] %v18590_v12  ;;  %v18592_v18 = vpop.f32.mrb[25].mxu1  ;;  %7981 = vmatprep.subr.bf16.mxu0 %v16515_v48  ;;  %v348_v48 = vld [vmem:[%s17635_s28 + $0x258] sm:$0xff]  ;;  %v18636_v12 = vcombine.low %v324_v35, %v336_v41  ;;  %v16525_v35 = vld [vmem:[%s22551_s1 + $0x880] ss:$16 sps:$4 sm:$0xff]  }
 0x153   : > { %22670 = vst [vmem:[#allocation43_spill] sm:$0xff] %v18592_v18  ;;  %v18602_v15 = vpop.f32.mrb[26].mxu1  ;;  %9912 = vmatpush1.bf16.msra.mxu1 %v16486_v32  ;;  %v360_v32 = vld [vmem:[%s17635_s28 + $0x2b8] sm:$0xff]  ;;  %v16524_v18 = vld [vmem:[%s22551_s1 + $0x864] ss:$16 sps:$4 sm:$0xff]  }
 0x154   : > { %22671 = vst [vmem:[#allocation44_spill] sm:$0xff] %v18602_v15  ;;  %v18612_v3 = vpop.f32.mrb[27].mxu1  ;;  %9913 = vmatprep.subr.bf16.mxu1 %v16491_v46  ;;  %v16492_v15 = vld [vmem:[%s22551_s1 + $0x468] ss:$16 sps:$4 sm:$0xff]  }
 0x155   : > { %22672 = vst [vmem:[#allocation45_spill] sm:$0xff] %v18612_v3  ;;  %7982 = vmatpush1.bf16.msra.mxu0 %v16513_v62  ;;  %v16497_v62 = vld [vmem:[%s22551_s1 + $0x48c] ss:$16 sps:$4 sm:$0xff]  }
 0x156   : > { %9759 = vmatmul.mubr.bf16.gmra.mrb[68].mxu1 %v17753_v27  ;;  %v16522_v27 = vld [vmem:[%s22551_s1 + $0x860] ss:$16 sps:$4 sm:$0xff]   ;;  %7983 = vmatprep.subr.bf16.mxu0 %v16518_v33 }
 0x157   : > { %7829 = vmatmul.mubr.bf16.gmra.mrb[4].mxu0 %v18594_v10  ;;  %9768 = vmatprep.mubr.bf16.mxu1 %v17757_v29  ;;  %v16495_v29 = vld [vmem:[%s22551_s1 + $0x488] ss:$16 sps:$4 sm:$0xff]  }
 0x158   : > { %7838 = vmatprep.mubr.bf16.mxu0 %v18604_v9  ;;  %9914 = vmatpush1.bf16.msra.mxu1 %v16489_v8  ;;  %v16527_v8 = vld [vmem:[%s22551_s1 + $0x884] ss:$16 sps:$4 sm:$0xff]  }
 0x159   : > { %v18632_v46 = vpop.f32.mrb[28].mxu1  ;;  %9915 = vmatprep.subr.bf16.mxu1 %v16494_v4  ;;  %7984 = vmatpush1.bf16.msra.mxu0 %v16516_v57  ;;  %v16500_v4 = vld [vmem:[%s22551_s1 + $0x4ac] ss:$16 sps:$4 sm:$0xff]  }
 0x15a   : > { %22673 = vst [vmem:[#allocation46_spill] sm:$0xff] %v18632_v46  ;;  %v18634_v3 = vpop.f32.mrb[29].mxu1  ;;  %7985 = vmatprep.subr.bf16.mxu0 %v16524_v18  ;;  %v18646_v46 = vcombine.high %v348_v48, %v360_v32  ;;  %v372_v18 = vld [vmem:[%s17635_s28 + $0x318] sm:$0xff] }
 0x15b   : > { %22674 = vst [vmem:[#allocation47_spill] sm:$0xff] %v18634_v3  ;;  %v18644_v33 = vpop.f32.mrb[30].mxu1  ;;  %v384_v57 = vld [vmem:[%s17635_s28 + $0x378] sm:$0xff]  ;;  %v16533_v3 = vld [vmem:[%s22551_s1 + $0x8a4] ss:$16 sps:$4 sm:$0xff]  }
 0x15c   : > { %22675 = vst [vmem:[#allocation48_spill] sm:$0xff] %v18644_v33  ;;  %v18654_v41 = vpop.f32.mrb[31].mxu1  ;;  %9916 = vmatpush1.bf16.msra.mxu1 %v16492_v15  ;;  %v16498_v33 = vld [vmem:[%s22551_s1 + $0x4a8] ss:$16 sps:$4 sm:$0xff]   ;;  %v16503_v15 = vld [vmem:[%s22551_s1 + $0x4cc] ss:$16 sps:$4 sm:$0xff]  }
 0x15d   : > { %22676 = vst [vmem:[#allocation49_spill] sm:$0xff] %v18654_v41  ;;  %9917 = vmatprep.subr.bf16.mxu1 %v16497_v62  ;;  %7986 = vmatpush1.bf16.msra.mxu0 %v16522_v27  ;;  %v18678_v41 = vcombine.low %v348_v48, %v360_v32  ;;  %v16534_v48 = vld [vmem:[%s22551_s1 + $0x8c0] ss:$16 sps:$4 sm:$0xff]  }
 0x15e   : > { %9769 = vmatmul.mubr.bf16.gmra.mrb[72].mxu1 %v17793_v43  ;;  %v16531_v43 = vld [vmem:[%s22551_s1 + $0x8a0] ss:$16 sps:$4 sm:$0xff]   ;;  %7987 = vmatprep.subr.bf16.mxu0 %v16527_v8 }
 0x15f   : > { %7839 = vmatmul.mubr.bf16.gmra.mrb[8].mxu0 %v18636_v12  ;;  %9778 = vmatprep.mubr.bf16.mxu1 %v17797_v45  ;;  %v16501_v45 = vld [vmem:[%s22551_s1 + $0x4c8] ss:$16 sps:$4 sm:$0xff]  }
 0x160   : > { %7848 = vmatprep.mubr.bf16.mxu0 %v18646_v46  ;;  %9918 = vmatpush1.bf16.msra.mxu1 %v16495_v29  ;;  %v16536_v29 = vld [vmem:[%s22551_s1 + $0x8c4] ss:$16 sps:$4 sm:$0xff]  }
 0x161   : > { %v18674_v62 = vpop.f32.mrb[32].mxu1  ;;  %9919 = vmatprep.subr.bf16.mxu1 %v16500_v4  ;;  %7988 = vmatpush1.bf16.msra.mxu0 %v16525_v35  ;;  %v16506_v4 = vld [vmem:[%s22551_s1 + $0x4ec] ss:$16 sps:$4 sm:$0xff]  }
 0x162   : > { %22677 = vst [vmem:[#allocation50_spill] sm:$0xff] %v18674_v62  ;;  %v18676_v27 = vpop.f32.mrb[33].mxu1  ;;  %7989 = vmatprep.subr.bf16.mxu0 %v16533_v3  ;;  %v18688_v62 = vcombine.high %v372_v18, %v384_v57  ;;  %v396_v3 = vld [vmem:[%s17635_s28 + $0x3d8] sm:$0xff] }
 0x163   : > { %22678 = vst [vmem:[#allocation51_spill] sm:$0xff] %v18676_v27  ;;  %v18686_v8 = vpop.f32.mrb[34].mxu1  ;;  %v408_v35 = vld [vmem:[%s17635_s28 + $0x438] sm:$0xff]  ;;  %v16542_v27 = vld [vmem:[%s22551_s1 + $0x8e4] ss:$16 sps:$4 sm:$0xff]  }
 0x164   : > { %22679 = vst [vmem:[#allocation52_spill] sm:$0xff] %v18686_v8  ;;  %v18696_v32 = vpop.f32.mrb[35].mxu1  ;;  %9920 = vmatpush1.bf16.msra.mxu1 %v16498_v33  ;;  %v16504_v8 = vld [vmem:[%s22551_s1 + $0x4e8] ss:$16 sps:$4 sm:$0xff]   ;;  %v16512_v33 = vld [vmem:[%s22551_s1 + $0x50c] ss:$16 sps:$4 sm:$0xff]  }
 0x165   : > { %22680 = vst [vmem:[#allocation53_spill] sm:$0xff] %v18696_v32  ;;  %9921 = vmatprep.subr.bf16.mxu1 %v16503_v15  ;;  %7990 = vmatpush1.bf16.msra.mxu0 %v16531_v43  ;;  %v18720_v32 = vcombine.low %v372_v18, %v384_v57  ;;  %v16543_v18 = vld [vmem:[%s22551_s1 + $0x900] ss:$16 sps:$4 sm:$0xff]  }
 0x166   : > { %9779 = vmatmul.mubr.bf16.gmra.mrb[76].mxu1 %v17833_v61  ;;  %v16540_v61 = vld [vmem:[%s22551_s1 + $0x8e0] ss:$16 sps:$4 sm:$0xff]   ;;  %7991 = vmatprep.subr.bf16.mxu0 %v16536_v29 }
 0x167   : > { %7849 = vmatmul.mubr.bf16.gmra.mrb[12].mxu0 %v18678_v41  ;;  %9788 = vmatprep.mubr.bf16.mxu1 %v17837_v63  ;;  %v16510_v63 = vld [vmem:[%s22551_s1 + $0x508] ss:$16 sps:$4 sm:$0xff]  }
 0x168   : > { %7858 = vmatprep.mubr.bf16.mxu0 %v18688_v62  ;;  %9922 = vmatpush1.bf16.msra.mxu1 %v16501_v45  ;;  %v16545_v45 = vld [vmem:[%s22551_s1 + $0x904] ss:$16 sps:$4 sm:$0xff]  }
 0x169   : > { %v18716_v15 = vpop.f32.mrb[36].mxu1  ;;  %9923 = vmatprep.subr.bf16.mxu1 %v16506_v4  ;;  %7992 = vmatpush1.bf16.msra.mxu0 %v16534_v48  ;;  %v16521_v4 = vld [vmem:[%s22551_s1 + $0x52c] ss:$16 sps:$4 sm:$0xff]  }
 0x16a   : > { %22681 = vst [vmem:[#allocation54_spill] sm:$0xff] %v18716_v15  ;;  %v18718_v43 = vpop.f32.mrb[37].mxu1  ;;  %7993 = vmatprep.subr.bf16.mxu0 %v16542_v27  ;;  %v18730_v15 = vcombine.high %v396_v3, %v408_v35  ;;  %v420_v27 = vld [vmem:[%s17635_s28 + $0x498] sm:$0xff] }
 0x16b   : > { %22682 = vst [vmem:[#allocation55_spill] sm:$0xff] %v18718_v43  ;;  %v18728_v29 = vpop.f32.mrb[38].mxu1  ;;  %v432_v48 = vld [vmem:[%s17635_s28 + $0x4f8] sm:$0xff]  ;;  %v16551_v43 = vld [vmem:[%s22551_s1 + $0x924] ss:$16 sps:$4 sm:$0xff]  }
 0x16c   : > { %22683 = vst [vmem:[#allocation56_spill] sm:$0xff] %v18728_v29  ;;  %v18738_v57 = vpop.f32.mrb[39].mxu1  ;;  %9924 = vmatpush1.bf16.msra.mxu1 %v16504_v8  ;;  %v16519_v29 = vld [vmem:[%s22551_s1 + $0x528] ss:$16 sps:$4 sm:$0xff]   ;;  %v16530_v8 = vld [vmem:[%s22551_s1 + $0x54c] ss:$16 sps:$4 sm:$0xff]  }
 0x16d   : > { %22684 = vst [vmem:[#allocation57_spill] sm:$0xff] %v18738_v57  ;;  %9925 = vmatprep.subr.bf16.mxu1 %v16512_v33  ;;  %7994 = vmatpush1.bf16.msra.mxu0 %v16540_v61  ;;  %v18762_v57 = vcombine.low %v396_v3, %v408_v35  ;;  %v16552_v3 = vld [vmem:[%s22551_s1 + $0x940] ss:$16 sps:$4 sm:$0xff]  }
 0x16e   : > { %9789 = vmatmul.mubr.bf16.gmra.mrb[80].mxu1 %v17873_v17  ;;  %v16549_v17 = vld [vmem:[%s22551_s1 + $0x920] ss:$16 sps:$4 sm:$0xff]   ;;  %7995 = vmatprep.subr.bf16.mxu0 %v16545_v45 }
 0x16f   : > { %7859 = vmatmul.mubr.bf16.gmra.mrb[16].mxu0 %v18720_v32  ;;  %9798 = vmatprep.mubr.bf16.mxu1 %v17877_v19  ;;  %v16528_v19 = vld [vmem:[%s22551_s1 + $0x548] ss:$16 sps:$4 sm:$0xff]  }
 0x170   : > { %7868 = vmatprep.mubr.bf16.mxu0 %v18730_v15  ;;  %9926 = vmatpush1.bf16.msra.mxu1 %v16510_v63  ;;  %v16554_v63 = vld [vmem:[%s22551_s1 + $0x944] ss:$16 sps:$4 sm:$0xff]  }
 0x171   : > { %v18758_v33 = vpop.f32.mrb[40].mxu1  ;;  %9927 = vmatprep.subr.bf16.mxu1 %v16521_v4  ;;  %7996 = vmatpush1.bf16.msra.mxu0 %v16543_v18  ;;  %v16539_v4 = vld [vmem:[%s22551_s1 + $0x56c] ss:$16 sps:$4 sm:$0xff]  }
 0x172   : > { %22685 = vst [vmem:[#allocation58_spill] sm:$0xff] %v18758_v33  ;;  %v18760_v61 = vpop.f32.mrb[41].mxu1  ;;  %7997 = vmatprep.subr.bf16.mxu0 %v16551_v43  ;;  %v18772_v33 = vcombine.high %v420_v27, %v432_v48  ;;  %v444_v43 = vld [vmem:[%s17635_s28 + $0x558] sm:$0xff] }
 0x173   : > { %22686 = vst [vmem:[#allocation59_spill] sm:$0xff] %v18760_v61  ;;  %v18770_v45 = vpop.f32.mrb[42].mxu1  ;;  %v456_v18 = vld [vmem:[%s17635_s28 + $0x5b8] sm:$0xff]  ;;  %v16560_v61 = vld [vmem:[%s22551_s1 + $0x964] ss:$16 sps:$4 sm:$0xff]  }
 0x174   : > { %22687 = vst [vmem:[#allocation60_spill] sm:$0xff] %v18770_v45  ;;  %v18780_v35 = vpop.f32.mrb[43].mxu1  ;;  %9928 = vmatpush1.bf16.msra.mxu1 %v16519_v29  ;;  %v16537_v45 = vld [vmem:[%s22551_s1 + $0x568] ss:$16 sps:$4 sm:$0xff]   ;;  %v16548_v29 = vld [vmem:[%s22551_s1 + $0x58c] ss:$16 sps:$4 sm:$0xff]  }
 0x175   : > { %22688 = vst [vmem:[#allocation61_spill] sm:$0xff] %v18780_v35  ;;  %9929 = vmatprep.subr.bf16.mxu1 %v16530_v8  ;;  %7998 = vmatpush1.bf16.msra.mxu0 %v16549_v17  ;;  %v18804_v35 = vcombine.low %v420_v27, %v432_v48  ;;  %v16561_v27 = vld [vmem:[%s22551_s1 + $0x980] ss:$16 sps:$4 sm:$0xff]  }
 0x176   : > { %9799 = vmatmul.mubr.bf16.gmra.mrb[84].mxu1 %v17913_v37  ;;  %v16558_v37 = vld [vmem:[%s22551_s1 + $0x960] ss:$16 sps:$4 sm:$0xff]   ;;  %7999 = vmatprep.subr.bf16.mxu0 %v16554_v63 }
 0x177   : > { %7869 = vmatmul.mubr.bf16.gmra.mrb[20].mxu0 %v18762_v57  ;;  %9808 = vmatprep.mubr.bf16.mxu1 %v17917_v39  ;;  %v16546_v39 = vld [vmem:[%s22551_s1 + $0x588] ss:$16 sps:$4 sm:$0xff]  }
 0x178   : > { %7878 = vmatprep.mubr.bf16.mxu0 %v18772_v33  ;;  %9930 = vmatpush1.bf16.msra.mxu1 %v16528_v19  ;;  %v16563_v19 = vld [vmem:[%s22551_s1 + $0x984] ss:$16 sps:$4 sm:$0xff]  }
 0x179   : > { %v18800_v8 = vpop.f32.mrb[44].mxu1  ;;  %9931 = vmatprep.subr.bf16.mxu1 %v16539_v4  ;;  %8000 = vmatpush1.bf16.msra.mxu0 %v16552_v3  ;;  %v16557_v4 = vld [vmem:[%s22551_s1 + $0x5ac] ss:$16 sps:$4 sm:$0xff]  }
 0x17a   : > { %22689 = vst [vmem:[#allocation62_spill] sm:$0xff] %v18800_v8  ;;  %v18802_v17 = vpop.f32.mrb[45].mxu1  ;;  %8001 = vmatprep.subr.bf16.mxu0 %v16560_v61  ;;  %v18814_v8 = vcombine.high %v444_v43, %v456_v18  ;;  %v468_v61 = vld [vmem:[%s17635_s28 + $0x618] sm:$0xff] }
 0x17b   : > { %22690 = vst [vmem:[#allocation63_spill] sm:$0xff] %v18802_v17  ;;  %v18812_v63 = vpop.f32.mrb[46].mxu1  ;;  %v480_v3 = vld [vmem:[%s17635_s28 + $0x678] sm:$0xff]  ;;  %v16569_v17 = vld [vmem:[%s22551_s1 + $0x9a4] ss:$16 sps:$4 sm:$0xff]  }
 0x17c   : > { %22691 = vst [vmem:[#allocation64_spill] sm:$0xff] %v18812_v63  ;;  %v18822_v48 = vpop.f32.mrb[47].mxu1  ;;  %9932 = vmatpush1.bf16.msra.mxu1 %v16537_v45  ;;  %v16555_v63 = vld [vmem:[%s22551_s1 + $0x5a8] ss:$16 sps:$4 sm:$0xff]   ;;  %v16566_v45 = vld [vmem:[%s22551_s1 + $0x5cc] ss:$16 sps:$4 sm:$0xff]  }
 0x17d   : > { %22692 = vst [vmem:[#allocation65_spill] sm:$0xff] %v18822_v48  ;;  %9933 = vmatprep.subr.bf16.mxu1 %v16548_v29  ;;  %8002 = vmatpush1.bf16.msra.mxu0 %v16558_v37  ;;  %v18846_v48 = vcombine.low %v444_v43, %v456_v18  ;;  %v16575_v43 = vld [vmem:[%s22551_s1 + $0x5ec] ss:$16 sps:$4 sm:$0xff]  }
 0x17e   : > { %9809 = vmatmul.mubr.bf16.gmra.mrb[88].mxu1 %v17953_v59  ;;  %v16567_v59 = vld [vmem:[%s22551_s1 + $0x9a0] ss:$16 sps:$4 sm:$0xff]   ;;  %8003 = vmatprep.subr.bf16.mxu0 %v16563_v19 }
 0x17f   : > { %7879 = vmatmul.mubr.bf16.gmra.mrb[24].mxu0 %v18804_v35  ;;  %9818 = vmatprep.mubr.bf16.mxu1 %v17957_v1  ;;  %22695 = vst [vmem:[#allocation68_spill] sm:$0xff] %v18846_v48  ;;  %v16564_v1 = vld [vmem:[%s22551_s1 + $0x5c8] ss:$16 sps:$4 sm:$0xff]  }
 0x180   : > { %7888 = vmatprep.mubr.bf16.mxu0 %v18814_v8  ;;  %9934 = vmatpush1.bf16.msra.mxu1 %v16546_v39  ;;  %v16572_v39 = vld [vmem:[%s22551_s1 + $0x9c4] ss:$16 sps:$4 sm:$0xff]  }
 0x181   : > { %v18842_v29 = vpop.f32.mrb[48].mxu1  ;;  %9935 = vmatprep.subr.bf16.mxu1 %v16557_v4  ;;  %8004 = vmatpush1.bf16.msra.mxu0 %v16561_v27  ;;  %v16570_v4 = vld [vmem:[%s22551_s1 + $0x9c0] ss:$16 sps:$4 sm:$0xff]   ;;  %v504_v27 = vld [vmem:[%s17635_s28 + $0x738] sm:$0xff] }
 0x182   : > { %22693 = vst [vmem:[#allocation66_spill] sm:$0xff] %v18842_v29  ;;  %v18844_v37 = vpop.f32.mrb[49].mxu1  ;;  %8005 = vmatprep.subr.bf16.mxu0 %v16569_v17  ;;  %v18856_v29 = vcombine.high %v468_v61, %v480_v3  ;;  %v492_v17 = vld [vmem:[%s17635_s28 + $0x6d8] sm:$0xff] }
 0x183   : > { %22694 = vst [vmem:[#allocation67_spill] sm:$0xff] %v18844_v37  ;;  %v18854_v19 = vpop.f32.mrb[50].mxu1  ;;  %v16578_v37 = vld [vmem:[%s22551_s1 + $0x9e4] ss:$16 sps:$4 sm:$0xff]  }
 0x184   : > { %22696 = vst [vmem:[#allocation69_spill] sm:$0xff] %v18854_v19  ;;  %22697 = vst [vmem:[#allocation70_spill] sm:$0xff] %v18856_v29  ;;  %v18864_v18 = vpop.f32.mrb[51].mxu1  ;;  %9936 = vmatpush1.bf16.msra.mxu1 %v16555_v63  ;;  %v16573_v19 = vld [vmem:[%s22551_s1 + $0x5e8] ss:$16 sps:$4 sm:$0xff]  }
 0x185   : > { %22698 = vst [vmem:[#allocation71_spill] sm:$0xff] %v18864_v18  ;;  %9937 = vmatprep.subr.bf16.mxu1 %v16566_v45  ;;  %8006 = vmatpush1.bf16.msra.mxu0 %v16567_v59  ;;  %v16576_v63 = vld [vmem:[%s22551_s1 + $0x9e0] ss:$16 sps:$4 sm:$0xff]   ;;  %v18888_v18 = vcombine.low %v468_v61, %v480_v3  ;;  %v516_v61 = vld [vmem:[%s17635_s28 + $0x798] sm:$0xff] }
 0x186   : > { %9819 = vmatmul.mubr.bf16.gmra.mrb[92].mxu1 %v17993_v23  ;;  %v16581_v23 = vld [vmem:[%s22551_s1 + $0x60c] ss:$16 sps:$4 sm:$0xff]   ;;  %8007 = vmatprep.subr.bf16.mxu0 %v16572_v39 }
 0x187   : > { %7889 = vmatmul.mubr.bf16.gmra.mrb[28].mxu0 %v18846_v48  ;;  %9828 = vmatprep.mubr.bf16.mxu1 %v17997_v25  ;;  %v528_v3 = vld [vmem:[%s17635_s28 + $0x7f8] sm:$0xff] }
 0x188   : > { %7898 = vmatprep.mubr.bf16.mxu0 %v18856_v29  ;;  %9938 = vmatpush1.bf16.msra.mxu1 %v16564_v1  ;;  %v18892_v29 = vcombine.high %v492_v17, %v504_v27  ;;  %v16605_v1 = vld [vmem:[%s22551_s1 + $0xa04] ss:$16 sps:$4 sm:$0xff]  }
 0x189   : > { %v18884_v45 = vpop.f32.mrb[52].mxu1  ;;  %9939 = vmatprep.subr.bf16.mxu1 %v16575_v43  ;;  %8008 = vmatpush1.bf16.msra.mxu0 %v16570_v4  ;;  %v18913_v43 = vcombine.high %v516_v61, %v528_v3 }
 0x18a   : > { %22699 = vst [vmem:[#allocation72_spill] sm:$0xff] %v18884_v45  ;;  %v18886_v59 = vpop.f32.mrb[53].mxu1  ;;  %8009 = vmatprep.subr.bf16.mxu0 %v16578_v37  ;;  %v648_v45 = vld [vmem:[%s17635_s28 + $0xbb8] sm:$0xff] }
 0x18b   : > { %22700 = vst [vmem:[#allocation73_spill] sm:$0xff] %v18886_v59  ;;  %v18890_v25 = vpop.f32.mrb[54].mxu1 }
 0x18c   : > { %22701 = vst [vmem:[#allocation74_spill] sm:$0xff] %v18890_v25  ;;  %v18894_v48 = vpop.f32.mrb[55].mxu1  ;;  %9940 = vmatpush1.bf16.msra.mxu1 %v16573_v19  ;;  %v18909_v19 = vcombine.low %v492_v17, %v504_v27  ;;  %v624_v25 = vld [vmem:[%s17635_s28 + $0xaf8] sm:$0xff] }
 0x18d   : > { %22702 = vst [vmem:[#allocation75_spill] sm:$0xff] %v18894_v48  ;;  %8010 = vmatpush1.bf16.msra.mxu0 %v16576_v63  ;;  %10102 = vmatprep.subr.bf16.mxu1 %v16581_v23  ;;  %v540_v63 = vld [vmem:[%s17635_s28 + $0x858] sm:$0xff] }
 0x18e   : > { %9829 = vmatmul.mubr.bf16.gmra.mrb[96].mxu1 %v18033_v51  ;;  %8172 = vmatprep.subr.bf16.mxu0 %v16605_v1  ;;  %v552_v23 = vld [vmem:[%s17635_s28 + $0x8b8] sm:$0xff]  ;;  %v18927_v1 = vcombine.low %v516_v61, %v528_v3 }
 0x18f   : > { %7899 = vmatmul.mubr.bf16.gmra.mrb[32].mxu0 %v18888_v18  ;;  %9838 = vmatprep.mubr.bf16.mxu1 %v18037_v54  ;;  %v22707_v54 = vld [vmem:[#allocation2_spill] sm:$0xff]  ;;  %v576_v61 = vld [vmem:[%s17635_s28 + $0x978] sm:$0xff]  ;;  %v18941_v3 = vcombine.low %v540_v63, %v552_v23 }
 0x190   : > { %7908 = vmatprep.mubr.bf16.mxu0 %v18892_v29 }
 0x191   : > { %v18905_v37 = vpop.f32.mrb[56].mxu1 }
 0x192   : > { %22703 = vst [vmem:[#allocation76_spill] sm:$0xff] %v18905_v37  ;;  %v18907_v39 = vpop.f32.mrb[57].mxu1  ;;  %v600_v37 = vld [vmem:[%s17635_s28 + $0xa38] sm:$0xff] }
 0x193   : > { %22704 = vst [vmem:[#allocation77_spill] sm:$0xff] %v18907_v39  ;;  %v18911_v4 = vpop.f32.mrb[58].mxu1  ;;  %v22712_v39 = vld [vmem:[#allocation3_spill] sm:$0xff] }
 0x194   : > { %22705 = vst [vmem:[#allocation78_spill] sm:$0xff] %v18911_v4  ;;  %v18915_v51 = vpop.f32.mrb[59].mxu1  ;;  %v18931_v4 = vcombine.high %v540_v63, %v552_v23  ;;  %v22718_v63 = vld [vmem:[#allocation7_spill] sm:$0xff]  ;;  %v22719_v23 = vld [vmem:[#allocation8_spill] sm:$0xff] }
 0x195   : > { %22706 = vst [vmem:[#allocation79_spill] sm:$0xff] %v18915_v51 }
 0x196   : > { %9839 = vmatmul.mubr.bf16.gmra.mrb[100].mxu1 %v18055_v7 }
 0x197   : > { %7909 = vmatmul.mubr.bf16.gmra.mrb[36].mxu0 %v18909_v19  ;;  %9848 = vmatprep.mubr.bf16.mxu1 %v22707_v54  ;;  %v22713_v54 = vld [vmem:[#allocation4_spill] sm:$0xff] }
 0x198   : > { %7918 = vmatprep.mubr.bf16.mxu0 %v18913_v43 }
 0x199   : > { %v18923_v17 = vpop.f32.mrb[60].mxu1 }
 0x19a   : > { %22708 = vst [vmem:[#allocation2_spill] sm:$0xff] %v18923_v17  ;;  %v18925_v27 = vpop.f32.mrb[61].mxu1  ;;  %v564_v17 = vld [vmem:[%s17635_s28 + $0x918] sm:$0xff] }
 0x19b   : > { %22709 = vst [vmem:[#allocation80_spill] sm:$0xff] %v18925_v27  ;;  %v18929_v51 = vpop.f32.mrb[62].mxu1  ;;  %v22714_v27 = vld [vmem:[#allocation5_spill] sm:$0xff] }
 0x19c   : > { %22710 = vst [vmem:[#allocation81_spill] sm:$0xff] %v18929_v51  ;;  %v18933_v7 = vpop.f32.mrb[63].mxu1  ;;  %v18943_v51 = vcombine.high %v564_v17, %v576_v61 }
 0x19d   : > { %22711 = vst [vmem:[#allocation82_spill] sm:$0xff] %v18933_v7  ;;  %v22715_v7 = vld [vmem:[#allocation6_spill] sm:$0xff] }
 0x19e   : > { %9849 = vmatmul.mubr.bf16.gmra.mrb[104].mxu1 %v22712_v39  ;;  %v588_v39 = vld [vmem:[%s17635_s28 + $0x9d8] sm:$0xff] }
 0x19f   : > { %7919 = vmatmul.mubr.bf16.gmra.mrb[40].mxu0 %v18927_v1  ;;  %9858 = vmatprep.mubr.bf16.mxu1 %v22713_v54  ;;  %v18951_v54 = vcombine.low %v564_v17, %v576_v61  ;;  %v18953_v48 = vcombine.high %v588_v39, %v600_v37  ;;  %v22722_v17 = vld [vmem:[#allocation9_spill] sm:$0xff]  ;;  %v22723_v61 = vld [vmem:[#allocation10_spill] sm:$0xff] }
 0x1a0   : > { %7928 = vmatprep.mubr.bf16.mxu0 %v18931_v4 }
 0x1a1   : > { %22716 = vst [vmem:[#allocation3_spill] sm:$0xff] %v18951_v54  ;;  %22717 = vst [vmem:[#allocation4_spill] sm:$0xff] %v18953_v48 }
 0x1a6   : > { %9859 = vmatmul.mubr.bf16.gmra.mrb[108].mxu1 %v22714_v27  ;;  %v612_v27 = vld [vmem:[%s17635_s28 + $0xa98] sm:$0xff] }
 0x1a7   : > { %7929 = vmatmul.mubr.bf16.gmra.mrb[44].mxu0 %v18941_v3  ;;  %9868 = vmatprep.mubr.bf16.mxu1 %v22715_v7  ;;  %v18961_v7 = vcombine.low %v588_v39, %v600_v37  ;;  %v18963_v59 = vcombine.high %v612_v27, %v624_v25  ;;  %v22726_v37 = vld [vmem:[#allocation11_spill] sm:$0xff]  ;;  %v22727_v39 = vld [vmem:[#allocation12_spill] sm:$0xff] }
 0x1a8   : > { %7938 = vmatprep.mubr.bf16.mxu0 %v18943_v51 }
 0x1a9   : > { %22720 = vst [vmem:[#allocation5_spill] sm:$0xff] %v18961_v7  ;;  %22721 = vst [vmem:[#allocation6_spill] sm:$0xff] %v18963_v59 }
 0x1ae   : > { %9869 = vmatmul.mubr.bf16.gmra.mrb[112].mxu1 %v22718_v63  ;;  %v636_v63 = vld [vmem:[%s17635_s28 + $0xb58] sm:$0xff] }
 0x1af   : > { %7939 = vmatmul.mubr.bf16.gmra.mrb[48].mxu0 %v18951_v54  ;;  %9878 = vmatprep.mubr.bf16.mxu1 %v22719_v23  ;;  %v18971_v23 = vcombine.low %v612_v27, %v624_v25  ;;  %v22730_v25 = vld [vmem:[#allocation13_spill] sm:$0xff]  ;;  %v22731_v27 = vld [vmem:[#allocation14_spill] sm:$0xff] }
 0x1b0   : > { %7948 = vmatprep.mubr.bf16.mxu0 %v18953_v48  ;;  %v18973_v48 = vcombine.high %v636_v63, %v648_v45  ;;  %v337_v54 = vld [vmem:[%s17635_s28 + $0x200] sm:$0xff] }
 0x1b1   : > { %22724 = vst [vmem:[#allocation7_spill] sm:$0xff] %v18971_v23 }
 0x1b2   : > { %22725 = vst [vmem:[#allocation8_spill] sm:$0xff] %v18973_v48 }
 0x1b6   : > { %9879 = vmatmul.mubr.bf16.gmra.mrb[116].mxu1 %v22722_v17  ;;  %v277_v17 = vld [vmem:[%s17635_s28 + $0x20] sm:$0xff] }
 0x1b7   : > { %7949 = vmatmul.mubr.bf16.gmra.mrb[52].mxu0 %v18961_v7  ;;  %9888 = vmatprep.mubr.bf16.mxu1 %v22723_v61  ;;  %v18981_v7 = vcombine.low %v636_v63, %v648_v45  ;;  %v16579_v45 = vld [vmem:[%s22551_s1 + $0x608] ss:$16 sps:$4 sm:$0xff]  }
 0x1b8   : > { %7958 = vmatprep.mubr.bf16.mxu0 %v18963_v59  ;;  %v289_v59 = vld [vmem:[%s17635_s28 + $0x80] sm:$0xff] }
 0x1b9   : > { %22728 = vst [vmem:[#allocation9_spill] sm:$0xff] %v18981_v7  ;;  %v18983_v61 = vcombine.high %v277_v17, %v289_v59 }
 0x1bb   : > { %22729 = vst [vmem:[#allocation10_spill] sm:$0xff] %v18983_v61 }
 0x1be   : > { %9889 = vmatmul.mubr.bf16.gmra.mrb[120].mxu1 %v22726_v37  ;;  %v301_v37 = vld [vmem:[%s17635_s28 + $0xe0] sm:$0xff] }
 0x1bf   : > { %7959 = vmatmul.mubr.bf16.gmra.mrb[56].mxu0 %v18971_v23  ;;  %9898 = vmatprep.mubr.bf16.mxu1 %v22727_v39  ;;  %v18991_v23 = vcombine.low %v277_v17, %v289_v59  ;;  %v16584_v39 = vld [vmem:[%s22551_s1 + $0x62c] ss:$16 sps:$4 sm:$0xff]   ;;  %v16611_v59 = vld [vmem:[%s22551_s1 + $0xa24] ss:$16 sps:$4 sm:$0xff]   ;;  %v16582_v17 = vld [vmem:[%s22551_s1 + $0x628] ss:$16 sps:$4 sm:$0xff]  }
 0x1c0   : > { %7968 = vmatprep.mubr.bf16.mxu0 %v18973_v48  ;;  %v313_v48 = vld [vmem:[%s17635_s28 + $0x140] sm:$0xff] }
 0x1c1   : > { %22732 = vst [vmem:[#allocation11_spill] sm:$0xff] %v18991_v23  ;;  %v18996_v63 = vcombine.high %v301_v37, %v313_v48 }
 0x1c3   : > { %22733 = vst [vmem:[#allocation12_spill] sm:$0xff] %v18996_v63 }
 0x1c6   : > { %9899 = vmatmul.mubr.bf16.gmra.mrb[124].mxu1 %v22730_v25  ;;  %v16603_v25 = vld [vmem:[%s22551_s1 + $0xa00] ss:$16 sps:$4 sm:$0xff]  }
 0x1c7   : > { %7969 = vmatmul.mubr.bf16.gmra.mrb[60].mxu0 %v18981_v7  ;;  %9941 = vmatprep.mubr.bf16.mxu1 %v22731_v27  ;;  %v22734_v27 = vld [vmem:[#allocation15_spill] sm:$0xff]  ;;  %v325_v7 = vld [vmem:[%s17635_s28 + $0x1a0] sm:$0xff] }
 0x1c8   : > { %8011 = vmatprep.mubr.bf16.mxu0 %v18983_v61  ;;  %v22735_v61 = vld [vmem:[#allocation16_spill] sm:$0xff] }
 0x1ce   : > { %9942 = vmatmul.mubr.bf16.vlgmr.msra.gmra.mrb[64].mxu1 %v22734_v27  ;;  %v16587_v27 = vld [vmem:[%s22551_s1 + $0x64c] ss:$16 sps:$4 sm:$0xff]  }
 0x1cf   : > { %8012 = vmatmul.mubr.bf16.vlgmr.msra.gmra.mrb[0].mxu0 %v18991_v23  ;;  %10103 = vmatpush1.bf16.msra.mxu1 %v16579_v45  ;;  %v16609_v45 = vld [vmem:[%s22551_s1 + $0xa20] ss:$16 sps:$4 sm:$0xff]   ;;  %v19022_v23 = vcombine.low %v301_v37, %v313_v48  ;;  %v16590_v48 = vld [vmem:[%s22551_s1 + $0x66c] ss:$16 sps:$4 sm:$0xff]  }
 0x1d0   : > { %8021 = vmatprep.mubr.bf16.mxu0 %v18996_v63  ;;  %9951 = vmatprep.mubr.bf16.mxu1 %v22735_v61  ;;  %v19024_v63 = vcombine.high %v325_v7, %v337_v54  ;;  %v16585_v61 = vld [vmem:[%s22551_s1 + $0x648] ss:$16 sps:$4 sm:$0xff]   ;;  %v16612_v37 = vld [vmem:[%s22551_s1 + $0xa40] ss:$16 sps:$4 sm:$0xff]  }
 0x1d1   : > { %10104 = vmatprep.subr.bf16.mxu1 %v16584_v39  ;;  %8173 = vmatpush1.bf16.msra.mxu0 %v16603_v25  ;;  %v16614_v39 = vld [vmem:[%s22551_s1 + $0xa44] ss:$16 sps:$4 sm:$0xff]  }
 0x1d2   : > { %8174 = vmatprep.subr.bf16.mxu0 %v16611_v59  ;;  %22736 = vst [vmem:[#allocation13_spill] sm:$0xff] %v19024_v63  ;;  %v16620_v25 = vld [vmem:[%s22551_s1 + $0xa64] ss:$16 sps:$4 sm:$0xff]   ;;  %v22737_v59 = vld [vmem:[#allocation17_spill] sm:$0xff] }
 0x1d3   : > { %10105 = vmatpush1.bf16.msra.mxu1 %v16582_v17  ;;  %v349_v17 = vld [vmem:[%s17635_s28 + $0x260] sm:$0xff] }
 0x1d4   : > { %10106 = vmatprep.subr.bf16.mxu1 %v16587_v27  ;;  %v361_v27 = vld [vmem:[%s17635_s28 + $0x2c0] sm:$0xff] }
 0x1d5   : > { %8175 = vmatpush1.bf16.msra.mxu0 %v16609_v45  ;;  %v16588_v45 = vld [vmem:[%s22551_s1 + $0x668] ss:$16 sps:$4 sm:$0xff]  }
 0x1d6   : > { %9952 = vmatmul.mubr.bf16.gmra.mrb[68].mxu1 %v18190_v11  ;;  %8176 = vmatprep.subr.bf16.mxu0 %v16614_v39  ;;  %v16593_v11 = vld [vmem:[%s22551_s1 + $0x68c] ss:$16 sps:$4 sm:$0xff]   ;;  %v16591_v39 = vld [vmem:[%s22551_s1 + $0x688] ss:$16 sps:$4 sm:$0xff]  }
 0x1d7   : > { %8022 = vmatmul.mubr.bf16.gmra.mrb[4].mxu0 %v19022_v23  ;;  %9961 = vmatprep.mubr.bf16.mxu1 %v22737_v59  ;;  %v19056_v59 = vcombine.low %v325_v7, %v337_v54  ;;  %v16621_v54 = vld [vmem:[%s22551_s1 + $0xa80] ss:$16 sps:$4 sm:$0xff]   ;;  %v16629_v7 = vld [vmem:[%s22551_s1 + $0xaa4] ss:$16 sps:$4 sm:$0xff]  }
 0x1d8   : > { %8031 = vmatprep.mubr.bf16.mxu0 %v19024_v63  ;;  %10107 = vmatpush1.bf16.msra.mxu1 %v16585_v61  ;;  %v16618_v63 = vld [vmem:[%s22551_s1 + $0xa60] ss:$16 sps:$4 sm:$0xff]   ;;  %v19058_v61 = vcombine.high %v349_v17, %v361_v27 }
 0x1d9   : > { %10108 = vmatprep.subr.bf16.mxu1 %v16590_v48  ;;  %8177 = vmatpush1.bf16.msra.mxu0 %v16612_v37  ;;  %v16623_v48 = vld [vmem:[%s22551_s1 + $0xa84] ss:$16 sps:$4 sm:$0xff]   ;;  %v16596_v37 = vld [vmem:[%s22551_s1 + $0x6ac] ss:$16 sps:$4 sm:$0xff]  }
 0x1da   : > { %8178 = vmatprep.subr.bf16.mxu0 %v16620_v25  ;;  %v373_v25 = vld [vmem:[%s17635_s28 + $0x320] sm:$0xff] }
 0x1dc   : > { %10109 = vmatpush1.bf16.msra.mxu1 %v16588_v45  ;;  %v385_v45 = vld [vmem:[%s17635_s28 + $0x380] sm:$0xff] }
 0x1dd   : > { %10110 = vmatprep.subr.bf16.mxu1 %v16593_v11  ;;  %8179 = vmatpush1.bf16.msra.mxu0 %v16618_v63  ;;  %v16594_v63 = vld [vmem:[%s22551_s1 + $0x6a8] ss:$16 sps:$4 sm:$0xff]   ;;  %v16627_v11 = vld [vmem:[%s22551_s1 + $0xaa0] ss:$16 sps:$4 sm:$0xff]  }
 0x1de   : > { %9962 = vmatmul.mubr.bf16.gmra.mrb[72].mxu1 %v18224_v49  ;;  %8180 = vmatprep.subr.bf16.mxu0 %v16623_v48  ;;  %v16599_v49 = vld [vmem:[%s22551_s1 + $0x6cc] ss:$16 sps:$4 sm:$0xff]   ;;  %v16597_v48 = vld [vmem:[%s22551_s1 + $0x6c8] ss:$16 sps:$4 sm:$0xff]  }
 0x1df   : > { %8032 = vmatmul.mubr.bf16.gmra.mrb[8].mxu0 %v19056_v59  ;;  %9971 = vmatprep.mubr.bf16.mxu1 %v18232_v5  ;;  %v19090_v5 = vcombine.low %v349_v17, %v361_v27  ;;  %v16630_v17 = vld [vmem:[%s22551_s1 + $0xac0] ss:$16 sps:$4 sm:$0xff]   ;;  %v16638_v27 = vld [vmem:[%s22551_s1 + $0xae4] ss:$16 sps:$4 sm:$0xff]  }
 0x1e0   : > { %8041 = vmatprep.mubr.bf16.mxu0 %v19058_v61  ;;  %10111 = vmatpush1.bf16.msra.mxu1 %v16591_v39  ;;  %v19092_v39 = vcombine.high %v373_v25, %v385_v45 }
 0x1e1   : > { %10112 = vmatprep.subr.bf16.mxu1 %v16596_v37  ;;  %8181 = vmatpush1.bf16.msra.mxu0 %v16621_v54  ;;  %v16632_v37 = vld [vmem:[%s22551_s1 + $0xac4] ss:$16 sps:$4 sm:$0xff]   ;;  %v16602_v54 = vld [vmem:[%s22551_s1 + $0x6ec] ss:$16 sps:$4 sm:$0xff]  }
 0x1e2   : > { %8182 = vmatprep.subr.bf16.mxu0 %v16629_v7  ;;  %v397_v7 = vld [vmem:[%s17635_s28 + $0x3e0] sm:$0xff] }
 0x1e4   : > { %10113 = vmatpush1.bf16.msra.mxu1 %v16594_v63  ;;  %v409_v63 = vld [vmem:[%s17635_s28 + $0x440] sm:$0xff] }
 0x1e5   : > { %10114 = vmatprep.subr.bf16.mxu1 %v16599_v49  ;;  %8183 = vmatpush1.bf16.msra.mxu0 %v16627_v11  ;;  %v16600_v49 = vld [vmem:[%s22551_s1 + $0x6e8] ss:$16 sps:$4 sm:$0xff]   ;;  %v16636_v11 = vld [vmem:[%s22551_s1 + $0xae0] ss:$16 sps:$4 sm:$0xff]  }
 0x1e6   : > { %9972 = vmatmul.mubr.bf16.gmra.mrb[76].mxu1 %v18258_v56  ;;  %8184 = vmatprep.subr.bf16.mxu0 %v16632_v37  ;;  %v16608_v56 = vld [vmem:[%s22551_s1 + $0x70c] ss:$16 sps:$4 sm:$0xff]   ;;  %v16606_v37 = vld [vmem:[%s22551_s1 + $0x708] ss:$16 sps:$4 sm:$0xff]  }
 0x1e7   : > { %8042 = vmatmul.mubr.bf16.gmra.mrb[12].mxu0 %v19090_v5  ;;  %9981 = vmatprep.mubr.bf16.mxu1 %v18266_v26  ;;  %v19124_v26 = vcombine.low %v373_v25, %v385_v45  ;;  %v16639_v25 = vld [vmem:[%s22551_s1 + $0xb00] ss:$16 sps:$4 sm:$0xff]   ;;  %v16647_v45 = vld [vmem:[%s22551_s1 + $0xb24] ss:$16 sps:$4 sm:$0xff]  }
 0x1e8   : > { %8051 = vmatprep.mubr.bf16.mxu0 %v19092_v39  ;;  %10115 = vmatpush1.bf16.msra.mxu1 %v16597_v48  ;;  %v19126_v48 = vcombine.high %v397_v7, %v409_v63 }
 0x1e9   : > { %10116 = vmatprep.subr.bf16.mxu1 %v16602_v54  ;;  %8185 = vmatpush1.bf16.msra.mxu0 %v16630_v17  ;;  %v16641_v54 = vld [vmem:[%s22551_s1 + $0xb04] ss:$16 sps:$4 sm:$0xff]   ;;  %v16617_v17 = vld [vmem:[%s22551_s1 + $0x72c] ss:$16 sps:$4 sm:$0xff]  }
 0x1ea   : > { %8186 = vmatprep.subr.bf16.mxu0 %v16638_v27  ;;  %v421_v27 = vld [vmem:[%s17635_s28 + $0x4a0] sm:$0xff] }
 0x1ec   : > { %10117 = vmatpush1.bf16.msra.mxu1 %v16600_v49  ;;  %v433_v49 = vld [vmem:[%s17635_s28 + $0x500] sm:$0xff] }
 0x1ed   : > { %10118 = vmatprep.subr.bf16.mxu1 %v16608_v56  ;;  %8187 = vmatpush1.bf16.msra.mxu0 %v16636_v11  ;;  %v16615_v56 = vld [vmem:[%s22551_s1 + $0x728] ss:$16 sps:$4 sm:$0xff]   ;;  %v16645_v11 = vld [vmem:[%s22551_s1 + $0xb20] ss:$16 sps:$4 sm:$0xff]  }
 0x1ee   : > { %9982 = vmatmul.mubr.bf16.gmra.mrb[80].mxu1 %v18292_v21  ;;  %8188 = vmatprep.subr.bf16.mxu0 %v16641_v54  ;;  %v16626_v21 = vld [vmem:[%s22551_s1 + $0x74c] ss:$16 sps:$4 sm:$0xff]   ;;  %v16624_v54 = vld [vmem:[%s22551_s1 + $0x748] ss:$16 sps:$4 sm:$0xff]  }
 0x1ef   : > { %8052 = vmatmul.mubr.bf16.gmra.mrb[16].mxu0 %v19124_v26  ;;  %9991 = vmatprep.mubr.bf16.mxu1 %v18300_v42  ;;  %v19158_v42 = vcombine.low %v397_v7, %v409_v63  ;;  %v16648_v7 = vld [vmem:[%s22551_s1 + $0xb40] ss:$16 sps:$4 sm:$0xff]   ;;  %v16656_v63 = vld [vmem:[%s22551_s1 + $0xb64] ss:$16 sps:$4 sm:$0xff]  }
 0x1f0   : > { %8061 = vmatprep.mubr.bf16.mxu0 %v19126_v48  ;;  %10119 = vmatpush1.bf16.msra.mxu1 %v16606_v37  ;;  %v19160_v37 = vcombine.high %v421_v27, %v433_v49 }
 0x1f1   : > { %10120 = vmatprep.subr.bf16.mxu1 %v16617_v17  ;;  %8189 = vmatpush1.bf16.msra.mxu0 %v16639_v25  ;;  %v16650_v17 = vld [vmem:[%s22551_s1 + $0xb44] ss:$16 sps:$4 sm:$0xff]   ;;  %v16635_v25 = vld [vmem:[%s22551_s1 + $0x76c] ss:$16 sps:$4 sm:$0xff]  }
 0x1f2   : > { %8190 = vmatprep.subr.bf16.mxu0 %v16647_v45  ;;  %v445_v45 = vld [vmem:[%s17635_s28 + $0x560] sm:$0xff] }
 0x1f4   : > { %10121 = vmatpush1.bf16.msra.mxu1 %v16615_v56  ;;  %v457_v56 = vld [vmem:[%s17635_s28 + $0x5c0] sm:$0xff] }
 0x1f5   : > { %10122 = vmatprep.subr.bf16.mxu1 %v16626_v21  ;;  %8191 = vmatpush1.bf16.msra.mxu0 %v16645_v11  ;;  %v16633_v21 = vld [vmem:[%s22551_s1 + $0x768] ss:$16 sps:$4 sm:$0xff]   ;;  %v16654_v11 = vld [vmem:[%s22551_s1 + $0xb60] ss:$16 sps:$4 sm:$0xff]  }
 0x1f6   : > { %9992 = vmatmul.mubr.bf16.gmra.mrb[84].mxu1 %v18326_v47  ;;  %8192 = vmatprep.subr.bf16.mxu0 %v16650_v17  ;;  %v16644_v47 = vld [vmem:[%s22551_s1 + $0x78c] ss:$16 sps:$4 sm:$0xff]   ;;  %v16642_v17 = vld [vmem:[%s22551_s1 + $0x788] ss:$16 sps:$4 sm:$0xff]  }
 0x1f7   : > { %8062 = vmatmul.mubr.bf16.gmra.mrb[20].mxu0 %v19158_v42  ;;  %10001 = vmatprep.mubr.bf16.mxu1 %v18334_v60  ;;  %v19192_v60 = vcombine.low %v421_v27, %v433_v49  ;;  %v16657_v27 = vld [vmem:[%s22551_s1 + $0xb80] ss:$16 sps:$4 sm:$0xff]   ;;  %v16665_v49 = vld [vmem:[%s22551_s1 + $0xba4] ss:$16 sps:$4 sm:$0xff]  }
 0x1f8   : > { %8071 = vmatprep.mubr.bf16.mxu0 %v19160_v37  ;;  %10123 = vmatpush1.bf16.msra.mxu1 %v16624_v54  ;;  %v19194_v54 = vcombine.high %v445_v45, %v457_v56 }
 0x1f9   : > { %10124 = vmatprep.subr.bf16.mxu1 %v16635_v25  ;;  %8193 = vmatpush1.bf16.msra.mxu0 %v16648_v7  ;;  %v16659_v25 = vld [vmem:[%s22551_s1 + $0xb84] ss:$16 sps:$4 sm:$0xff]   ;;  %v16653_v7 = vld [vmem:[%s22551_s1 + $0x7ac] ss:$16 sps:$4 sm:$0xff]  }
 0x1fa   : > { %8194 = vmatprep.subr.bf16.mxu0 %v16656_v63  ;;  %v469_v63 = vld [vmem:[%s17635_s28 + $0x620] sm:$0xff] }
 0x1fc   : > { %10125 = vmatpush1.bf16.msra.mxu1 %v16633_v21  ;;  %v481_v21 = vld [vmem:[%s17635_s28 + $0x680] sm:$0xff] }
 0x1fd   : > { %10126 = vmatprep.subr.bf16.mxu1 %v16644_v47  ;;  %8195 = vmatpush1.bf16.msra.mxu0 %v16654_v11  ;;  %v16651_v47 = vld [vmem:[%s22551_s1 + $0x7a8] ss:$16 sps:$4 sm:$0xff]   ;;  %v16663_v11 = vld [vmem:[%s22551_s1 + $0xba0] ss:$16 sps:$4 sm:$0xff]  }
 0x1fe   : > { %10002 = vmatmul.mubr.bf16.gmra.mrb[88].mxu1 %v18360_v20  ;;  %8196 = vmatprep.subr.bf16.mxu0 %v16659_v25  ;;  %v16662_v20 = vld [vmem:[%s22551_s1 + $0x7cc] ss:$16 sps:$4 sm:$0xff]   ;;  %v16660_v25 = vld [vmem:[%s22551_s1 + $0x7c8] ss:$16 sps:$4 sm:$0xff]  }
 0x1ff   : > { %8072 = vmatmul.mubr.bf16.gmra.mrb[24].mxu0 %v19192_v60  ;;  %10011 = vmatprep.mubr.bf16.mxu1 %v18368_v16  ;;  %v19226_v16 = vcombine.low %v445_v45, %v457_v56  ;;  %v16666_v45 = vld [vmem:[%s22551_s1 + $0xbc0] ss:$16 sps:$4 sm:$0xff]   ;;  %v16671_v56 = vld [vmem:[%s22551_s1 + $0x7ec] ss:$16 sps:$4 sm:$0xff]  }
 0x200   : > { %8081 = vmatprep.mubr.bf16.mxu0 %v19194_v54  ;;  %10127 = vmatpush1.bf16.msra.mxu1 %v16642_v17  ;;  %v19228_v17 = vcombine.high %v469_v63, %v481_v21 }
 0x201   : > { %10128 = vmatprep.subr.bf16.mxu1 %v16653_v7  ;;  %8197 = vmatpush1.bf16.msra.mxu0 %v16657_v27  ;;  %v16668_v7 = vld [vmem:[%s22551_s1 + $0xbc4] ss:$16 sps:$4 sm:$0xff]  }
 0x202   : > { %8198 = vmatprep.subr.bf16.mxu0 %v16665_v49  ;;  %v16674_v27 = vld [vmem:[%s22551_s1 + $0xbe4] ss:$16 sps:$4 sm:$0xff]  }
 0x203   : > { %v493_v49 = vld [vmem:[%s17635_s28 + $0x6e0] sm:$0xff] }
 0x204   : > { %10129 = vmatpush1.bf16.msra.mxu1 %v16651_v47  ;;  %v505_v47 = vld [vmem:[%s17635_s28 + $0x740] sm:$0xff] }
 0x205   : > { %10130 = vmatprep.subr.bf16.mxu1 %v16662_v20  ;;  %8199 = vmatpush1.bf16.msra.mxu0 %v16663_v11  ;;  %v16669_v20 = vld [vmem:[%s22551_s1 + $0x7e8] ss:$16 sps:$4 sm:$0xff]   ;;  %v19260_v11 = vcombine.low %v469_v63, %v481_v21  ;;  %v517_v63 = vld [vmem:[%s17635_s28 + $0x7a0] sm:$0xff] }
 0x206   : > { %10012 = vmatmul.mubr.bf16.gmra.mrb[92].mxu1 %v18394_v40  ;;  %8200 = vmatprep.subr.bf16.mxu0 %v16668_v7  ;;  %v16672_v40 = vld [vmem:[%s22551_s1 + $0xbe0] ss:$16 sps:$4 sm:$0xff]   ;;  %v16701_v7 = vld [vmem:[%s22551_s1 + $0xc04] ss:$16 sps:$4 sm:$0xff]  }
 0x207   : > { %8082 = vmatmul.mubr.bf16.gmra.mrb[28].mxu0 %v19226_v16  ;;  %10021 = vmatprep.mubr.bf16.mxu1 %v18402_v36  ;;  %v16677_v36 = vld [vmem:[%s22551_s1 + $0x80c] ss:$16 sps:$4 sm:$0xff]   ;;  %v529_v21 = vld [vmem:[%s17635_s28 + $0x800] sm:$0xff] }
 0x208   : > { %8091 = vmatprep.mubr.bf16.mxu0 %v19228_v17  ;;  %10131 = vmatpush1.bf16.msra.mxu1 %v16660_v25  ;;  %v19262_v25 = vcombine.high %v493_v49, %v505_v47 }
 0x209   : > { %10132 = vmatprep.subr.bf16.mxu1 %v16671_v56  ;;  %8201 = vmatpush1.bf16.msra.mxu0 %v16666_v45  ;;  %v19273_v45 = vcombine.low %v493_v49, %v505_v47  ;;  %v19275_v56 = vcombine.high %v517_v63, %v529_v21  ;;  %v577_v49 = vld [vmem:[%s17635_s28 + $0x980] sm:$0xff] }
 0x20a   : > { %8202 = vmatprep.subr.bf16.mxu0 %v16674_v27  ;;  %v19283_v27 = vcombine.low %v517_v63, %v529_v21  ;;  %v649_v21 = vld [vmem:[%s17635_s28 + $0xbc0] sm:$0xff] }
 0x20c   : > { %10133 = vmatpush1.bf16.msra.mxu1 %v16669_v20 }
 0x20d   : > { %8203 = vmatpush1.bf16.msra.mxu0 %v16672_v40  ;;  %10295 = vmatprep.subr.bf16.mxu1 %v16677_v36  ;;  %v601_v40 = vld [vmem:[%s17635_s28 + $0xa40] sm:$0xff] }
 0x20e   : > { %10022 = vmatmul.mubr.bf16.gmra.mrb[96].mxu1 %v18428_v34  ;;  %8365 = vmatprep.subr.bf16.mxu0 %v16701_v7  ;;  %v541_v34 = vld [vmem:[%s17635_s28 + $0x860] sm:$0xff] }
 0x20f   : > { %8092 = vmatmul.mubr.bf16.gmra.mrb[32].mxu0 %v19260_v11  ;;  %10031 = vmatprep.mubr.bf16.mxu1 %v18430_v44  ;;  %v553_v44 = vld [vmem:[%s17635_s28 + $0x8c0] sm:$0xff] }
 0x210   : > { %8101 = vmatprep.mubr.bf16.mxu0 %v19262_v25  ;;  %v19285_v20 = vcombine.high %v541_v34, %v553_v44  ;;  %v625_v7 = vld [vmem:[%s17635_s28 + $0xb00] sm:$0xff] }
 0x216   : > { %10032 = vmatmul.mubr.bf16.gmra.mrb[100].mxu1 %v18441_v14  ;;  %v565_v14 = vld [vmem:[%s17635_s28 + $0x920] sm:$0xff] }
 0x217   : > { %8102 = vmatmul.mubr.bf16.gmra.mrb[36].mxu0 %v19273_v45  ;;  %10041 = vmatprep.mubr.bf16.mxu1 %v18443_v0  ;;  %v19293_v0 = vcombine.low %v541_v34, %v553_v44  ;;  %v19295_v47 = vcombine.high %v565_v14, %v577_v49  ;;  %v290_v44 = vld [vmem:[%s17635_s28 + $0x88] sm:$0xff] }
 0x218   : > { %8111 = vmatprep.mubr.bf16.mxu0 %v19275_v56 }
 0x21e   : > { %10042 = vmatmul.mubr.bf16.gmra.mrb[104].mxu1 %v18451_v38  ;;  %v589_v38 = vld [vmem:[%s17635_s28 + $0x9e0] sm:$0xff] }
 0x21f   : > { %8112 = vmatmul.mubr.bf16.gmra.mrb[40].mxu0 %v19283_v27  ;;  %10051 = vmatprep.mubr.bf16.mxu1 %v18453_v53  ;;  %v19303_v53 = vcombine.low %v565_v14, %v577_v49  ;;  %v19305_v36 = vcombine.high %v589_v38, %v601_v40  ;;  %v314_v49 = vld [vmem:[%s17635_s28 + $0x148] sm:$0xff] }
 0x220   : > { %8121 = vmatprep.mubr.bf16.mxu0 %v19285_v20 }
 0x226   : > { %10052 = vmatmul.mubr.bf16.gmra.mrb[108].mxu1 %v18465_v13  ;;  %v613_v13 = vld [vmem:[%s17635_s28 + $0xaa0] sm:$0xff] }
 0x227   : > { %8122 = vmatmul.mubr.bf16.gmra.mrb[44].mxu0 %v19293_v0  ;;  %10061 = vmatprep.mubr.bf16.mxu1 %v18469_v31  ;;  %v19313_v31 = vcombine.low %v589_v38, %v601_v40  ;;  %v19315_v63 = vcombine.high %v613_v13, %v625_v7 }
 0x228   : > { %8131 = vmatprep.mubr.bf16.mxu0 %v19295_v47 }
 0x22e   : > { %10062 = vmatmul.mubr.bf16.gmra.mrb[112].mxu1 %v18483_v58  ;;  %v637_v58 = vld [vmem:[%s17635_s28 + $0xb60] sm:$0xff] }
 0x22f   : > { %8132 = vmatmul.mubr.bf16.gmra.mrb[48].mxu0 %v19303_v53  ;;  %10071 = vmatprep.mubr.bf16.mxu1 %v18487_v28  ;;  %v19323_v28 = vcombine.low %v613_v13, %v625_v7  ;;  %v19325_v34 = vcombine.high %v637_v58, %v649_v21  ;;  %v19333_v14 = vcombine.low %v637_v58, %v649_v21  ;;  %v16707_v13 = vld [vmem:[%s22551_s1 + $0xc24] ss:$16 sps:$4 sm:$0xff]   ;;  %v16678_v7 = vld [vmem:[%s22551_s1 + $0x828] ss:$16 sps:$4 sm:$0xff]  }
 0x230   : > { %8141 = vmatprep.mubr.bf16.mxu0 %v19305_v36  ;;  %v326_v58 = vld [vmem:[%s17635_s28 + $0x1a8] sm:$0xff] }
 0x231   : > { %v338_v21 = vld [vmem:[%s17635_s28 + $0x208] sm:$0xff] }
 0x236   : > { %10072 = vmatmul.mubr.bf16.gmra.mrb[116].mxu1 %v18501_v2  ;;  %v278_v2 = vld [vmem:[%s17635_s28 + $0x28] sm:$0xff] }
 0x237   : > { %8142 = vmatmul.mubr.bf16.gmra.mrb[52].mxu0 %v19313_v31  ;;  %10081 = vmatprep.mubr.bf16.mxu1 %v18505_v50  ;;  %v19335_v50 = vcombine.high %v278_v2, %v290_v44  ;;  %v19343_v38 = vcombine.low %v278_v2, %v290_v44  ;;  %v16705_v2 = vld [vmem:[%s22551_s1 + $0xc20] ss:$16 sps:$4 sm:$0xff]  }
 0x238   : > { %8151 = vmatprep.mubr.bf16.mxu0 %v19315_v63 }
 0x23e   : > { %10082 = vmatmul.mubr.bf16.gmra.mrb[120].mxu1 %v18519_v24  ;;  %v302_v24 = vld [vmem:[%s17635_s28 + $0xe8] sm:$0xff] }
 0x23f   : > { %8152 = vmatmul.mubr.bf16.gmra.mrb[56].mxu0 %v19323_v28  ;;  %10091 = vmatprep.mubr.bf16.mxu1 %v18523_v22  ;;  %v16675_v22 = vld [vmem:[%s22551_s1 + $0x808] ss:$16 sps:$4 sm:$0xff]   ;;  %v19348_v40 = vcombine.high %v302_v24, %v314_v49  ;;  %v19374_v44 = vcombine.low %v302_v24, %v314_v49  ;;  %v16686_v24 = vld [vmem:[%s22551_s1 + $0x86c] ss:$16 sps:$4 sm:$0xff]   ;;  %v16708_v49 = vld [vmem:[%s22551_s1 + $0xc40] ss:$16 sps:$4 sm:$0xff]  }
 0x240   : > { %8161 = vmatprep.mubr.bf16.mxu0 %v19325_v34 }
 0x246   : > { %10092 = vmatmul.mubr.bf16.gmra.mrb[124].mxu1 %v18537_v52  ;;  %v16680_v52 = vld [vmem:[%s22551_s1 + $0x82c] ss:$16 sps:$4 sm:$0xff]  }
 0x247   : > { %8162 = vmatmul.mubr.bf16.gmra.mrb[60].mxu0 %v19333_v14  ;;  %10134 = vmatprep.mubr.bf16.mxu1 %v18541_v6  ;;  %v16699_v6 = vld [vmem:[%s22551_s1 + $0xc00] ss:$16 sps:$4 sm:$0xff]  }
 0x248   : > { %8204 = vmatprep.mubr.bf16.mxu0 %v19335_v50 }
 0x24e   : > { %10135 = vmatmul.mubr.bf16.vlgmr.msra.gmra.mrb[64].mxu1 %v18558_v30  ;;  %v16683_v30 = vld [vmem:[%s22551_s1 + $0x84c] ss:$16 sps:$4 sm:$0xff]  }
 0x24f   : > { %8205 = vmatmul.mubr.bf16.vlgmr.msra.gmra.mrb[0].mxu0 %v19343_v38  ;;  %10296 = vmatpush1.bf16.msra.mxu1 %v16675_v22  ;;  %v19376_v22 = vcombine.high %v326_v58, %v338_v21 }
 0x250   : > { %8214 = vmatprep.mubr.bf16.mxu0 %v19348_v40  ;;  %10144 = vmatprep.mubr.bf16.mxu1 %v18565_v55  ;;  %v16681_v55 = vld [vmem:[%s22551_s1 + $0x848] ss:$16 sps:$4 sm:$0xff]  }
 0x251   : > { %10297 = vmatprep.subr.bf16.mxu1 %v16680_v52  ;;  %8366 = vmatpush1.bf16.msra.mxu0 %v16699_v6  ;;  %v16710_v52 = vld [vmem:[%s22551_s1 + $0xc44] ss:$16 sps:$4 sm:$0xff]  }
 0x252   : > { %8367 = vmatprep.subr.bf16.mxu0 %v16707_v13  ;;  %v16716_v6 = vld [vmem:[%s22551_s1 + $0xc64] ss:$16 sps:$4 sm:$0xff]   ;;  %v350_v13 = vld [vmem:[%s17635_s28 + $0x268] sm:$0xff] }
 0x253   : > { %10298 = vmatpush1.bf16.msra.mxu1 %v16678_v7  ;;  %v362_v7 = vld [vmem:[%s17635_s28 + $0x2c8] sm:$0xff] }
 0x254   : > { %10299 = vmatprep.subr.bf16.mxu1 %v16683_v30  ;;  %v16684_v30 = vld [vmem:[%s22551_s1 + $0x868] ss:$16 sps:$4 sm:$0xff]  }
 0x255   : > { %8368 = vmatpush1.bf16.msra.mxu0 %v16705_v2  ;;  %v16714_v2 = vld [vmem:[%s22551_s1 + $0xc60] ss:$16 sps:$4 sm:$0xff]  }
 0x256   : > { %10145 = vmatmul.mubr.bf16.gmra.mrb[68].mxu1 %v18594_v10  ;;  %8369 = vmatprep.subr.bf16.mxu0 %v16710_v52  ;;  %v16689_v10 = vld [vmem:[%s22551_s1 + $0x88c] ss:$16 sps:$4 sm:$0xff]   ;;  %v16687_v52 = vld [vmem:[%s22551_s1 + $0x888] ss:$16 sps:$4 sm:$0xff]  }
 0x257   : > { %8215 = vmatmul.mubr.bf16.gmra.mrb[4].mxu0 %v19374_v44  ;;  %10154 = vmatprep.mubr.bf16.mxu1 %v18604_v9  ;;  %v19408_v9 = vcombine.low %v326_v58, %v338_v21  ;;  %v16717_v58 = vld [vmem:[%s22551_s1 + $0xc80] ss:$16 sps:$4 sm:$0xff]   ;;  %v16725_v21 = vld [vmem:[%s22551_s1 + $0xca4] ss:$16 sps:$4 sm:$0xff]  }
 0x258   : > { %8224 = vmatprep.mubr.bf16.mxu0 %v19376_v22  ;;  %10300 = vmatpush1.bf16.msra.mxu1 %v16681_v55  ;;  %v19410_v55 = vcombine.high %v350_v13, %v362_v7 }
 0x259   : > { %10301 = vmatprep.subr.bf16.mxu1 %v16686_v24  ;;  %8370 = vmatpush1.bf16.msra.mxu0 %v16708_v49  ;;  %v16719_v24 = vld [vmem:[%s22551_s1 + $0xc84] ss:$16 sps:$4 sm:$0xff]   ;;  %v16692_v49 = vld [vmem:[%s22551_s1 + $0x8ac] ss:$16 sps:$4 sm:$0xff]  }
 0x25a   : > { %8371 = vmatprep.subr.bf16.mxu0 %v16716_v6  ;;  %v374_v6 = vld [vmem:[%s17635_s28 + $0x328] sm:$0xff] }
 0x25c   : > { %10302 = vmatpush1.bf16.msra.mxu1 %v16684_v30  ;;  %v386_v30 = vld [vmem:[%s17635_s28 + $0x388] sm:$0xff] }
 0x25d   : > { %10303 = vmatprep.subr.bf16.mxu1 %v16689_v10  ;;  %8372 = vmatpush1.bf16.msra.mxu0 %v16714_v2  ;;  %v16690_v10 = vld [vmem:[%s22551_s1 + $0x8a8] ss:$16 sps:$4 sm:$0xff]   ;;  %v16723_v2 = vld [vmem:[%s22551_s1 + $0xca0] ss:$16 sps:$4 sm:$0xff]  }
 0x25e   : > { %10155 = vmatmul.mubr.bf16.gmra.mrb[72].mxu1 %v18636_v12  ;;  %8373 = vmatprep.subr.bf16.mxu0 %v16719_v24  ;;  %v16695_v12 = vld [vmem:[%s22551_s1 + $0x8cc] ss:$16 sps:$4 sm:$0xff]   ;;  %v16693_v24 = vld [vmem:[%s22551_s1 + $0x8c8] ss:$16 sps:$4 sm:$0xff]  }
 0x25f   : > { %8225 = vmatmul.mubr.bf16.gmra.mrb[8].mxu0 %v19408_v9  ;;  %10164 = vmatprep.mubr.bf16.mxu1 %v18646_v46  ;;  %v19442_v46 = vcombine.low %v350_v13, %v362_v7  ;;  %v16726_v13 = vld [vmem:[%s22551_s1 + $0xcc0] ss:$16 sps:$4 sm:$0xff]   ;;  %v16734_v7 = vld [vmem:[%s22551_s1 + $0xce4] ss:$16 sps:$4 sm:$0xff]  }
 0x260   : > { %8234 = vmatprep.mubr.bf16.mxu0 %v19410_v55  ;;  %10304 = vmatpush1.bf16.msra.mxu1 %v16687_v52  ;;  %v19444_v52 = vcombine.high %v374_v6, %v386_v30 }
 0x261   : > { %10305 = vmatprep.subr.bf16.mxu1 %v16692_v49  ;;  %8374 = vmatpush1.bf16.msra.mxu0 %v16717_v58  ;;  %v16728_v49 = vld [vmem:[%s22551_s1 + $0xcc4] ss:$16 sps:$4 sm:$0xff]   ;;  %v16698_v58 = vld [vmem:[%s22551_s1 + $0x8ec] ss:$16 sps:$4 sm:$0xff]  }
 0x262   : > { %8375 = vmatprep.subr.bf16.mxu0 %v16725_v21  ;;  %v398_v21 = vld [vmem:[%s17635_s28 + $0x3e8] sm:$0xff] }
 0x264   : > { %10306 = vmatpush1.bf16.msra.mxu1 %v16690_v10  ;;  %v410_v10 = vld [vmem:[%s17635_s28 + $0x448] sm:$0xff] }
 0x265   : > { %10307 = vmatprep.subr.bf16.mxu1 %v16695_v12  ;;  %8376 = vmatpush1.bf16.msra.mxu0 %v16723_v2  ;;  %v16696_v12 = vld [vmem:[%s22551_s1 + $0x8e8] ss:$16 sps:$4 sm:$0xff]   ;;  %v16732_v2 = vld [vmem:[%s22551_s1 + $0xce0] ss:$16 sps:$4 sm:$0xff]  }
 0x266   : > { %10165 = vmatmul.mubr.bf16.gmra.mrb[76].mxu1 %v18678_v41  ;;  %8377 = vmatprep.subr.bf16.mxu0 %v16728_v49  ;;  %v16704_v41 = vld [vmem:[%s22551_s1 + $0x90c] ss:$16 sps:$4 sm:$0xff]   ;;  %v16702_v49 = vld [vmem:[%s22551_s1 + $0x908] ss:$16 sps:$4 sm:$0xff]  }
 0x267   : > { %8235 = vmatmul.mubr.bf16.gmra.mrb[12].mxu0 %v19442_v46  ;;  %10174 = vmatprep.mubr.bf16.mxu1 %v18688_v62  ;;  %v19476_v62 = vcombine.low %v374_v6, %v386_v30  ;;  %v16735_v6 = vld [vmem:[%s22551_s1 + $0xd00] ss:$16 sps:$4 sm:$0xff]   ;;  %v16743_v30 = vld [vmem:[%s22551_s1 + $0xd24] ss:$16 sps:$4 sm:$0xff]  }
 0x268   : > { %8244 = vmatprep.mubr.bf16.mxu0 %v19444_v52  ;;  %10308 = vmatpush1.bf16.msra.mxu1 %v16693_v24  ;;  %v19478_v24 = vcombine.high %v398_v21, %v410_v10 }
 0x269   : > { %10309 = vmatprep.subr.bf16.mxu1 %v16698_v58  ;;  %8378 = vmatpush1.bf16.msra.mxu0 %v16726_v13  ;;  %v16737_v58 = vld [vmem:[%s22551_s1 + $0xd04] ss:$16 sps:$4 sm:$0xff]   ;;  %v16713_v13 = vld [vmem:[%s22551_s1 + $0x92c] ss:$16 sps:$4 sm:$0xff]  }
 0x26a   : > { %8379 = vmatprep.subr.bf16.mxu0 %v16734_v7  ;;  %v422_v7 = vld [vmem:[%s17635_s28 + $0x4a8] sm:$0xff] }
 0x26c   : > { %10310 = vmatpush1.bf16.msra.mxu1 %v16696_v12  ;;  %v434_v12 = vld [vmem:[%s17635_s28 + $0x508] sm:$0xff] }
 0x26d   : > { %10311 = vmatprep.subr.bf16.mxu1 %v16704_v41  ;;  %8380 = vmatpush1.bf16.msra.mxu0 %v16732_v2  ;;  %v16711_v41 = vld [vmem:[%s22551_s1 + $0x928] ss:$16 sps:$4 sm:$0xff]   ;;  %v16741_v2 = vld [vmem:[%s22551_s1 + $0xd20] ss:$16 sps:$4 sm:$0xff]  }
 0x26e   : > { %10175 = vmatmul.mubr.bf16.gmra.mrb[80].mxu1 %v18720_v32  ;;  %8381 = vmatprep.subr.bf16.mxu0 %v16737_v58  ;;  %v16722_v32 = vld [vmem:[%s22551_s1 + $0x94c] ss:$16 sps:$4 sm:$0xff]   ;;  %v16720_v58 = vld [vmem:[%s22551_s1 + $0x948] ss:$16 sps:$4 sm:$0xff]  }
 0x26f   : > { %8245 = vmatmul.mubr.bf16.gmra.mrb[16].mxu0 %v19476_v62  ;;  %10184 = vmatprep.mubr.bf16.mxu1 %v18730_v15  ;;  %v19510_v15 = vcombine.low %v398_v21, %v410_v10  ;;  %v16744_v21 = vld [vmem:[%s22551_s1 + $0xd40] ss:$16 sps:$4 sm:$0xff]   ;;  %v16752_v10 = vld [vmem:[%s22551_s1 + $0xd64] ss:$16 sps:$4 sm:$0xff]  }
 0x270   : > { %8254 = vmatprep.mubr.bf16.mxu0 %v19478_v24  ;;  %10312 = vmatpush1.bf16.msra.mxu1 %v16702_v49  ;;  %v19512_v49 = vcombine.high %v422_v7, %v434_v12 }
 0x271   : > { %10313 = vmatprep.subr.bf16.mxu1 %v16713_v13  ;;  %8382 = vmatpush1.bf16.msra.mxu0 %v16735_v6  ;;  %v16746_v13 = vld [vmem:[%s22551_s1 + $0xd44] ss:$16 sps:$4 sm:$0xff]   ;;  %v16731_v6 = vld [vmem:[%s22551_s1 + $0x96c] ss:$16 sps:$4 sm:$0xff]  }
 0x272   : > { %8383 = vmatprep.subr.bf16.mxu0 %v16743_v30  ;;  %v446_v30 = vld [vmem:[%s17635_s28 + $0x568] sm:$0xff] }
 0x274   : > { %10314 = vmatpush1.bf16.msra.mxu1 %v16711_v41  ;;  %v458_v41 = vld [vmem:[%s17635_s28 + $0x5c8] sm:$0xff] }
 0x275   : > { %10315 = vmatprep.subr.bf16.mxu1 %v16722_v32  ;;  %8384 = vmatpush1.bf16.msra.mxu0 %v16741_v2  ;;  %v16729_v32 = vld [vmem:[%s22551_s1 + $0x968] ss:$16 sps:$4 sm:$0xff]   ;;  %v16750_v2 = vld [vmem:[%s22551_s1 + $0xd60] ss:$16 sps:$4 sm:$0xff]  }
 0x276   : > { %10185 = vmatmul.mubr.bf16.gmra.mrb[84].mxu1 %v18762_v57  ;;  %8385 = vmatprep.subr.bf16.mxu0 %v16746_v13  ;;  %v16740_v57 = vld [vmem:[%s22551_s1 + $0x98c] ss:$16 sps:$4 sm:$0xff]   ;;  %v16738_v13 = vld [vmem:[%s22551_s1 + $0x988] ss:$16 sps:$4 sm:$0xff]  }
 0x277   : > { %8255 = vmatmul.mubr.bf16.gmra.mrb[20].mxu0 %v19510_v15  ;;  %10194 = vmatprep.mubr.bf16.mxu1 %v18772_v33  ;;  %v19544_v33 = vcombine.low %v422_v7, %v434_v12  ;;  %v16753_v7 = vld [vmem:[%s22551_s1 + $0xd80] ss:$16 sps:$4 sm:$0xff]   ;;  %v16761_v12 = vld [vmem:[%s22551_s1 + $0xda4] ss:$16 sps:$4 sm:$0xff]  }
 0x278   : > { %8264 = vmatprep.mubr.bf16.mxu0 %v19512_v49  ;;  %10316 = vmatpush1.bf16.msra.mxu1 %v16720_v58  ;;  %v19546_v58 = vcombine.high %v446_v30, %v458_v41 }
 0x279   : > { %10317 = vmatprep.subr.bf16.mxu1 %v16731_v6  ;;  %8386 = vmatpush1.bf16.msra.mxu0 %v16744_v21  ;;  %v16755_v6 = vld [vmem:[%s22551_s1 + $0xd84] ss:$16 sps:$4 sm:$0xff]   ;;  %v16749_v21 = vld [vmem:[%s22551_s1 + $0x9ac] ss:$16 sps:$4 sm:$0xff]  }
 0x27a   : > { %8387 = vmatprep.subr.bf16.mxu0 %v16752_v10  ;;  %22738 = vst [vmem:[#allocation14_spill] sm:$0xff] %v19546_v58  ;;  %v470_v10 = vld [vmem:[%s17635_s28 + $0x628] sm:$0xff] }
 0x27c   : > { %10318 = vmatpush1.bf16.msra.mxu1 %v16729_v32  ;;  %v482_v32 = vld [vmem:[%s17635_s28 + $0x688] sm:$0xff] }
 0x27d   : > { %10319 = vmatprep.subr.bf16.mxu1 %v16740_v57  ;;  %8388 = vmatpush1.bf16.msra.mxu0 %v16750_v2  ;;  %v16747_v57 = vld [vmem:[%s22551_s1 + $0x9a8] ss:$16 sps:$4 sm:$0xff]   ;;  %v16759_v2 = vld [vmem:[%s22551_s1 + $0xda0] ss:$16 sps:$4 sm:$0xff]  }
 0x27e   : > { %10195 = vmatmul.mubr.bf16.gmra.mrb[88].mxu1 %v18804_v35  ;;  %8389 = vmatprep.subr.bf16.mxu0 %v16755_v6  ;;  %v16758_v35 = vld [vmem:[%s22551_s1 + $0x9cc] ss:$16 sps:$4 sm:$0xff]   ;;  %v16756_v6 = vld [vmem:[%s22551_s1 + $0x9c8] ss:$16 sps:$4 sm:$0xff]  }
 0x27f   : > { %8265 = vmatmul.mubr.bf16.gmra.mrb[24].mxu0 %v19544_v33  ;;  %10204 = vmatprep.mubr.bf16.mxu1 %v18814_v8  ;;  %v19578_v8 = vcombine.low %v446_v30, %v458_v41  ;;  %v16762_v30 = vld [vmem:[%s22551_s1 + $0xdc0] ss:$16 sps:$4 sm:$0xff]   ;;  %v16767_v41 = vld [vmem:[%s22551_s1 + $0x9ec] ss:$16 sps:$4 sm:$0xff]  }
 0x280   : > { %8274 = vmatprep.mubr.bf16.mxu0 %v19546_v58  ;;  %10320 = vmatpush1.bf16.msra.mxu1 %v16738_v13  ;;  %v19580_v13 = vcombine.high %v470_v10, %v482_v32  ;;  %v16765_v58 = vld [vmem:[%s22551_s1 + $0x9e8] ss:$16 sps:$4 sm:$0xff]  }
 0x281   : > { %10321 = vmatprep.subr.bf16.mxu1 %v16749_v21  ;;  %8390 = vmatpush1.bf16.msra.mxu0 %v16753_v7  ;;  %v16764_v21 = vld [vmem:[%s22551_s1 + $0xdc4] ss:$16 sps:$4 sm:$0xff]  }
 0x282   : > { %8391 = vmatprep.subr.bf16.mxu0 %v16761_v12  ;;  %22739 = vst [vmem:[#allocation15_spill] sm:$0xff] %v19580_v13  ;;  %v22740_v7 = vld [vmem:[#allocation68_spill] sm:$0xff] }
 0x283   : > { %v16770_v12 = vld [vmem:[%s22551_s1 + $0xde4] ss:$16 sps:$4 sm:$0xff]  }
 0x284   : > { %10322 = vmatpush1.bf16.msra.mxu1 %v16747_v57  ;;  %v22741_v57 = vld [vmem:[#allocation70_spill] sm:$0xff] }
 0x285   : > { %10323 = vmatprep.subr.bf16.mxu1 %v16758_v35  ;;  %8392 = vmatpush1.bf16.msra.mxu0 %v16759_v2  ;;  %v494_v35 = vld [vmem:[%s17635_s28 + $0x6e8] sm:$0xff] }
 0x286   : > { %10205 = vmatmul.mubr.bf16.gmra.mrb[92].mxu1 %v22740_v7  ;;  %v506_v2 = vld [vmem:[%s17635_s28 + $0x748] sm:$0xff]  ;;  %8393 = vmatprep.subr.bf16.mxu0 %v16764_v21  ;;  %v16768_v7 = vld [vmem:[%s22551_s1 + $0xde0] ss:$16 sps:$4 sm:$0xff]   ;;  %v16797_v21 = vld [vmem:[%s22551_s1 + $0xe04] ss:$16 sps:$4 sm:$0xff]  }
 0x287   : > { %8275 = vmatmul.mubr.bf16.gmra.mrb[28].mxu0 %v19578_v8  ;;  %10214 = vmatprep.mubr.bf16.mxu1 %v22741_v57  ;;  %v16773_v57 = vld [vmem:[%s22551_s1 + $0xa0c] ss:$16 sps:$4 sm:$0xff]  }
 0x288   : > { %8284 = vmatprep.mubr.bf16.mxu0 %v19580_v13  ;;  %10324 = vmatpush1.bf16.msra.mxu1 %v16756_v6  ;;  %v19612_v13 = vcombine.low %v470_v10, %v482_v32  ;;  %v19614_v6 = vcombine.high %v494_v35, %v506_v2  ;;  %v518_v10 = vld [vmem:[%s17635_s28 + $0x7a8] sm:$0xff] }
 0x289   : > { %10325 = vmatprep.subr.bf16.mxu1 %v16767_v41  ;;  %8394 = vmatpush1.bf16.msra.mxu0 %v16762_v30  ;;  %v530_v32 = vld [vmem:[%s17635_s28 + $0x808] sm:$0xff] }
 0x28a   : > { %8395 = vmatprep.subr.bf16.mxu0 %v16770_v12  ;;  %v19627_v30 = vcombine.high %v518_v10, %v530_v32  ;;  %v19635_v41 = vcombine.low %v518_v10, %v530_v32  ;;  %v22745_v10 = vld [vmem:[#allocation4_spill] sm:$0xff]  ;;  %v626_v32 = vld [vmem:[%s17635_s28 + $0xb08] sm:$0xff] }
 0x28c   : > { %10326 = vmatpush1.bf16.msra.mxu1 %v16765_v58  ;;  %v19625_v58 = vcombine.low %v494_v35, %v506_v2  ;;  %v578_v35 = vld [vmem:[%s17635_s28 + $0x988] sm:$0xff] }
 0x28d   : > { %8396 = vmatpush1.bf16.msra.mxu0 %v16768_v7  ;;  %10488 = vmatprep.subr.bf16.mxu1 %v16773_v57  ;;  %v602_v7 = vld [vmem:[%s17635_s28 + $0xa48] sm:$0xff] }
 0x28e   : > { %10215 = vmatmul.mubr.bf16.gmra.mrb[96].mxu1 %v18888_v18  ;;  %8558 = vmatprep.subr.bf16.mxu0 %v16797_v21  ;;  %v542_v18 = vld [vmem:[%s17635_s28 + $0x868] sm:$0xff] }
 0x28f   : > { %8285 = vmatmul.mubr.bf16.gmra.mrb[32].mxu0 %v19612_v13  ;;  %10224 = vmatprep.mubr.bf16.mxu1 %v18892_v29  ;;  %v554_v29 = vld [vmem:[%s17635_s28 + $0x8c8] sm:$0xff] }
 0x290   : > { %8294 = vmatprep.mubr.bf16.mxu0 %v19614_v6  ;;  %v19637_v12 = vcombine.high %v542_v18, %v554_v29  ;;  %v22744_v21 = vld [vmem:[#allocation3_spill] sm:$0xff] }
 0x296   : > { %10225 = vmatmul.mubr.bf16.gmra.mrb[100].mxu1 %v18909_v19  ;;  %v566_v19 = vld [vmem:[%s17635_s28 + $0x928] sm:$0xff] }
 0x297   : > { %8295 = vmatmul.mubr.bf16.gmra.mrb[36].mxu0 %v19625_v58  ;;  %10234 = vmatprep.mubr.bf16.mxu1 %v18913_v43  ;;  %v19645_v43 = vcombine.low %v542_v18, %v554_v29  ;;  %v19647_v2 = vcombine.high %v566_v19, %v578_v35  ;;  %v22748_v29 = vld [vmem:[#allocation5_spill] sm:$0xff] }
 0x298   : > { %8304 = vmatprep.mubr.bf16.mxu0 %v19627_v30 }
 0x29e   : > { %10235 = vmatmul.mubr.bf16.gmra.mrb[104].mxu1 %v18927_v1  ;;  %v590_v1 = vld [vmem:[%s17635_s28 + $0x9e8] sm:$0xff] }
 0x29f   : > { %8305 = vmatmul.mubr.bf16.gmra.mrb[40].mxu0 %v19635_v41  ;;  %10244 = vmatprep.mubr.bf16.mxu1 %v18931_v4  ;;  %v19655_v4 = vcombine.low %v566_v19, %v578_v35  ;;  %v19657_v57 = vcombine.high %v590_v1, %v602_v7  ;;  %v22749_v19 = vld [vmem:[#allocation6_spill] sm:$0xff]  ;;  %v638_v35 = vld [vmem:[%s17635_s28 + $0xb68] sm:$0xff] }
 0x2a0   : > { %8314 = vmatprep.mubr.bf16.mxu0 %v19637_v12 }
 0x2a1   : > { %22742 = vst [vmem:[#allocation16_spill] sm:$0xff] %v19655_v4  ;;  %22743 = vst [vmem:[#allocation17_spill] sm:$0xff] %v19657_v57 }
 0x2a6   : > { %10245 = vmatmul.mubr.bf16.gmra.mrb[108].mxu1 %v18941_v3  ;;  %v614_v3 = vld [vmem:[%s17635_s28 + $0xaa8] sm:$0xff] }
 0x2a7   : > { %8315 = vmatmul.mubr.bf16.gmra.mrb[44].mxu0 %v19645_v43  ;;  %10254 = vmatprep.mubr.bf16.mxu1 %v18943_v51  ;;  %v19665_v51 = vcombine.low %v590_v1, %v602_v7  ;;  %v19667_v18 = vcombine.high %v614_v3, %v626_v32  ;;  %v22752_v1 = vld [vmem:[#allocation7_spill] sm:$0xff]  ;;  %v22753_v7 = vld [vmem:[#allocation8_spill] sm:$0xff] }
 0x2a8   : > { %8324 = vmatprep.mubr.bf16.mxu0 %v19647_v2 }
 0x2a9   : > { %22746 = vst [vmem:[#allocation68_spill] sm:$0xff] %v19665_v51  ;;  %22747 = vst [vmem:[#allocation70_spill] sm:$0xff] %v19667_v18 }
 0x2ae   : > { %10255 = vmatmul.mubr.bf16.gmra.mrb[112].mxu1 %v22744_v21  ;;  %v650_v21 = vld [vmem:[%s17635_s28 + $0xbc8] sm:$0xff] }
 0x2af   : > { %8325 = vmatmul.mubr.bf16.gmra.mrb[48].mxu0 %v19655_v4  ;;  %10264 = vmatprep.mubr.bf16.mxu1 %v22745_v10  ;;  %v19675_v10 = vcombine.low %v614_v3, %v626_v32  ;;  %v22756_v3 = vld [vmem:[#allocation9_spill] sm:$0xff]  ;;  %v22757_v32 = vld [vmem:[#allocation10_spill] sm:$0xff]  ;;  %v339_v4 = vld [vmem:[%s17635_s28 + $0x210] sm:$0xff] }
 0x2b0   : > { %8334 = vmatprep.mubr.bf16.mxu0 %v19657_v57  ;;  %v19677_v57 = vcombine.high %v638_v35, %v650_v21 }
 0x2b1   : > { %22750 = vst [vmem:[#allocation3_spill] sm:$0xff] %v19675_v10 }
 0x2b2   : > { %22751 = vst [vmem:[#allocation4_spill] sm:$0xff] %v19677_v57 }
 0x2b6   : > { %10265 = vmatmul.mubr.bf16.gmra.mrb[116].mxu1 %v22748_v29  ;;  %v279_v29 = vld [vmem:[%s17635_s28 + $0x30] sm:$0xff] }
 0x2b7   : > { %8335 = vmatmul.mubr.bf16.gmra.mrb[52].mxu0 %v19665_v51  ;;  %10274 = vmatprep.mubr.bf16.mxu1 %v22749_v19  ;;  %v19685_v51 = vcombine.low %v638_v35, %v650_v21  ;;  %v16771_v35 = vld [vmem:[%s22551_s1 + $0xa08] ss:$16 sps:$4 sm:$0xff]  }
 0x2b8   : > { %8344 = vmatprep.mubr.bf16.mxu0 %v19667_v18  ;;  %v291_v18 = vld [vmem:[%s17635_s28 + $0x90] sm:$0xff] }
 0x2b9   : > { %22754 = vst [vmem:[#allocation5_spill] sm:$0xff] %v19685_v51  ;;  %v19687_v19 = vcombine.high %v279_v29, %v291_v18 }
 0x2bb   : > { %22755 = vst [vmem:[#allocation6_spill] sm:$0xff] %v19687_v19 }
 0x2be   : > { %10275 = vmatmul.mubr.bf16.gmra.mrb[120].mxu1 %v22752_v1  ;;  %v303_v1 = vld [vmem:[%s17635_s28 + $0xf0] sm:$0xff] }
 0x2bf   : > { %8345 = vmatmul.mubr.bf16.gmra.mrb[56].mxu0 %v19675_v10  ;;  %10284 = vmatprep.mubr.bf16.mxu1 %v22753_v7  ;;  %v19695_v10 = vcombine.low %v279_v29, %v291_v18  ;;  %v16776_v7 = vld [vmem:[%s22551_s1 + $0xa2c] ss:$16 sps:$4 sm:$0xff]   ;;  %v16803_v18 = vld [vmem:[%s22551_s1 + $0xe24] ss:$16 sps:$4 sm:$0xff]   ;;  %v16774_v29 = vld [vmem:[%s22551_s1 + $0xa28] ss:$16 sps:$4 sm:$0xff]  }
 0x2c0   : > { %8354 = vmatprep.mubr.bf16.mxu0 %v19677_v57  ;;  %v315_v57 = vld [vmem:[%s17635_s28 + $0x150] sm:$0xff] }
 0x2c1   : > { %22758 = vst [vmem:[#allocation7_spill] sm:$0xff] %v19695_v10  ;;  %v19700_v21 = vcombine.high %v303_v1, %v315_v57 }
 0x2c3   : > { %22759 = vst [vmem:[#allocation8_spill] sm:$0xff] %v19700_v21 }
 0x2c6   : > { %10285 = vmatmul.mubr.bf16.gmra.mrb[124].mxu1 %v22756_v3  ;;  %v16795_v3 = vld [vmem:[%s22551_s1 + $0xe00] ss:$16 sps:$4 sm:$0xff]  }
 0x2c7   : > { %8355 = vmatmul.mubr.bf16.gmra.mrb[60].mxu0 %v19685_v51  ;;  %10327 = vmatprep.mubr.bf16.mxu1 %v22757_v32  ;;  %v22760_v32 = vld [vmem:[#allocation11_spill] sm:$0xff]  ;;  %v327_v51 = vld [vmem:[%s17635_s28 + $0x1b0] sm:$0xff] }
 0x2c8   : > { %8397 = vmatprep.mubr.bf16.mxu0 %v19687_v19  ;;  %v22761_v19 = vld [vmem:[#allocation12_spill] sm:$0xff] }
 0x2ce   : > { %10328 = vmatmul.mubr.bf16.vlgmr.msra.gmra.mrb[64].mxu1 %v22760_v32  ;;  %v16779_v32 = vld [vmem:[%s22551_s1 + $0xa4c] ss:$16 sps:$4 sm:$0xff]  }
 0x2cf   : > { %8398 = vmatmul.mubr.bf16.vlgmr.msra.gmra.mrb[0].mxu0 %v19695_v10  ;;  %10489 = vmatpush1.bf16.msra.mxu1 %v16771_v35  ;;  %v16801_v35 = vld [vmem:[%s22551_s1 + $0xe20] ss:$16 sps:$4 sm:$0xff]   ;;  %v19726_v10 = vcombine.low %v303_v1, %v315_v57  ;;  %v16782_v57 = vld [vmem:[%s22551_s1 + $0xa6c] ss:$16 sps:$4 sm:$0xff]  }
 0x2d0   : > { %8407 = vmatprep.mubr.bf16.mxu0 %v19700_v21  ;;  %10337 = vmatprep.mubr.bf16.mxu1 %v22761_v19  ;;  %v19728_v21 = vcombine.high %v327_v51, %v339_v4  ;;  %v16777_v19 = vld [vmem:[%s22551_s1 + $0xa48] ss:$16 sps:$4 sm:$0xff]   ;;  %v16804_v1 = vld [vmem:[%s22551_s1 + $0xe40] ss:$16 sps:$4 sm:$0xff]  }
 0x2d1   : > { %10490 = vmatprep.subr.bf16.mxu1 %v16776_v7  ;;  %8559 = vmatpush1.bf16.msra.mxu0 %v16795_v3  ;;  %v16806_v7 = vld [vmem:[%s22551_s1 + $0xe44] ss:$16 sps:$4 sm:$0xff]  }
 0x2d2   : > { %8560 = vmatprep.subr.bf16.mxu0 %v16803_v18  ;;  %22762 = vst [vmem:[#allocation9_spill] sm:$0xff] %v19728_v21  ;;  %v16812_v3 = vld [vmem:[%s22551_s1 + $0xe64] ss:$16 sps:$4 sm:$0xff]   ;;  %v22763_v18 = vld [vmem:[#allocation13_spill] sm:$0xff] }
 0x2d3   : > { %10491 = vmatpush1.bf16.msra.mxu1 %v16774_v29  ;;  %v351_v29 = vld [vmem:[%s17635_s28 + $0x270] sm:$0xff] }
 0x2d4   : > { %10492 = vmatprep.subr.bf16.mxu1 %v16779_v32  ;;  %v363_v32 = vld [vmem:[%s17635_s28 + $0x2d0] sm:$0xff] }
 0x2d5   : > { %8561 = vmatpush1.bf16.msra.mxu0 %v16801_v35  ;;  %v16780_v35 = vld [vmem:[%s22551_s1 + $0xa68] ss:$16 sps:$4 sm:$0xff]  }
 0x2d6   : > { %10338 = vmatmul.mubr.bf16.gmra.mrb[68].mxu1 %v19022_v23  ;;  %8562 = vmatprep.subr.bf16.mxu0 %v16806_v7  ;;  %v16785_v23 = vld [vmem:[%s22551_s1 + $0xa8c] ss:$16 sps:$4 sm:$0xff]   ;;  %v16783_v7 = vld [vmem:[%s22551_s1 + $0xa88] ss:$16 sps:$4 sm:$0xff]  }
 0x2d7   : > { %8408 = vmatmul.mubr.bf16.gmra.mrb[4].mxu0 %v19726_v10  ;;  %10347 = vmatprep.mubr.bf16.mxu1 %v22763_v18  ;;  %v19760_v18 = vcombine.low %v327_v51, %v339_v4  ;;  %v16813_v4 = vld [vmem:[%s22551_s1 + $0xe80] ss:$16 sps:$4 sm:$0xff]   ;;  %v16821_v51 = vld [vmem:[%s22551_s1 + $0xea4] ss:$16 sps:$4 sm:$0xff]  }
 0x2d8   : > { %8417 = vmatprep.mubr.bf16.mxu0 %v19728_v21  ;;  %10493 = vmatpush1.bf16.msra.mxu1 %v16777_v19  ;;  %v16810_v21 = vld [vmem:[%s22551_s1 + $0xe60] ss:$16 sps:$4 sm:$0xff]   ;;  %v19762_v19 = vcombine.high %v351_v29, %v363_v32 }
 0x2d9   : > { %10494 = vmatprep.subr.bf16.mxu1 %v16782_v57  ;;  %8563 = vmatpush1.bf16.msra.mxu0 %v16804_v1  ;;  %v16815_v57 = vld [vmem:[%s22551_s1 + $0xe84] ss:$16 sps:$4 sm:$0xff]   ;;  %v16788_v1 = vld [vmem:[%s22551_s1 + $0xaac] ss:$16 sps:$4 sm:$0xff]  }
 0x2da   : > { %8564 = vmatprep.subr.bf16.mxu0 %v16812_v3  ;;  %v375_v3 = vld [vmem:[%s17635_s28 + $0x330] sm:$0xff] }
 0x2dc   : > { %10495 = vmatpush1.bf16.msra.mxu1 %v16780_v35  ;;  %v387_v35 = vld [vmem:[%s17635_s28 + $0x390] sm:$0xff] }
 0x2dd   : > { %10496 = vmatprep.subr.bf16.mxu1 %v16785_v23  ;;  %8565 = vmatpush1.bf16.msra.mxu0 %v16810_v21  ;;  %v16786_v21 = vld [vmem:[%s22551_s1 + $0xaa8] ss:$16 sps:$4 sm:$0xff]   ;;  %v16819_v23 = vld [vmem:[%s22551_s1 + $0xea0] ss:$16 sps:$4 sm:$0xff]  }
 0x2de   : > { %10348 = vmatmul.mubr.bf16.gmra.mrb[72].mxu1 %v19056_v59  ;;  %8566 = vmatprep.subr.bf16.mxu0 %v16815_v57  ;;  %v16791_v59 = vld [vmem:[%s22551_s1 + $0xacc] ss:$16 sps:$4 sm:$0xff]   ;;  %v16789_v57 = vld [vmem:[%s22551_s1 + $0xac8] ss:$16 sps:$4 sm:$0xff]  }
 0x2df   : > { %8418 = vmatmul.mubr.bf16.gmra.mrb[8].mxu0 %v19760_v18  ;;  %10357 = vmatprep.mubr.bf16.mxu1 %v19058_v61  ;;  %v19794_v61 = vcombine.low %v351_v29, %v363_v32  ;;  %v16822_v29 = vld [vmem:[%s22551_s1 + $0xec0] ss:$16 sps:$4 sm:$0xff]   ;;  %v16830_v32 = vld [vmem:[%s22551_s1 + $0xee4] ss:$16 sps:$4 sm:$0xff]  }
 0x2e0   : > { %8427 = vmatprep.mubr.bf16.mxu0 %v19762_v19  ;;  %10497 = vmatpush1.bf16.msra.mxu1 %v16783_v7  ;;  %v19796_v7 = vcombine.high %v375_v3, %v387_v35 }
 0x2e1   : > { %10498 = vmatprep.subr.bf16.mxu1 %v16788_v1  ;;  %8567 = vmatpush1.bf16.msra.mxu0 %v16813_v4  ;;  %v16824_v1 = vld [vmem:[%s22551_s1 + $0xec4] ss:$16 sps:$4 sm:$0xff]   ;;  %v16794_v4 = vld [vmem:[%s22551_s1 + $0xaec] ss:$16 sps:$4 sm:$0xff]  }
 0x2e2   : > { %8568 = vmatprep.subr.bf16.mxu0 %v16821_v51  ;;  %v399_v51 = vld [vmem:[%s17635_s28 + $0x3f0] sm:$0xff] }
 0x2e4   : > { %10499 = vmatpush1.bf16.msra.mxu1 %v16786_v21  ;;  %v411_v21 = vld [vmem:[%s17635_s28 + $0x450] sm:$0xff] }
 0x2e5   : > { %10500 = vmatprep.subr.bf16.mxu1 %v16791_v59  ;;  %8569 = vmatpush1.bf16.msra.mxu0 %v16819_v23  ;;  %v16792_v59 = vld [vmem:[%s22551_s1 + $0xae8] ss:$16 sps:$4 sm:$0xff]   ;;  %v16828_v23 = vld [vmem:[%s22551_s1 + $0xee0] ss:$16 sps:$4 sm:$0xff]  }
 0x2e6   : > { %10358 = vmatmul.mubr.bf16.gmra.mrb[76].mxu1 %v19090_v5  ;;  %8570 = vmatprep.subr.bf16.mxu0 %v16824_v1  ;;  %v16800_v5 = vld [vmem:[%s22551_s1 + $0xb0c] ss:$16 sps:$4 sm:$0xff]   ;;  %v16798_v1 = vld [vmem:[%s22551_s1 + $0xb08] ss:$16 sps:$4 sm:$0xff]  }
 0x2e7   : > { %8428 = vmatmul.mubr.bf16.gmra.mrb[12].mxu0 %v19794_v61  ;;  %10367 = vmatprep.mubr.bf16.mxu1 %v19092_v39  ;;  %v19828_v39 = vcombine.low %v375_v3, %v387_v35  ;;  %v16831_v3 = vld [vmem:[%s22551_s1 + $0xf00] ss:$16 sps:$4 sm:$0xff]   ;;  %v16839_v35 = vld [vmem:[%s22551_s1 + $0xf24] ss:$16 sps:$4 sm:$0xff]  }
 0x2e8   : > { %8437 = vmatprep.mubr.bf16.mxu0 %v19796_v7  ;;  %10501 = vmatpush1.bf16.msra.mxu1 %v16789_v57  ;;  %v19830_v57 = vcombine.high %v399_v51, %v411_v21 }
 0x2e9   : > { %10502 = vmatprep.subr.bf16.mxu1 %v16794_v4  ;;  %8571 = vmatpush1.bf16.msra.mxu0 %v16822_v29  ;;  %v16833_v4 = vld [vmem:[%s22551_s1 + $0xf04] ss:$16 sps:$4 sm:$0xff]   ;;  %v16809_v29 = vld [vmem:[%s22551_s1 + $0xb2c] ss:$16 sps:$4 sm:$0xff]  }
 0x2ea   : > { %8572 = vmatprep.subr.bf16.mxu0 %v16830_v32  ;;  %v423_v32 = vld [vmem:[%s17635_s28 + $0x4b0] sm:$0xff] }
 0x2ec   : > { %10503 = vmatpush1.bf16.msra.mxu1 %v16792_v59  ;;  %v435_v59 = vld [vmem:[%s17635_s28 + $0x510] sm:$0xff] }
 0x2ed   : > { %10504 = vmatprep.subr.bf16.mxu1 %v16800_v5  ;;  %8573 = vmatpush1.bf16.msra.mxu0 %v16828_v23  ;;  %v16807_v5 = vld [vmem:[%s22551_s1 + $0xb28] ss:$16 sps:$4 sm:$0xff]   ;;  %v16837_v23 = vld [vmem:[%s22551_s1 + $0xf20] ss:$16 sps:$4 sm:$0xff]  }
 0x2ee   : > { %10368 = vmatmul.mubr.bf16.gmra.mrb[80].mxu1 %v19124_v26  ;;  %8574 = vmatprep.subr.bf16.mxu0 %v16833_v4  ;;  %v16818_v26 = vld [vmem:[%s22551_s1 + $0xb4c] ss:$16 sps:$4 sm:$0xff]   ;;  %v16816_v4 = vld [vmem:[%s22551_s1 + $0xb48] ss:$16 sps:$4 sm:$0xff]  }
 0x2ef   : > { %8438 = vmatmul.mubr.bf16.gmra.mrb[16].mxu0 %v19828_v39  ;;  %10377 = vmatprep.mubr.bf16.mxu1 %v19126_v48  ;;  %v19862_v48 = vcombine.low %v399_v51, %v411_v21  ;;  %v16840_v51 = vld [vmem:[%s22551_s1 + $0xf40] ss:$16 sps:$4 sm:$0xff]   ;;  %v16848_v21 = vld [vmem:[%s22551_s1 + $0xf64] ss:$16 sps:$4 sm:$0xff]  }
 0x2f0   : > { %8447 = vmatprep.mubr.bf16.mxu0 %v19830_v57  ;;  %10505 = vmatpush1.bf16.msra.mxu1 %v16798_v1  ;;  %v19864_v1 = vcombine.high %v423_v32, %v435_v59 }
 0x2f1   : > { %10506 = vmatprep.subr.bf16.mxu1 %v16809_v29  ;;  %8575 = vmatpush1.bf16.msra.mxu0 %v16831_v3  ;;  %v16842_v29 = vld [vmem:[%s22551_s1 + $0xf44] ss:$16 sps:$4 sm:$0xff]   ;;  %v16827_v3 = vld [vmem:[%s22551_s1 + $0xb6c] ss:$16 sps:$4 sm:$0xff]  }
 0x2f2   : > { %8576 = vmatprep.subr.bf16.mxu0 %v16839_v35  ;;  %v447_v35 = vld [vmem:[%s17635_s28 + $0x570] sm:$0xff] }
 0x2f4   : > { %10507 = vmatpush1.bf16.msra.mxu1 %v16807_v5  ;;  %v459_v5 = vld [vmem:[%s17635_s28 + $0x5d0] sm:$0xff] }
 0x2f5   : > { %10508 = vmatprep.subr.bf16.mxu1 %v16818_v26  ;;  %8577 = vmatpush1.bf16.msra.mxu0 %v16837_v23  ;;  %v16825_v26 = vld [vmem:[%s22551_s1 + $0xb68] ss:$16 sps:$4 sm:$0xff]   ;;  %v16846_v23 = vld [vmem:[%s22551_s1 + $0xf60] ss:$16 sps:$4 sm:$0xff]  }
 0x2f6   : > { %10378 = vmatmul.mubr.bf16.gmra.mrb[84].mxu1 %v19158_v42  ;;  %8578 = vmatprep.subr.bf16.mxu0 %v16842_v29  ;;  %v16836_v42 = vld [vmem:[%s22551_s1 + $0xb8c] ss:$16 sps:$4 sm:$0xff]   ;;  %v16834_v29 = vld [vmem:[%s22551_s1 + $0xb88] ss:$16 sps:$4 sm:$0xff]  }
 0x2f7   : > { %8448 = vmatmul.mubr.bf16.gmra.mrb[20].mxu0 %v19862_v48  ;;  %10387 = vmatprep.mubr.bf16.mxu1 %v19160_v37  ;;  %v19896_v37 = vcombine.low %v423_v32, %v435_v59  ;;  %v16849_v32 = vld [vmem:[%s22551_s1 + $0xf80] ss:$16 sps:$4 sm:$0xff]   ;;  %v16857_v59 = vld [vmem:[%s22551_s1 + $0xfa4] ss:$16 sps:$4 sm:$0xff]  }
 0x2f8   : > { %8457 = vmatprep.mubr.bf16.mxu0 %v19864_v1  ;;  %10509 = vmatpush1.bf16.msra.mxu1 %v16816_v4  ;;  %v19898_v4 = vcombine.high %v447_v35, %v459_v5 }
 0x2f9   : > { %10510 = vmatprep.subr.bf16.mxu1 %v16827_v3  ;;  %8579 = vmatpush1.bf16.msra.mxu0 %v16840_v51  ;;  %v16851_v3 = vld [vmem:[%s22551_s1 + $0xf84] ss:$16 sps:$4 sm:$0xff]   ;;  %v16845_v51 = vld [vmem:[%s22551_s1 + $0xbac] ss:$16 sps:$4 sm:$0xff]  }
 0x2fa   : > { %8580 = vmatprep.subr.bf16.mxu0 %v16848_v21  ;;  %v471_v21 = vld [vmem:[%s17635_s28 + $0x630] sm:$0xff] }
 0x2fc   : > { %10511 = vmatpush1.bf16.msra.mxu1 %v16825_v26  ;;  %v483_v26 = vld [vmem:[%s17635_s28 + $0x690] sm:$0xff] }
 0x2fd   : > { %10512 = vmatprep.subr.bf16.mxu1 %v16836_v42  ;;  %8581 = vmatpush1.bf16.msra.mxu0 %v16846_v23  ;;  %v16843_v42 = vld [vmem:[%s22551_s1 + $0xba8] ss:$16 sps:$4 sm:$0xff]   ;;  %v16855_v23 = vld [vmem:[%s22551_s1 + $0xfa0] ss:$16 sps:$4 sm:$0xff]  }
 0x2fe   : > { %10388 = vmatmul.mubr.bf16.gmra.mrb[88].mxu1 %v19192_v60  ;;  %8582 = vmatprep.subr.bf16.mxu0 %v16851_v3  ;;  %v16854_v60 = vld [vmem:[%s22551_s1 + $0xbcc] ss:$16 sps:$4 sm:$0xff]   ;;  %v16852_v3 = vld [vmem:[%s22551_s1 + $0xbc8] ss:$16 sps:$4 sm:$0xff]  }
 0x2ff   : > { %8458 = vmatmul.mubr.bf16.gmra.mrb[24].mxu0 %v19896_v37  ;;  %10397 = vmatprep.mubr.bf16.mxu1 %v19194_v54  ;;  %v19930_v54 = vcombine.low %v447_v35, %v459_v5  ;;  %v16858_v35 = vld [vmem:[%s22551_s1 + $0xfc0] ss:$16 sps:$4 sm:$0xff]   ;;  %v16863_v5 = vld [vmem:[%s22551_s1 + $0xbec] ss:$16 sps:$4 sm:$0xff]  }
 0x300   : > { %8467 = vmatprep.mubr.bf16.mxu0 %v19898_v4  ;;  %10513 = vmatpush1.bf16.msra.mxu1 %v16834_v29  ;;  %v19932_v29 = vcombine.high %v471_v21, %v483_v26 }
 0x301   : > { %10514 = vmatprep.subr.bf16.mxu1 %v16845_v51  ;;  %8583 = vmatpush1.bf16.msra.mxu0 %v16849_v32  ;;  %v16860_v51 = vld [vmem:[%s22551_s1 + $0xfc4] ss:$16 sps:$4 sm:$0xff]  }
 0x302   : > { %8584 = vmatprep.subr.bf16.mxu0 %v16857_v59  ;;  %v16866_v32 = vld [vmem:[%s22551_s1 + $0xfe4] ss:$16 sps:$4 sm:$0xff]  }
 0x303   : > { %v495_v59 = vld [vmem:[%s17635_s28 + $0x6f0] sm:$0xff] }
 0x304   : > { %10515 = vmatpush1.bf16.msra.mxu1 %v16843_v42  ;;  %v507_v42 = vld [vmem:[%s17635_s28 + $0x750] sm:$0xff] }
 0x305   : > { %10516 = vmatprep.subr.bf16.mxu1 %v16854_v60  ;;  %8585 = vmatpush1.bf16.msra.mxu0 %v16855_v23  ;;  %v16861_v60 = vld [vmem:[%s22551_s1 + $0xbe8] ss:$16 sps:$4 sm:$0xff]   ;;  %v19964_v23 = vcombine.low %v471_v21, %v483_v26  ;;  %v519_v21 = vld [vmem:[%s17635_s28 + $0x7b0] sm:$0xff] }
 0x306   : > { %10398 = vmatmul.mubr.bf16.gmra.mrb[92].mxu1 %v19226_v16  ;;  %8586 = vmatprep.subr.bf16.mxu0 %v16860_v51  ;;  %v16864_v16 = vld [vmem:[%s22551_s1 + $0xfe0] ss:$16 sps:$4 sm:$0xff]   ;;  %v16893_v51 = vld [vmem:[%s22551_s1 + $0x1004] ss:$16 sps:$4 sm:$0xff]  }
 0x307   : > { %8468 = vmatmul.mubr.bf16.gmra.mrb[28].mxu0 %v19930_v54  ;;  %10407 = vmatprep.mubr.bf16.mxu1 %v19228_v17  ;;  %v16869_v17 = vld [vmem:[%s22551_s1 + $0xc0c] ss:$16 sps:$4 sm:$0xff]   ;;  %v531_v26 = vld [vmem:[%s17635_s28 + $0x810] sm:$0xff] }
 0x308   : > { %8477 = vmatprep.mubr.bf16.mxu0 %v19932_v29  ;;  %10517 = vmatpush1.bf16.msra.mxu1 %v16852_v3  ;;  %v19966_v3 = vcombine.high %v495_v59, %v507_v42 }
 0x309   : > { %10518 = vmatprep.subr.bf16.mxu1 %v16863_v5  ;;  %8587 = vmatpush1.bf16.msra.mxu0 %v16858_v35  ;;  %v19977_v35 = vcombine.low %v495_v59, %v507_v42  ;;  %v19979_v5 = vcombine.high %v519_v21, %v531_v26  ;;  %v579_v59 = vld [vmem:[%s17635_s28 + $0x990] sm:$0xff] }
 0x30a   : > { %8588 = vmatprep.subr.bf16.mxu0 %v16866_v32  ;;  %v19987_v32 = vcombine.low %v519_v21, %v531_v26  ;;  %v651_v26 = vld [vmem:[%s17635_s28 + $0xbd0] sm:$0xff] }
 0x30c   : > { %10519 = vmatpush1.bf16.msra.mxu1 %v16861_v60 }
 0x30d   : > { %8589 = vmatpush1.bf16.msra.mxu0 %v16864_v16  ;;  %10681 = vmatprep.subr.bf16.mxu1 %v16869_v17  ;;  %v603_v16 = vld [vmem:[%s17635_s28 + $0xa50] sm:$0xff] }
 0x30e   : > { %10408 = vmatmul.mubr.bf16.gmra.mrb[96].mxu1 %v19260_v11  ;;  %8751 = vmatprep.subr.bf16.mxu0 %v16893_v51  ;;  %v543_v11 = vld [vmem:[%s17635_s28 + $0x870] sm:$0xff] }
 0x30f   : > { %8478 = vmatmul.mubr.bf16.gmra.mrb[32].mxu0 %v19964_v23  ;;  %10417 = vmatprep.mubr.bf16.mxu1 %v19262_v25  ;;  %v555_v25 = vld [vmem:[%s17635_s28 + $0x8d0] sm:$0xff] }
 0x310   : > { %8487 = vmatprep.mubr.bf16.mxu0 %v19966_v3  ;;  %v19989_v60 = vcombine.high %v543_v11, %v555_v25  ;;  %v627_v51 = vld [vmem:[%s17635_s28 + $0xb10] sm:$0xff] }
 0x316   : > { %10418 = vmatmul.mubr.bf16.gmra.mrb[100].mxu1 %v19273_v45  ;;  %v567_v45 = vld [vmem:[%s17635_s28 + $0x930] sm:$0xff] }
 0x317   : > { %8488 = vmatmul.mubr.bf16.gmra.mrb[36].mxu0 %v19977_v35  ;;  %10427 = vmatprep.mubr.bf16.mxu1 %v19275_v56  ;;  %v19997_v56 = vcombine.low %v543_v11, %v555_v25  ;;  %v19999_v42 = vcombine.high %v567_v45, %v579_v59  ;;  %v292_v25 = vld [vmem:[%s17635_s28 + $0x98] sm:$0xff] }
 0x318   : > { %8497 = vmatprep.mubr.bf16.mxu0 %v19979_v5 }
 0x31e   : > { %10428 = vmatmul.mubr.bf16.gmra.mrb[104].mxu1 %v19283_v27  ;;  %v591_v27 = vld [vmem:[%s17635_s28 + $0x9f0] sm:$0xff] }
 0x31f   : > { %8498 = vmatmul.mubr.bf16.gmra.mrb[40].mxu0 %v19987_v32  ;;  %10437 = vmatprep.mubr.bf16.mxu1 %v19285_v20  ;;  %v20007_v20 = vcombine.low %v567_v45, %v579_v59  ;;  %v20009_v17 = vcombine.high %v591_v27, %v603_v16  ;;  %v316_v59 = vld [vmem:[%s17635_s28 + $0x158] sm:$0xff] }
 0x320   : > { %8507 = vmatprep.mubr.bf16.mxu0 %v19989_v60 }
 0x326   : > { %10438 = vmatmul.mubr.bf16.gmra.mrb[108].mxu1 %v19293_v0  ;;  %v615_v0 = vld [vmem:[%s17635_s28 + $0xab0] sm:$0xff] }
 0x327   : > { %8508 = vmatmul.mubr.bf16.gmra.mrb[44].mxu0 %v19997_v56  ;;  %10447 = vmatprep.mubr.bf16.mxu1 %v19295_v47  ;;  %v20017_v47 = vcombine.low %v591_v27, %v603_v16  ;;  %v20019_v21 = vcombine.high %v615_v0, %v627_v51 }
 0x328   : > { %8517 = vmatprep.mubr.bf16.mxu0 %v19999_v42 }
 0x32e   : > { %10448 = vmatmul.mubr.bf16.gmra.mrb[112].mxu1 %v19303_v53  ;;  %v639_v53 = vld [vmem:[%s17635_s28 + $0xb70] sm:$0xff] }
 0x32f   : > { %8518 = vmatmul.mubr.bf16.gmra.mrb[48].mxu0 %v20007_v20  ;;  %10457 = vmatprep.mubr.bf16.mxu1 %v19305_v36  ;;  %v20027_v36 = vcombine.low %v615_v0, %v627_v51  ;;  %v20029_v11 = vcombine.high %v639_v53, %v651_v26  ;;  %v20037_v45 = vcombine.low %v639_v53, %v651_v26  ;;  %v16899_v0 = vld [vmem:[%s22551_s1 + $0x1024] ss:$16 sps:$4 sm:$0xff]   ;;  %v16870_v51 = vld [vmem:[%s22551_s1 + $0xc28] ss:$16 sps:$4 sm:$0xff]  }
 0x330   : > { %8527 = vmatprep.mubr.bf16.mxu0 %v20009_v17  ;;  %v328_v53 = vld [vmem:[%s17635_s28 + $0x1b8] sm:$0xff] }
 0x331   : > { %v340_v26 = vld [vmem:[%s17635_s28 + $0x218] sm:$0xff] }
 0x336   : > { %10458 = vmatmul.mubr.bf16.gmra.mrb[116].mxu1 %v19313_v31  ;;  %v280_v31 = vld [vmem:[%s17635_s28 + $0x38] sm:$0xff] }
 0x337   : > { %8528 = vmatmul.mubr.bf16.gmra.mrb[52].mxu0 %v20017_v47  ;;  %10467 = vmatprep.mubr.bf16.mxu1 %v19315_v63  ;;  %v20039_v63 = vcombine.high %v280_v31, %v292_v25  ;;  %v20047_v27 = vcombine.low %v280_v31, %v292_v25  ;;  %v16897_v31 = vld [vmem:[%s22551_s1 + $0x1020] ss:$16 sps:$4 sm:$0xff]  }
 0x338   : > { %8537 = vmatprep.mubr.bf16.mxu0 %v20019_v21 }
 0x33e   : > { %10468 = vmatmul.mubr.bf16.gmra.mrb[120].mxu1 %v19323_v28  ;;  %v304_v28 = vld [vmem:[%s17635_s28 + $0xf8] sm:$0xff] }
 0x33f   : > { %8538 = vmatmul.mubr.bf16.gmra.mrb[56].mxu0 %v20027_v36  ;;  %10477 = vmatprep.mubr.bf16.mxu1 %v19325_v34  ;;  %v16867_v34 = vld [vmem:[%s22551_s1 + $0xc08] ss:$16 sps:$4 sm:$0xff]   ;;  %v20052_v16 = vcombine.high %v304_v28, %v316_v59  ;;  %v20078_v25 = vcombine.low %v304_v28, %v316_v59  ;;  %v16878_v28 = vld [vmem:[%s22551_s1 + $0xc6c] ss:$16 sps:$4 sm:$0xff]   ;;  %v16900_v59 = vld [vmem:[%s22551_s1 + $0x1040] ss:$16 sps:$4 sm:$0xff]  }
 0x340   : > { %8547 = vmatprep.mubr.bf16.mxu0 %v20029_v11 }
 0x346   : > { %10478 = vmatmul.mubr.bf16.gmra.mrb[124].mxu1 %v19333_v14  ;;  %v16872_v14 = vld [vmem:[%s22551_s1 + $0xc2c] ss:$16 sps:$4 sm:$0xff]  }
 0x347   : > { %8548 = vmatmul.mubr.bf16.gmra.mrb[60].mxu0 %v20037_v45  ;;  %10520 = vmatprep.mubr.bf16.mxu1 %v19335_v50  ;;  %v16891_v50 = vld [vmem:[%s22551_s1 + $0x1000] ss:$16 sps:$4 sm:$0xff]  }
 0x348   : > { %8590 = vmatprep.mubr.bf16.mxu0 %v20039_v63 }
 0x34e   : > { %10521 = vmatmul.mubr.bf16.vlgmr.msra.gmra.mrb[64].mxu1 %v19343_v38  ;;  %v16875_v38 = vld [vmem:[%s22551_s1 + $0xc4c] ss:$16 sps:$4 sm:$0xff]  }
 0x34f   : > { %8591 = vmatmul.mubr.bf16.vlgmr.msra.gmra.mrb[0].mxu0 %v20047_v27  ;;  %10682 = vmatpush1.bf16.msra.mxu1 %v16867_v34  ;;  %v20080_v34 = vcombine.high %v328_v53, %v340_v26 }
 0x350   : > { %8600 = vmatprep.mubr.bf16.mxu0 %v20052_v16  ;;  %10530 = vmatprep.mubr.bf16.mxu1 %v19348_v40  ;;  %v16873_v40 = vld [vmem:[%s22551_s1 + $0xc48] ss:$16 sps:$4 sm:$0xff]  }
 0x351   : > { %10683 = vmatprep.subr.bf16.mxu1 %v16872_v14  ;;  %8752 = vmatpush1.bf16.msra.mxu0 %v16891_v50  ;;  %v16902_v14 = vld [vmem:[%s22551_s1 + $0x1044] ss:$16 sps:$4 sm:$0xff]  }
 0x352   : > { %8753 = vmatprep.subr.bf16.mxu0 %v16899_v0  ;;  %v16908_v50 = vld [vmem:[%s22551_s1 + $0x1064] ss:$16 sps:$4 sm:$0xff]   ;;  %v352_v0 = vld [vmem:[%s17635_s28 + $0x278] sm:$0xff] }
 0x353   : > { %10684 = vmatpush1.bf16.msra.mxu1 %v16870_v51  ;;  %v364_v51 = vld [vmem:[%s17635_s28 + $0x2d8] sm:$0xff] }
 0x354   : > { %10685 = vmatprep.subr.bf16.mxu1 %v16875_v38  ;;  %v16876_v38 = vld [vmem:[%s22551_s1 + $0xc68] ss:$16 sps:$4 sm:$0xff]  }
 0x355   : > { %8754 = vmatpush1.bf16.msra.mxu0 %v16897_v31  ;;  %v16906_v31 = vld [vmem:[%s22551_s1 + $0x1060] ss:$16 sps:$4 sm:$0xff]  }
 0x356   : > { %10531 = vmatmul.mubr.bf16.gmra.mrb[68].mxu1 %v19374_v44  ;;  %8755 = vmatprep.subr.bf16.mxu0 %v16902_v14  ;;  %v16881_v44 = vld [vmem:[%s22551_s1 + $0xc8c] ss:$16 sps:$4 sm:$0xff]   ;;  %v16879_v14 = vld [vmem:[%s22551_s1 + $0xc88] ss:$16 sps:$4 sm:$0xff]  }
 0x357   : > { %8601 = vmatmul.mubr.bf16.gmra.mrb[4].mxu0 %v20078_v25  ;;  %10540 = vmatprep.mubr.bf16.mxu1 %v19376_v22  ;;  %v20112_v22 = vcombine.low %v328_v53, %v340_v26  ;;  %v16909_v53 = vld [vmem:[%s22551_s1 + $0x1080] ss:$16 sps:$4 sm:$0xff]   ;;  %v16917_v26 = vld [vmem:[%s22551_s1 + $0x10a4] ss:$16 sps:$4 sm:$0xff]  }
 0x358   : > { %8610 = vmatprep.mubr.bf16.mxu0 %v20080_v34  ;;  %10686 = vmatpush1.bf16.msra.mxu1 %v16873_v40  ;;  %v20114_v40 = vcombine.high %v352_v0, %v364_v51 }
 0x359   : > { %10687 = vmatprep.subr.bf16.mxu1 %v16878_v28  ;;  %8756 = vmatpush1.bf16.msra.mxu0 %v16900_v59  ;;  %v16911_v28 = vld [vmem:[%s22551_s1 + $0x1084] ss:$16 sps:$4 sm:$0xff]   ;;  %v16884_v59 = vld [vmem:[%s22551_s1 + $0xcac] ss:$16 sps:$4 sm:$0xff]  }
 0x35a   : > { %8757 = vmatprep.subr.bf16.mxu0 %v16908_v50  ;;  %v376_v50 = vld [vmem:[%s17635_s28 + $0x338] sm:$0xff] }
 0x35c   : > { %10688 = vmatpush1.bf16.msra.mxu1 %v16876_v38  ;;  %v388_v38 = vld [vmem:[%s17635_s28 + $0x398] sm:$0xff] }
 0x35d   : > { %10689 = vmatprep.subr.bf16.mxu1 %v16881_v44  ;;  %8758 = vmatpush1.bf16.msra.mxu0 %v16906_v31  ;;  %v16882_v44 = vld [vmem:[%s22551_s1 + $0xca8] ss:$16 sps:$4 sm:$0xff]   ;;  %v16915_v31 = vld [vmem:[%s22551_s1 + $0x10a0] ss:$16 sps:$4 sm:$0xff]  }
 0x35e   : > { %10541 = vmatmul.mubr.bf16.gmra.mrb[72].mxu1 %v19408_v9  ;;  %8759 = vmatprep.subr.bf16.mxu0 %v16911_v28  ;;  %v16887_v9 = vld [vmem:[%s22551_s1 + $0xccc] ss:$16 sps:$4 sm:$0xff]   ;;  %v16885_v28 = vld [vmem:[%s22551_s1 + $0xcc8] ss:$16 sps:$4 sm:$0xff]  }
 0x35f   : > { %8611 = vmatmul.mubr.bf16.gmra.mrb[8].mxu0 %v20112_v22  ;;  %10550 = vmatprep.mubr.bf16.mxu1 %v19410_v55  ;;  %v20146_v55 = vcombine.low %v352_v0, %v364_v51  ;;  %v16918_v0 = vld [vmem:[%s22551_s1 + $0x10c0] ss:$16 sps:$4 sm:$0xff]   ;;  %v16926_v51 = vld [vmem:[%s22551_s1 + $0x10e4] ss:$16 sps:$4 sm:$0xff]  }
 0x360   : > { %8620 = vmatprep.mubr.bf16.mxu0 %v20114_v40  ;;  %10690 = vmatpush1.bf16.msra.mxu1 %v16879_v14  ;;  %v20148_v14 = vcombine.high %v376_v50, %v388_v38 }
 0x361   : > { %10691 = vmatprep.subr.bf16.mxu1 %v16884_v59  ;;  %8760 = vmatpush1.bf16.msra.mxu0 %v16909_v53  ;;  %v16920_v59 = vld [vmem:[%s22551_s1 + $0x10c4] ss:$16 sps:$4 sm:$0xff]   ;;  %v16890_v53 = vld [vmem:[%s22551_s1 + $0xcec] ss:$16 sps:$4 sm:$0xff]  }
 0x362   : > { %8761 = vmatprep.subr.bf16.mxu0 %v16917_v26  ;;  %v400_v26 = vld [vmem:[%s17635_s28 + $0x3f8] sm:$0xff] }
 0x364   : > { %10692 = vmatpush1.bf16.msra.mxu1 %v16882_v44  ;;  %v412_v44 = vld [vmem:[%s17635_s28 + $0x458] sm:$0xff] }
 0x365   : > { %10693 = vmatprep.subr.bf16.mxu1 %v16887_v9  ;;  %8762 = vmatpush1.bf16.msra.mxu0 %v16915_v31  ;;  %v16888_v9 = vld [vmem:[%s22551_s1 + $0xce8] ss:$16 sps:$4 sm:$0xff]   ;;  %v16924_v31 = vld [vmem:[%s22551_s1 + $0x10e0] ss:$16 sps:$4 sm:$0xff]  }
 0x366   : > { %10551 = vmatmul.mubr.bf16.gmra.mrb[76].mxu1 %v19442_v46  ;;  %8763 = vmatprep.subr.bf16.mxu0 %v16920_v59  ;;  %v16896_v46 = vld [vmem:[%s22551_s1 + $0xd0c] ss:$16 sps:$4 sm:$0xff]   ;;  %v16894_v59 = vld [vmem:[%s22551_s1 + $0xd08] ss:$16 sps:$4 sm:$0xff]  }
 0x367   : > { %8621 = vmatmul.mubr.bf16.gmra.mrb[12].mxu0 %v20146_v55  ;;  %10560 = vmatprep.mubr.bf16.mxu1 %v19444_v52  ;;  %v20180_v52 = vcombine.low %v376_v50, %v388_v38  ;;  %v16927_v50 = vld [vmem:[%s22551_s1 + $0x1100] ss:$16 sps:$4 sm:$0xff]   ;;  %v16935_v38 = vld [vmem:[%s22551_s1 + $0x1124] ss:$16 sps:$4 sm:$0xff]  }
 0x368   : > { %8630 = vmatprep.mubr.bf16.mxu0 %v20148_v14  ;;  %10694 = vmatpush1.bf16.msra.mxu1 %v16885_v28  ;;  %v20182_v28 = vcombine.high %v400_v26, %v412_v44 }
 0x369   : > { %10695 = vmatprep.subr.bf16.mxu1 %v16890_v53  ;;  %8764 = vmatpush1.bf16.msra.mxu0 %v16918_v0  ;;  %v16929_v53 = vld [vmem:[%s22551_s1 + $0x1104] ss:$16 sps:$4 sm:$0xff]   ;;  %v16905_v0 = vld [vmem:[%s22551_s1 + $0xd2c] ss:$16 sps:$4 sm:$0xff]  }
 0x36a   : > { %8765 = vmatprep.subr.bf16.mxu0 %v16926_v51  ;;  %v424_v51 = vld [vmem:[%s17635_s28 + $0x4b8] sm:$0xff] }
 0x36c   : > { %10696 = vmatpush1.bf16.msra.mxu1 %v16888_v9  ;;  %v436_v9 = vld [vmem:[%s17635_s28 + $0x518] sm:$0xff] }
 0x36d   : > { %10697 = vmatprep.subr.bf16.mxu1 %v16896_v46  ;;  %8766 = vmatpush1.bf16.msra.mxu0 %v16924_v31  ;;  %v16903_v46 = vld [vmem:[%s22551_s1 + $0xd28] ss:$16 sps:$4 sm:$0xff]   ;;  %v16933_v31 = vld [vmem:[%s22551_s1 + $0x1120] ss:$16 sps:$4 sm:$0xff]  }
 0x36e   : > { %10561 = vmatmul.mubr.bf16.gmra.mrb[80].mxu1 %v19476_v62  ;;  %8767 = vmatprep.subr.bf16.mxu0 %v16929_v53  ;;  %v16914_v62 = vld [vmem:[%s22551_s1 + $0xd4c] ss:$16 sps:$4 sm:$0xff]   ;;  %v16912_v53 = vld [vmem:[%s22551_s1 + $0xd48] ss:$16 sps:$4 sm:$0xff]  }
 0x36f   : > { %8631 = vmatmul.mubr.bf16.gmra.mrb[16].mxu0 %v20180_v52  ;;  %10570 = vmatprep.mubr.bf16.mxu1 %v19478_v24  ;;  %v20214_v24 = vcombine.low %v400_v26, %v412_v44  ;;  %v16936_v26 = vld [vmem:[%s22551_s1 + $0x1140] ss:$16 sps:$4 sm:$0xff]   ;;  %v16944_v44 = vld [vmem:[%s22551_s1 + $0x1164] ss:$16 sps:$4 sm:$0xff]  }
 0x370   : > { %8640 = vmatprep.mubr.bf16.mxu0 %v20182_v28  ;;  %10698 = vmatpush1.bf16.msra.mxu1 %v16894_v59  ;;  %v20216_v59 = vcombine.high %v424_v51, %v436_v9 }
 0x371   : > { %10699 = vmatprep.subr.bf16.mxu1 %v16905_v0  ;;  %8768 = vmatpush1.bf16.msra.mxu0 %v16927_v50  ;;  %v16938_v0 = vld [vmem:[%s22551_s1 + $0x1144] ss:$16 sps:$4 sm:$0xff]   ;;  %v16923_v50 = vld [vmem:[%s22551_s1 + $0xd6c] ss:$16 sps:$4 sm:$0xff]  }
 0x372   : > { %8769 = vmatprep.subr.bf16.mxu0 %v16935_v38  ;;  %v448_v38 = vld [vmem:[%s17635_s28 + $0x578] sm:$0xff] }
 0x374   : > { %10700 = vmatpush1.bf16.msra.mxu1 %v16903_v46  ;;  %v460_v46 = vld [vmem:[%s17635_s28 + $0x5d8] sm:$0xff] }
 0x375   : > { %10701 = vmatprep.subr.bf16.mxu1 %v16914_v62  ;;  %8770 = vmatpush1.bf16.msra.mxu0 %v16933_v31  ;;  %v16921_v62 = vld [vmem:[%s22551_s1 + $0xd68] ss:$16 sps:$4 sm:$0xff]   ;;  %v16942_v31 = vld [vmem:[%s22551_s1 + $0x1160] ss:$16 sps:$4 sm:$0xff]  }
 0x376   : > { %10571 = vmatmul.mubr.bf16.gmra.mrb[84].mxu1 %v19510_v15  ;;  %8771 = vmatprep.subr.bf16.mxu0 %v16938_v0  ;;  %v16932_v15 = vld [vmem:[%s22551_s1 + $0xd8c] ss:$16 sps:$4 sm:$0xff]   ;;  %v16930_v0 = vld [vmem:[%s22551_s1 + $0xd88] ss:$16 sps:$4 sm:$0xff]  }
 0x377   : > { %8641 = vmatmul.mubr.bf16.gmra.mrb[20].mxu0 %v20214_v24  ;;  %10580 = vmatprep.mubr.bf16.mxu1 %v19512_v49  ;;  %v20248_v49 = vcombine.low %v424_v51, %v436_v9  ;;  %v16945_v51 = vld [vmem:[%s22551_s1 + $0x1180] ss:$16 sps:$4 sm:$0xff]   ;;  %v16953_v9 = vld [vmem:[%s22551_s1 + $0x11a4] ss:$16 sps:$4 sm:$0xff]  }
 0x378   : > { %8650 = vmatprep.mubr.bf16.mxu0 %v20216_v59  ;;  %10702 = vmatpush1.bf16.msra.mxu1 %v16912_v53  ;;  %v20250_v53 = vcombine.high %v448_v38, %v460_v46 }
 0x379   : > { %10703 = vmatprep.subr.bf16.mxu1 %v16923_v50  ;;  %8772 = vmatpush1.bf16.msra.mxu0 %v16936_v26  ;;  %v16947_v50 = vld [vmem:[%s22551_s1 + $0x1184] ss:$16 sps:$4 sm:$0xff]   ;;  %v16941_v26 = vld [vmem:[%s22551_s1 + $0xdac] ss:$16 sps:$4 sm:$0xff]  }
 0x37a   : > { %8773 = vmatprep.subr.bf16.mxu0 %v16944_v44  ;;  %22764 = vst [vmem:[#allocation10_spill] sm:$0xff] %v20250_v53  ;;  %v22765_v44 = vld [vmem:[#allocation14_spill] sm:$0xff] }
 0x37c   : > { %10704 = vmatpush1.bf16.msra.mxu1 %v16921_v62  ;;  %v472_v62 = vld [vmem:[%s17635_s28 + $0x638] sm:$0xff] }
 0x37d   : > { %10705 = vmatprep.subr.bf16.mxu1 %v16932_v15  ;;  %8774 = vmatpush1.bf16.msra.mxu0 %v16942_v31  ;;  %v484_v15 = vld [vmem:[%s17635_s28 + $0x698] sm:$0xff] }
 0x37e   : > { %10581 = vmatmul.mubr.bf16.gmra.mrb[88].mxu1 %v19544_v33  ;;  %v16939_v31 = vld [vmem:[%s22551_s1 + $0xda8] ss:$16 sps:$4 sm:$0xff]   ;;  %8775 = vmatprep.subr.bf16.mxu0 %v16947_v50  ;;  %v16950_v33 = vld [vmem:[%s22551_s1 + $0xdcc] ss:$16 sps:$4 sm:$0xff]  }
 0x37f   : > { %8651 = vmatmul.mubr.bf16.gmra.mrb[24].mxu0 %v20248_v49  ;;  %10590 = vmatprep.mubr.bf16.mxu1 %v22765_v44  ;;  %v20282_v44 = vcombine.low %v448_v38, %v460_v46  ;;  %v16948_v50 = vld [vmem:[%s22551_s1 + $0xdc8] ss:$16 sps:$4 sm:$0xff]   ;;  %v16954_v38 = vld [vmem:[%s22551_s1 + $0x11c0] ss:$16 sps:$4 sm:$0xff]   ;;  %v16959_v46 = vld [vmem:[%s22551_s1 + $0xdec] ss:$16 sps:$4 sm:$0xff]  }
 0x380   : > { %8660 = vmatprep.mubr.bf16.mxu0 %v20250_v53  ;;  %10706 = vmatpush1.bf16.msra.mxu1 %v16930_v0  ;;  %v16951_v53 = vld [vmem:[%s22551_s1 + $0x11a0] ss:$16 sps:$4 sm:$0xff]   ;;  %v20284_v0 = vcombine.high %v472_v62, %v484_v15 }
 0x381   : > { %10707 = vmatprep.subr.bf16.mxu1 %v16941_v26  ;;  %8776 = vmatpush1.bf16.msra.mxu0 %v16945_v51  ;;  %v16956_v26 = vld [vmem:[%s22551_s1 + $0x11c4] ss:$16 sps:$4 sm:$0xff]  }
 0x382   : > { %8777 = vmatprep.subr.bf16.mxu0 %v16953_v9  ;;  %22766 = vst [vmem:[#allocation11_spill] sm:$0xff] %v20284_v0  ;;  %v16962_v51 = vld [vmem:[%s22551_s1 + $0x11e4] ss:$16 sps:$4 sm:$0xff]   ;;  %v22767_v9 = vld [vmem:[#allocation15_spill] sm:$0xff] }
 0x384   : > { %10708 = vmatpush1.bf16.msra.mxu1 %v16939_v31  ;;  %v508_v31 = vld [vmem:[%s17635_s28 + $0x758] sm:$0xff] }
 0x385   : > { %10709 = vmatprep.subr.bf16.mxu1 %v16950_v33  ;;  %8778 = vmatpush1.bf16.msra.mxu0 %v16951_v53  ;;  %v496_v53 = vld [vmem:[%s17635_s28 + $0x6f8] sm:$0xff] }
 0x386   : > { %10591 = vmatmul.mubr.bf16.gmra.mrb[92].mxu1 %v19578_v8  ;;  %8779 = vmatprep.subr.bf16.mxu0 %v16956_v26  ;;  %v16957_v33 = vld [vmem:[%s22551_s1 + $0xde8] ss:$16 sps:$4 sm:$0xff]   ;;  %v16960_v8 = vld [vmem:[%s22551_s1 + $0x11e0] ss:$16 sps:$4 sm:$0xff]   ;;  %v16989_v26 = vld [vmem:[%s22551_s1 + $0x1204] ss:$16 sps:$4 sm:$0xff]  }
 0x387   : > { %8661 = vmatmul.mubr.bf16.gmra.mrb[28].mxu0 %v20282_v44  ;;  %10600 = vmatprep.mubr.bf16.mxu1 %v22767_v9  ;;  %v16965_v9 = vld [vmem:[%s22551_s1 + $0xe0c] ss:$16 sps:$4 sm:$0xff]  }
 0x388   : > { %8670 = vmatprep.mubr.bf16.mxu0 %v20284_v0  ;;  %10710 = vmatpush1.bf16.msra.mxu1 %v16948_v50  ;;  %v20316_v0 = vcombine.low %v472_v62, %v484_v15  ;;  %v20318_v50 = vcombine.high %v496_v53, %v508_v31  ;;  %v520_v62 = vld [vmem:[%s17635_s28 + $0x7b8] sm:$0xff] }
 0x389   : > { %10711 = vmatprep.subr.bf16.mxu1 %v16959_v46  ;;  %8780 = vmatpush1.bf16.msra.mxu0 %v16954_v38  ;;  %v532_v15 = vld [vmem:[%s17635_s28 + $0x818] sm:$0xff]  ;;  %v20329_v38 = vcombine.low %v496_v53, %v508_v31 }
 0x38a   : > { %8781 = vmatprep.subr.bf16.mxu0 %v16962_v51  ;;  %v20331_v46 = vcombine.high %v520_v62, %v532_v15  ;;  %v20339_v51 = vcombine.low %v520_v62, %v532_v15  ;;  %v580_v53 = vld [vmem:[%s17635_s28 + $0x998] sm:$0xff] }
 0x38b   : > { %v22771_v62 = vld [vmem:[#allocation17_spill] sm:$0xff] }
 0x38c   : > { %10712 = vmatpush1.bf16.msra.mxu1 %v16957_v33  ;;  %v628_v15 = vld [vmem:[%s17635_s28 + $0xb18] sm:$0xff] }
 0x38d   : > { %8782 = vmatpush1.bf16.msra.mxu0 %v16960_v8  ;;  %10874 = vmatprep.subr.bf16.mxu1 %v16965_v9  ;;  %v604_v8 = vld [vmem:[%s17635_s28 + $0xa58] sm:$0xff] }
 0x38e   : > { %10601 = vmatmul.mubr.bf16.gmra.mrb[96].mxu1 %v19612_v13  ;;  %8944 = vmatprep.subr.bf16.mxu0 %v16989_v26  ;;  %v544_v13 = vld [vmem:[%s17635_s28 + $0x878] sm:$0xff]  ;;  %v22770_v26 = vld [vmem:[#allocation16_spill] sm:$0xff] }
 0x38f   : > { %8671 = vmatmul.mubr.bf16.gmra.mrb[32].mxu0 %v20316_v0  ;;  %10610 = vmatprep.mubr.bf16.mxu1 %v19614_v6  ;;  %v556_v6 = vld [vmem:[%s17635_s28 + $0x8d8] sm:$0xff] }
 0x390   : > { %8680 = vmatprep.mubr.bf16.mxu0 %v20318_v50  ;;  %v20341_v33 = vcombine.high %v544_v13, %v556_v6 }
 0x396   : > { %10611 = vmatmul.mubr.bf16.gmra.mrb[100].mxu1 %v19625_v58  ;;  %v568_v58 = vld [vmem:[%s17635_s28 + $0x938] sm:$0xff] }
 0x397   : > { %8681 = vmatmul.mubr.bf16.gmra.mrb[36].mxu0 %v20329_v38  ;;  %10620 = vmatprep.mubr.bf16.mxu1 %v19627_v30  ;;  %v20349_v30 = vcombine.low %v544_v13, %v556_v6  ;;  %v20351_v31 = vcombine.high %v568_v58, %v580_v53  ;;  %v22774_v6 = vld [vmem:[#allocation68_spill] sm:$0xff] }
 0x398   : > { %8690 = vmatprep.mubr.bf16.mxu0 %v20331_v46 }
 0x39e   : > { %10621 = vmatmul.mubr.bf16.gmra.mrb[104].mxu1 %v19635_v41  ;;  %v592_v41 = vld [vmem:[%s17635_s28 + $0x9f8] sm:$0xff] }
 0x39f   : > { %8691 = vmatmul.mubr.bf16.gmra.mrb[40].mxu0 %v20339_v51  ;;  %10630 = vmatprep.mubr.bf16.mxu1 %v19637_v12  ;;  %v20359_v12 = vcombine.low %v568_v58, %v580_v53  ;;  %v20361_v9 = vcombine.high %v592_v41, %v604_v8  ;;  %v22775_v58 = vld [vmem:[#allocation70_spill] sm:$0xff]  ;;  %v640_v53 = vld [vmem:[%s17635_s28 + $0xb78] sm:$0xff] }
 0x3a0   : > { %8700 = vmatprep.mubr.bf16.mxu0 %v20341_v33 }
 0x3a1   : > { %22768 = vst [vmem:[#allocation12_spill] sm:$0xff] %v20359_v12  ;;  %22769 = vst [vmem:[#allocation13_spill] sm:$0xff] %v20361_v9 }
 0x3a6   : > { %10631 = vmatmul.mubr.bf16.gmra.mrb[108].mxu1 %v19645_v43  ;;  %v616_v43 = vld [vmem:[%s17635_s28 + $0xab8] sm:$0xff] }
 0x3a7   : > { %8701 = vmatmul.mubr.bf16.gmra.mrb[44].mxu0 %v20349_v30  ;;  %10640 = vmatprep.mubr.bf16.mxu1 %v19647_v2  ;;  %v20369_v2 = vcombine.low %v592_v41, %v604_v8  ;;  %v20371_v13 = vcombine.high %v616_v43, %v628_v15  ;;  %v22778_v41 = vld [vmem:[#allocation3_spill] sm:$0xff]  ;;  %v22779_v8 = vld [vmem:[#allocation4_spill] sm:$0xff] }
 0x3a8   : > { %8710 = vmatprep.mubr.bf16.mxu0 %v20351_v31 }
 0x3a9   : > { %22772 = vst [vmem:[#allocation14_spill] sm:$0xff] %v20369_v2  ;;  %22773 = vst [vmem:[#allocation15_spill] sm:$0xff] %v20371_v13 }
 0x3ae   : > { %10641 = vmatmul.mubr.bf16.gmra.mrb[112].mxu1 %v22770_v26  ;;  %v652_v26 = vld [vmem:[%s17635_s28 + $0xbd8] sm:$0xff] }
 0x3af   : > { %8711 = vmatmul.mubr.bf16.gmra.mrb[48].mxu0 %v20359_v12  ;;  %10650 = vmatprep.mubr.bf16.mxu1 %v22771_v62  ;;  %v20379_v62 = vcombine.low %v616_v43, %v628_v15  ;;  %v22782_v43 = vld [vmem:[#allocation5_spill] sm:$0xff]  ;;  %v22783_v15 = vld [vmem:[#allocation6_spill] sm:$0xff] }
 0x3b0   : > { %8720 = vmatprep.mubr.bf16.mxu0 %v20361_v9  ;;  %v20381_v9 = vcombine.high %v640_v53, %v652_v26  ;;  %v341_v12 = vld [vmem:[%s17635_s28 + $0x220] sm:$0xff] }
 0x3b1   : > { %22776 = vst [vmem:[#allocation16_spill] sm:$0xff] %v20379_v62 }
 0x3b2   : > { %22777 = vst [vmem:[#allocation17_spill] sm:$0xff] %v20381_v9 }
 0x3b6   : > { %10651 = vmatmul.mubr.bf16.gmra.mrb[116].mxu1 %v22774_v6  ;;  %v281_v6 = vld [vmem:[%s17635_s28 + $0x40] sm:$0xff] }
 0x3b7   : > { %8721 = vmatmul.mubr.bf16.gmra.mrb[52].mxu0 %v20369_v2  ;;  %10660 = vmatprep.mubr.bf16.mxu1 %v22775_v58  ;;  %v20389_v2 = vcombine.low %v640_v53, %v652_v26  ;;  %v16963_v53 = vld [vmem:[%s22551_s1 + $0xe08] ss:$16 sps:$4 sm:$0xff]  }
 0x3b8   : > { %8730 = vmatprep.mubr.bf16.mxu0 %v20371_v13  ;;  %v293_v13 = vld [vmem:[%s17635_s28 + $0xa0] sm:$0xff] }
 0x3b9   : > { %22780 = vst [vmem:[#allocation68_spill] sm:$0xff] %v20389_v2  ;;  %v20391_v58 = vcombine.high %v281_v6, %v293_v13 }
 0x3bb   : > { %22781 = vst [vmem:[#allocation70_spill] sm:$0xff] %v20391_v58 }
 0x3be   : > { %10661 = vmatmul.mubr.bf16.gmra.mrb[120].mxu1 %v22778_v41  ;;  %v305_v41 = vld [vmem:[%s17635_s28 + $0x100] sm:$0xff] }
 0x3bf   : > { %8731 = vmatmul.mubr.bf16.gmra.mrb[56].mxu0 %v20379_v62  ;;  %10670 = vmatprep.mubr.bf16.mxu1 %v22779_v8  ;;  %v20399_v62 = vcombine.low %v281_v6, %v293_v13  ;;  %v16968_v8 = vld [vmem:[%s22551_s1 + $0xe2c] ss:$16 sps:$4 sm:$0xff]   ;;  %v16995_v13 = vld [vmem:[%s22551_s1 + $0x1224] ss:$16 sps:$4 sm:$0xff]   ;;  %v16966_v6 = vld [vmem:[%s22551_s1 + $0xe28] ss:$16 sps:$4 sm:$0xff]  }
 0x3c0   : > { %8740 = vmatprep.mubr.bf16.mxu0 %v20381_v9  ;;  %v317_v9 = vld [vmem:[%s17635_s28 + $0x160] sm:$0xff] }
 0x3c1   : > { %22784 = vst [vmem:[#allocation3_spill] sm:$0xff] %v20399_v62  ;;  %v20404_v26 = vcombine.high %v305_v41, %v317_v9 }
 0x3c3   : > { %22785 = vst [vmem:[#allocation4_spill] sm:$0xff] %v20404_v26 }
 0x3c6   : > { %10671 = vmatmul.mubr.bf16.gmra.mrb[124].mxu1 %v22782_v43  ;;  %v16987_v43 = vld [vmem:[%s22551_s1 + $0x1200] ss:$16 sps:$4 sm:$0xff]  }
 0x3c7   : > { %8741 = vmatmul.mubr.bf16.gmra.mrb[60].mxu0 %v20389_v2  ;;  %10713 = vmatprep.mubr.bf16.mxu1 %v22783_v15  ;;  %v22786_v15 = vld [vmem:[#allocation7_spill] sm:$0xff]  ;;  %v329_v2 = vld [vmem:[%s17635_s28 + $0x1c0] sm:$0xff] }
 0x3c8   : > { %8783 = vmatprep.mubr.bf16.mxu0 %v20391_v58  ;;  %v22787_v58 = vld [vmem:[#allocation8_spill] sm:$0xff] }
 0x3ce   : > { %10714 = vmatmul.mubr.bf16.vlgmr.msra.gmra.mrb[64].mxu1 %v22786_v15  ;;  %v16971_v15 = vld [vmem:[%s22551_s1 + $0xe4c] ss:$16 sps:$4 sm:$0xff]  }
 0x3cf   : > { %8784 = vmatmul.mubr.bf16.vlgmr.msra.gmra.mrb[0].mxu0 %v20399_v62  ;;  %10875 = vmatpush1.bf16.msra.mxu1 %v16963_v53  ;;  %v16993_v53 = vld [vmem:[%s22551_s1 + $0x1220] ss:$16 sps:$4 sm:$0xff]   ;;  %v20430_v62 = vcombine.low %v305_v41, %v317_v9  ;;  %v16974_v9 = vld [vmem:[%s22551_s1 + $0xe6c] ss:$16 sps:$4 sm:$0xff]  }
 0x3d0   : > { %8793 = vmatprep.mubr.bf16.mxu0 %v20404_v26  ;;  %10723 = vmatprep.mubr.bf16.mxu1 %v22787_v58  ;;  %v20432_v26 = vcombine.high %v329_v2, %v341_v12  ;;  %v16969_v58 = vld [vmem:[%s22551_s1 + $0xe48] ss:$16 sps:$4 sm:$0xff]   ;;  %v16996_v41 = vld [vmem:[%s22551_s1 + $0x1240] ss:$16 sps:$4 sm:$0xff]  }
 0x3d1   : > { %10876 = vmatprep.subr.bf16.mxu1 %v16968_v8  ;;  %8945 = vmatpush1.bf16.msra.mxu0 %v16987_v43  ;;  %v16998_v8 = vld [vmem:[%s22551_s1 + $0x1244] ss:$16 sps:$4 sm:$0xff]  }
 0x3d2   : > { %8946 = vmatprep.subr.bf16.mxu0 %v16995_v13  ;;  %22788 = vst [vmem:[#allocation5_spill] sm:$0xff] %v20432_v26  ;;  %v17004_v43 = vld [vmem:[%s22551_s1 + $0x1264] ss:$16 sps:$4 sm:$0xff]   ;;  %v22789_v13 = vld [vmem:[#allocation9_spill] sm:$0xff] }
 0x3d3   : > { %10877 = vmatpush1.bf16.msra.mxu1 %v16966_v6  ;;  %v353_v6 = vld [vmem:[%s17635_s28 + $0x280] sm:$0xff] }
 0x3d4   : > { %10878 = vmatprep.subr.bf16.mxu1 %v16971_v15  ;;  %v365_v15 = vld [vmem:[%s17635_s28 + $0x2e0] sm:$0xff] }
 0x3d5   : > { %8947 = vmatpush1.bf16.msra.mxu0 %v16993_v53  ;;  %v16972_v53 = vld [vmem:[%s22551_s1 + $0xe68] ss:$16 sps:$4 sm:$0xff]  }
 0x3d6   : > { %10724 = vmatmul.mubr.bf16.gmra.mrb[68].mxu1 %v19726_v10  ;;  %8948 = vmatprep.subr.bf16.mxu0 %v16998_v8  ;;  %v16977_v10 = vld [vmem:[%s22551_s1 + $0xe8c] ss:$16 sps:$4 sm:$0xff]   ;;  %v16975_v8 = vld [vmem:[%s22551_s1 + $0xe88] ss:$16 sps:$4 sm:$0xff]  }
 0x3d7   : > { %8794 = vmatmul.mubr.bf16.gmra.mrb[4].mxu0 %v20430_v62  ;;  %10733 = vmatprep.mubr.bf16.mxu1 %v22789_v13  ;;  %v20464_v13 = vcombine.low %v329_v2, %v341_v12  ;;  %v17005_v12 = vld [vmem:[%s22551_s1 + $0x1280] ss:$16 sps:$4 sm:$0xff]   ;;  %v17013_v2 = vld [vmem:[%s22551_s1 + $0x12a4] ss:$16 sps:$4 sm:$0xff]  }
 0x3d8   : > { %8803 = vmatprep.mubr.bf16.mxu0 %v20432_v26  ;;  %10879 = vmatpush1.bf16.msra.mxu1 %v16969_v58  ;;  %v17002_v26 = vld [vmem:[%s22551_s1 + $0x1260] ss:$16 sps:$4 sm:$0xff]   ;;  %v20466_v58 = vcombine.high %v353_v6, %v365_v15 }
 0x3d9   : > { %10880 = vmatprep.subr.bf16.mxu1 %v16974_v9  ;;  %8949 = vmatpush1.bf16.msra.mxu0 %v16996_v41  ;;  %v17007_v9 = vld [vmem:[%s22551_s1 + $0x1284] ss:$16 sps:$4 sm:$0xff]   ;;  %v16980_v41 = vld [vmem:[%s22551_s1 + $0xeac] ss:$16 sps:$4 sm:$0xff]  }
 0x3da   : > { %8950 = vmatprep.subr.bf16.mxu0 %v17004_v43  ;;  %v377_v43 = vld [vmem:[%s17635_s28 + $0x340] sm:$0xff] }
 0x3dc   : > { %10881 = vmatpush1.bf16.msra.mxu1 %v16972_v53  ;;  %v389_v53 = vld [vmem:[%s17635_s28 + $0x3a0] sm:$0xff] }
 0x3dd   : > { %10882 = vmatprep.subr.bf16.mxu1 %v16977_v10  ;;  %8951 = vmatpush1.bf16.msra.mxu0 %v17002_v26  ;;  %v16978_v26 = vld [vmem:[%s22551_s1 + $0xea8] ss:$16 sps:$4 sm:$0xff]   ;;  %v17011_v10 = vld [vmem:[%s22551_s1 + $0x12a0] ss:$16 sps:$4 sm:$0xff]  }
 0x3de   : > { %10734 = vmatmul.mubr.bf16.gmra.mrb[72].mxu1 %v19760_v18  ;;  %8952 = vmatprep.subr.bf16.mxu0 %v17007_v9  ;;  %v16983_v18 = vld [vmem:[%s22551_s1 + $0xecc] ss:$16 sps:$4 sm:$0xff]   ;;  %v16981_v9 = vld [vmem:[%s22551_s1 + $0xec8] ss:$16 sps:$4 sm:$0xff]  }
 0x3df   : > { %8804 = vmatmul.mubr.bf16.gmra.mrb[8].mxu0 %v20464_v13  ;;  %10743 = vmatprep.mubr.bf16.mxu1 %v19762_v19  ;;  %v20498_v19 = vcombine.low %v353_v6, %v365_v15  ;;  %v17014_v6 = vld [vmem:[%s22551_s1 + $0x12c0] ss:$16 sps:$4 sm:$0xff]   ;;  %v17022_v15 = vld [vmem:[%s22551_s1 + $0x12e4] ss:$16 sps:$4 sm:$0xff]  }
 0x3e0   : > { %8813 = vmatprep.mubr.bf16.mxu0 %v20466_v58  ;;  %10883 = vmatpush1.bf16.msra.mxu1 %v16975_v8  ;;  %v20500_v8 = vcombine.high %v377_v43, %v389_v53 }
 0x3e1   : > { %10884 = vmatprep.subr.bf16.mxu1 %v16980_v41  ;;  %8953 = vmatpush1.bf16.msra.mxu0 %v17005_v12  ;;  %v17016_v41 = vld [vmem:[%s22551_s1 + $0x12c4] ss:$16 sps:$4 sm:$0xff]   ;;  %v16986_v12 = vld [vmem:[%s22551_s1 + $0xeec] ss:$16 sps:$4 sm:$0xff]  }
 0x3e2   : > { %8954 = vmatprep.subr.bf16.mxu0 %v17013_v2  ;;  %v401_v2 = vld [vmem:[%s17635_s28 + $0x400] sm:$0xff] }
 0x3e4   : > { %10885 = vmatpush1.bf16.msra.mxu1 %v16978_v26  ;;  %v413_v26 = vld [vmem:[%s17635_s28 + $0x460] sm:$0xff] }
 0x3e5   : > { %10886 = vmatprep.subr.bf16.mxu1 %v16983_v18  ;;  %8955 = vmatpush1.bf16.msra.mxu0 %v17011_v10  ;;  %v16984_v18 = vld [vmem:[%s22551_s1 + $0xee8] ss:$16 sps:$4 sm:$0xff]   ;;  %v17020_v10 = vld [vmem:[%s22551_s1 + $0x12e0] ss:$16 sps:$4 sm:$0xff]  }
 0x3e6   : > { %10744 = vmatmul.mubr.bf16.gmra.mrb[76].mxu1 %v19794_v61  ;;  %8956 = vmatprep.subr.bf16.mxu0 %v17016_v41  ;;  %v16992_v61 = vld [vmem:[%s22551_s1 + $0xf0c] ss:$16 sps:$4 sm:$0xff]   ;;  %v16990_v41 = vld [vmem:[%s22551_s1 + $0xf08] ss:$16 sps:$4 sm:$0xff]  }
 0x3e7   : > { %8814 = vmatmul.mubr.bf16.gmra.mrb[12].mxu0 %v20498_v19  ;;  %10753 = vmatprep.mubr.bf16.mxu1 %v19796_v7  ;;  %v20532_v7 = vcombine.low %v377_v43, %v389_v53  ;;  %v17023_v43 = vld [vmem:[%s22551_s1 + $0x1300] ss:$16 sps:$4 sm:$0xff]   ;;  %v17031_v53 = vld [vmem:[%s22551_s1 + $0x1324] ss:$16 sps:$4 sm:$0xff]  }
 0x3e8   : > { %8823 = vmatprep.mubr.bf16.mxu0 %v20500_v8  ;;  %10887 = vmatpush1.bf16.msra.mxu1 %v16981_v9  ;;  %v20534_v9 = vcombine.high %v401_v2, %v413_v26 }
 0x3e9   : > { %10888 = vmatprep.subr.bf16.mxu1 %v16986_v12  ;;  %8957 = vmatpush1.bf16.msra.mxu0 %v17014_v6  ;;  %v17025_v12 = vld [vmem:[%s22551_s1 + $0x1304] ss:$16 sps:$4 sm:$0xff]   ;;  %v17001_v6 = vld [vmem:[%s22551_s1 + $0xf2c] ss:$16 sps:$4 sm:$0xff]  }
 0x3ea   : > { %8958 = vmatprep.subr.bf16.mxu0 %v17022_v15  ;;  %v425_v15 = vld [vmem:[%s17635_s28 + $0x4c0] sm:$0xff] }
 0x3ec   : > { %10889 = vmatpush1.bf16.msra.mxu1 %v16984_v18  ;;  %v437_v18 = vld [vmem:[%s17635_s28 + $0x520] sm:$0xff] }
 0x3ed   : > { %10890 = vmatprep.subr.bf16.mxu1 %v16992_v61  ;;  %8959 = vmatpush1.bf16.msra.mxu0 %v17020_v10  ;;  %v16999_v61 = vld [vmem:[%s22551_s1 + $0xf28] ss:$16 sps:$4 sm:$0xff]   ;;  %v17029_v10 = vld [vmem:[%s22551_s1 + $0x1320] ss:$16 sps:$4 sm:$0xff]  }
 0x3ee   : > { %10754 = vmatmul.mubr.bf16.gmra.mrb[80].mxu1 %v19828_v39  ;;  %8960 = vmatprep.subr.bf16.mxu0 %v17025_v12  ;;  %v17010_v39 = vld [vmem:[%s22551_s1 + $0xf4c] ss:$16 sps:$4 sm:$0xff]   ;;  %v17008_v12 = vld [vmem:[%s22551_s1 + $0xf48] ss:$16 sps:$4 sm:$0xff]  }
 0x3ef   : > { %8824 = vmatmul.mubr.bf16.gmra.mrb[16].mxu0 %v20532_v7  ;;  %10763 = vmatprep.mubr.bf16.mxu1 %v19830_v57  ;;  %v20566_v57 = vcombine.low %v401_v2, %v413_v26  ;;  %v17032_v2 = vld [vmem:[%s22551_s1 + $0x1340] ss:$16 sps:$4 sm:$0xff]   ;;  %v17040_v26 = vld [vmem:[%s22551_s1 + $0x1364] ss:$16 sps:$4 sm:$0xff]  }
 0x3f0   : > { %8833 = vmatprep.mubr.bf16.mxu0 %v20534_v9  ;;  %10891 = vmatpush1.bf16.msra.mxu1 %v16990_v41  ;;  %v20568_v41 = vcombine.high %v425_v15, %v437_v18 }
 0x3f1   : > { %10892 = vmatprep.subr.bf16.mxu1 %v17001_v6  ;;  %8961 = vmatpush1.bf16.msra.mxu0 %v17023_v43  ;;  %v17034_v6 = vld [vmem:[%s22551_s1 + $0x1344] ss:$16 sps:$4 sm:$0xff]   ;;  %v17019_v43 = vld [vmem:[%s22551_s1 + $0xf6c] ss:$16 sps:$4 sm:$0xff]  }
 0x3f2   : > { %8962 = vmatprep.subr.bf16.mxu0 %v17031_v53  ;;  %v449_v53 = vld [vmem:[%s17635_s28 + $0x580] sm:$0xff] }
 0x3f4   : > { %10893 = vmatpush1.bf16.msra.mxu1 %v16999_v61  ;;  %v461_v61 = vld [vmem:[%s17635_s28 + $0x5e0] sm:$0xff] }
 0x3f5   : > { %10894 = vmatprep.subr.bf16.mxu1 %v17010_v39  ;;  %8963 = vmatpush1.bf16.msra.mxu0 %v17029_v10  ;;  %v17017_v39 = vld [vmem:[%s22551_s1 + $0xf68] ss:$16 sps:$4 sm:$0xff]   ;;  %v17038_v10 = vld [vmem:[%s22551_s1 + $0x1360] ss:$16 sps:$4 sm:$0xff]  }
 0x3f6   : > { %10764 = vmatmul.mubr.bf16.gmra.mrb[84].mxu1 %v19862_v48  ;;  %8964 = vmatprep.subr.bf16.mxu0 %v17034_v6  ;;  %v17028_v48 = vld [vmem:[%s22551_s1 + $0xf8c] ss:$16 sps:$4 sm:$0xff]   ;;  %v17026_v6 = vld [vmem:[%s22551_s1 + $0xf88] ss:$16 sps:$4 sm:$0xff]  }
 0x3f7   : > { %8834 = vmatmul.mubr.bf16.gmra.mrb[20].mxu0 %v20566_v57  ;;  %10773 = vmatprep.mubr.bf16.mxu1 %v19864_v1  ;;  %v20600_v1 = vcombine.low %v425_v15, %v437_v18  ;;  %v17041_v15 = vld [vmem:[%s22551_s1 + $0x1380] ss:$16 sps:$4 sm:$0xff]   ;;  %v17049_v18 = vld [vmem:[%s22551_s1 + $0x13a4] ss:$16 sps:$4 sm:$0xff]  }
 0x3f8   : > { %8843 = vmatprep.mubr.bf16.mxu0 %v20568_v41  ;;  %10895 = vmatpush1.bf16.msra.mxu1 %v17008_v12  ;;  %v20602_v12 = vcombine.high %v449_v53, %v461_v61 }
 0x3f9   : > { %10896 = vmatprep.subr.bf16.mxu1 %v17019_v43  ;;  %8965 = vmatpush1.bf16.msra.mxu0 %v17032_v2  ;;  %v17043_v43 = vld [vmem:[%s22551_s1 + $0x1384] ss:$16 sps:$4 sm:$0xff]   ;;  %v17037_v2 = vld [vmem:[%s22551_s1 + $0xfac] ss:$16 sps:$4 sm:$0xff]  }
 0x3fa   : > { %8966 = vmatprep.subr.bf16.mxu0 %v17040_v26  ;;  %v473_v26 = vld [vmem:[%s17635_s28 + $0x640] sm:$0xff] }
 0x3fc   : > { %10897 = vmatpush1.bf16.msra.mxu1 %v17017_v39  ;;  %v485_v39 = vld [vmem:[%s17635_s28 + $0x6a0] sm:$0xff] }
 0x3fd   : > { %10898 = vmatprep.subr.bf16.mxu1 %v17028_v48  ;;  %8967 = vmatpush1.bf16.msra.mxu0 %v17038_v10  ;;  %v17035_v48 = vld [vmem:[%s22551_s1 + $0xfa8] ss:$16 sps:$4 sm:$0xff]   ;;  %v17047_v10 = vld [vmem:[%s22551_s1 + $0x13a0] ss:$16 sps:$4 sm:$0xff]  }
 0x3fe   : > { %10774 = vmatmul.mubr.bf16.gmra.mrb[88].mxu1 %v19896_v37  ;;  %8968 = vmatprep.subr.bf16.mxu0 %v17043_v43  ;;  %v17046_v37 = vld [vmem:[%s22551_s1 + $0xfcc] ss:$16 sps:$4 sm:$0xff]   ;;  %v17044_v43 = vld [vmem:[%s22551_s1 + $0xfc8] ss:$16 sps:$4 sm:$0xff]  }
 0x3ff   : > { %8844 = vmatmul.mubr.bf16.gmra.mrb[24].mxu0 %v20600_v1  ;;  %10783 = vmatprep.mubr.bf16.mxu1 %v19898_v4  ;;  %v20634_v4 = vcombine.low %v449_v53, %v461_v61  ;;  %v17050_v53 = vld [vmem:[%s22551_s1 + $0x13c0] ss:$16 sps:$4 sm:$0xff]   ;;  %v17055_v61 = vld [vmem:[%s22551_s1 + $0xfec] ss:$16 sps:$4 sm:$0xff]  }
 0x400   : > { %8853 = vmatprep.mubr.bf16.mxu0 %v20602_v12  ;;  %10899 = vmatpush1.bf16.msra.mxu1 %v17026_v6  ;;  %v20636_v6 = vcombine.high %v473_v26, %v485_v39 }
 0x401   : > { %10900 = vmatprep.subr.bf16.mxu1 %v17037_v2  ;;  %8969 = vmatpush1.bf16.msra.mxu0 %v17041_v15  ;;  %v17052_v2 = vld [vmem:[%s22551_s1 + $0x13c4] ss:$16 sps:$4 sm:$0xff]  }
 0x402   : > { %8970 = vmatprep.subr.bf16.mxu0 %v17049_v18  ;;  %v17058_v15 = vld [vmem:[%s22551_s1 + $0x13e4] ss:$16 sps:$4 sm:$0xff]  }
 0x403   : > { %v497_v18 = vld [vmem:[%s17635_s28 + $0x700] sm:$0xff] }
 0x404   : > { %10901 = vmatpush1.bf16.msra.mxu1 %v17035_v48  ;;  %v509_v48 = vld [vmem:[%s17635_s28 + $0x760] sm:$0xff] }
 0x405   : > { %10902 = vmatprep.subr.bf16.mxu1 %v17046_v37  ;;  %8971 = vmatpush1.bf16.msra.mxu0 %v17047_v10  ;;  %v17053_v37 = vld [vmem:[%s22551_s1 + $0xfe8] ss:$16 sps:$4 sm:$0xff]   ;;  %v20668_v10 = vcombine.low %v473_v26, %v485_v39  ;;  %v521_v26 = vld [vmem:[%s17635_s28 + $0x7c0] sm:$0xff] }
 0x406   : > { %10784 = vmatmul.mubr.bf16.gmra.mrb[92].mxu1 %v19930_v54  ;;  %8972 = vmatprep.subr.bf16.mxu0 %v17052_v2  ;;  %v17056_v54 = vld [vmem:[%s22551_s1 + $0x13e0] ss:$16 sps:$4 sm:$0xff]   ;;  %v17085_v2 = vld [vmem:[%s22551_s1 + $0x1404] ss:$16 sps:$4 sm:$0xff]  }
 0x407   : > { %8854 = vmatmul.mubr.bf16.gmra.mrb[28].mxu0 %v20634_v4  ;;  %10793 = vmatprep.mubr.bf16.mxu1 %v19932_v29  ;;  %v17061_v29 = vld [vmem:[%s22551_s1 + $0x100c] ss:$16 sps:$4 sm:$0xff]   ;;  %v533_v39 = vld [vmem:[%s17635_s28 + $0x820] sm:$0xff] }
 0x408   : > { %8863 = vmatprep.mubr.bf16.mxu0 %v20636_v6  ;;  %10903 = vmatpush1.bf16.msra.mxu1 %v17044_v43  ;;  %v20670_v43 = vcombine.high %v497_v18, %v509_v48 }
 0x409   : > { %10904 = vmatprep.subr.bf16.mxu1 %v17055_v61  ;;  %8973 = vmatpush1.bf16.msra.mxu0 %v17050_v53  ;;  %v20681_v53 = vcombine.low %v497_v18, %v509_v48  ;;  %v20683_v61 = vcombine.high %v521_v26, %v533_v39  ;;  %v581_v18 = vld [vmem:[%s17635_s28 + $0x9a0] sm:$0xff] }
 0x40a   : > { %8974 = vmatprep.subr.bf16.mxu0 %v17058_v15  ;;  %v20691_v15 = vcombine.low %v521_v26, %v533_v39  ;;  %v653_v39 = vld [vmem:[%s17635_s28 + $0xbe0] sm:$0xff] }
 0x40c   : > { %10905 = vmatpush1.bf16.msra.mxu1 %v17053_v37 }
 0x40d   : > { %8975 = vmatpush1.bf16.msra.mxu0 %v17056_v54  ;;  %11067 = vmatprep.subr.bf16.mxu1 %v17061_v29  ;;  %v605_v54 = vld [vmem:[%s17635_s28 + $0xa60] sm:$0xff] }
 0x40e   : > { %10794 = vmatmul.mubr.bf16.gmra.mrb[96].mxu1 %v19964_v23  ;;  %9137 = vmatprep.subr.bf16.mxu0 %v17085_v2  ;;  %v545_v23 = vld [vmem:[%s17635_s28 + $0x880] sm:$0xff] }
 0x40f   : > { %8864 = vmatmul.mubr.bf16.gmra.mrb[32].mxu0 %v20668_v10  ;;  %10803 = vmatprep.mubr.bf16.mxu1 %v19966_v3  ;;  %v557_v3 = vld [vmem:[%s17635_s28 + $0x8e0] sm:$0xff] }
 0x410   : > { %8873 = vmatprep.mubr.bf16.mxu0 %v20670_v43  ;;  %v20693_v37 = vcombine.high %v545_v23, %v557_v3  ;;  %v629_v2 = vld [vmem:[%s17635_s28 + $0xb20] sm:$0xff] }
 0x416   : > { %10804 = vmatmul.mubr.bf16.gmra.mrb[100].mxu1 %v19977_v35  ;;  %v569_v35 = vld [vmem:[%s17635_s28 + $0x940] sm:$0xff] }
 0x417   : > { %8874 = vmatmul.mubr.bf16.gmra.mrb[36].mxu0 %v20681_v53  ;;  %10813 = vmatprep.mubr.bf16.mxu1 %v19979_v5  ;;  %v20701_v5 = vcombine.low %v545_v23, %v557_v3  ;;  %v20703_v48 = vcombine.high %v569_v35, %v581_v18  ;;  %v294_v3 = vld [vmem:[%s17635_s28 + $0xa8] sm:$0xff] }
 0x418   : > { %8883 = vmatprep.mubr.bf16.mxu0 %v20683_v61 }
 0x41e   : > { %10814 = vmatmul.mubr.bf16.gmra.mrb[104].mxu1 %v19987_v32  ;;  %v593_v32 = vld [vmem:[%s17635_s28 + $0xa00] sm:$0xff] }
 0x41f   : > { %8884 = vmatmul.mubr.bf16.gmra.mrb[40].mxu0 %v20691_v15  ;;  %10823 = vmatprep.mubr.bf16.mxu1 %v19989_v60  ;;  %v20711_v60 = vcombine.low %v569_v35, %v581_v18  ;;  %v20713_v29 = vcombine.high %v593_v32, %v605_v54  ;;  %v318_v18 = vld [vmem:[%s17635_s28 + $0x168] sm:$0xff] }
 0x420   : > { %8893 = vmatprep.mubr.bf16.mxu0 %v20693_v37 }
 0x426   : > { %10824 = vmatmul.mubr.bf16.gmra.mrb[108].mxu1 %v19997_v56  ;;  %v617_v56 = vld [vmem:[%s17635_s28 + $0xac0] sm:$0xff] }
 0x427   : > { %8894 = vmatmul.mubr.bf16.gmra.mrb[44].mxu0 %v20701_v5  ;;  %10833 = vmatprep.mubr.bf16.mxu1 %v19999_v42  ;;  %v20721_v42 = vcombine.low %v593_v32, %v605_v54  ;;  %v20723_v26 = vcombine.high %v617_v56, %v629_v2 }
 0x428   : > { %8903 = vmatprep.mubr.bf16.mxu0 %v20703_v48 }
 0x42e   : > { %10834 = vmatmul.mubr.bf16.gmra.mrb[112].mxu1 %v20007_v20  ;;  %v641_v20 = vld [vmem:[%s17635_s28 + $0xb80] sm:$0xff] }
 0x42f   : > { %8904 = vmatmul.mubr.bf16.gmra.mrb[48].mxu0 %v20711_v60  ;;  %10843 = vmatprep.mubr.bf16.mxu1 %v20009_v17  ;;  %v20731_v17 = vcombine.low %v617_v56, %v629_v2  ;;  %v20733_v23 = vcombine.high %v641_v20, %v653_v39  ;;  %v20741_v35 = vcombine.low %v641_v20, %v653_v39  ;;  %v17091_v56 = vld [vmem:[%s22551_s1 + $0x1424] ss:$16 sps:$4 sm:$0xff]   ;;  %v17062_v2 = vld [vmem:[%s22551_s1 + $0x1028] ss:$16 sps:$4 sm:$0xff]  }
 0x430   : > { %8913 = vmatprep.mubr.bf16.mxu0 %v20713_v29  ;;  %v330_v20 = vld [vmem:[%s17635_s28 + $0x1c8] sm:$0xff] }
 0x431   : > { %v342_v39 = vld [vmem:[%s17635_s28 + $0x228] sm:$0xff] }
 0x436   : > { %10844 = vmatmul.mubr.bf16.gmra.mrb[116].mxu1 %v20017_v47  ;;  %v282_v47 = vld [vmem:[%s17635_s28 + $0x48] sm:$0xff] }
 0x437   : > { %8914 = vmatmul.mubr.bf16.gmra.mrb[52].mxu0 %v20721_v42  ;;  %10853 = vmatprep.mubr.bf16.mxu1 %v20019_v21  ;;  %v20743_v21 = vcombine.high %v282_v47, %v294_v3  ;;  %v20751_v32 = vcombine.low %v282_v47, %v294_v3  ;;  %v17089_v47 = vld [vmem:[%s22551_s1 + $0x1420] ss:$16 sps:$4 sm:$0xff]  }
 0x438   : > { %8923 = vmatprep.mubr.bf16.mxu0 %v20723_v26 }
 0x43e   : > { %10854 = vmatmul.mubr.bf16.gmra.mrb[120].mxu1 %v20027_v36  ;;  %v306_v36 = vld [vmem:[%s17635_s28 + $0x108] sm:$0xff] }
 0x43f   : > { %8924 = vmatmul.mubr.bf16.gmra.mrb[56].mxu0 %v20731_v17  ;;  %10863 = vmatprep.mubr.bf16.mxu1 %v20029_v11  ;;  %v17059_v11 = vld [vmem:[%s22551_s1 + $0x1008] ss:$16 sps:$4 sm:$0xff]   ;;  %v20756_v54 = vcombine.high %v306_v36, %v318_v18  ;;  %v20782_v3 = vcombine.low %v306_v36, %v318_v18  ;;  %v17070_v36 = vld [vmem:[%s22551_s1 + $0x106c] ss:$16 sps:$4 sm:$0xff]   ;;  %v17092_v18 = vld [vmem:[%s22551_s1 + $0x1440] ss:$16 sps:$4 sm:$0xff]  }
 0x440   : > { %8933 = vmatprep.mubr.bf16.mxu0 %v20733_v23 }
 0x446   : > { %10864 = vmatmul.mubr.bf16.gmra.mrb[124].mxu1 %v20037_v45  ;;  %v17064_v45 = vld [vmem:[%s22551_s1 + $0x102c] ss:$16 sps:$4 sm:$0xff]  }
 0x447   : > { %8934 = vmatmul.mubr.bf16.gmra.mrb[60].mxu0 %v20741_v35  ;;  %10906 = vmatprep.mubr.bf16.mxu1 %v20039_v63  ;;  %v17083_v63 = vld [vmem:[%s22551_s1 + $0x1400] ss:$16 sps:$4 sm:$0xff]  }
 0x448   : > { %8976 = vmatprep.mubr.bf16.mxu0 %v20743_v21 }
 0x44e   : > { %10907 = vmatmul.mubr.bf16.vlgmr.msra.gmra.mrb[64].mxu1 %v20047_v27  ;;  %v17067_v27 = vld [vmem:[%s22551_s1 + $0x104c] ss:$16 sps:$4 sm:$0xff]  }
 0x44f   : > { %8977 = vmatmul.mubr.bf16.vlgmr.msra.gmra.mrb[0].mxu0 %v20751_v32  ;;  %11068 = vmatpush1.bf16.msra.mxu1 %v17059_v11  ;;  %v20784_v11 = vcombine.high %v330_v20, %v342_v39 }
 0x450   : > { %8986 = vmatprep.mubr.bf16.mxu0 %v20756_v54  ;;  %10916 = vmatprep.mubr.bf16.mxu1 %v20052_v16  ;;  %v17065_v16 = vld [vmem:[%s22551_s1 + $0x1048] ss:$16 sps:$4 sm:$0xff]  }
 0x451   : > { %11069 = vmatprep.subr.bf16.mxu1 %v17064_v45  ;;  %9138 = vmatpush1.bf16.msra.mxu0 %v17083_v63  ;;  %v17094_v45 = vld [vmem:[%s22551_s1 + $0x1444] ss:$16 sps:$4 sm:$0xff]  }
 0x452   : > { %9139 = vmatprep.subr.bf16.mxu0 %v17091_v56  ;;  %v17100_v63 = vld [vmem:[%s22551_s1 + $0x1464] ss:$16 sps:$4 sm:$0xff]   ;;  %v354_v56 = vld [vmem:[%s17635_s28 + $0x288] sm:$0xff] }
 0x453   : > { %11070 = vmatpush1.bf16.msra.mxu1 %v17062_v2  ;;  %v366_v2 = vld [vmem:[%s17635_s28 + $0x2e8] sm:$0xff] }
 0x454   : > { %11071 = vmatprep.subr.bf16.mxu1 %v17067_v27  ;;  %v17068_v27 = vld [vmem:[%s22551_s1 + $0x1068] ss:$16 sps:$4 sm:$0xff]  }
 0x455   : > { %9140 = vmatpush1.bf16.msra.mxu0 %v17089_v47  ;;  %v17098_v47 = vld [vmem:[%s22551_s1 + $0x1460] ss:$16 sps:$4 sm:$0xff]  }
 0x456   : > { %10917 = vmatmul.mubr.bf16.gmra.mrb[68].mxu1 %v20078_v25  ;;  %9141 = vmatprep.subr.bf16.mxu0 %v17094_v45  ;;  %v17073_v25 = vld [vmem:[%s22551_s1 + $0x108c] ss:$16 sps:$4 sm:$0xff]   ;;  %v17071_v45 = vld [vmem:[%s22551_s1 + $0x1088] ss:$16 sps:$4 sm:$0xff]  }
 0x457   : > { %8987 = vmatmul.mubr.bf16.gmra.mrb[4].mxu0 %v20782_v3  ;;  %10926 = vmatprep.mubr.bf16.mxu1 %v20080_v34  ;;  %v20816_v34 = vcombine.low %v330_v20, %v342_v39  ;;  %v17101_v20 = vld [vmem:[%s22551_s1 + $0x1480] ss:$16 sps:$4 sm:$0xff]   ;;  %v17109_v39 = vld [vmem:[%s22551_s1 + $0x14a4] ss:$16 sps:$4 sm:$0xff]  }
 0x458   : > { %8996 = vmatprep.mubr.bf16.mxu0 %v20784_v11  ;;  %11072 = vmatpush1.bf16.msra.mxu1 %v17065_v16  ;;  %v20818_v16 = vcombine.high %v354_v56, %v366_v2 }
 0x459   : > { %11073 = vmatprep.subr.bf16.mxu1 %v17070_v36  ;;  %9142 = vmatpush1.bf16.msra.mxu0 %v17092_v18  ;;  %v17103_v36 = vld [vmem:[%s22551_s1 + $0x1484] ss:$16 sps:$4 sm:$0xff]   ;;  %v17076_v18 = vld [vmem:[%s22551_s1 + $0x10ac] ss:$16 sps:$4 sm:$0xff]  }
 0x45a   : > { %9143 = vmatprep.subr.bf16.mxu0 %v17100_v63  ;;  %v378_v63 = vld [vmem:[%s17635_s28 + $0x348] sm:$0xff] }
 0x45c   : > { %11074 = vmatpush1.bf16.msra.mxu1 %v17068_v27  ;;  %v390_v27 = vld [vmem:[%s17635_s28 + $0x3a8] sm:$0xff] }
 0x45d   : > { %11075 = vmatprep.subr.bf16.mxu1 %v17073_v25  ;;  %9144 = vmatpush1.bf16.msra.mxu0 %v17098_v47  ;;  %v17074_v25 = vld [vmem:[%s22551_s1 + $0x10a8] ss:$16 sps:$4 sm:$0xff]   ;;  %v17107_v47 = vld [vmem:[%s22551_s1 + $0x14a0] ss:$16 sps:$4 sm:$0xff]  }
 0x45e   : > { %10927 = vmatmul.mubr.bf16.gmra.mrb[72].mxu1 %v20112_v22  ;;  %9145 = vmatprep.subr.bf16.mxu0 %v17103_v36  ;;  %v17079_v22 = vld [vmem:[%s22551_s1 + $0x10cc] ss:$16 sps:$4 sm:$0xff]   ;;  %v17077_v36 = vld [vmem:[%s22551_s1 + $0x10c8] ss:$16 sps:$4 sm:$0xff]  }
 0x45f   : > { %8997 = vmatmul.mubr.bf16.gmra.mrb[8].mxu0 %v20816_v34  ;;  %10936 = vmatprep.mubr.bf16.mxu1 %v20114_v40  ;;  %v20850_v40 = vcombine.low %v354_v56, %v366_v2  ;;  %v17110_v56 = vld [vmem:[%s22551_s1 + $0x14c0] ss:$16 sps:$4 sm:$0xff]   ;;  %v17118_v2 = vld [vmem:[%s22551_s1 + $0x14e4] ss:$16 sps:$4 sm:$0xff]  }
 0x460   : > { %9006 = vmatprep.mubr.bf16.mxu0 %v20818_v16  ;;  %11076 = vmatpush1.bf16.msra.mxu1 %v17071_v45  ;;  %v20852_v45 = vcombine.high %v378_v63, %v390_v27 }
 0x461   : > { %11077 = vmatprep.subr.bf16.mxu1 %v17076_v18  ;;  %9146 = vmatpush1.bf16.msra.mxu0 %v17101_v20  ;;  %v17112_v18 = vld [vmem:[%s22551_s1 + $0x14c4] ss:$16 sps:$4 sm:$0xff]   ;;  %v17082_v20 = vld [vmem:[%s22551_s1 + $0x10ec] ss:$16 sps:$4 sm:$0xff]  }
 0x462   : > { %9147 = vmatprep.subr.bf16.mxu0 %v17109_v39  ;;  %v402_v39 = vld [vmem:[%s17635_s28 + $0x408] sm:$0xff] }
 0x464   : > { %11078 = vmatpush1.bf16.msra.mxu1 %v17074_v25  ;;  %v414_v25 = vld [vmem:[%s17635_s28 + $0x468] sm:$0xff] }
 0x465   : > { %11079 = vmatprep.subr.bf16.mxu1 %v17079_v22  ;;  %9148 = vmatpush1.bf16.msra.mxu0 %v17107_v47  ;;  %v17080_v22 = vld [vmem:[%s22551_s1 + $0x10e8] ss:$16 sps:$4 sm:$0xff]   ;;  %v17116_v47 = vld [vmem:[%s22551_s1 + $0x14e0] ss:$16 sps:$4 sm:$0xff]  }
 0x466   : > { %10937 = vmatmul.mubr.bf16.gmra.mrb[76].mxu1 %v20146_v55  ;;  %9149 = vmatprep.subr.bf16.mxu0 %v17112_v18  ;;  %v17088_v55 = vld [vmem:[%s22551_s1 + $0x110c] ss:$16 sps:$4 sm:$0xff]   ;;  %v17086_v18 = vld [vmem:[%s22551_s1 + $0x1108] ss:$16 sps:$4 sm:$0xff]  }
 0x467   : > { %9007 = vmatmul.mubr.bf16.gmra.mrb[12].mxu0 %v20850_v40  ;;  %10946 = vmatprep.mubr.bf16.mxu1 %v20148_v14  ;;  %v20884_v14 = vcombine.low %v378_v63, %v390_v27  ;;  %v17119_v63 = vld [vmem:[%s22551_s1 + $0x1500] ss:$16 sps:$4 sm:$0xff]   ;;  %v17127_v27 = vld [vmem:[%s22551_s1 + $0x1524] ss:$16 sps:$4 sm:$0xff]  }
 0x468   : > { %9016 = vmatprep.mubr.bf16.mxu0 %v20852_v45  ;;  %11080 = vmatpush1.bf16.msra.mxu1 %v17077_v36  ;;  %v20886_v36 = vcombine.high %v402_v39, %v414_v25 }
 0x469   : > { %11081 = vmatprep.subr.bf16.mxu1 %v17082_v20  ;;  %9150 = vmatpush1.bf16.msra.mxu0 %v17110_v56  ;;  %v17121_v20 = vld [vmem:[%s22551_s1 + $0x1504] ss:$16 sps:$4 sm:$0xff]   ;;  %v17097_v56 = vld [vmem:[%s22551_s1 + $0x112c] ss:$16 sps:$4 sm:$0xff]  }
 0x46a   : > { %9151 = vmatprep.subr.bf16.mxu0 %v17118_v2  ;;  %v426_v2 = vld [vmem:[%s17635_s28 + $0x4c8] sm:$0xff] }
 0x46c   : > { %11082 = vmatpush1.bf16.msra.mxu1 %v17080_v22  ;;  %v438_v22 = vld [vmem:[%s17635_s28 + $0x528] sm:$0xff] }
 0x46d   : > { %11083 = vmatprep.subr.bf16.mxu1 %v17088_v55  ;;  %9152 = vmatpush1.bf16.msra.mxu0 %v17116_v47  ;;  %v17095_v55 = vld [vmem:[%s22551_s1 + $0x1128] ss:$16 sps:$4 sm:$0xff]   ;;  %v17125_v47 = vld [vmem:[%s22551_s1 + $0x1520] ss:$16 sps:$4 sm:$0xff]  }
 0x46e   : > { %10947 = vmatmul.mubr.bf16.gmra.mrb[80].mxu1 %v20180_v52  ;;  %9153 = vmatprep.subr.bf16.mxu0 %v17121_v20  ;;  %v17106_v52 = vld [vmem:[%s22551_s1 + $0x114c] ss:$16 sps:$4 sm:$0xff]   ;;  %v17104_v20 = vld [vmem:[%s22551_s1 + $0x1148] ss:$16 sps:$4 sm:$0xff]  }
 0x46f   : > { %9017 = vmatmul.mubr.bf16.gmra.mrb[16].mxu0 %v20884_v14  ;;  %10956 = vmatprep.mubr.bf16.mxu1 %v20182_v28  ;;  %v20918_v28 = vcombine.low %v402_v39, %v414_v25  ;;  %v17128_v39 = vld [vmem:[%s22551_s1 + $0x1540] ss:$16 sps:$4 sm:$0xff]   ;;  %v17136_v25 = vld [vmem:[%s22551_s1 + $0x1564] ss:$16 sps:$4 sm:$0xff]  }
 0x470   : > { %9026 = vmatprep.mubr.bf16.mxu0 %v20886_v36  ;;  %11084 = vmatpush1.bf16.msra.mxu1 %v17086_v18  ;;  %v20920_v18 = vcombine.high %v426_v2, %v438_v22 }
 0x471   : > { %11085 = vmatprep.subr.bf16.mxu1 %v17097_v56  ;;  %9154 = vmatpush1.bf16.msra.mxu0 %v17119_v63  ;;  %v17130_v56 = vld [vmem:[%s22551_s1 + $0x1544] ss:$16 sps:$4 sm:$0xff]   ;;  %v17115_v63 = vld [vmem:[%s22551_s1 + $0x116c] ss:$16 sps:$4 sm:$0xff]  }
 0x472   : > { %9155 = vmatprep.subr.bf16.mxu0 %v17127_v27  ;;  %v450_v27 = vld [vmem:[%s17635_s28 + $0x588] sm:$0xff] }
 0x474   : > { %11086 = vmatpush1.bf16.msra.mxu1 %v17095_v55  ;;  %v462_v55 = vld [vmem:[%s17635_s28 + $0x5e8] sm:$0xff] }
 0x475   : > { %11087 = vmatprep.subr.bf16.mxu1 %v17106_v52  ;;  %9156 = vmatpush1.bf16.msra.mxu0 %v17125_v47  ;;  %v17113_v52 = vld [vmem:[%s22551_s1 + $0x1168] ss:$16 sps:$4 sm:$0xff]   ;;  %v17134_v47 = vld [vmem:[%s22551_s1 + $0x1560] ss:$16 sps:$4 sm:$0xff]  }
 0x476   : > { %10957 = vmatmul.mubr.bf16.gmra.mrb[84].mxu1 %v20214_v24  ;;  %9157 = vmatprep.subr.bf16.mxu0 %v17130_v56  ;;  %v17124_v24 = vld [vmem:[%s22551_s1 + $0x118c] ss:$16 sps:$4 sm:$0xff]   ;;  %v17122_v56 = vld [vmem:[%s22551_s1 + $0x1188] ss:$16 sps:$4 sm:$0xff]  }
 0x477   : > { %9027 = vmatmul.mubr.bf16.gmra.mrb[20].mxu0 %v20918_v28  ;;  %10966 = vmatprep.mubr.bf16.mxu1 %v20216_v59  ;;  %v20952_v59 = vcombine.low %v426_v2, %v438_v22  ;;  %v17137_v2 = vld [vmem:[%s22551_s1 + $0x1580] ss:$16 sps:$4 sm:$0xff]   ;;  %v17145_v22 = vld [vmem:[%s22551_s1 + $0x15a4] ss:$16 sps:$4 sm:$0xff]  }
 0x478   : > { %9036 = vmatprep.mubr.bf16.mxu0 %v20920_v18  ;;  %11088 = vmatpush1.bf16.msra.mxu1 %v17104_v20  ;;  %v20954_v20 = vcombine.high %v450_v27, %v462_v55 }
 0x479   : > { %11089 = vmatprep.subr.bf16.mxu1 %v17115_v63  ;;  %9158 = vmatpush1.bf16.msra.mxu0 %v17128_v39  ;;  %v17139_v63 = vld [vmem:[%s22551_s1 + $0x1584] ss:$16 sps:$4 sm:$0xff]   ;;  %v17133_v39 = vld [vmem:[%s22551_s1 + $0x11ac] ss:$16 sps:$4 sm:$0xff]  }
 0x47a   : > { %9159 = vmatprep.subr.bf16.mxu0 %v17136_v25  ;;  %22790 = vst [vmem:[#allocation6_spill] sm:$0xff] %v20954_v20  ;;  %v22791_v25 = vld [vmem:[#allocation10_spill] sm:$0xff] }
 0x47c   : > { %11090 = vmatpush1.bf16.msra.mxu1 %v17113_v52  ;;  %v474_v52 = vld [vmem:[%s17635_s28 + $0x648] sm:$0xff] }
 0x47d   : > { %11091 = vmatprep.subr.bf16.mxu1 %v17124_v24  ;;  %9160 = vmatpush1.bf16.msra.mxu0 %v17134_v47  ;;  %v486_v24 = vld [vmem:[%s17635_s28 + $0x6a8] sm:$0xff] }
 0x47e   : > { %10967 = vmatmul.mubr.bf16.gmra.mrb[88].mxu1 %v20248_v49  ;;  %v17131_v47 = vld [vmem:[%s22551_s1 + $0x11a8] ss:$16 sps:$4 sm:$0xff]   ;;  %9161 = vmatprep.subr.bf16.mxu0 %v17139_v63  ;;  %v17142_v49 = vld [vmem:[%s22551_s1 + $0x11cc] ss:$16 sps:$4 sm:$0xff]  }
 0x47f   : > { %9037 = vmatmul.mubr.bf16.gmra.mrb[24].mxu0 %v20952_v59  ;;  %10976 = vmatprep.mubr.bf16.mxu1 %v22791_v25  ;;  %v20986_v25 = vcombine.low %v450_v27, %v462_v55  ;;  %v17140_v63 = vld [vmem:[%s22551_s1 + $0x11c8] ss:$16 sps:$4 sm:$0xff]   ;;  %v17146_v27 = vld [vmem:[%s22551_s1 + $0x15c0] ss:$16 sps:$4 sm:$0xff]   ;;  %v17151_v55 = vld [vmem:[%s22551_s1 + $0x11ec] ss:$16 sps:$4 sm:$0xff]  }
 0x480   : > { %9046 = vmatprep.mubr.bf16.mxu0 %v20954_v20  ;;  %11092 = vmatpush1.bf16.msra.mxu1 %v17122_v56  ;;  %v17143_v20 = vld [vmem:[%s22551_s1 + $0x15a0] ss:$16 sps:$4 sm:$0xff]   ;;  %v20988_v56 = vcombine.high %v474_v52, %v486_v24 }
 0x481   : > { %11093 = vmatprep.subr.bf16.mxu1 %v17133_v39  ;;  %9162 = vmatpush1.bf16.msra.mxu0 %v17137_v2  ;;  %v17148_v39 = vld [vmem:[%s22551_s1 + $0x15c4] ss:$16 sps:$4 sm:$0xff]  }
 0x482   : > { %9163 = vmatprep.subr.bf16.mxu0 %v17145_v22  ;;  %22792 = vst [vmem:[#allocation7_spill] sm:$0xff] %v20988_v56  ;;  %v17154_v2 = vld [vmem:[%s22551_s1 + $0x15e4] ss:$16 sps:$4 sm:$0xff]   ;;  %v22793_v22 = vld [vmem:[#allocation11_spill] sm:$0xff] }
 0x484   : > { %11094 = vmatpush1.bf16.msra.mxu1 %v17131_v47  ;;  %v510_v47 = vld [vmem:[%s17635_s28 + $0x768] sm:$0xff] }
 0x485   : > { %11095 = vmatprep.subr.bf16.mxu1 %v17142_v49  ;;  %9164 = vmatpush1.bf16.msra.mxu0 %v17143_v20  ;;  %v498_v20 = vld [vmem:[%s17635_s28 + $0x708] sm:$0xff] }
 0x486   : > { %10977 = vmatmul.mubr.bf16.gmra.mrb[92].mxu1 %v20282_v44  ;;  %9165 = vmatprep.subr.bf16.mxu0 %v17148_v39  ;;  %v17149_v49 = vld [vmem:[%s22551_s1 + $0x11e8] ss:$16 sps:$4 sm:$0xff]   ;;  %v17152_v44 = vld [vmem:[%s22551_s1 + $0x15e0] ss:$16 sps:$4 sm:$0xff]   ;;  %v17181_v39 = vld [vmem:[%s22551_s1 + $0x1604] ss:$16 sps:$4 sm:$0xff]  }
 0x487   : > { %9047 = vmatmul.mubr.bf16.gmra.mrb[28].mxu0 %v20986_v25  ;;  %10986 = vmatprep.mubr.bf16.mxu1 %v22793_v22  ;;  %v17157_v22 = vld [vmem:[%s22551_s1 + $0x120c] ss:$16 sps:$4 sm:$0xff]  }
 0x488   : > { %9056 = vmatprep.mubr.bf16.mxu0 %v20988_v56  ;;  %11096 = vmatpush1.bf16.msra.mxu1 %v17140_v63  ;;  %v21020_v56 = vcombine.low %v474_v52, %v486_v24  ;;  %v21022_v63 = vcombine.high %v498_v20, %v510_v47  ;;  %v522_v52 = vld [vmem:[%s17635_s28 + $0x7c8] sm:$0xff] }
 0x489   : > { %11097 = vmatprep.subr.bf16.mxu1 %v17151_v55  ;;  %9166 = vmatpush1.bf16.msra.mxu0 %v17146_v27  ;;  %v534_v24 = vld [vmem:[%s17635_s28 + $0x828] sm:$0xff]  ;;  %v21033_v27 = vcombine.low %v498_v20, %v510_v47 }
 0x48a   : > { %9167 = vmatprep.subr.bf16.mxu0 %v17154_v2  ;;  %v21035_v55 = vcombine.high %v522_v52, %v534_v24  ;;  %v21043_v2 = vcombine.low %v522_v52, %v534_v24  ;;  %v582_v20 = vld [vmem:[%s17635_s28 + $0x9a8] sm:$0xff]  ;;  %v22797_v52 = vld [vmem:[#allocation13_spill] sm:$0xff] }
 0x48b   : > { %v630_v24 = vld [vmem:[%s17635_s28 + $0xb28] sm:$0xff] }
 0x48c   : > { %11098 = vmatpush1.bf16.msra.mxu1 %v17149_v49 }
 0x48d   : > { %9168 = vmatpush1.bf16.msra.mxu0 %v17152_v44  ;;  %11260 = vmatprep.subr.bf16.mxu1 %v17157_v22  ;;  %v606_v44 = vld [vmem:[%s17635_s28 + $0xa68] sm:$0xff] }
 0x48e   : > { %10987 = vmatmul.mubr.bf16.gmra.mrb[96].mxu1 %v20316_v0  ;;  %9330 = vmatprep.subr.bf16.mxu0 %v17181_v39  ;;  %v546_v0 = vld [vmem:[%s17635_s28 + $0x888] sm:$0xff]  ;;  %v22796_v39 = vld [vmem:[#allocation12_spill] sm:$0xff] }
 0x48f   : > { %9057 = vmatmul.mubr.bf16.gmra.mrb[32].mxu0 %v21020_v56  ;;  %10996 = vmatprep.mubr.bf16.mxu1 %v20318_v50  ;;  %v558_v50 = vld [vmem:[%s17635_s28 + $0x8e8] sm:$0xff] }
 0x490   : > { %9066 = vmatprep.mubr.bf16.mxu0 %v21022_v63  ;;  %v21045_v49 = vcombine.high %v546_v0, %v558_v50 }
 0x496   : > { %10997 = vmatmul.mubr.bf16.gmra.mrb[100].mxu1 %v20329_v38  ;;  %v570_v38 = vld [vmem:[%s17635_s28 + $0x948] sm:$0xff] }
 0x497   : > { %9067 = vmatmul.mubr.bf16.gmra.mrb[36].mxu0 %v21033_v27  ;;  %11006 = vmatprep.mubr.bf16.mxu1 %v20331_v46  ;;  %v21053_v46 = vcombine.low %v546_v0, %v558_v50  ;;  %v21055_v47 = vcombine.high %v570_v38, %v582_v20  ;;  %v22800_v50 = vld [vmem:[#allocation14_spill] sm:$0xff] }
 0x498   : > { %9076 = vmatprep.mubr.bf16.mxu0 %v21035_v55 }
 0x49e   : > { %11007 = vmatmul.mubr.bf16.gmra.mrb[104].mxu1 %v20339_v51  ;;  %v594_v51 = vld [vmem:[%s17635_s28 + $0xa08] sm:$0xff] }
 0x49f   : > { %9077 = vmatmul.mubr.bf16.gmra.mrb[40].mxu0 %v21043_v2  ;;  %11016 = vmatprep.mubr.bf16.mxu1 %v20341_v33  ;;  %v21063_v33 = vcombine.low %v570_v38, %v582_v20  ;;  %v21065_v22 = vcombine.high %v594_v51, %v606_v44  ;;  %v22801_v38 = vld [vmem:[#allocation15_spill] sm:$0xff] }
 0x4a0   : > { %9086 = vmatprep.mubr.bf16.mxu0 %v21045_v49  ;;  %v642_v20 = vld [vmem:[%s17635_s28 + $0xb88] sm:$0xff] }
 0x4a1   : > { %22794 = vst [vmem:[#allocation8_spill] sm:$0xff] %v21063_v33  ;;  %22795 = vst [vmem:[#allocation9_spill] sm:$0xff] %v21065_v22 }
 0x4a6   : > { %11017 = vmatmul.mubr.bf16.gmra.mrb[108].mxu1 %v20349_v30  ;;  %v618_v30 = vld [vmem:[%s17635_s28 + $0xac8] sm:$0xff] }
 0x4a7   : > { %9087 = vmatmul.mubr.bf16.gmra.mrb[44].mxu0 %v21053_v46  ;;  %11026 = vmatprep.mubr.bf16.mxu1 %v20351_v31  ;;  %v21073_v31 = vcombine.low %v594_v51, %v606_v44  ;;  %v21075_v0 = vcombine.high %v618_v30, %v630_v24  ;;  %v22804_v51 = vld [vmem:[#allocation16_spill] sm:$0xff]  ;;  %v22805_v44 = vld [vmem:[#allocation17_spill] sm:$0xff] }
 0x4a8   : > { %9096 = vmatprep.mubr.bf16.mxu0 %v21055_v47 }
 0x4a9   : > { %22798 = vst [vmem:[#allocation10_spill] sm:$0xff] %v21073_v31  ;;  %22799 = vst [vmem:[#allocation11_spill] sm:$0xff] %v21075_v0 }
 0x4ae   : > { %11027 = vmatmul.mubr.bf16.gmra.mrb[112].mxu1 %v22796_v39  ;;  %v654_v39 = vld [vmem:[%s17635_s28 + $0xbe8] sm:$0xff] }
 0x4af   : > { %9097 = vmatmul.mubr.bf16.gmra.mrb[48].mxu0 %v21063_v33  ;;  %11036 = vmatprep.mubr.bf16.mxu1 %v22797_v52  ;;  %v21083_v52 = vcombine.low %v618_v30, %v630_v24  ;;  %v22808_v30 = vld [vmem:[#allocation68_spill] sm:$0xff]  ;;  %v22809_v24 = vld [vmem:[#allocation70_spill] sm:$0xff] }
 0x4b0   : > { %9106 = vmatprep.mubr.bf16.mxu0 %v21065_v22  ;;  %v21085_v22 = vcombine.high %v642_v20, %v654_v39  ;;  %v343_v33 = vld [vmem:[%s17635_s28 + $0x230] sm:$0xff] }
 0x4b1   : > { %22802 = vst [vmem:[#allocation12_spill] sm:$0xff] %v21083_v52 }
 0x4b2   : > { %22803 = vst [vmem:[#allocation13_spill] sm:$0xff] %v21085_v22 }
 0x4b6   : > { %11037 = vmatmul.mubr.bf16.gmra.mrb[116].mxu1 %v22800_v50  ;;  %v283_v50 = vld [vmem:[%s17635_s28 + $0x50] sm:$0xff] }
 0x4b7   : > { %9107 = vmatmul.mubr.bf16.gmra.mrb[52].mxu0 %v21073_v31  ;;  %11046 = vmatprep.mubr.bf16.mxu1 %v22801_v38  ;;  %v21093_v31 = vcombine.low %v642_v20, %v654_v39  ;;  %v17155_v20 = vld [vmem:[%s22551_s1 + $0x1208] ss:$16 sps:$4 sm:$0xff]  }
 0x4b8   : > { %9116 = vmatprep.mubr.bf16.mxu0 %v21075_v0  ;;  %v295_v0 = vld [vmem:[%s17635_s28 + $0xb0] sm:$0xff] }
 0x4b9   : > { %22806 = vst [vmem:[#allocation14_spill] sm:$0xff] %v21093_v31  ;;  %v21095_v38 = vcombine.high %v283_v50, %v295_v0 }
 0x4bb   : > { %22807 = vst [vmem:[#allocation15_spill] sm:$0xff] %v21095_v38 }
 0x4be   : > { %11047 = vmatmul.mubr.bf16.gmra.mrb[120].mxu1 %v22804_v51  ;;  %v307_v51 = vld [vmem:[%s17635_s28 + $0x110] sm:$0xff] }
 0x4bf   : > { %9117 = vmatmul.mubr.bf16.gmra.mrb[56].mxu0 %v21083_v52  ;;  %11056 = vmatprep.mubr.bf16.mxu1 %v22805_v44  ;;  %v21103_v52 = vcombine.low %v283_v50, %v295_v0  ;;  %v17160_v44 = vld [vmem:[%s22551_s1 + $0x122c] ss:$16 sps:$4 sm:$0xff]   ;;  %v17187_v0 = vld [vmem:[%s22551_s1 + $0x1624] ss:$16 sps:$4 sm:$0xff]   ;;  %v17158_v50 = vld [vmem:[%s22551_s1 + $0x1228] ss:$16 sps:$4 sm:$0xff]  }
 0x4c0   : > { %9126 = vmatprep.mubr.bf16.mxu0 %v21085_v22  ;;  %v319_v22 = vld [vmem:[%s17635_s28 + $0x170] sm:$0xff] }
 0x4c1   : > { %22810 = vst [vmem:[#allocation16_spill] sm:$0xff] %v21103_v52  ;;  %v21108_v39 = vcombine.high %v307_v51, %v319_v22 }
 0x4c3   : > { %22811 = vst [vmem:[#allocation17_spill] sm:$0xff] %v21108_v39 }
 0x4c6   : > { %11057 = vmatmul.mubr.bf16.gmra.mrb[124].mxu1 %v22808_v30  ;;  %v17179_v30 = vld [vmem:[%s22551_s1 + $0x1600] ss:$16 sps:$4 sm:$0xff]  }
 0x4c7   : > { %9127 = vmatmul.mubr.bf16.gmra.mrb[60].mxu0 %v21093_v31  ;;  %11099 = vmatprep.mubr.bf16.mxu1 %v22809_v24  ;;  %v22812_v24 = vld [vmem:[#allocation3_spill] sm:$0xff]  ;;  %v331_v31 = vld [vmem:[%s17635_s28 + $0x1d0] sm:$0xff] }
 0x4c8   : > { %9169 = vmatprep.mubr.bf16.mxu0 %v21095_v38  ;;  %v22813_v38 = vld [vmem:[#allocation4_spill] sm:$0xff] }
 0x4ce   : > { %11100 = vmatmul.mubr.bf16.vlgmr.msra.gmra.mrb[64].mxu1 %v22812_v24  ;;  %v17163_v24 = vld [vmem:[%s22551_s1 + $0x124c] ss:$16 sps:$4 sm:$0xff]  }
 0x4cf   : > { %9170 = vmatmul.mubr.bf16.vlgmr.msra.gmra.mrb[0].mxu0 %v21103_v52  ;;  %11261 = vmatpush1.bf16.msra.mxu1 %v17155_v20  ;;  %v17185_v20 = vld [vmem:[%s22551_s1 + $0x1620] ss:$16 sps:$4 sm:$0xff]   ;;  %v21134_v52 = vcombine.low %v307_v51, %v319_v22  ;;  %v17166_v22 = vld [vmem:[%s22551_s1 + $0x126c] ss:$16 sps:$4 sm:$0xff]  }
 0x4d0   : > { %9179 = vmatprep.mubr.bf16.mxu0 %v21108_v39  ;;  %11109 = vmatprep.mubr.bf16.mxu1 %v22813_v38  ;;  %v21136_v39 = vcombine.high %v331_v31, %v343_v33  ;;  %v17161_v38 = vld [vmem:[%s22551_s1 + $0x1248] ss:$16 sps:$4 sm:$0xff]   ;;  %v17188_v51 = vld [vmem:[%s22551_s1 + $0x1640] ss:$16 sps:$4 sm:$0xff]  }
 0x4d1   : > { %11262 = vmatprep.subr.bf16.mxu1 %v17160_v44  ;;  %9331 = vmatpush1.bf16.msra.mxu0 %v17179_v30  ;;  %v17190_v44 = vld [vmem:[%s22551_s1 + $0x1644] ss:$16 sps:$4 sm:$0xff]  }
 0x4d2   : > { %9332 = vmatprep.subr.bf16.mxu0 %v17187_v0  ;;  %22814 = vst [vmem:[#allocation68_spill] sm:$0xff] %v21136_v39  ;;  %v17196_v30 = vld [vmem:[%s22551_s1 + $0x1664] ss:$16 sps:$4 sm:$0xff]   ;;  %v22815_v0 = vld [vmem:[#allocation5_spill] sm:$0xff] }
 0x4d3   : > { %11263 = vmatpush1.bf16.msra.mxu1 %v17158_v50  ;;  %v355_v50 = vld [vmem:[%s17635_s28 + $0x290] sm:$0xff] }
 0x4d4   : > { %11264 = vmatprep.subr.bf16.mxu1 %v17163_v24  ;;  %v367_v24 = vld [vmem:[%s17635_s28 + $0x2f0] sm:$0xff] }
 0x4d5   : > { %9333 = vmatpush1.bf16.msra.mxu0 %v17185_v20  ;;  %v17164_v20 = vld [vmem:[%s22551_s1 + $0x1268] ss:$16 sps:$4 sm:$0xff]  }
 0x4d6   : > { %11110 = vmatmul.mubr.bf16.gmra.mrb[68].mxu1 %v20430_v62  ;;  %9334 = vmatprep.subr.bf16.mxu0 %v17190_v44  ;;  %v17169_v62 = vld [vmem:[%s22551_s1 + $0x128c] ss:$16 sps:$4 sm:$0xff]   ;;  %v17167_v44 = vld [vmem:[%s22551_s1 + $0x1288] ss:$16 sps:$4 sm:$0xff]  }
 0x4d7   : > { %9180 = vmatmul.mubr.bf16.gmra.mrb[4].mxu0 %v21134_v52  ;;  %11119 = vmatprep.mubr.bf16.mxu1 %v22815_v0  ;;  %v21168_v0 = vcombine.low %v331_v31, %v343_v33  ;;  %v17197_v33 = vld [vmem:[%s22551_s1 + $0x1680] ss:$16 sps:$4 sm:$0xff]   ;;  %v17205_v31 = vld [vmem:[%s22551_s1 + $0x16a4] ss:$16 sps:$4 sm:$0xff]  }
 0x4d8   : > { %9189 = vmatprep.mubr.bf16.mxu0 %v21136_v39  ;;  %11265 = vmatpush1.bf16.msra.mxu1 %v17161_v38  ;;  %v17194_v39 = vld [vmem:[%s22551_s1 + $0x1660] ss:$16 sps:$4 sm:$0xff]   ;;  %v21170_v38 = vcombine.high %v355_v50, %v367_v24 }
 0x4d9   : > { %11266 = vmatprep.subr.bf16.mxu1 %v17166_v22  ;;  %9335 = vmatpush1.bf16.msra.mxu0 %v17188_v51  ;;  %v17199_v22 = vld [vmem:[%s22551_s1 + $0x1684] ss:$16 sps:$4 sm:$0xff]   ;;  %v17172_v51 = vld [vmem:[%s22551_s1 + $0x12ac] ss:$16 sps:$4 sm:$0xff]  }
 0x4da   : > { %9336 = vmatprep.subr.bf16.mxu0 %v17196_v30  ;;  %v379_v30 = vld [vmem:[%s17635_s28 + $0x350] sm:$0xff] }
 0x4dc   : > { %11267 = vmatpush1.bf16.msra.mxu1 %v17164_v20  ;;  %v391_v20 = vld [vmem:[%s17635_s28 + $0x3b0] sm:$0xff] }
 0x4dd   : > { %11268 = vmatprep.subr.bf16.mxu1 %v17169_v62  ;;  %9337 = vmatpush1.bf16.msra.mxu0 %v17194_v39  ;;  %v17170_v39 = vld [vmem:[%s22551_s1 + $0x12a8] ss:$16 sps:$4 sm:$0xff]   ;;  %v17203_v62 = vld [vmem:[%s22551_s1 + $0x16a0] ss:$16 sps:$4 sm:$0xff]  }
 0x4de   : > { %11120 = vmatmul.mubr.bf16.gmra.mrb[72].mxu1 %v20464_v13  ;;  %9338 = vmatprep.subr.bf16.mxu0 %v17199_v22  ;;  %v17175_v13 = vld [vmem:[%s22551_s1 + $0x12cc] ss:$16 sps:$4 sm:$0xff]   ;;  %v17173_v22 = vld [vmem:[%s22551_s1 + $0x12c8] ss:$16 sps:$4 sm:$0xff]  }
 0x4df   : > { %9190 = vmatmul.mubr.bf16.gmra.mrb[8].mxu0 %v21168_v0  ;;  %11129 = vmatprep.mubr.bf16.mxu1 %v20466_v58  ;;  %v21202_v58 = vcombine.low %v355_v50, %v367_v24  ;;  %v17206_v50 = vld [vmem:[%s22551_s1 + $0x16c0] ss:$16 sps:$4 sm:$0xff]   ;;  %v17214_v24 = vld [vmem:[%s22551_s1 + $0x16e4] ss:$16 sps:$4 sm:$0xff]  }
 0x4e0   : > { %9199 = vmatprep.mubr.bf16.mxu0 %v21170_v38  ;;  %11269 = vmatpush1.bf16.msra.mxu1 %v17167_v44  ;;  %v21204_v44 = vcombine.high %v379_v30, %v391_v20 }
 0x4e1   : > { %11270 = vmatprep.subr.bf16.mxu1 %v17172_v51  ;;  %9339 = vmatpush1.bf16.msra.mxu0 %v17197_v33  ;;  %v17208_v51 = vld [vmem:[%s22551_s1 + $0x16c4] ss:$16 sps:$4 sm:$0xff]   ;;  %v17178_v33 = vld [vmem:[%s22551_s1 + $0x12ec] ss:$16 sps:$4 sm:$0xff]  }
 0x4e2   : > { %9340 = vmatprep.subr.bf16.mxu0 %v17205_v31  ;;  %v403_v31 = vld [vmem:[%s17635_s28 + $0x410] sm:$0xff] }
 0x4e4   : > { %11271 = vmatpush1.bf16.msra.mxu1 %v17170_v39  ;;  %v415_v39 = vld [vmem:[%s17635_s28 + $0x470] sm:$0xff] }
 0x4e5   : > { %11272 = vmatprep.subr.bf16.mxu1 %v17175_v13  ;;  %9341 = vmatpush1.bf16.msra.mxu0 %v17203_v62  ;;  %v17176_v13 = vld [vmem:[%s22551_s1 + $0x12e8] ss:$16 sps:$4 sm:$0xff]   ;;  %v17212_v62 = vld [vmem:[%s22551_s1 + $0x16e0] ss:$16 sps:$4 sm:$0xff]  }
 0x4e6   : > { %11130 = vmatmul.mubr.bf16.gmra.mrb[76].mxu1 %v20498_v19  ;;  %9342 = vmatprep.subr.bf16.mxu0 %v17208_v51  ;;  %v17184_v19 = vld [vmem:[%s22551_s1 + $0x130c] ss:$16 sps:$4 sm:$0xff]   ;;  %v17182_v51 = vld [vmem:[%s22551_s1 + $0x1308] ss:$16 sps:$4 sm:$0xff]  }
 0x4e7   : > { %9200 = vmatmul.mubr.bf16.gmra.mrb[12].mxu0 %v21202_v58  ;;  %11139 = vmatprep.mubr.bf16.mxu1 %v20500_v8  ;;  %v21236_v8 = vcombine.low %v379_v30, %v391_v20  ;;  %v17215_v30 = vld [vmem:[%s22551_s1 + $0x1700] ss:$16 sps:$4 sm:$0xff]   ;;  %v17223_v20 = vld [vmem:[%s22551_s1 + $0x1724] ss:$16 sps:$4 sm:$0xff]  }
 0x4e8   : > { %9209 = vmatprep.mubr.bf16.mxu0 %v21204_v44  ;;  %11273 = vmatpush1.bf16.msra.mxu1 %v17173_v22  ;;  %v21238_v22 = vcombine.high %v403_v31, %v415_v39 }
 0x4e9   : > { %11274 = vmatprep.subr.bf16.mxu1 %v17178_v33  ;;  %9343 = vmatpush1.bf16.msra.mxu0 %v17206_v50  ;;  %v17217_v33 = vld [vmem:[%s22551_s1 + $0x1704] ss:$16 sps:$4 sm:$0xff]   ;;  %v17193_v50 = vld [vmem:[%s22551_s1 + $0x132c] ss:$16 sps:$4 sm:$0xff]  }
 0x4ea   : > { %9344 = vmatprep.subr.bf16.mxu0 %v17214_v24  ;;  %v427_v24 = vld [vmem:[%s17635_s28 + $0x4d0] sm:$0xff] }
 0x4ec   : > { %11275 = vmatpush1.bf16.msra.mxu1 %v17176_v13  ;;  %v439_v13 = vld [vmem:[%s17635_s28 + $0x530] sm:$0xff] }
 0x4ed   : > { %11276 = vmatprep.subr.bf16.mxu1 %v17184_v19  ;;  %9345 = vmatpush1.bf16.msra.mxu0 %v17212_v62  ;;  %v17191_v19 = vld [vmem:[%s22551_s1 + $0x1328] ss:$16 sps:$4 sm:$0xff]   ;;  %v17221_v62 = vld [vmem:[%s22551_s1 + $0x1720] ss:$16 sps:$4 sm:$0xff]  }
 0x4ee   : > { %11140 = vmatmul.mubr.bf16.gmra.mrb[80].mxu1 %v20532_v7  ;;  %9346 = vmatprep.subr.bf16.mxu0 %v17217_v33  ;;  %v17202_v7 = vld [vmem:[%s22551_s1 + $0x134c] ss:$16 sps:$4 sm:$0xff]   ;;  %v17200_v33 = vld [vmem:[%s22551_s1 + $0x1348] ss:$16 sps:$4 sm:$0xff]  }
 0x4ef   : > { %9210 = vmatmul.mubr.bf16.gmra.mrb[16].mxu0 %v21236_v8  ;;  %11149 = vmatprep.mubr.bf16.mxu1 %v20534_v9  ;;  %v21270_v9 = vcombine.low %v403_v31, %v415_v39  ;;  %v17224_v31 = vld [vmem:[%s22551_s1 + $0x1740] ss:$16 sps:$4 sm:$0xff]   ;;  %v17232_v39 = vld [vmem:[%s22551_s1 + $0x1764] ss:$16 sps:$4 sm:$0xff]  }
 0x4f0   : > { %9219 = vmatprep.mubr.bf16.mxu0 %v21238_v22  ;;  %11277 = vmatpush1.bf16.msra.mxu1 %v17182_v51  ;;  %v21272_v51 = vcombine.high %v427_v24, %v439_v13 }
 0x4f1   : > { %11278 = vmatprep.subr.bf16.mxu1 %v17193_v50  ;;  %9347 = vmatpush1.bf16.msra.mxu0 %v17215_v30  ;;  %v17226_v50 = vld [vmem:[%s22551_s1 + $0x1744] ss:$16 sps:$4 sm:$0xff]   ;;  %v17211_v30 = vld [vmem:[%s22551_s1 + $0x136c] ss:$16 sps:$4 sm:$0xff]  }
 0x4f2   : > { %9348 = vmatprep.subr.bf16.mxu0 %v17223_v20  ;;  %v451_v20 = vld [vmem:[%s17635_s28 + $0x590] sm:$0xff] }
 0x4f4   : > { %11279 = vmatpush1.bf16.msra.mxu1 %v17191_v19  ;;  %v463_v19 = vld [vmem:[%s17635_s28 + $0x5f0] sm:$0xff] }
 0x4f5   : > { %11280 = vmatprep.subr.bf16.mxu1 %v17202_v7  ;;  %9349 = vmatpush1.bf16.msra.mxu0 %v17221_v62  ;;  %v17209_v7 = vld [vmem:[%s22551_s1 + $0x1368] ss:$16 sps:$4 sm:$0xff]   ;;  %v17230_v62 = vld [vmem:[%s22551_s1 + $0x1760] ss:$16 sps:$4 sm:$0xff]  }
 0x4f6   : > { %11150 = vmatmul.mubr.bf16.gmra.mrb[84].mxu1 %v20566_v57  ;;  %9350 = vmatprep.subr.bf16.mxu0 %v17226_v50  ;;  %v17220_v57 = vld [vmem:[%s22551_s1 + $0x138c] ss:$16 sps:$4 sm:$0xff]   ;;  %v17218_v50 = vld [vmem:[%s22551_s1 + $0x1388] ss:$16 sps:$4 sm:$0xff]  }
 0x4f7   : > { %9220 = vmatmul.mubr.bf16.gmra.mrb[20].mxu0 %v21270_v9  ;;  %11159 = vmatprep.mubr.bf16.mxu1 %v20568_v41  ;;  %v21304_v41 = vcombine.low %v427_v24, %v439_v13  ;;  %v17233_v24 = vld [vmem:[%s22551_s1 + $0x1780] ss:$16 sps:$4 sm:$0xff]   ;;  %v17241_v13 = vld [vmem:[%s22551_s1 + $0x17a4] ss:$16 sps:$4 sm:$0xff]  }
 0x4f8   : > { %9229 = vmatprep.mubr.bf16.mxu0 %v21272_v51  ;;  %11281 = vmatpush1.bf16.msra.mxu1 %v17200_v33  ;;  %v21306_v33 = vcombine.high %v451_v20, %v463_v19 }
 0x4f9   : > { %11282 = vmatprep.subr.bf16.mxu1 %v17211_v30  ;;  %9351 = vmatpush1.bf16.msra.mxu0 %v17224_v31  ;;  %v17235_v30 = vld [vmem:[%s22551_s1 + $0x1784] ss:$16 sps:$4 sm:$0xff]   ;;  %v17229_v31 = vld [vmem:[%s22551_s1 + $0x13ac] ss:$16 sps:$4 sm:$0xff]  }
 0x4fa   : > { %9352 = vmatprep.subr.bf16.mxu0 %v17232_v39  ;;  %v475_v39 = vld [vmem:[%s17635_s28 + $0x650] sm:$0xff] }
 0x4fc   : > { %11283 = vmatpush1.bf16.msra.mxu1 %v17209_v7  ;;  %v487_v7 = vld [vmem:[%s17635_s28 + $0x6b0] sm:$0xff] }
 0x4fd   : > { %11284 = vmatprep.subr.bf16.mxu1 %v17220_v57  ;;  %9353 = vmatpush1.bf16.msra.mxu0 %v17230_v62  ;;  %v17227_v57 = vld [vmem:[%s22551_s1 + $0x13a8] ss:$16 sps:$4 sm:$0xff]   ;;  %v17239_v62 = vld [vmem:[%s22551_s1 + $0x17a0] ss:$16 sps:$4 sm:$0xff]  }
 0x4fe   : > { %11160 = vmatmul.mubr.bf16.gmra.mrb[88].mxu1 %v20600_v1  ;;  %9354 = vmatprep.subr.bf16.mxu0 %v17235_v30  ;;  %v17238_v1 = vld [vmem:[%s22551_s1 + $0x13cc] ss:$16 sps:$4 sm:$0xff]   ;;  %v17236_v30 = vld [vmem:[%s22551_s1 + $0x13c8] ss:$16 sps:$4 sm:$0xff]  }
 0x4ff   : > { %9230 = vmatmul.mubr.bf16.gmra.mrb[24].mxu0 %v21304_v41  ;;  %11169 = vmatprep.mubr.bf16.mxu1 %v20602_v12  ;;  %v21338_v12 = vcombine.low %v451_v20, %v463_v19  ;;  %v17242_v20 = vld [vmem:[%s22551_s1 + $0x17c0] ss:$16 sps:$4 sm:$0xff]   ;;  %v17247_v19 = vld [vmem:[%s22551_s1 + $0x13ec] ss:$16 sps:$4 sm:$0xff]  }
 0x500   : > { %9239 = vmatprep.mubr.bf16.mxu0 %v21306_v33  ;;  %11285 = vmatpush1.bf16.msra.mxu1 %v17218_v50  ;;  %v21340_v50 = vcombine.high %v475_v39, %v487_v7 }
 0x501   : > { %11286 = vmatprep.subr.bf16.mxu1 %v17229_v31  ;;  %9355 = vmatpush1.bf16.msra.mxu0 %v17233_v24  ;;  %v17244_v31 = vld [vmem:[%s22551_s1 + $0x17c4] ss:$16 sps:$4 sm:$0xff]  }
 0x502   : > { %9356 = vmatprep.subr.bf16.mxu0 %v17241_v13  ;;  %v17250_v24 = vld [vmem:[%s22551_s1 + $0x17e4] ss:$16 sps:$4 sm:$0xff]  }
 0x503   : > { %v499_v13 = vld [vmem:[%s17635_s28 + $0x710] sm:$0xff] }
 0x504   : > { %11287 = vmatpush1.bf16.msra.mxu1 %v17227_v57  ;;  %v511_v57 = vld [vmem:[%s17635_s28 + $0x770] sm:$0xff] }
 0x505   : > { %11288 = vmatprep.subr.bf16.mxu1 %v17238_v1  ;;  %9357 = vmatpush1.bf16.msra.mxu0 %v17239_v62  ;;  %v17245_v1 = vld [vmem:[%s22551_s1 + $0x13e8] ss:$16 sps:$4 sm:$0xff]   ;;  %v21372_v62 = vcombine.low %v475_v39, %v487_v7  ;;  %v535_v39 = vld [vmem:[%s17635_s28 + $0x830] sm:$0xff]  ;;  %v21382_v7 = vcombine.low %v499_v13, %v511_v57 }
 0x506   : > { %11170 = vmatmul.mubr.bf16.gmra.mrb[92].mxu1 %v20634_v4  ;;  %9358 = vmatprep.subr.bf16.mxu0 %v17244_v31  ;;  %v17248_v4 = vld [vmem:[%s22551_s1 + $0x17e0] ss:$16 sps:$4 sm:$0xff]  }
 0x507   : > { %9240 = vmatmul.mubr.bf16.gmra.mrb[28].mxu0 %v21338_v12  ;;  %11179 = vmatprep.mubr.bf16.mxu1 %v20636_v6  ;;  %v17253_v6 = vld [vmem:[%s22551_s1 + $0x140c] ss:$16 sps:$4 sm:$0xff]   ;;  %v523_v31 = vld [vmem:[%s17635_s28 + $0x7d0] sm:$0xff] }
 0x508   : > { %9249 = vmatprep.mubr.bf16.mxu0 %v21340_v50  ;;  %11289 = vmatpush1.bf16.msra.mxu1 %v17236_v30  ;;  %v21374_v30 = vcombine.high %v499_v13, %v511_v57  ;;  %v583_v13 = vld [vmem:[%s17635_s28 + $0x9b0] sm:$0xff] }
 0x509   : > { %11290 = vmatprep.subr.bf16.mxu1 %v17247_v19  ;;  %9359 = vmatpush1.bf16.msra.mxu0 %v17242_v20  ;;  %v21384_v20 = vcombine.high %v523_v31, %v535_v39  ;;  %v559_v19 = vld [vmem:[%s17635_s28 + $0x8f0] sm:$0xff] }
 0x50a   : > { %9360 = vmatprep.subr.bf16.mxu0 %v17250_v24 }
 0x50c   : > { %11291 = vmatpush1.bf16.msra.mxu1 %v17245_v1  ;;  %v607_v1 = vld [vmem:[%s17635_s28 + $0xa70] sm:$0xff] }
 0x50d   : > { %9361 = vmatpush1.bf16.msra.mxu0 %v17248_v4  ;;  %11453 = vmatprep.subr.bf16.mxu1 %v17253_v6  ;;  %v631_v6 = vld [vmem:[%s17635_s28 + $0xb30] sm:$0xff] }
 0x50e   : > { %11180 = vmatmul.mubr.bf16.gmra.mrb[96].mxu1 %v20668_v10  ;;  %v547_v10 = vld [vmem:[%s17635_s28 + $0x890] sm:$0xff] }
 0x50f   : > { %9250 = vmatmul.mubr.bf16.gmra.mrb[32].mxu0 %v21372_v62  ;;  %11189 = vmatprep.mubr.bf16.mxu1 %v20670_v43  ;;  %v21392_v43 = vcombine.low %v523_v31, %v535_v39  ;;  %v21394_v24 = vcombine.high %v547_v10, %v559_v19  ;;  %v655_v39 = vld [vmem:[%s17635_s28 + $0xbf0] sm:$0xff] }
 0x510   : > { %9259 = vmatprep.mubr.bf16.mxu0 %v21374_v30 }
 0x516   : > { %11190 = vmatmul.mubr.bf16.gmra.mrb[100].mxu1 %v20681_v53  ;;  %v571_v53 = vld [vmem:[%s17635_s28 + $0x950] sm:$0xff] }
 0x517   : > { %9260 = vmatmul.mubr.bf16.gmra.mrb[36].mxu0 %v21382_v7  ;;  %11199 = vmatprep.mubr.bf16.mxu1 %v20683_v61  ;;  %v21402_v61 = vcombine.low %v547_v10, %v559_v19  ;;  %v21404_v57 = vcombine.high %v571_v53, %v583_v13  ;;  %v296_v19 = vld [vmem:[%s17635_s28 + $0xb8] sm:$0xff] }
 0x518   : > { %9269 = vmatprep.mubr.bf16.mxu0 %v21384_v20 }
 0x51e   : > { %11200 = vmatmul.mubr.bf16.gmra.mrb[104].mxu1 %v20691_v15  ;;  %v595_v15 = vld [vmem:[%s17635_s28 + $0xa10] sm:$0xff] }
 0x51f   : > { %9270 = vmatmul.mubr.bf16.gmra.mrb[40].mxu0 %v21392_v43  ;;  %11209 = vmatprep.mubr.bf16.mxu1 %v20693_v37  ;;  %v21412_v37 = vcombine.low %v571_v53, %v583_v13  ;;  %v21414_v4 = vcombine.high %v595_v15, %v607_v1  ;;  %v320_v13 = vld [vmem:[%s17635_s28 + $0x178] sm:$0xff] }
 0x520   : > { %9279 = vmatprep.mubr.bf16.mxu0 %v21394_v24 }
 0x526   : > { %11210 = vmatmul.mubr.bf16.gmra.mrb[108].mxu1 %v20701_v5  ;;  %v619_v5 = vld [vmem:[%s17635_s28 + $0xad0] sm:$0xff] }
 0x527   : > { %9280 = vmatmul.mubr.bf16.gmra.mrb[44].mxu0 %v21402_v61  ;;  %11219 = vmatprep.mubr.bf16.mxu1 %v20703_v48  ;;  %v21422_v48 = vcombine.low %v595_v15, %v607_v1  ;;  %v21424_v31 = vcombine.high %v619_v5, %v631_v6 }
 0x528   : > { %9289 = vmatprep.mubr.bf16.mxu0 %v21404_v57 }
 0x52e   : > { %11220 = vmatmul.mubr.bf16.gmra.mrb[112].mxu1 %v20711_v60  ;;  %v643_v60 = vld [vmem:[%s17635_s28 + $0xb90] sm:$0xff] }
 0x52f   : > { %9290 = vmatmul.mubr.bf16.gmra.mrb[48].mxu0 %v21412_v37  ;;  %11229 = vmatprep.mubr.bf16.mxu1 %v20713_v29  ;;  %v21432_v29 = vcombine.low %v619_v5, %v631_v6  ;;  %v21434_v10 = vcombine.high %v643_v60, %v655_v39  ;;  %v21442_v53 = vcombine.low %v643_v60, %v655_v39  ;;  %v332_v5 = vld [vmem:[%s17635_s28 + $0x1d8] sm:$0xff] }
 0x530   : > { %9299 = vmatprep.mubr.bf16.mxu0 %v21414_v4  ;;  %v344_v6 = vld [vmem:[%s17635_s28 + $0x238] sm:$0xff] }
 0x531   : > { %v17259_v60 = vld [vmem:[%s22551_s1 + $0x144c] ss:$16 sps:$4 sm:$0xff]  }
 0x536   : > { %11230 = vmatmul.mubr.bf16.gmra.mrb[116].mxu1 %v20721_v42  ;;  %v284_v42 = vld [vmem:[%s17635_s28 + $0x58] sm:$0xff] }
 0x537   : > { %9300 = vmatmul.mubr.bf16.gmra.mrb[52].mxu0 %v21422_v48  ;;  %11239 = vmatprep.mubr.bf16.mxu1 %v20723_v26  ;;  %v21444_v26 = vcombine.high %v284_v42, %v296_v19  ;;  %v21452_v15 = vcombine.low %v284_v42, %v296_v19  ;;  %v17257_v42 = vld [vmem:[%s22551_s1 + $0x1448] ss:$16 sps:$4 sm:$0xff]  }
 0x538   : > { %9309 = vmatprep.mubr.bf16.mxu0 %v21424_v31  ;;  %v356_v19 = vld [vmem:[%s17635_s28 + $0x298] sm:$0xff] }
 0x53e   : > { %11240 = vmatmul.mubr.bf16.gmra.mrb[120].mxu1 %v20731_v17  ;;  %v308_v17 = vld [vmem:[%s17635_s28 + $0x118] sm:$0xff] }
 0x53f   : > { %9310 = vmatmul.mubr.bf16.gmra.mrb[56].mxu0 %v21432_v29  ;;  %11249 = vmatprep.mubr.bf16.mxu1 %v20733_v23  ;;  %v17251_v23 = vld [vmem:[%s22551_s1 + $0x1408] ss:$16 sps:$4 sm:$0xff]   ;;  %v21457_v1 = vcombine.high %v308_v17, %v320_v13  ;;  %v21474_v39 = vcombine.low %v308_v17, %v320_v13 }
 0x540   : > { %9319 = vmatprep.mubr.bf16.mxu0 %v21434_v10  ;;  %v368_v17 = vld [vmem:[%s17635_s28 + $0x2f8] sm:$0xff] }
 0x541   : > { %v17260_v13 = vld [vmem:[%s22551_s1 + $0x1468] ss:$16 sps:$4 sm:$0xff]  }
 0x546   : > { %11250 = vmatmul.mubr.bf16.gmra.mrb[124].mxu1 %v20741_v35  ;;  %v17256_v35 = vld [vmem:[%s22551_s1 + $0x142c] ss:$16 sps:$4 sm:$0xff]  }
 0x547   : > { %9320 = vmatmul.mubr.bf16.gmra.mrb[60].mxu0 %v21442_v53  ;;  %11292 = vmatprep.mubr.bf16.mxu1 %v20743_v21  ;;  %v17254_v21 = vld [vmem:[%s22551_s1 + $0x1428] ss:$16 sps:$4 sm:$0xff]  }
 0x548   : > { %9362 = vmatprep.mubr.bf16.mxu0 %v21444_v26 }
 0x54e   : > { %11293 = vmatmul.mubr.bf16.vlgmr.msra.gmra.mrb[64].mxu1 %v20751_v32  ;;  %v21476_v32 = vcombine.high %v332_v5, %v344_v6 }
 0x54f   : > { %9363 = vmatmul.mubr.bf16.vlgmr.msra.gmra.mrb[0].mxu0 %v21452_v15  ;;  %11454 = vmatpush1.bf16.msra.mxu1 %v17251_v23  ;;  %v17265_v23 = vld [vmem:[%s22551_s1 + $0x148c] ss:$16 sps:$4 sm:$0xff]  }
 0x550   : > { %9372 = vmatprep.mubr.bf16.mxu0 %v21457_v1  ;;  %11302 = vmatprep.mubr.bf16.mxu1 %v20756_v54  ;;  %v17262_v54 = vld [vmem:[%s22551_s1 + $0x146c] ss:$16 sps:$4 sm:$0xff]  }
 0x551   : > { %11455 = vmatprep.subr.bf16.mxu1 %v17256_v35  ;;  %v21496_v35 = vcombine.low %v332_v5, %v344_v6  ;;  %v380_v5 = vld [vmem:[%s17635_s28 + $0x358] sm:$0xff] }
 0x552   : > { %v392_v6 = vld [vmem:[%s17635_s28 + $0x3b8] sm:$0xff] }
 0x553   : > { %11456 = vmatpush1.bf16.msra.mxu1 %v17254_v21  ;;  %v17268_v21 = vld [vmem:[%s22551_s1 + $0x14ac] ss:$16 sps:$4 sm:$0xff]  }
 0x554   : > { %11457 = vmatprep.subr.bf16.mxu1 %v17259_v60  ;;  %v17266_v60 = vld [vmem:[%s22551_s1 + $0x14a8] ss:$16 sps:$4 sm:$0xff]  }
 0x556   : > { %11303 = vmatmul.mubr.bf16.gmra.mrb[68].mxu1 %v20782_v3  ;;  %v21498_v3 = vcombine.high %v356_v19, %v368_v17 }
 0x557   : > { %9373 = vmatmul.mubr.bf16.gmra.mrb[4].mxu0 %v21474_v39  ;;  %11312 = vmatprep.mubr.bf16.mxu1 %v20784_v11  ;;  %v17263_v11 = vld [vmem:[%s22551_s1 + $0x1488] ss:$16 sps:$4 sm:$0xff]  }
 0x558   : > { %9382 = vmatprep.mubr.bf16.mxu0 %v21476_v32  ;;  %11458 = vmatpush1.bf16.msra.mxu1 %v17257_v42  ;;  %v17271_v42 = vld [vmem:[%s22551_s1 + $0x14cc] ss:$16 sps:$4 sm:$0xff]  }
 0x559   : > { %11459 = vmatprep.subr.bf16.mxu1 %v17262_v54  ;;  %v21518_v54 = vcombine.low %v356_v19, %v368_v17  ;;  %v17311_v19 = vld [vmem:[%s22553_s3] ss:$8 sps:$4 sm:$0xff]   ;;  %v17313_v17 = vld [vmem:[%s22553_s3 + $0x4] ss:$8 sps:$4 sm:$0xff]  }
 0x55a   : > { %12299 = vmatprep.subr.bf16.mxu0 %v17313_v17  ;;  %v440_v17 = vld [vmem:[%s17635_s28 + $0x538] sm:$0xff] }
 0x55b   : > { %12300 = vmatpush1.bf16.msra.mxu0 %v17311_v19  ;;  %v428_v19 = vld [vmem:[%s17635_s28 + $0x4d8] sm:$0xff] }
 0x55c   : > { %11460 = vmatpush1.bf16.msra.mxu1 %v17260_v13  ;;  %v17274_v13 = vld [vmem:[%s22551_s1 + $0x14ec] ss:$16 sps:$4 sm:$0xff]  }
 0x55d   : > { %11461 = vmatprep.subr.bf16.mxu1 %v17265_v23  ;;  %v404_v23 = vld [vmem:[%s17635_s28 + $0x418] sm:$0xff] }
 0x55e   : > { %11313 = vmatmul.mubr.bf16.gmra.mrb[72].mxu1 %v20816_v34  ;;  %v21520_v34 = vcombine.high %v380_v5, %v392_v6 }
 0x55f   : > { %9383 = vmatmul.mubr.bf16.gmra.mrb[8].mxu0 %v21496_v35  ;;  %11322 = vmatprep.mubr.bf16.mxu1 %v20818_v16  ;;  %v17269_v16 = vld [vmem:[%s22551_s1 + $0x14c8] ss:$16 sps:$4 sm:$0xff]  }
 0x560   : > { %9392 = vmatprep.mubr.bf16.mxu0 %v21498_v3  ;;  %11462 = vmatpush1.bf16.msra.mxu1 %v17263_v11  ;;  %v416_v11 = vld [vmem:[%s17635_s28 + $0x478] sm:$0xff] }
 0x561   : > { %11463 = vmatprep.subr.bf16.mxu1 %v17268_v21  ;;  %v17272_v21 = vld [vmem:[%s22551_s1 + $0x14e8] ss:$16 sps:$4 sm:$0xff]  }
 0x564   : > { %11464 = vmatpush1.bf16.msra.mxu1 %v17266_v60  ;;  %v21548_v60 = vcombine.high %v404_v23, %v416_v11 }
 0x565   : > { %11465 = vmatprep.subr.bf16.mxu1 %v17271_v42  ;;  %v17275_v42 = vld [vmem:[%s22551_s1 + $0x1508] ss:$16 sps:$4 sm:$0xff]  }
 0x566   : > { %11323 = vmatmul.mubr.bf16.gmra.mrb[76].mxu1 %v20850_v40  ;;  %v17277_v40 = vld [vmem:[%s22551_s1 + $0x150c] ss:$16 sps:$4 sm:$0xff]  }
 0x567   : > { %9393 = vmatmul.mubr.bf16.gmra.mrb[12].mxu0 %v21518_v54  ;;  %11332 = vmatprep.mubr.bf16.mxu1 %v20852_v45  ;;  %v21546_v45 = vcombine.low %v380_v5, %v392_v6  ;;  %v17317_v5 = vld [vmem:[%s22553_s3 + $0x10] ss:$8 sps:$4 sm:$0xff]   ;;  %v17322_v6 = vld [vmem:[%s22553_s3 + $0x24] ss:$8 sps:$4 sm:$0xff]  }
 0x568   : > { %9402 = vmatprep.mubr.bf16.mxu0 %v21520_v34  ;;  %11466 = vmatpush1.bf16.msra.mxu1 %v17269_v16  ;;  %v17319_v16 = vld [vmem:[%s22553_s3 + $0x14] ss:$8 sps:$4 sm:$0xff]  }
 0x569   : > { %11467 = vmatprep.subr.bf16.mxu1 %v17274_v13  ;;  %v17280_v13 = vld [vmem:[%s22551_s1 + $0x152c] ss:$16 sps:$4 sm:$0xff]   ;;  %12301 = vmatprep.subr.bf16.mxu0 %v17319_v16  ;;  %v17281_v16 = vld [vmem:[%s22551_s1 + $0x1548] ss:$16 sps:$4 sm:$0xff]  }
 0x56a   : > { %12302 = vmatpush1.bf16.msra.mxu0 %v17317_v5  ;;  %v17286_v5 = vld [vmem:[%s22551_s1 + $0x156c] ss:$16 sps:$4 sm:$0xff]  }
 0x56b   : > { %12303 = vmatprep.subr.bf16.mxu0 %v17322_v6  ;;  %v452_v6 = vld [vmem:[%s17635_s28 + $0x598] sm:$0xff] }
 0x56c   : > { %11468 = vmatpush1.bf16.msra.mxu1 %v17272_v21  ;;  %v17278_v21 = vld [vmem:[%s22551_s1 + $0x1528] ss:$16 sps:$4 sm:$0xff]  }
 0x56d   : > { %11469 = vmatprep.subr.bf16.mxu1 %v17277_v40  ;;  %v21580_v40 = vcombine.low %v404_v23, %v416_v11  ;;  %v17326_v23 = vld [vmem:[%s22553_s3 + $0x30] ss:$8 sps:$4 sm:$0xff]   ;;  %v17331_v11 = vld [vmem:[%s22553_s3 + $0x44] ss:$8 sps:$4 sm:$0xff]  }
 0x56e   : > { %11333 = vmatmul.mubr.bf16.gmra.mrb[80].mxu1 %v20884_v14  ;;  %v17283_v14 = vld [vmem:[%s22551_s1 + $0x154c] ss:$16 sps:$4 sm:$0xff]  }
 0x56f   : > { %9403 = vmatmul.mubr.bf16.gmra.mrb[16].mxu0 %v21546_v45  ;;  %11342 = vmatprep.mubr.bf16.mxu1 %v20886_v36  ;;  %v17320_v36 = vld [vmem:[%s22553_s3 + $0x20] ss:$8 sps:$4 sm:$0xff]  }
 0x570   : > { %9412 = vmatprep.mubr.bf16.mxu0 %v21548_v60  ;;  %11470 = vmatpush1.bf16.msra.mxu1 %v17275_v42  ;;  %v21582_v42 = vcombine.high %v428_v19, %v440_v17 }
 0x571   : > { %11471 = vmatprep.subr.bf16.mxu1 %v17280_v13  ;;  %v17328_v13 = vld [vmem:[%s22553_s3 + $0x34] ss:$8 sps:$4 sm:$0xff]   ;;  %12304 = vmatpush1.bf16.msra.mxu0 %v17320_v36  ;;  %v21614_v36 = vcombine.low %v428_v19, %v440_v17  ;;  %v17335_v19 = vld [vmem:[%s22553_s3 + $0x50] ss:$8 sps:$4 sm:$0xff]   ;;  %v22817_v17 = vld [vmem:[#allocation6_spill] sm:$0xff] }
 0x572   : > { %12305 = vmatprep.subr.bf16.mxu0 %v17328_v13  ;;  %v17287_v13 = vld [vmem:[%s22551_s1 + $0x1588] ss:$16 sps:$4 sm:$0xff]  }
 0x574   : > { %11472 = vmatpush1.bf16.msra.mxu1 %v17278_v21  ;;  %v464_v21 = vld [vmem:[%s17635_s28 + $0x5f8] sm:$0xff] }
 0x575   : > { %11473 = vmatprep.subr.bf16.mxu1 %v17283_v14  ;;  %v17284_v14 = vld [vmem:[%s22551_s1 + $0x1568] ss:$16 sps:$4 sm:$0xff]   ;;  %12306 = vmatpush1.bf16.msra.mxu0 %v17326_v23  ;;  %v17292_v23 = vld [vmem:[%s22551_s1 + $0x15ac] ss:$16 sps:$4 sm:$0xff]  }
 0x576   : > { %11343 = vmatmul.mubr.bf16.gmra.mrb[84].mxu1 %v20918_v28  ;;  %v17289_v28 = vld [vmem:[%s22551_s1 + $0x158c] ss:$16 sps:$4 sm:$0xff]   ;;  %12307 = vmatprep.subr.bf16.mxu0 %v17331_v11 }
 0x577   : > { %9413 = vmatmul.mubr.bf16.gmra.mrb[20].mxu0 %v21580_v40  ;;  %11352 = vmatprep.mubr.bf16.mxu1 %v20920_v18  ;;  %v17329_v18 = vld [vmem:[%s22553_s3 + $0x40] ss:$8 sps:$4 sm:$0xff]   ;;  %v17340_v11 = vld [vmem:[%s22553_s3 + $0x64] ss:$8 sps:$4 sm:$0xff]  }
 0x578   : > { %9422 = vmatprep.mubr.bf16.mxu0 %v21582_v42  ;;  %11474 = vmatpush1.bf16.msra.mxu1 %v17281_v16  ;;  %v21616_v16 = vcombine.high %v452_v6, %v464_v21 }
 0x579   : > { %11475 = vmatprep.subr.bf16.mxu1 %v17286_v5  ;;  %v17337_v5 = vld [vmem:[%s22553_s3 + $0x54] ss:$8 sps:$4 sm:$0xff]   ;;  %12308 = vmatpush1.bf16.msra.mxu0 %v17329_v18  ;;  %v17290_v18 = vld [vmem:[%s22551_s1 + $0x15a8] ss:$16 sps:$4 sm:$0xff]  }
 0x57a   : > { %22816 = vst [vmem:[#allocation70_spill] sm:$0xff] %v21616_v16  ;;  %12309 = vmatprep.subr.bf16.mxu0 %v17337_v5  ;;  %v17293_v5 = vld [vmem:[%s22551_s1 + $0x15c8] ss:$16 sps:$4 sm:$0xff]  }
 0x57c   : > { %11476 = vmatpush1.bf16.msra.mxu1 %v17284_v14  ;;  %v476_v14 = vld [vmem:[%s17635_s28 + $0x658] sm:$0xff] }
 0x57d   : > { %11477 = vmatprep.subr.bf16.mxu1 %v17289_v28  ;;  %v488_v28 = vld [vmem:[%s17635_s28 + $0x6b8] sm:$0xff]  ;;  %12310 = vmatpush1.bf16.msra.mxu0 %v17335_v19 }
 0x57e   : > { %11353 = vmatmul.mubr.bf16.gmra.mrb[88].mxu1 %v20952_v59  ;;  %v17295_v59 = vld [vmem:[%s22551_s1 + $0x15cc] ss:$16 sps:$4 sm:$0xff]   ;;  %12311 = vmatprep.subr.bf16.mxu0 %v17340_v11 }
 0x57f   : > { %9423 = vmatmul.mubr.bf16.gmra.mrb[24].mxu0 %v21614_v36  ;;  %11362 = vmatprep.mubr.bf16.mxu1 %v22817_v17  ;;  %v17338_v17 = vld [vmem:[%s22553_s3 + $0x60] ss:$8 sps:$4 sm:$0xff]   ;;  %v17298_v19 = vld [vmem:[%s22551_s1 + $0x15ec] ss:$16 sps:$4 sm:$0xff]  }
 0x580   : > { %9432 = vmatprep.mubr.bf16.mxu0 %v21616_v16  ;;  %11478 = vmatpush1.bf16.msra.mxu1 %v17287_v13  ;;  %v21648_v16 = vcombine.low %v452_v6, %v464_v21  ;;  %v21650_v13 = vcombine.high %v476_v14, %v488_v28  ;;  %v17344_v6 = vld [vmem:[%s22553_s3 + $0x70] ss:$8 sps:$4 sm:$0xff]   ;;  %v22819_v21 = vld [vmem:[#allocation7_spill] sm:$0xff] }
 0x581   : > { %11479 = vmatprep.subr.bf16.mxu1 %v17292_v23  ;;  %v17346_v23 = vld [vmem:[%s22553_s3 + $0x74] ss:$8 sps:$4 sm:$0xff]   ;;  %12312 = vmatpush1.bf16.msra.mxu0 %v17338_v17  ;;  %v17349_v11 = vld [vmem:[%s22553_s3 + $0x84] ss:$8 sps:$4 sm:$0xff]   ;;  %v17296_v17 = vld [vmem:[%s22551_s1 + $0x15e8] ss:$16 sps:$4 sm:$0xff]  }
 0x582   : > { %22818 = vst [vmem:[#allocation3_spill] sm:$0xff] %v21650_v13  ;;  %12313 = vmatprep.subr.bf16.mxu0 %v17346_v23  ;;  %v17355_v23 = vld [vmem:[%s22553_s3 + $0x94] ss:$8 sps:$4 sm:$0xff]  }
 0x584   : > { %11480 = vmatpush1.bf16.msra.mxu1 %v17290_v18  ;;  %v500_v18 = vld [vmem:[%s17635_s28 + $0x718] sm:$0xff] }
 0x585   : > { %11481 = vmatprep.subr.bf16.mxu1 %v17295_v59  ;;  %v512_v59 = vld [vmem:[%s17635_s28 + $0x778] sm:$0xff]  ;;  %12314 = vmatpush1.bf16.msra.mxu0 %v17344_v6 }
 0x586   : > { %11363 = vmatmul.mubr.bf16.gmra.mrb[92].mxu1 %v20986_v25  ;;  %v17301_v25 = vld [vmem:[%s22551_s1 + $0x160c] ss:$16 sps:$4 sm:$0xff]   ;;  %12315 = vmatprep.subr.bf16.mxu0 %v17349_v11  ;;  %v17356_v11 = vld [vmem:[%s22553_s3 + $0xa0] ss:$8 sps:$4 sm:$0xff]  }
 0x587   : > { %9433 = vmatmul.mubr.bf16.gmra.mrb[28].mxu0 %v21648_v16  ;;  %11372 = vmatprep.mubr.bf16.mxu1 %v22819_v21  ;;  %v17347_v21 = vld [vmem:[%s22553_s3 + $0x80] ss:$8 sps:$4 sm:$0xff]   ;;  %v536_v6 = vld [vmem:[%s17635_s28 + $0x838] sm:$0xff] }
 0x588   : > { %9442 = vmatprep.mubr.bf16.mxu0 %v21650_v13  ;;  %11482 = vmatpush1.bf16.msra.mxu1 %v17293_v5  ;;  %v21682_v13 = vcombine.low %v476_v14, %v488_v28  ;;  %v21684_v5 = vcombine.high %v500_v18, %v512_v59  ;;  %v17358_v14 = vld [vmem:[%s22553_s3 + $0xa4] ss:$8 sps:$4 sm:$0xff]   ;;  %v524_v28 = vld [vmem:[%s17635_s28 + $0x7d8] sm:$0xff] }
 0x589   : > { %11483 = vmatprep.subr.bf16.mxu1 %v17298_v19  ;;  %12316 = vmatpush1.bf16.msra.mxu0 %v17347_v21  ;;  %v17353_v19 = vld [vmem:[%s22553_s3 + $0x90] ss:$8 sps:$4 sm:$0xff]  }
 0x58a   : > { %12317 = vmatprep.subr.bf16.mxu0 %v17355_v23  ;;  %v560_v21 = vld [vmem:[%s17635_s28 + $0x8f8] sm:$0xff]  ;;  %v17365_v23 = vld [vmem:[%s22553_s3 + $0xc0] ss:$8 sps:$4 sm:$0xff]  }
 0x58c   : > { %11484 = vmatpush1.bf16.msra.mxu1 %v17296_v17  ;;  %v21704_v17 = vcombine.low %v500_v18, %v512_v59  ;;  %v17367_v18 = vld [vmem:[%s22553_s3 + $0xc4] ss:$8 sps:$4 sm:$0xff]   ;;  %v548_v59 = vld [vmem:[%s17635_s28 + $0x898] sm:$0xff] }
 0x58d   : > { %11646 = vmatprep.subr.bf16.mxu1 %v17301_v25  ;;  %12318 = vmatpush1.bf16.msra.mxu0 %v17353_v19  ;;  %v17362_v25 = vld [vmem:[%s22553_s3 + $0xb0] ss:$8 sps:$4 sm:$0xff]   ;;  %v21726_v19 = vcombine.low %v524_v28, %v536_v6 }
 0x58e   : > { %11373 = vmatmul.mubr.bf16.gmra.mrb[96].mxu1 %v21020_v56  ;;  %12319 = vmatprep.subr.bf16.mxu0 %v17358_v14  ;;  %v21706_v56 = vcombine.high %v524_v28, %v536_v6  ;;  %v17371_v14 = vld [vmem:[%s22553_s3 + $0xd0] ss:$8 sps:$4 sm:$0xff]  }
 0x58f   : > { %9443 = vmatmul.mubr.bf16.gmra.mrb[32].mxu0 %v21682_v13  ;;  %11382 = vmatprep.mubr.bf16.mxu1 %v21022_v63  ;;  %v17364_v63 = vld [vmem:[%s22553_s3 + $0xb4] ss:$8 sps:$4 sm:$0xff]  }
 0x590   : > { %9452 = vmatprep.mubr.bf16.mxu0 %v21684_v5  ;;  %v572_v28 = vld [vmem:[%s17635_s28 + $0x958] sm:$0xff] }
 0x591   : > { %12320 = vmatpush1.bf16.msra.mxu0 %v17356_v11  ;;  %v584_v6 = vld [vmem:[%s17635_s28 + $0x9b8] sm:$0xff]  ;;  %v17376_v11 = vld [vmem:[%s22553_s3 + $0xe4] ss:$8 sps:$4 sm:$0xff]  }
 0x592   : > { %12321 = vmatprep.subr.bf16.mxu0 %v17364_v63  ;;  %v17374_v63 = vld [vmem:[%s22553_s3 + $0xe0] ss:$8 sps:$4 sm:$0xff]  }
 0x595   : > { %12322 = vmatpush1.bf16.msra.mxu0 %v17362_v25  ;;  %v21748_v25 = vcombine.low %v548_v59, %v560_v21 }
 0x596   : > { %11383 = vmatmul.mubr.bf16.gmra.mrb[100].mxu1 %v21033_v27  ;;  %12323 = vmatprep.subr.bf16.mxu0 %v17367_v18  ;;  %v21728_v27 = vcombine.high %v548_v59, %v560_v21  ;;  %v17380_v18 = vld [vmem:[%s22553_s3 + $0xf0] ss:$8 sps:$4 sm:$0xff]  }
 0x597   : > { %9453 = vmatmul.mubr.bf16.gmra.mrb[36].mxu0 %v21704_v17  ;;  %11392 = vmatprep.mubr.bf16.mxu1 %v21035_v55  ;;  %v17373_v55 = vld [vmem:[%s22553_s3 + $0xd4] ss:$8 sps:$4 sm:$0xff]  }
 0x598   : > { %9462 = vmatprep.mubr.bf16.mxu0 %v21706_v56  ;;  %v596_v59 = vld [vmem:[%s17635_s28 + $0xa18] sm:$0xff] }
 0x599   : > { %12324 = vmatpush1.bf16.msra.mxu0 %v17365_v23  ;;  %v608_v21 = vld [vmem:[%s17635_s28 + $0xa78] sm:$0xff]  ;;  %v21764_v23 = vcombine.low %v572_v28, %v584_v6 }
 0x59a   : > { %12325 = vmatprep.subr.bf16.mxu0 %v17373_v55  ;;  %v21766_v55 = vcombine.high %v596_v59, %v608_v21 }
 0x59b   : > { %22820 = vst [vmem:[#allocation4_spill] sm:$0xff] %v21764_v23 }
 0x59c   : > { %22821 = vst [vmem:[#allocation5_spill] sm:$0xff] %v21766_v55 }
 0x59d   : > { %12326 = vmatpush1.bf16.msra.mxu0 %v17371_v14  ;;  %v22822_v14 = vld [vmem:[#allocation8_spill] sm:$0xff] }
 0x59e   : > { %11393 = vmatmul.mubr.bf16.gmra.mrb[104].mxu1 %v21043_v2  ;;  %12327 = vmatprep.subr.bf16.mxu0 %v17376_v11  ;;  %v21750_v2 = vcombine.high %v572_v28, %v584_v6  ;;  %v620_v11 = vld [vmem:[%s17635_s28 + $0xad8] sm:$0xff]  ;;  %v22824_v28 = vld [vmem:[#allocation10_spill] sm:$0xff]  ;;  %v22825_v6 = vld [vmem:[#allocation11_spill] sm:$0xff] }
 0x59f   : > { %9463 = vmatmul.mubr.bf16.gmra.mrb[40].mxu0 %v21726_v19  ;;  %11402 = vmatprep.mubr.bf16.mxu1 %v21045_v49  ;;  %v17382_v49 = vld [vmem:[%s22553_s3 + $0xf4] ss:$8 sps:$4 sm:$0xff]  }
 0x5a0   : > { %9472 = vmatprep.mubr.bf16.mxu0 %v21728_v27 }
 0x5a1   : > { %12328 = vmatpush1.bf16.msra.mxu0 %v17374_v63  ;;  %v21774_v63 = vcombine.low %v596_v59, %v608_v21  ;;  %v22826_v59 = vld [vmem:[#allocation12_spill] sm:$0xff]  ;;  %v22827_v21 = vld [vmem:[#allocation13_spill] sm:$0xff] }
 0x5a2   : > { %12329 = vmatprep.subr.bf16.mxu0 %v17382_v49 }
 0x5a5   : > { %12330 = vmatpush1.bf16.msra.mxu0 %v17380_v18  ;;  %v644_v18 = vld [vmem:[%s17635_s28 + $0xb98] sm:$0xff] }
 0x5a6   : > { %11403 = vmatmul.mubr.bf16.gmra.mrb[108].mxu1 %v21053_v46  ;;  %v22823_v46 = vld [vmem:[#allocation9_spill] sm:$0xff] }
 0x5a7   : > { %9473 = vmatmul.mubr.bf16.gmra.mrb[44].mxu0 %v21748_v25  ;;  %11412 = vmatprep.mubr.bf16.mxu1 %v21055_v47  ;;  %v632_v47 = vld [vmem:[%s17635_s28 + $0xb38] sm:$0xff] }
 0x5a8   : > { %9482 = vmatprep.mubr.bf16.mxu0 %v21750_v2  ;;  %v21776_v49 = vcombine.high %v620_v11, %v632_v47 }
 0x5ae   : > { %11413 = vmatmul.mubr.bf16.gmra.mrb[112].mxu1 %v22822_v14  ;;  %v656_v14 = vld [vmem:[%s17635_s28 + $0xbf8] sm:$0xff] }
 0x5af   : > { %9483 = vmatmul.mubr.bf16.gmra.mrb[48].mxu0 %v21764_v23  ;;  %11422 = vmatprep.mubr.bf16.mxu1 %v22823_v46  ;;  %v21784_v23 = vcombine.low %v620_v11, %v632_v47  ;;  %v21792_v46 = vcombine.low %v644_v18, %v656_v14  ;;  %v17299_v11 = vld [vmem:[%s22551_s1 + $0x1608] ss:$16 sps:$4 sm:$0xff]   ;;  %v17304_v47 = vld [vmem:[%s22551_s1 + $0x162c] ss:$16 sps:$4 sm:$0xff]  }
 0x5b0   : > { %9492 = vmatprep.mubr.bf16.mxu0 %v21766_v55  ;;  %v21786_v55 = vcombine.high %v644_v18, %v656_v14  ;;  %v17302_v18 = vld [vmem:[%s22551_s1 + $0x1628] ss:$16 sps:$4 sm:$0xff]   ;;  %v17307_v14 = vld [vmem:[%s22551_s1 + $0x164c] ss:$16 sps:$4 sm:$0xff]  }
 0x5b6   : > { %11423 = vmatmul.mubr.bf16.gmra.mrb[116].mxu1 %v22824_v28  ;;  %v22828_v28 = vld [vmem:[#allocation14_spill] sm:$0xff] }
 0x5b7   : > { %9493 = vmatmul.mubr.bf16.gmra.mrb[52].mxu0 %v21774_v63  ;;  %11432 = vmatprep.mubr.bf16.mxu1 %v22825_v6  ;;  %v22829_v6 = vld [vmem:[#allocation15_spill] sm:$0xff] }
 0x5b8   : > { %9502 = vmatprep.mubr.bf16.mxu0 %v21776_v49 }
 0x5be   : > { %11433 = vmatmul.mubr.bf16.gmra.mrb[120].mxu1 %v22826_v59  ;;  %v22830_v59 = vld [vmem:[#allocation16_spill] sm:$0xff] }
 0x5bf   : > { %9503 = vmatmul.mubr.bf16.gmra.mrb[56].mxu0 %v21784_v23  ;;  %11442 = vmatprep.mubr.bf16.mxu1 %v22827_v21  ;;  %v22831_v21 = vld [vmem:[#allocation17_spill] sm:$0xff] }
 0x5c0   : > { %9512 = vmatprep.mubr.bf16.mxu0 %v21786_v55 }
 0x5c6   : > { %11443 = vmatmul.mubr.bf16.gmra.mrb[124].mxu1 %v22828_v28  ;;  %v17305_v28 = vld [vmem:[%s22551_s1 + $0x1648] ss:$16 sps:$4 sm:$0xff]  }
 0x5c7   : > { %9513 = vmatmul.mubr.bf16.gmra.mrb[60].mxu0 %v21792_v46  ;;  %11485 = vmatprep.mubr.bf16.mxu1 %v22829_v6  ;;  %v17310_v6 = vld [vmem:[%s22551_s1 + $0x166c] ss:$16 sps:$4 sm:$0xff]  }
 0x5ce   : > { %11486 = vmatmul.mubr.bf16.vlgmr.msra.gmra.mrb[64].mxu1 %v22830_v59  ;;  %v17316_v59 = vld [vmem:[%s22551_s1 + $0x168c] ss:$16 sps:$4 sm:$0xff]  }
 0x5cf   : > { %11647 = vmatpush1.bf16.msra.mxu1 %v17299_v11  ;;  %11495 = vmatprep.mubr.bf16.mxu1 %v22831_v21  ;;  %v22832_v11 = vld [vmem:[#allocation68_spill] sm:$0xff]  ;;  %v17314_v21 = vld [vmem:[%s22551_s1 + $0x1688] ss:$16 sps:$4 sm:$0xff]  }
 0x5d0   : > { %11648 = vmatprep.subr.bf16.mxu1 %v17304_v47  ;;  %v17308_v47 = vld [vmem:[%s22551_s1 + $0x1668] ss:$16 sps:$4 sm:$0xff]  }
 0x5d3   : > { %11649 = vmatpush1.bf16.msra.mxu1 %v17302_v18  ;;  %v17323_v18 = vld [vmem:[%s22551_s1 + $0x16a8] ss:$16 sps:$4 sm:$0xff]  }
 0x5d4   : > { %11650 = vmatprep.subr.bf16.mxu1 %v17307_v14  ;;  %v17334_v14 = vld [vmem:[%s22551_s1 + $0x16cc] ss:$16 sps:$4 sm:$0xff]  }
 0x5d6   : > { %11496 = vmatmul.mubr.bf16.gmra.mrb[68].mxu1 %v21134_v52  ;;  %v17325_v52 = vld [vmem:[%s22551_s1 + $0x16ac] ss:$16 sps:$4 sm:$0xff]  }
 0x5d7   : > { %11505 = vmatprep.mubr.bf16.mxu1 %v22832_v11  ;;  %11651 = vmatpush1.bf16.msra.mxu1 %v17305_v28  ;;  %v17332_v28 = vld [vmem:[%s22551_s1 + $0x16c8] ss:$16 sps:$4 sm:$0xff]  }
 0x5d8   : > { %11652 = vmatprep.subr.bf16.mxu1 %v17310_v6  ;;  %v17352_v6 = vld [vmem:[%s22551_s1 + $0x170c] ss:$16 sps:$4 sm:$0xff]   ;;  %v17350_v11 = vld [vmem:[%s22551_s1 + $0x1708] ss:$16 sps:$4 sm:$0xff]  }
 0x5db   : > { %11653 = vmatpush1.bf16.msra.mxu1 %v17308_v47  ;;  %v17370_v47 = vld [vmem:[%s22551_s1 + $0x174c] ss:$16 sps:$4 sm:$0xff]  }
 0x5dc   : > { %11654 = vmatprep.subr.bf16.mxu1 %v17316_v59  ;;  %v17368_v59 = vld [vmem:[%s22551_s1 + $0x1748] ss:$16 sps:$4 sm:$0xff]  }
 0x5de   : > { %11506 = vmatmul.mubr.bf16.gmra.mrb[72].mxu1 %v21168_v0  ;;  %v17343_v0 = vld [vmem:[%s22551_s1 + $0x16ec] ss:$16 sps:$4 sm:$0xff]  }
 0x5df   : > { %11515 = vmatprep.mubr.bf16.mxu1 %v21170_v38  ;;  %11655 = vmatpush1.bf16.msra.mxu1 %v17314_v21  ;;  %v17341_v38 = vld [vmem:[%s22551_s1 + $0x16e8] ss:$16 sps:$4 sm:$0xff]   ;;  %v17385_v21 = vld [vmem:[%s22551_s1 + $0x178c] ss:$16 sps:$4 sm:$0xff]  }
 0x5e0   : > { %11656 = vmatprep.subr.bf16.mxu1 %v17325_v52  ;;  %v17383_v52 = vld [vmem:[%s22551_s1 + $0x1788] ss:$16 sps:$4 sm:$0xff]  }
 0x5e3   : > { %11657 = vmatpush1.bf16.msra.mxu1 %v17323_v18  ;;  %v17391_v18 = vld [vmem:[%s22551_s1 + $0x17cc] ss:$16 sps:$4 sm:$0xff]  }
 0x5e4   : > { %11658 = vmatprep.subr.bf16.mxu1 %v17334_v14  ;;  %v17389_v14 = vld [vmem:[%s22551_s1 + $0x17c8] ss:$16 sps:$4 sm:$0xff]  }
 0x5e6   : > { %11516 = vmatmul.mubr.bf16.gmra.mrb[76].mxu1 %v21202_v58  ;;  %v17361_v58 = vld [vmem:[%s22551_s1 + $0x172c] ss:$16 sps:$4 sm:$0xff]  }
 0x5e7   : > { %11525 = vmatprep.mubr.bf16.mxu1 %v21204_v44  ;;  %11659 = vmatpush1.bf16.msra.mxu1 %v17332_v28  ;;  %v17359_v44 = vld [vmem:[%s22551_s1 + $0x1728] ss:$16 sps:$4 sm:$0xff]   ;;  %v1427_v28 = vlaneseq }
 0x5e8   : > { %11660 = vmatprep.subr.bf16.mxu1 %v17343_v0 }
 0x5e9   : > { %v21908_v0 = vshrl.u32 %v1427_v28, 7  ;;  %v22837_v28 = vld [vmem:[#allocation22_spill] sm:$0xff] }
 0x5eb   : > { %11661 = vmatpush1.bf16.msra.mxu1 %v17341_v38  ;;  %v1433_v38 = vsub.s32 1, %v21908_v0 }
 0x5ec   : > { %11662 = vmatprep.subr.bf16.mxu1 %v17352_v6  ;;  %v22834_v6 = vld [vmem:[#allocation19_spill] sm:$0xff] }
 0x5ee   : > { %11526 = vmatmul.mubr.bf16.gmra.mrb[80].mxu1 %v21236_v8  ;;  %v17379_v8 = vld [vmem:[%s22551_s1 + $0x176c] ss:$16 sps:$4 sm:$0xff]  }
 0x5ef   : > { %11535 = vmatprep.mubr.bf16.mxu1 %v21238_v22  ;;  %11663 = vmatpush1.bf16.msra.mxu1 %v17350_v11  ;;  %v17377_v22 = vld [vmem:[%s22551_s1 + $0x1768] ss:$16 sps:$4 sm:$0xff]  }
 0x5f0   : > { %11664 = vmatprep.subr.bf16.mxu1 %v17361_v58 }
 0x5f3   : > { %11665 = vmatpush1.bf16.msra.mxu1 %v17359_v44  ;;  %v22835_v44 = vld [vmem:[#allocation20_spill] sm:$0xff] }
 0x5f4   : > { %11666 = vmatprep.subr.bf16.mxu1 %v17370_v47 }
 0x5f6   : > { %11536 = vmatmul.mubr.bf16.gmra.mrb[84].mxu1 %v21270_v9  ;;  %v17388_v9 = vld [vmem:[%s22551_s1 + $0x17ac] ss:$16 sps:$4 sm:$0xff]  }
 0x5f7   : > { %11545 = vmatprep.mubr.bf16.mxu1 %v21272_v51  ;;  %11667 = vmatpush1.bf16.msra.mxu1 %v17368_v59  ;;  %v17386_v51 = vld [vmem:[%s22551_s1 + $0x17a8] ss:$16 sps:$4 sm:$0xff]  }
 0x5f8   : > { %11668 = vmatprep.subr.bf16.mxu1 %v17379_v8 }
 0x5fb   : > { %11669 = vmatpush1.bf16.msra.mxu1 %v17377_v22  ;;  %v22836_v22 = vld [vmem:[#allocation21_spill] sm:$0xff] }
 0x5fc   : > { %11670 = vmatprep.subr.bf16.mxu1 %v17385_v21 }
 0x5fe   : > { %11546 = vmatmul.mubr.bf16.gmra.mrb[88].mxu1 %v21304_v41  ;;  %v17394_v41 = vld [vmem:[%s22551_s1 + $0x17ec] ss:$16 sps:$4 sm:$0xff]  }
 0x5ff   : > { %11555 = vmatprep.mubr.bf16.mxu1 %v21306_v33  ;;  %11671 = vmatpush1.bf16.msra.mxu1 %v17383_v52  ;;  %v17392_v33 = vld [vmem:[%s22551_s1 + $0x17e8] ss:$16 sps:$4 sm:$0xff]  }
 0x600   : > { %11672 = vmatprep.subr.bf16.mxu1 %v17388_v9 }
 0x603   : > { %11673 = vmatpush1.bf16.msra.mxu1 %v17386_v51 }
 0x604   : > { %11674 = vmatprep.subr.bf16.mxu1 %v17391_v18 }
 0x606   : > { %11556 = vmatmul.mubr.bf16.gmra.mrb[92].mxu1 %v21338_v12  ;;  %v1429_v12 = vsub.s32 0, %v21908_v0 }
 0x607   : > { %11565 = vmatprep.mubr.bf16.mxu1 %v21340_v50  ;;  %11675 = vmatpush1.bf16.msra.mxu1 %v17389_v14  ;;  %v21916_v50 = vld [vmem:[%s22552_s2] sm:$0xf]  ;;  %v17397_v14 = vld [vmem:[%s22553_s3 + $0x104] ss:$8 sps:$4 sm:$0xff]  }
 0x608   : > { %11676 = vmatprep.subr.bf16.mxu1 %v17394_v41  ;;  %12492 = vmatprep.subr.bf16.mxu0 %v17397_v14  ;;  %v22841_v14 = vld [vmem:[#allocation26_spill] sm:$0xff] }
 0x60b   : > { %11677 = vmatpush1.bf16.msra.mxu1 %v17392_v33  ;;  %v17395_v33 = vld [vmem:[%s22553_s3 + $0x100] ss:$8 sps:$4 sm:$0xff]  }
 0x60e   : > { %11566 = vmatmul.mubr.bf16.gmra.mrb[96].mxu1 %v21372_v62  ;;  %v21922_v62 = vrot.slane %v21916_v50, %v1429_v12 }
 0x60f   : > { %11575 = vmatprep.mubr.bf16.mxu1 %v21374_v30  ;;  %v21927_v30 = vrot.slane %v21916_v50, %v1433_v38 }
 0x610   : > { %v7246_v47 = vadd.f32 %v22835_v44, %v21922_v62 }
 0x611   : > { %v7244_v11 = vadd.f32 %v22834_v6, %v21927_v30  ;;  %v7248_v21 = vadd.f32 %v22836_v22, %v21927_v30 }
 0x616   : > { %11576 = vmatmul.mubr.bf16.gmra.mrb[100].mxu1 %v21382_v7  ;;  %v22833_v7 = vld [vmem:[#allocation18_spill] sm:$0xff] }
 0x617   : > { %11585 = vmatprep.mubr.bf16.mxu1 %v21384_v20  ;;  %v7242_v20 = vadd.f32 %v22833_v7, %v21922_v62  ;;  %v7252_v7 = vadd.f32 %v22837_v28, %v21922_v62 }
 0x61e   : > { %11586 = vmatmul.mubr.bf16.gmra.mrb[104].mxu1 %v21392_v43 }
 0x61f   : > { %11595 = vmatprep.mubr.bf16.mxu1 %v21394_v24 }
 0x622   : > { %v9364_v58 = vpop.f32.mrb[0].mxu0 }
 0x623   : > { %v14523_v59 = vadd.f32 %v9364_v58, %v7242_v20  ;;  %v9366_v8 = vpop.f32.mrb[1].mxu0  ;;  %v22838_v20 = vld [vmem:[#allocation23_spill] sm:$0xff] }
 0x624   : > { %v14525_v52 = vadd.f32 %v9366_v8, %v7244_v11  ;;  %v9368_v9 = vpop.f32.mrb[2].mxu0  ;;  %v7254_v6 = vadd.f32 %v22838_v20, %v21927_v30 }
 0x625   : > { %v14527_v43 = vadd.f32 %v9368_v9, %v7246_v47  ;;  %v9370_v51 = vpop.f32.mrb[3].mxu0 }
 0x626   : > { %v14529_v24 = vadd.f32 %v9370_v51, %v7248_v21  ;;  %11596 = vmatmul.mubr.bf16.gmra.mrb[108].mxu1 %v21402_v61  ;;  %v22839_v61 = vld [vmem:[#allocation24_spill] sm:$0xff] }
 0x627   : > { %v11839_v18 = vpack.c.bf16 %v14527_v43, %v14523_v59  ;;  %11605 = vmatprep.mubr.bf16.mxu1 %v21404_v57  ;;  %v7256_v58 = vadd.f32 %v22839_v61, %v21922_v62  ;;  %v22840_v57 = vld [vmem:[#allocation25_spill] sm:$0xff] }
 0x628   : > { %v11840_v41 = vpack.c.bf16 %v14529_v24, %v14525_v52  ;;  %v7258_v59 = vadd.f32 %v22840_v57, %v21927_v30  ;;  %v17398_v51 = vld [vmem:[%s22553_s3 + $0x110] ss:$8 sps:$4 sm:$0xff]   ;;  %v17400_v24 = vld [vmem:[%s22553_s3 + $0x114] ss:$8 sps:$4 sm:$0xff]  }
 0x629   : > { %v22844_v61 = vld [vmem:[#allocation29_spill] sm:$0xff] }
 0x62a   : > { %v9374_v11 = vpop.f32.mrb[4].mxu0  ;;  %12331 = vmatprep.mubr.bf16.mxu0 %v11840_v41  ;;  %v7262_v41 = vadd.f32 %v22841_v14, %v21922_v62 }
 0x62b   : > { %v14531_v44 = vadd.f32 %v9374_v11, %v7252_v7  ;;  %v9376_v47 = vpop.f32.mrb[5].mxu0  ;;  %12332 = vmatmul.mubr.bf16.vlgmr.msra.gmra.mrb[64].mxu0 %v11839_v18 }
 0x62c   : > { %v14533_v8 = vadd.f32 %v9376_v47, %v7254_v6  ;;  %v9378_v22 = vpop.f32.mrb[6].mxu0  ;;  %12493 = vmatpush1.bf16.msra.mxu0 %v17395_v33  ;;  %v22842_v33 = vld [vmem:[#allocation27_spill] sm:$0xff] }
 0x62d   : > { %v14535_v21 = vadd.f32 %v9378_v22, %v7256_v58  ;;  %v9380_v52 = vpop.f32.mrb[7].mxu0  ;;  %12494 = vmatprep.subr.bf16.mxu0 %v17400_v24  ;;  %v7264_v28 = vadd.f32 %v22842_v33, %v21927_v30  ;;  %v7268_v58 = vadd.f32 %v22844_v61, %v21927_v30  ;;  %v17401_v22 = vld [vmem:[%s22553_s3 + $0x120] ss:$8 sps:$4 sm:$0xff]  }
 0x62e   : > { %v14537_v9 = vadd.f32 %v9380_v52, %v7258_v59  ;;  %11606 = vmatmul.mubr.bf16.gmra.mrb[112].mxu1 %v21412_v37  ;;  %v22843_v37 = vld [vmem:[#allocation28_spill] sm:$0xff] }
 0x62f   : > { %v11843_v43 = vpack.c.bf16 %v14535_v21, %v14531_v44  ;;  %11615 = vmatprep.mubr.bf16.mxu1 %v21414_v4  ;;  %v7266_v20 = vadd.f32 %v22843_v37, %v21922_v62  ;;  %v17403_v21 = vld [vmem:[%s22553_s3 + $0x124] ss:$8 sps:$4 sm:$0xff]  }
 0x630   : > { %v11844_v18 = vpack.c.bf16 %v14537_v9, %v14533_v8  ;;  %12495 = vmatpush1.bf16.msra.mxu0 %v17398_v51  ;;  %v22845_v9 = vld [vmem:[#allocation30_spill] sm:$0xff]  ;;  %v22846_v51 = vld [vmem:[#allocation31_spill] sm:$0xff] }
 0x631   : > { %12496 = vmatprep.subr.bf16.mxu0 %v17403_v21  ;;  %v7274_v24 = vadd.f32 %v22846_v51, %v21927_v30 }
 0x632   : > { %v9384_v7 = vpop.f32.mrb[8].mxu0  ;;  %12341 = vmatprep.mubr.bf16.mxu0 %v11844_v18 }
 0x633   : > { %v14539_v6 = vadd.f32 %v9384_v7, %v7262_v41  ;;  %v9386_v11 = vpop.f32.mrb[9].mxu0  ;;  %12342 = vmatmul.mubr.bf16.gmra.mrb[68].mxu0 %v11843_v43  ;;  %v7272_v43 = vadd.f32 %v22845_v9, %v21922_v62 }
 0x634   : > { %v14541_v4 = vadd.f32 %v9386_v11, %v7264_v28  ;;  %v9388_v44 = vpop.f32.mrb[10].mxu0  ;;  %12497 = vmatpush1.bf16.msra.mxu0 %v17401_v22  ;;  %v22848_v28 = vld [vmem:[#allocation33_spill] sm:$0xff] }
 0x635   : > { %v14543_v47 = vadd.f32 %v9388_v44, %v7266_v20  ;;  %v9390_v57 = vpop.f32.mrb[11].mxu0  ;;  %v7278_v7 = vadd.f32 %v22848_v28, %v21927_v30  ;;  %v17409_v28 = vld [vmem:[%s22553_s3 + $0x144] ss:$8 sps:$4 sm:$0xff]  }
 0x636   : > { %v14545_v59 = vadd.f32 %v9390_v57, %v7268_v58  ;;  %11616 = vmatmul.mubr.bf16.gmra.mrb[116].mxu1 %v21422_v48  ;;  %v22847_v48 = vld [vmem:[#allocation32_spill] sm:$0xff] }
 0x637   : > { %v11847_v8 = vpack.c.bf16 %v14543_v47, %v14539_v6  ;;  %11625 = vmatprep.mubr.bf16.mxu1 %v21424_v31  ;;  %v7276_v14 = vadd.f32 %v22847_v48, %v21922_v62  ;;  %v17404_v58 = vld [vmem:[%s22553_s3 + $0x130] ss:$8 sps:$4 sm:$0xff]   ;;  %v22849_v47 = vld [vmem:[#allocation34_spill] sm:$0xff] }
 0x638   : > { %v11848_v52 = vpack.c.bf16 %v14545_v59, %v14541_v4  ;;  %v17406_v4 = vld [vmem:[%s22553_s3 + $0x134] ss:$8 sps:$4 sm:$0xff]   ;;  %v7282_v57 = vadd.f32 %v22849_v47, %v21922_v62  ;;  %v22850_v59 = vld [vmem:[#allocation35_spill] sm:$0xff] }
 0x639   : > { %12498 = vmatprep.subr.bf16.mxu0 %v17406_v4  ;;  %v17415_v47 = vld [vmem:[%s22553_s3 + $0x164] ss:$8 sps:$4 sm:$0xff]  }
 0x63a   : > { %v9394_v18 = vpop.f32.mrb[12].mxu0  ;;  %12351 = vmatprep.mubr.bf16.mxu0 %v11848_v52  ;;  %12499 = vmatpush1.bf16.msra.mxu0 %v17404_v58 }
 0x63b   : > { %v14547_v41 = vadd.f32 %v9394_v18, %v7272_v43  ;;  %v9396_v33 = vpop.f32.mrb[13].mxu0  ;;  %12352 = vmatmul.mubr.bf16.gmra.mrb[72].mxu0 %v11847_v8  ;;  %v7284_v8 = vadd.f32 %v22850_v59, %v21927_v30  ;;  %v22852_v43 = vld [vmem:[#allocation37_spill] sm:$0xff]  ;;  %12500 = vmatprep.subr.bf16.mxu0 %v17409_v28 }
 0x63c   : > { %v14549_v31 = vadd.f32 %v9396_v33, %v7274_v24  ;;  %v9398_v37 = vpop.f32.mrb[14].mxu0  ;;  %v7288_v51 = vadd.f32 %v22852_v43, %v21927_v30  ;;  %v17407_v33 = vld [vmem:[%s22553_s3 + $0x140] ss:$8 sps:$4 sm:$0xff]  }
 0x63d   : > { %v14551_v20 = vadd.f32 %v9398_v37, %v7276_v14  ;;  %v9400_v6 = vpop.f32.mrb[15].mxu0  ;;  %v22853_v37 = vld [vmem:[#allocation38_spill] sm:$0xff] }
 0x63e   : > { %v14553_v11 = vadd.f32 %v9400_v6, %v7278_v7  ;;  %11626 = vmatmul.mubr.bf16.gmra.mrb[120].mxu1 %v21432_v29  ;;  %v22851_v29 = vld [vmem:[#allocation36_spill] sm:$0xff]  ;;  %12501 = vmatpush1.bf16.msra.mxu0 %v17407_v33 }
 0x63f   : > { %v11851_v61 = vpack.c.bf16 %v14551_v20, %v14547_v41  ;;  %11635 = vmatprep.mubr.bf16.mxu1 %v21434_v10  ;;  %v7286_v21 = vadd.f32 %v22851_v29, %v21922_v62  ;;  %v7292_v20 = vadd.f32 %v22853_v37, %v21922_v62  ;;  %v22859_v33 = vld [vmem:[#allocation44_spill] sm:$0xff]  ;;  %v22860_v37 = vld [vmem:[#allocation45_spill] sm:$0xff] }
 0x640   : > { %v11852_v44 = vpack.c.bf16 %v14553_v11, %v14549_v31  ;;  %v17412_v31 = vld [vmem:[%s22553_s3 + $0x154] ss:$8 sps:$4 sm:$0xff]   ;;  %v7306_v28 = vadd.f32 %v22859_v33, %v21922_v62 }
 0x641   : > { %12502 = vmatprep.subr.bf16.mxu0 %v17412_v31 }
 0x642   : > { %v9404_v22 = vpop.f32.mrb[16].mxu0  ;;  %12361 = vmatprep.mubr.bf16.mxu0 %v11852_v44 }
 0x643   : > { %v14555_v52 = vadd.f32 %v9404_v22, %v7282_v57  ;;  %v9406_v9 = vpop.f32.mrb[17].mxu0  ;;  %12362 = vmatmul.mubr.bf16.gmra.mrb[76].mxu0 %v11851_v61  ;;  %v17410_v61 = vld [vmem:[%s22553_s3 + $0x150] ss:$8 sps:$4 sm:$0xff]  }
 0x644   : > { %v14557_v10 = vadd.f32 %v9406_v9, %v7284_v8  ;;  %v9408_v24 = vpop.f32.mrb[18].mxu0  ;;  %v22856_v57 = vld [vmem:[#allocation41_spill] sm:$0xff]  ;;  %12503 = vmatpush1.bf16.msra.mxu0 %v17410_v61  ;;  %v17413_v9 = vld [vmem:[%s22553_s3 + $0x160] ss:$8 sps:$4 sm:$0xff]  }
 0x645   : > { %v14559_v18 = vadd.f32 %v9408_v24, %v7286_v21  ;;  %v9410_v48 = vpop.f32.mrb[19].mxu0  ;;  %v7298_v59 = vadd.f32 %v22856_v57, %v21927_v30  ;;  %12504 = vmatprep.subr.bf16.mxu0 %v17415_v47  ;;  %v22857_v24 = vld [vmem:[#allocation42_spill] sm:$0xff] }
 0x646   : > { %v14561_v14 = vadd.f32 %v9410_v48, %v7288_v51  ;;  %11636 = vmatmul.mubr.bf16.gmra.mrb[124].mxu1 %v21442_v53  ;;  %v22854_v53 = vld [vmem:[#allocation39_spill] sm:$0xff]  ;;  %v17418_v51 = vld [vmem:[%s22553_s3 + $0x174] ss:$8 sps:$4 sm:$0xff]   ;;  %v22861_v57 = vld [vmem:[#allocation46_spill] sm:$0xff] }
 0x647   : > { %v11855_v41 = vpack.c.bf16 %v14559_v18, %v14555_v52  ;;  %11678 = vmatprep.mubr.bf16.mxu1 %v21444_v26  ;;  %v7294_v6 = vadd.f32 %v22854_v53, %v21927_v30  ;;  %v22855_v26 = vld [vmem:[#allocation40_spill] sm:$0xff]  ;;  %v7302_v18 = vadd.f32 %v22857_v24, %v21922_v62  ;;  %v22858_v48 = vld [vmem:[#allocation43_spill] sm:$0xff] }
 0x648   : > { %v11856_v7 = vpack.c.bf16 %v14561_v14, %v14557_v10  ;;  %v7296_v58 = vadd.f32 %v22855_v26, %v21922_v62  ;;  %v7304_v14 = vadd.f32 %v22858_v48, %v21927_v30  ;;  %12505 = vmatpush1.bf16.msra.mxu0 %v17413_v9 }
 0x649   : > { %12506 = vmatprep.subr.bf16.mxu0 %v17418_v51  ;;  %v22864_v51 = vld [vmem:[#allocation49_spill] sm:$0xff] }
 0x64a   : > { %v9414_v11 = vpop.f32.mrb[20].mxu0  ;;  %12371 = vmatprep.mubr.bf16.mxu0 %v11856_v7 }
 0x64b   : > { %v14563_v4 = vadd.f32 %v9414_v11, %v7292_v20  ;;  %v9416_v44 = vpop.f32.mrb[21].mxu0  ;;  %12372 = vmatmul.mubr.bf16.gmra.mrb[80].mxu0 %v11855_v41  ;;  %v7308_v20 = vadd.f32 %v22860_v37, %v21927_v30  ;;  %v22866_v37 = vld [vmem:[#allocation51_spill] sm:$0xff] }
 0x64c   : > { %v14565_v8 = vadd.f32 %v9416_v44, %v7294_v6  ;;  %v9418_v22 = vpop.f32.mrb[22].mxu0  ;;  %v17424_v44 = vld [vmem:[%s22553_s3 + $0x194] ss:$8 sps:$4 sm:$0xff]  }
 0x64d   : > { %v14567_v29 = vadd.f32 %v9418_v22, %v7296_v58  ;;  %v9420_v21 = vpop.f32.mrb[23].mxu0  ;;  %v17419_v58 = vld [vmem:[%s22553_s3 + $0x180] ss:$8 sps:$4 sm:$0xff]  }
 0x64e   : > { %v14569_v52 = vadd.f32 %v9420_v21, %v7298_v59  ;;  %11679 = vmatmul.mubr.bf16.vlgmr.msra.gmra.mrb[64].mxu1 %v21452_v15  ;;  %v17416_v15 = vld [vmem:[%s22553_s3 + $0x170] ss:$8 sps:$4 sm:$0xff]   ;;  %v7312_v59 = vadd.f32 %v22861_v57, %v21922_v62 }
 0x64f   : > { %v11859_v43 = vpack.c.bf16 %v14567_v29, %v14563_v4  ;;  %11688 = vmatprep.mubr.bf16.mxu1 %v21457_v1  ;;  %v17421_v1 = vld [vmem:[%s22553_s3 + $0x184] ss:$8 sps:$4 sm:$0xff]   ;;  %12507 = vmatpush1.bf16.msra.mxu0 %v17416_v15  ;;  %v22863_v21 = vld [vmem:[#allocation48_spill] sm:$0xff]  ;;  %v17425_v15 = vld [vmem:[%s22553_s3 + $0x1a0] ss:$8 sps:$4 sm:$0xff]  }
 0x650   : > { %v11860_v10 = vpack.c.bf16 %v14569_v52, %v14565_v8  ;;  %12508 = vmatprep.subr.bf16.mxu0 %v17421_v1  ;;  %v22862_v8 = vld [vmem:[#allocation47_spill] sm:$0xff]  ;;  %v7316_v52 = vadd.f32 %v22863_v21, %v21922_v62 }
 0x651   : > { %v7314_v22 = vadd.f32 %v22862_v8, %v21927_v30 }
 0x652   : > { %v9424_v41 = vpop.f32.mrb[24].mxu0  ;;  %12381 = vmatprep.mubr.bf16.mxu0 %v11860_v10  ;;  %v7318_v10 = vadd.f32 %v22864_v51, %v21927_v30 }
 0x653   : > { %v14571_v7 = vadd.f32 %v9424_v41, %v7302_v18  ;;  %v9426_v31 = vpop.f32.mrb[25].mxu0  ;;  %12382 = vmatmul.mubr.bf16.gmra.mrb[84].mxu0 %v11859_v43 }
 0x654   : > { %v14573_v53 = vadd.f32 %v9426_v31, %v7304_v14  ;;  %v9428_v6 = vpop.f32.mrb[26].mxu0  ;;  %12509 = vmatpush1.bf16.msra.mxu0 %v17419_v58  ;;  %v22865_v31 = vld [vmem:[#allocation50_spill] sm:$0xff]  ;;  %v22868_v58 = vld [vmem:[#allocation53_spill] sm:$0xff] }
 0x655   : > { %v14575_v11 = vadd.f32 %v9428_v6, %v7306_v28  ;;  %v9430_v61 = vpop.f32.mrb[27].mxu0  ;;  %12510 = vmatprep.subr.bf16.mxu0 %v17424_v44  ;;  %v17430_v28 = vld [vmem:[%s22553_s3 + $0x1b4] ss:$8 sps:$4 sm:$0xff]   ;;  %v7322_v1 = vadd.f32 %v22865_v31, %v21922_v62 }
 0x656   : > { %v14577_v26 = vadd.f32 %v9430_v61, %v7308_v20  ;;  %11689 = vmatmul.mubr.bf16.gmra.mrb[68].mxu1 %v21474_v39  ;;  %v17422_v39 = vld [vmem:[%s22553_s3 + $0x190] ss:$8 sps:$4 sm:$0xff]   ;;  %v7324_v20 = vadd.f32 %v22866_v37, %v21927_v30 }
 0x657   : > { %v11863_v4 = vpack.c.bf16 %v14575_v11, %v14571_v7  ;;  %11698 = vmatprep.mubr.bf16.mxu1 %v21476_v32  ;;  %v17427_v32 = vld [vmem:[%s22553_s3 + $0x1a4] ss:$8 sps:$4 sm:$0xff]   ;;  %v22867_v6 = vld [vmem:[#allocation52_spill] sm:$0xff] }
 0x658   : > { %v11864_v47 = vpack.c.bf16 %v14577_v26, %v14573_v53  ;;  %12511 = vmatpush1.bf16.msra.mxu0 %v17422_v39  ;;  %v7326_v11 = vadd.f32 %v22867_v6, %v21922_v62  ;;  %v17436_v39 = vld [vmem:[%s22553_s3 + $0x1d4] ss:$8 sps:$4 sm:$0xff]   ;;  %v22874_v6 = vld [vmem:[#allocation59_spill] sm:$0xff] }
 0x659   : > { %12512 = vmatprep.subr.bf16.mxu0 %v17427_v32 }
 0x65a   : > { %v9434_v29 = vpop.f32.mrb[28].mxu0  ;;  %12391 = vmatprep.mubr.bf16.mxu0 %v11864_v47 }
 0x65b   : > { %v14579_v9 = vadd.f32 %v9434_v29, %v7312_v59  ;;  %v9436_v43 = vpop.f32.mrb[29].mxu0  ;;  %12392 = vmatmul.mubr.bf16.gmra.mrb[88].mxu0 %v11863_v4  ;;  %v7328_v4 = vadd.f32 %v22868_v58, %v21927_v30 }
 0x65c   : > { %v14581_v24 = vadd.f32 %v9436_v43, %v7314_v22  ;;  %v9438_v18 = vpop.f32.mrb[30].mxu0  ;;  %12513 = vmatpush1.bf16.msra.mxu0 %v17425_v15  ;;  %v17431_v22 = vld [vmem:[%s22553_s3 + $0x1c0] ss:$8 sps:$4 sm:$0xff]  }
 0x65d   : > { %v14583_v48 = vadd.f32 %v9438_v18, %v7316_v52  ;;  %v9440_v14 = vpop.f32.mrb[31].mxu0  ;;  %12514 = vmatprep.subr.bf16.mxu0 %v17430_v28  ;;  %v22869_v52 = vld [vmem:[#allocation54_spill] sm:$0xff]  ;;  %v22870_v43 = vld [vmem:[#allocation55_spill] sm:$0xff] }
 0x65e   : > { %v14585_v41 = vadd.f32 %v9440_v14, %v7318_v10  ;;  %11699 = vmatmul.mubr.bf16.gmra.mrb[72].mxu1 %v21496_v35  ;;  %v17428_v35 = vld [vmem:[%s22553_s3 + $0x1b0] ss:$8 sps:$4 sm:$0xff]   ;;  %v7334_v32 = vadd.f32 %v22870_v43, %v21927_v30 }
 0x65f   : > { %v11867_v33 = vpack.c.bf16 %v14583_v48, %v14579_v9  ;;  %11708 = vmatprep.mubr.bf16.mxu1 %v21498_v3  ;;  %v17433_v3 = vld [vmem:[%s22553_s3 + $0x1c4] ss:$8 sps:$4 sm:$0xff]   ;;  %v7332_v9 = vadd.f32 %v22869_v52, %v21922_v62  ;;  %v22871_v10 = vld [vmem:[#allocation56_spill] sm:$0xff]  ;;  %v22872_v14 = vld [vmem:[#allocation57_spill] sm:$0xff] }
 0x660   : > { %v11868_v7 = vpack.c.bf16 %v14585_v41, %v14581_v24  ;;  %12515 = vmatpush1.bf16.msra.mxu0 %v17428_v35  ;;  %v7336_v24 = vadd.f32 %v22871_v10, %v21922_v62  ;;  %v7338_v41 = vadd.f32 %v22872_v14, %v21927_v30  ;;  %v22878_v52 = vld [vmem:[#allocation63_spill] sm:$0xff] }
 0x661   : > { %12516 = vmatprep.subr.bf16.mxu0 %v17433_v3 }
 0x662   : > { %v9444_v53 = vpop.f32.mrb[32].mxu0  ;;  %12401 = vmatprep.mubr.bf16.mxu0 %v11868_v7 }
 0x663   : > { %v14587_v61 = vadd.f32 %v9444_v53, %v7322_v1  ;;  %v9446_v26 = vpop.f32.mrb[33].mxu0  ;;  %12402 = vmatmul.mubr.bf16.gmra.mrb[92].mxu0 %v11867_v33  ;;  %v17437_v1 = vld [vmem:[%s22553_s3 + $0x1e0] ss:$8 sps:$4 sm:$0xff]  }
 0x664   : > { %v14589_v44 = vadd.f32 %v9446_v26, %v7324_v20  ;;  %v9448_v47 = vpop.f32.mrb[34].mxu0  ;;  %12517 = vmatpush1.bf16.msra.mxu0 %v17431_v22  ;;  %v22873_v53 = vld [vmem:[#allocation58_spill] sm:$0xff]  ;;  %v22875_v26 = vld [vmem:[#allocation60_spill] sm:$0xff] }
 0x665   : > { %v14591_v57 = vadd.f32 %v9448_v47, %v7326_v11  ;;  %v9450_v59 = vpop.f32.mrb[35].mxu0  ;;  %12518 = vmatprep.subr.bf16.mxu0 %v17436_v39  ;;  %v7342_v35 = vadd.f32 %v22873_v53, %v21922_v62  ;;  %v7344_v11 = vadd.f32 %v22874_v6, %v21927_v30  ;;  %v7346_v3 = vadd.f32 %v22875_v26, %v21922_v62  ;;  %v22877_v39 = vld [vmem:[#allocation62_spill] sm:$0xff] }
 0x666   : > { %v14593_v8 = vadd.f32 %v9450_v59, %v7328_v4  ;;  %11709 = vmatmul.mubr.bf16.gmra.mrb[76].mxu1 %v21518_v54  ;;  %v17434_v54 = vld [vmem:[%s22553_s3 + $0x1d0] ss:$8 sps:$4 sm:$0xff]  }
 0x667   : > { %v11871_v29 = vpack.c.bf16 %v14591_v57, %v14587_v61  ;;  %11718 = vmatprep.mubr.bf16.mxu1 %v21520_v34  ;;  %v17439_v34 = vld [vmem:[%s22553_s3 + $0x1e4] ss:$8 sps:$4 sm:$0xff]  }
 0x668   : > { %v11872_v21 = vpack.c.bf16 %v14593_v8, %v14589_v44  ;;  %12519 = vmatpush1.bf16.msra.mxu0 %v17434_v54 }
 0x669   : > { %12520 = vmatprep.subr.bf16.mxu0 %v17439_v34 }
 0x66a   : > { %v9454_v51 = vpop.f32.mrb[36].mxu0  ;;  %12411 = vmatprep.mubr.bf16.mxu0 %v11872_v21  ;;  %v7352_v21 = vadd.f32 %v22877_v39, %v21922_v62 }
 0x66b   : > { %v14595_v18 = vadd.f32 %v9454_v51, %v7332_v9  ;;  %v9456_v48 = vpop.f32.mrb[37].mxu0  ;;  %12412 = vmatmul.mubr.bf16.gmra.mrb[96].mxu0 %v11871_v29  ;;  %v7354_v9 = vadd.f32 %v22878_v52, %v21927_v30 }
 0x66c   : > { %v14597_v15 = vadd.f32 %v9456_v48, %v7334_v32  ;;  %v9458_v33 = vpop.f32.mrb[38].mxu0  ;;  %12521 = vmatpush1.bf16.msra.mxu0 %v17437_v1  ;;  %v22879_v32 = vld [vmem:[#allocation64_spill] sm:$0xff] }
 0x66d   : > { %v14599_v28 = vadd.f32 %v9458_v33, %v7336_v24  ;;  %v9460_v7 = vpop.f32.mrb[39].mxu0  ;;  %v7356_v51 = vadd.f32 %v22879_v32, %v21922_v62  ;;  %v22880_v24 = vld [vmem:[#allocation65_spill] sm:$0xff]  ;;  %v22881_v33 = vld [vmem:[#allocation70_spill] sm:$0xff] }
 0x66e   : > { %v14601_v31 = vadd.f32 %v9460_v7, %v7338_v41  ;;  %11719 = vmatmul.mubr.bf16.gmra.mrb[80].mxu1 %v21546_v45  ;;  %v22876_v45 = vld [vmem:[#allocation61_spill] sm:$0xff] }
 0x66f   : > { %v11875_v37 = vpack.c.bf16 %v14599_v28, %v14595_v18  ;;  %11728 = vmatprep.mubr.bf16.mxu1 %v21548_v60  ;;  %v7348_v44 = vadd.f32 %v22876_v45, %v21927_v30  ;;  %v22882_v28 = vld [vmem:[#allocation66_spill] sm:$0xff] }
 0x670   : > { %v11876_v20 = vpack.c.bf16 %v14601_v31, %v14597_v15  ;;  %v7362_v7 = vadd.f32 %v22882_v28, %v21922_v62  ;;  %v22883_v31 = vld [vmem:[#allocation67_spill] sm:$0xff] }
 0x671   : > { %v7364_v1 = vadd.f32 %v22883_v31, %v21927_v30 }
 0x672   : > { %v9464_v61 = vpop.f32.mrb[40].mxu0  ;;  %12421 = vmatprep.mubr.bf16.mxu0 %v11876_v20  ;;  %v22884_v20 = vld [vmem:[#allocation69_spill] sm:$0xff] }
 0x673   : > { %v14603_v58 = vadd.f32 %v9464_v61, %v7342_v35  ;;  %v9466_v4 = vpop.f32.mrb[41].mxu0  ;;  %12422 = vmatmul.mubr.bf16.gmra.mrb[100].mxu0 %v11875_v37  ;;  %v7366_v53 = vadd.f32 %v22884_v20, %v21922_v62 }
 0x674   : > { %v14605_v47 = vadd.f32 %v9466_v4, %v7344_v11  ;;  %v9468_v60 = vpop.f32.mrb[42].mxu0  ;;  %v22885_v11 = vld [vmem:[#allocation71_spill] sm:$0xff] }
 0x675   : > { %v14607_v57 = vadd.f32 %v9468_v60, %v7346_v3  ;;  %v9470_v59 = vpop.f32.mrb[43].mxu0  ;;  %v22887_v60 = vld [vmem:[#allocation72_spill] sm:$0xff] }
 0x676   : > { %v14609_v8 = vadd.f32 %v9470_v59, %v7348_v44  ;;  %11729 = vmatmul.mubr.bf16.gmra.mrb[84].mxu1 %v21580_v40  ;;  %v7358_v40 = vadd.f32 %v22880_v24, %v21927_v30  ;;  %v22888_v59 = vld [vmem:[#allocation73_spill] sm:$0xff] }
 0x677   : > { %v11879_v22 = vpack.c.bf16 %v14607_v57, %v14603_v58  ;;  %11738 = vmatprep.mubr.bf16.mxu1 %v21582_v42  ;;  %v7372_v57 = vadd.f32 %v22887_v60, %v21922_v62 }
 0x678   : > { %v11880_v29 = vpack.c.bf16 %v14609_v8, %v14605_v47  ;;  %v22886_v47 = vld [vmem:[#allocation3_spill] sm:$0xff]  ;;  %v7374_v8 = vadd.f32 %v22888_v59, %v21927_v30 }
 0x67a   : > { %v9474_v43 = vpop.f32.mrb[44].mxu0  ;;  %12431 = vmatprep.mubr.bf16.mxu0 %v11880_v29  ;;  %v22889_v29 = vld [vmem:[#allocation74_spill] sm:$0xff] }
 0x67b   : > { %v14611_v54 = vadd.f32 %v9474_v43, %v7352_v21  ;;  %v9476_v10 = vpop.f32.mrb[45].mxu0  ;;  %12432 = vmatmul.mubr.bf16.gmra.mrb[104].mxu0 %v11879_v22  ;;  %v7376_v39 = vadd.f32 %v22889_v29, %v21922_v62  ;;  %v22900_v29 = vld [vmem:[#allocation5_spill] sm:$0xff] }
 0x67c   : > { %v14613_v18 = vadd.f32 %v9476_v10, %v7354_v9  ;;  %v9478_v48 = vpop.f32.mrb[46].mxu0  ;;  %v22890_v9 = vld [vmem:[#allocation75_spill] sm:$0xff] }
 0x67d   : > { %v14615_v42 = vadd.f32 %v9478_v48, %v7356_v51  ;;  %v9480_v34 = vpop.f32.mrb[47].mxu0 }
 0x67e   : > { %v14617_v14 = vadd.f32 %v9480_v34, %v7358_v40  ;;  %11739 = vmatmul.mubr.bf16.gmra.mrb[88].mxu1 %v21614_v36  ;;  %v7368_v36 = vadd.f32 %v22885_v11, %v21927_v30 }
 0x67f   : > { %v11883_v41 = vpack.c.bf16 %v14615_v42, %v14611_v54  ;;  %11748 = vmatprep.mubr.bf16.mxu1 %v22881_v33  ;;  %v22892_v42 = vld [vmem:[#allocation77_spill] sm:$0xff] }
 0x680   : > { %v11884_v15 = vpack.c.bf16 %v14617_v14, %v14613_v18  ;;  %v22891_v18 = vld [vmem:[#allocation76_spill] sm:$0xff]  ;;  %v7384_v34 = vadd.f32 %v22892_v42, %v21927_v30 }
 0x681   : > { %v7382_v48 = vadd.f32 %v22891_v18, %v21922_v62 }
 0x682   : > { %v9484_v37 = vpop.f32.mrb[48].mxu0  ;;  %12441 = vmatprep.mubr.bf16.mxu0 %v11884_v15 }
 0x683   : > { %v14619_v35 = vadd.f32 %v9484_v37, %v7362_v7  ;;  %v9486_v6 = vpop.f32.mrb[49].mxu0  ;;  %12442 = vmatmul.mubr.bf16.gmra.mrb[108].mxu0 %v11883_v41  ;;  %v22893_v41 = vld [vmem:[#allocation78_spill] sm:$0xff]  ;;  %v22894_v7 = vld [vmem:[#allocation79_spill] sm:$0xff] }
 0x684   : > { %v14621_v61 = vadd.f32 %v9486_v6, %v7364_v1  ;;  %v9488_v26 = vpop.f32.mrb[50].mxu0  ;;  %v7386_v15 = vadd.f32 %v22893_v41, %v21922_v62  ;;  %v22895_v6 = vld [vmem:[#allocation2_spill] sm:$0xff] }
 0x685   : > { %v14623_v3 = vadd.f32 %v9488_v26, %v7366_v53  ;;  %v9490_v58 = vpop.f32.mrb[51].mxu0  ;;  %v7392_v11 = vadd.f32 %v22895_v6, %v21922_v62 }
 0x686   : > { %v14625_v4 = vadd.f32 %v9490_v58, %v7368_v36  ;;  %11749 = vmatmul.mubr.bf16.gmra.mrb[92].mxu1 %v21648_v16  ;;  %v7378_v16 = vadd.f32 %v22890_v9, %v21927_v30  ;;  %v22896_v36 = vld [vmem:[#allocation80_spill] sm:$0xff] }
 0x687   : > { %v11887_v45 = vpack.c.bf16 %v14623_v3, %v14619_v35  ;;  %11758 = vmatprep.mubr.bf16.mxu1 %v22886_v47  ;;  %v22897_v3 = vld [vmem:[#allocation81_spill] sm:$0xff] }
 0x688   : > { %v11888_v44 = vpack.c.bf16 %v14625_v4, %v14621_v61  ;;  %v7394_v61 = vadd.f32 %v22896_v36, %v21927_v30  ;;  %v7396_v58 = vadd.f32 %v22897_v3, %v21922_v62  ;;  %v17440_v62 = vld [vmem:[%s22553_s3 + $0x1f0] ss:$8 sps:$4 sm:$0xff]  }
 0x68a   : > { %v9494_v22 = vpop.f32.mrb[52].mxu0  ;;  %12451 = vmatprep.mubr.bf16.mxu0 %v11888_v44  ;;  %v22898_v44 = vld [vmem:[#allocation82_spill] sm:$0xff] }
 0x68b   : > { %v14627_v21 = vadd.f32 %v9494_v22, %v7372_v57  ;;  %v9496_v52 = vpop.f32.mrb[53].mxu0  ;;  %12452 = vmatmul.mubr.bf16.gmra.mrb[112].mxu0 %v11887_v45 }
 0x68c   : > { %v14629_v43 = vadd.f32 %v9496_v52, %v7374_v8  ;;  %v9498_v32 = vpop.f32.mrb[54].mxu0 }
 0x68d   : > { %v14631_v51 = vadd.f32 %v9498_v32, %v7376_v39  ;;  %v9500_v54 = vpop.f32.mrb[55].mxu0 }
 0x68e   : > { %v14633_v10 = vadd.f32 %v9500_v54, %v7378_v16  ;;  %11759 = vmatmul.mubr.bf16.gmra.mrb[96].mxu1 %v21682_v13  ;;  %v7388_v13 = vadd.f32 %v22894_v7, %v21927_v30 }
 0x68f   : > { %v11891_v24 = vpack.c.bf16 %v14631_v51, %v14627_v21  ;;  %11768 = vmatprep.mubr.bf16.mxu1 %v21684_v5 }
 0x690   : > { %v11892_v40 = vpack.c.bf16 %v14633_v10, %v14629_v43 }
 0x692   : > { %v9504_v14 = vpop.f32.mrb[56].mxu0  ;;  %12461 = vmatprep.mubr.bf16.mxu0 %v11892_v40 }
 0x693   : > { %v14635_v33 = vadd.f32 %v9504_v14, %v7382_v48  ;;  %v9506_v28 = vpop.f32.mrb[57].mxu0  ;;  %12462 = vmatmul.mubr.bf16.gmra.mrb[116].mxu0 %v11891_v24 }
 0x694   : > { %v14637_v31 = vadd.f32 %v9506_v28, %v7384_v34  ;;  %v9508_v1 = vpop.f32.mrb[58].mxu0 }
 0x695   : > { %v14639_v5 = vadd.f32 %v9508_v1, %v7386_v15  ;;  %v9510_v37 = vpop.f32.mrb[59].mxu0 }
 0x696   : > { %v14641_v20 = vadd.f32 %v9510_v37, %v7388_v13  ;;  %11769 = vmatmul.mubr.bf16.gmra.mrb[100].mxu1 %v21704_v17  ;;  %v7398_v17 = vadd.f32 %v22898_v44, %v21927_v30  ;;  %v17442_v30 = vld [vmem:[%s22553_s3 + $0x1f4] ss:$8 sps:$4 sm:$0xff]  }
 0x697   : > { %v11895_v53 = vpack.c.bf16 %v14639_v5, %v14635_v33  ;;  %11778 = vmatprep.mubr.bf16.mxu1 %v21706_v56  ;;  %12522 = vmatprep.subr.bf16.mxu0 %v17442_v30 }
 0x698   : > { %v11896_v35 = vpack.c.bf16 %v14641_v20, %v14637_v31  ;;  %12523 = vmatpush1.bf16.msra.mxu0 %v17440_v62 }
 0x69a   : > { %v9514_v26 = vpop.f32.mrb[60].mxu0  ;;  %12471 = vmatprep.mubr.bf16.mxu0 %v11896_v35 }
 0x69b   : > { %v14643_v4 = vadd.f32 %v9514_v26, %v7392_v11  ;;  %v9516_v45 = vpop.f32.mrb[61].mxu0  ;;  %12472 = vmatmul.mubr.bf16.gmra.mrb[120].mxu0 %v11895_v53 }
 0x69c   : > { %v14645_v47 = vadd.f32 %v9516_v45, %v7394_v61  ;;  %v9518_v60 = vpop.f32.mrb[62].mxu0 }
 0x69d   : > { %v14647_v56 = vadd.f32 %v9518_v60, %v7396_v58  ;;  %v9520_v57 = vpop.f32.mrb[63].mxu0 }
 0x69e   : > { %v14649_v59 = vadd.f32 %v9520_v57, %v7398_v17  ;;  %11779 = vmatmul.mubr.bf16.gmra.mrb[104].mxu1 %v21726_v19  ;;  %v22899_v19 = vld [vmem:[#allocation4_spill] sm:$0xff] }
 0x69f   : > { %v11899_v8 = vpack.c.bf16 %v14647_v56, %v14643_v4  ;;  %11788 = vmatprep.mubr.bf16.mxu1 %v21728_v27  ;;  %v1437_v27 = vsub.s32 2, %v21908_v0 }
 0x6a0   : > { %v11900_v22 = vpack.c.bf16 %v14649_v59, %v14645_v47 }
 0x6a2   : > { %12481 = vmatprep.mubr.bf16.mxu0 %v11900_v22 }
 0x6a3   : > { %12482 = vmatmul.mubr.bf16.gmra.mrb[124].mxu0 %v11899_v8 }
 0x6a6   : > { %11789 = vmatmul.mubr.bf16.gmra.mrb[108].mxu1 %v21748_v25  ;;  %v1441_v25 = vsub.s32 3, %v21908_v0 }
 0x6a7   : > { %11798 = vmatprep.mubr.bf16.mxu1 %v21750_v2  ;;  %v22199_v2 = vrot.slane %v21916_v50, %v1437_v27 }
 0x6a8   : > { %v22202_v21 = vrot.slane %v21916_v50, %v1441_v25 }
 0x6ae   : > { %11799 = vmatmul.mubr.bf16.gmra.mrb[112].mxu1 %v22899_v19 }
 0x6af   : > { %11808 = vmatprep.mubr.bf16.mxu1 %v22900_v29 }
 0x6b6   : > { %11809 = vmatmul.mubr.bf16.gmra.mrb[116].mxu1 %v21774_v63 }
 0x6b7   : > { %11818 = vmatprep.mubr.bf16.mxu1 %v21776_v49 }
 0x6be   : > { %11819 = vmatmul.mubr.bf16.gmra.mrb[120].mxu1 %v21784_v23 }
 0x6bf   : > { %11828 = vmatprep.mubr.bf16.mxu1 %v21786_v55 }
 0x6c6   : > { %11829 = vmatmul.mubr.bf16.gmra.mrb[124].mxu1 %v21792_v46 }
 0x721   : > { %v11680_v39 = vpop.f32.mrb[64].mxu1 }
 0x722   : > { %v11682_v63 = vpop.f32.mrb[65].mxu1  ;;  %v14650_v49 = vadd.f32 %v11680_v39, %v22199_v2 }
 0x723   : > { %v11684_v52 = vpop.f32.mrb[66].mxu1  ;;  %v14651_v46 = vadd.f32 %v11682_v63, %v22202_v21 }
 0x724   : > { %v14652_v23 = vadd.f32 %v11684_v52, %v22199_v2  ;;  %v11686_v55 = vpop.f32.mrb[67].mxu1 }
 0x725   : > { %v14653_v9 = vadd.f32 %v11686_v55, %v22202_v21 }
 0x726   : > { %v11841_v16 = vpack.c.bf16 %v14652_v23, %v14650_v49 }
 0x727   : > { %v11842_v43 = vpack.c.bf16 %v14653_v9, %v14651_v46 }
 0x729   : > { %v11690_v32 = vpop.f32.mrb[68].mxu1  ;;  %12524 = vmatprep.mubr.bf16.mxu0 %v11842_v43 }
 0x72a   : > { %v11692_v51 = vpop.f32.mrb[69].mxu1  ;;  %12525 = vmatmul.mubr.bf16.vlgmr.msra.gmra.mrb[64].mxu0 %v11841_v16  ;;  %v14654_v50 = vadd.f32 %v11690_v32, %v22199_v2 }
 0x72b   : > { %v11694_v54 = vpop.f32.mrb[70].mxu1  ;;  %v14655_v40 = vadd.f32 %v11692_v51, %v22202_v21 }
 0x72c   : > { %v14656_v10 = vadd.f32 %v11694_v54, %v22199_v2  ;;  %v11696_v24 = vpop.f32.mrb[71].mxu1 }
 0x72d   : > { %v14657_v18 = vadd.f32 %v11696_v24, %v22202_v21 }
 0x72e   : > { %v11845_v48 = vpack.c.bf16 %v14656_v10, %v14654_v50 }
 0x72f   : > { %v11846_v42 = vpack.c.bf16 %v14657_v18, %v14655_v40 }
 0x731   : > { %v11700_v34 = vpop.f32.mrb[72].mxu1  ;;  %12534 = vmatprep.mubr.bf16.mxu0 %v11846_v42 }
 0x732   : > { %v11702_v14 = vpop.f32.mrb[73].mxu1  ;;  %12535 = vmatmul.mubr.bf16.gmra.mrb[68].mxu0 %v11845_v48  ;;  %v14658_v15 = vadd.f32 %v11700_v34, %v22199_v2 }
 0x733   : > { %v11704_v41 = vpop.f32.mrb[74].mxu1  ;;  %v14659_v7 = vadd.f32 %v11702_v14, %v22202_v21 }
 0x734   : > { %v14660_v33 = vadd.f32 %v11704_v41, %v22199_v2  ;;  %v11706_v28 = vpop.f32.mrb[75].mxu1 }
 0x735   : > { %v14661_v13 = vadd.f32 %v11706_v28, %v22202_v21 }
 0x736   : > { %v11849_v31 = vpack.c.bf16 %v14660_v33, %v14658_v15 }
 0x737   : > { %v11850_v1 = vpack.c.bf16 %v14661_v13, %v14659_v7 }
 0x739   : > { %v11710_v5 = vpop.f32.mrb[76].mxu1  ;;  %12544 = vmatprep.mubr.bf16.mxu0 %v11850_v1 }
 0x73a   : > { %v11712_v37 = vpop.f32.mrb[77].mxu1  ;;  %12545 = vmatmul.mubr.bf16.gmra.mrb[72].mxu0 %v11849_v31  ;;  %v14662_v53 = vadd.f32 %v11710_v5, %v22199_v2 }
 0x73b   : > { %v11714_v20 = vpop.f32.mrb[78].mxu1  ;;  %v14663_v11 = vadd.f32 %v11712_v37, %v22202_v21 }
 0x73c   : > { %v14664_v35 = vadd.f32 %v11714_v20, %v22199_v2  ;;  %v11716_v6 = vpop.f32.mrb[79].mxu1 }
 0x73d   : > { %v14665_v36 = vadd.f32 %v11716_v6, %v22202_v21 }
 0x73e   : > { %v11853_v61 = vpack.c.bf16 %v14664_v35, %v14662_v53 }
 0x73f   : > { %v11854_v26 = vpack.c.bf16 %v14665_v36, %v14663_v11 }
 0x741   : > { %v11720_v3 = vpop.f32.mrb[80].mxu1  ;;  %12554 = vmatprep.mubr.bf16.mxu0 %v11854_v26 }
 0x742   : > { %v11722_v58 = vpop.f32.mrb[81].mxu1  ;;  %12555 = vmatmul.mubr.bf16.gmra.mrb[76].mxu0 %v11853_v61  ;;  %v14666_v45 = vadd.f32 %v11720_v3, %v22199_v2 }
 0x743   : > { %v11724_v4 = vpop.f32.mrb[82].mxu1  ;;  %v14667_v47 = vadd.f32 %v11722_v58, %v22202_v21 }
 0x744   : > { %v14668_v44 = vadd.f32 %v11724_v4, %v22199_v2  ;;  %v11726_v17 = vpop.f32.mrb[83].mxu1 }
 0x745   : > { %v14669_v60 = vadd.f32 %v11726_v17, %v22202_v21 }
 0x746   : > { %v11857_v56 = vpack.c.bf16 %v14668_v44, %v14666_v45 }
 0x747   : > { %v11858_v57 = vpack.c.bf16 %v14669_v60, %v14667_v47 }
 0x749   : > { %v11730_v59 = vpop.f32.mrb[84].mxu1  ;;  %12564 = vmatprep.mubr.bf16.mxu0 %v11858_v57 }
 0x74a   : > { %v11732_v8 = vpop.f32.mrb[85].mxu1  ;;  %12565 = vmatmul.mubr.bf16.gmra.mrb[80].mxu0 %v11857_v56  ;;  %v14670_v62 = vadd.f32 %v11730_v59, %v22199_v2 }
 0x74b   : > { %v11734_v22 = vpop.f32.mrb[86].mxu1  ;;  %v14671_v29 = vadd.f32 %v11732_v8, %v22202_v21 }
 0x74c   : > { %v14672_v30 = vadd.f32 %v11734_v22, %v22199_v2  ;;  %v11736_v19 = vpop.f32.mrb[87].mxu1 }
 0x74d   : > { %v14673_v27 = vadd.f32 %v11736_v19, %v22202_v21 }
 0x74e   : > { %v11861_v25 = vpack.c.bf16 %v14672_v30, %v14670_v62 }
 0x74f   : > { %v11862_v39 = vpack.c.bf16 %v14673_v27, %v14671_v29 }
 0x751   : > { %v11740_v63 = vpop.f32.mrb[88].mxu1  ;;  %12574 = vmatprep.mubr.bf16.mxu0 %v11862_v39 }
 0x752   : > { %v11742_v52 = vpop.f32.mrb[89].mxu1  ;;  %12575 = vmatmul.mubr.bf16.gmra.mrb[84].mxu0 %v11861_v25  ;;  %v14674_v23 = vadd.f32 %v11740_v63, %v22199_v2 }
 0x753   : > { %v11744_v49 = vpop.f32.mrb[90].mxu1  ;;  %v14675_v9 = vadd.f32 %v11742_v52, %v22202_v21 }
 0x754   : > { %v14676_v55 = vadd.f32 %v11744_v49, %v22199_v2  ;;  %v11746_v46 = vpop.f32.mrb[91].mxu1 }
 0x755   : > { %v14677_v16 = vadd.f32 %v11746_v46, %v22202_v21 }
 0x756   : > { %v11865_v43 = vpack.c.bf16 %v14676_v55, %v14674_v23 }
 0x757   : > { %v11866_v32 = vpack.c.bf16 %v14677_v16, %v14675_v9 }
 0x759   : > { %v11750_v51 = vpop.f32.mrb[92].mxu1  ;;  %12584 = vmatprep.mubr.bf16.mxu0 %v11866_v32 }
 0x75a   : > { %v11752_v54 = vpop.f32.mrb[93].mxu1  ;;  %12585 = vmatmul.mubr.bf16.gmra.mrb[88].mxu0 %v11865_v43  ;;  %v14678_v10 = vadd.f32 %v11750_v51, %v22199_v2 }
 0x75b   : > { %v11754_v50 = vpop.f32.mrb[94].mxu1  ;;  %v14679_v18 = vadd.f32 %v11752_v54, %v22202_v21 }
 0x75c   : > { %v14680_v24 = vadd.f32 %v11754_v50, %v22199_v2  ;;  %v11756_v40 = vpop.f32.mrb[95].mxu1 }
 0x75d   : > { %v14681_v48 = vadd.f32 %v11756_v40, %v22202_v21 }
 0x75e   : > { %v11869_v42 = vpack.c.bf16 %v14680_v24, %v14678_v10 }
 0x75f   : > { %v11870_v34 = vpack.c.bf16 %v14681_v48, %v14679_v18 }
 0x761   : > { %v11760_v14 = vpop.f32.mrb[96].mxu1  ;;  %12594 = vmatprep.mubr.bf16.mxu0 %v11870_v34 }
 0x762   : > { %v11762_v41 = vpop.f32.mrb[97].mxu1  ;;  %12595 = vmatmul.mubr.bf16.gmra.mrb[92].mxu0 %v11869_v42  ;;  %v14682_v33 = vadd.f32 %v11760_v14, %v22199_v2 }
 0x763   : > { %v11764_v15 = vpop.f32.mrb[98].mxu1  ;;  %v14683_v13 = vadd.f32 %v11762_v41, %v22202_v21 }
 0x764   : > { %v14684_v28 = vadd.f32 %v11764_v15, %v22199_v2  ;;  %v11766_v7 = vpop.f32.mrb[99].mxu1 }
 0x765   : > { %v14685_v31 = vadd.f32 %v11766_v7, %v22202_v21 }
 0x766   : > { %v11873_v1 = vpack.c.bf16 %v14684_v28, %v14682_v33 }
 0x767   : > { %v11874_v5 = vpack.c.bf16 %v14685_v31, %v14683_v13 }
 0x769   : > { %v11770_v37 = vpop.f32.mrb[100].mxu1  ;;  %12604 = vmatprep.mubr.bf16.mxu0 %v11874_v5 }
 0x76a   : > { %v11772_v20 = vpop.f32.mrb[101].mxu1  ;;  %12605 = vmatmul.mubr.bf16.gmra.mrb[96].mxu0 %v11873_v1  ;;  %v14686_v35 = vadd.f32 %v11770_v37, %v22199_v2 }
 0x76b   : > { %v11774_v53 = vpop.f32.mrb[102].mxu1  ;;  %v14687_v36 = vadd.f32 %v11772_v20, %v22202_v21 }
 0x76c   : > { %v14688_v6 = vadd.f32 %v11774_v53, %v22199_v2  ;;  %v11776_v11 = vpop.f32.mrb[103].mxu1 }
 0x76d   : > { %v14689_v61 = vadd.f32 %v11776_v11, %v22202_v21 }
 0x76e   : > { %v11877_v26 = vpack.c.bf16 %v14688_v6, %v14686_v35 }
 0x76f   : > { %v11878_v3 = vpack.c.bf16 %v14689_v61, %v14687_v36 }
 0x771   : > { %v11780_v58 = vpop.f32.mrb[104].mxu1  ;;  %12614 = vmatprep.mubr.bf16.mxu0 %v11878_v3 }
 0x772   : > { %v11782_v4 = vpop.f32.mrb[105].mxu1  ;;  %12615 = vmatmul.mubr.bf16.gmra.mrb[100].mxu0 %v11877_v26  ;;  %v14690_v44 = vadd.f32 %v11780_v58, %v22199_v2 }
 0x773   : > { %v11784_v45 = vpop.f32.mrb[106].mxu1  ;;  %v14691_v60 = vadd.f32 %v11782_v4, %v22202_v21  ;;  %v22269_v4 = vstv %s14517_s17 }
 0x774   : > { %v14692_v17 = vadd.f32 %v11784_v45, %v22199_v2  ;;  %v11786_v47 = vpop.f32.mrb[107].mxu1  ;;  %v11967_v45 = vld [vmem:[%s22554_s4] sm:$0x3] }
 0x775   : > { %v14693_v56 = vadd.f32 %v11786_v47, %v22202_v21 }
 0x776   : > { %v11881_v57 = vpack.c.bf16 %v14692_v17, %v14690_v44  ;;  %v12752_v44 = vadd.s32 8, %v21908_v0  ;;  %v22284_v17 = vrot.slane %v11967_v45, %v1433_v38  ;;  %v12754_v38 = vadd.s32 24, %v21908_v0 }
 0x777   : > { %v11882_v59 = vpack.c.bf16 %v14693_v56, %v14691_v60  ;;  %v12753_v56 = vadd.s32 16, %v21908_v0 }
 0x778   : > { %v12785_v47 = vadd.s32 %v22269_v4, %v12752_v44 }
 0x779   : > { %v11790_v8 = vpop.f32.mrb[108].mxu1  ;;  %12624 = vmatprep.mubr.bf16.mxu0 %v11882_v59 }
 0x77a   : > { %v11792_v22 = vpop.f32.mrb[109].mxu1  ;;  %12625 = vmatmul.mubr.bf16.gmra.mrb[104].mxu0 %v11881_v57  ;;  %v14694_v30 = vadd.f32 %v11790_v8, %v22199_v2  ;;  %vm12817_vm1 = vcmp.lt.s32.totalorder %v12785_v47, 300 }
 0x77b   : > { %v11794_v62 = vpop.f32.mrb[110].mxu1  ;;  %v14695_v27 = vadd.f32 %v11792_v22, %v22202_v21 }
 0x77c   : > { %v14696_v19 = vadd.f32 %v11794_v62, %v22199_v2  ;;  %v11796_v29 = vpop.f32.mrb[111].mxu1 }
 0x77d   : > { %v14697_v25 = vadd.f32 %v11796_v29, %v22202_v21 }
 0x77e   : > { %v11885_v39 = vpack.c.bf16 %v14696_v19, %v14694_v30 }
 0x77f   : > { %v11886_v63 = vpack.c.bf16 %v14697_v25, %v14695_v27  ;;  %v12786_v27 = vadd.s32 %v22269_v4, %v12753_v56 }
 0x781   : > { %v11800_v52 = vpop.f32.mrb[112].mxu1  ;;  %12634 = vmatprep.mubr.bf16.mxu0 %v11886_v63  ;;  %vm12818_vm2 = vcmp.lt.s32.totalorder %v12786_v27, 300 }
 0x782   : > { %v11802_v49 = vpop.f32.mrb[113].mxu1  ;;  %12635 = vmatmul.mubr.bf16.gmra.mrb[108].mxu0 %v11885_v39  ;;  %v14698_v55 = vadd.f32 %v11800_v52, %v22199_v2  ;;  %v12787_v39 = vadd.s32 %v22269_v4, %v12754_v38 }
 0x783   : > { %v11804_v23 = vpop.f32.mrb[114].mxu1  ;;  %v14699_v16 = vadd.f32 %v11802_v49, %v22202_v21 }
 0x784   : > { %v14700_v46 = vadd.f32 %v11804_v23, %v22199_v2  ;;  %v11806_v9 = vpop.f32.mrb[115].mxu1  ;;  %vm12819_vm3 = vcmp.lt.s32.totalorder %v12787_v39, 300 }
 0x785   : > { %v14701_v43 = vadd.f32 %v11806_v9, %v22202_v21 }
 0x786   : > { %v11889_v32 = vpack.c.bf16 %v14700_v46, %v14698_v55 }
 0x787   : > { %v11890_v51 = vpack.c.bf16 %v14701_v43, %v14699_v16  ;;  %v12755_v16 = vadd.s32 32, %v21908_v0 }
 0x789   : > { %v11810_v54 = vpop.f32.mrb[116].mxu1  ;;  %12644 = vmatprep.mubr.bf16.mxu0 %v11890_v51 }
 0x78a   : > { %v11812_v50 = vpop.f32.mrb[117].mxu1  ;;  %12645 = vmatmul.mubr.bf16.gmra.mrb[112].mxu0 %v11889_v32  ;;  %v14702_v24 = vadd.f32 %v11810_v54, %v22199_v2 }
 0x78b   : > { %v11814_v10 = vpop.f32.mrb[118].mxu1  ;;  %v14703_v48 = vadd.f32 %v11812_v50, %v22202_v21 }
 0x78c   : > { %v14704_v40 = vadd.f32 %v11814_v10, %v22199_v2  ;;  %v11816_v18 = vpop.f32.mrb[119].mxu1  ;;  %v12756_v10 = vadd.s32 40, %v21908_v0 }
 0x78d   : > { %v14705_v42 = vadd.f32 %v11816_v18, %v22202_v21 }
 0x78e   : > { %v11893_v34 = vpack.c.bf16 %v14704_v40, %v14702_v24 }
 0x78f   : > { %v11894_v14 = vpack.c.bf16 %v14705_v42, %v14703_v48 }
 0x791   : > { %v11820_v41 = vpop.f32.mrb[120].mxu1  ;;  %12654 = vmatprep.mubr.bf16.mxu0 %v11894_v14 }
 0x792   : > { %v11822_v15 = vpop.f32.mrb[121].mxu1  ;;  %12655 = vmatmul.mubr.bf16.gmra.mrb[116].mxu0 %v11893_v34  ;;  %v14706_v28 = vadd.f32 %v11820_v41, %v22199_v2  ;;  %v12788_v34 = vadd.s32 %v22269_v4, %v12755_v16 }
 0x793   : > { %v11824_v33 = vpop.f32.mrb[122].mxu1  ;;  %v14707_v31 = vadd.f32 %v11822_v15, %v22202_v21 }
 0x794   : > { %v14708_v7 = vadd.f32 %v11824_v33, %v22199_v2  ;;  %v11826_v13 = vpop.f32.mrb[123].mxu1  ;;  %vm12820_vm4 = vcmp.lt.s32.totalorder %v12788_v34, 300 }
 0x795   : > { %v14709_v1 = vadd.f32 %v11826_v13, %v22202_v21 }
 0x796   : > { %v11897_v5 = vpack.c.bf16 %v14708_v7, %v14706_v28 }
 0x797   : > { %v11898_v37 = vpack.c.bf16 %v14709_v1, %v14707_v31  ;;  %v12789_v31 = vadd.s32 %v22269_v4, %v12756_v10 }
 0x799   : > { %v11830_v20 = vpop.f32.mrb[124].mxu1  ;;  %12664 = vmatprep.mubr.bf16.mxu0 %v11898_v37  ;;  %vm12821_vm5 = vcmp.lt.s32.totalorder %v12789_v31, 300 }
 0x79a   : > { %v11832_v53 = vpop.f32.mrb[125].mxu1  ;;  %12665 = vmatmul.mubr.bf16.gmra.mrb[120].mxu0 %v11897_v5  ;;  %v14710_v6 = vadd.f32 %v11830_v20, %v22199_v2 }
 0x79b   : > { %v11834_v35 = vpop.f32.mrb[126].mxu1  ;;  %v14711_v61 = vadd.f32 %v11832_v53, %v22202_v21 }
 0x79c   : > { %v14712_v11 = vadd.f32 %v11834_v35, %v22199_v2  ;;  %v11836_v36 = vpop.f32.mrb[127].mxu1  ;;  %v12784_v2 = vadd.s32 %v22269_v4, %v21908_v0 }
 0x79d   : > { %v14713_v26 = vadd.f32 %v11836_v36, %v22202_v21  ;;  %v22280_v21 = vrot.slane %v11967_v45, %v1429_v12  ;;  %v12758_v45 = vadd.s32 56, %v21908_v0 }
 0x79e   : > { %v11901_v3 = vpack.c.bf16 %v14712_v11, %v14710_v6  ;;  %vm12816_vm0 = vcmp.lt.s32.totalorder %v12784_v2, 300  ;;  %v12757_v11 = vadd.s32 48, %v21908_v0 }
 0x79f   : > { %v11902_v58 = vpack.c.bf16 %v14713_v26, %v14711_v61 }
 0x7a1   : > { %12674 = vmatprep.mubr.bf16.mxu0 %v11902_v58 }
 0x7a2   : > { %12675 = vmatmul.mubr.bf16.gmra.mrb[124].mxu0 %v11901_v3 }
 0x7fd   : > { %v12526_v60 = vpop.f32.mrb[64].mxu0 }
 0x7fe   : > { %v14714_v12 = vadd.f32 %v12526_v60, %v22280_v21  ;;  %v12528_v57 = vpop.f32.mrb[65].mxu0 }
 0x7ff   : > { %v14715_v59 = vadd.f32 %v12528_v57, %v22284_v17  ;;  %v12530_v8 = vpop.f32.mrb[66].mxu0 }
 0x800   : > { %12685 = vst [vmem:[%s22290_s25] sm:$0xff] %v14714_v12  ;;  %v12912_v22 = vsel %vm12816_vm0, %v14714_v12, 0.0  ;;  %v14716_v62 = vadd.f32 %v12530_v8, %v22280_v21  ;;  %v12532_v30 = vpop.f32.mrb[67].mxu0  ;;  %v12790_v12 = vadd.s32 %v22269_v4, %v12757_v11 }
 0x801   : > { %12686 = vst [vmem:[%s22290_s25 + $0x8] sm:$0xff] %v14715_v59  ;;  %v12913_v19 = vsel %vm12816_vm0, %v14715_v59, 0.0  ;;  %v14717_v29 = vadd.f32 %v12532_v30, %v22284_v17  ;;  %v13050_v63 = vmul.f32 %v12912_v22, %v12912_v22 }
 0x802   : > { %12687 = vst [vmem:[%s22290_s25 + $0x10] sm:$0xff] %v14716_v62  ;;  %v12914_v25 = vsel %vm12817_vm1, %v14716_v62, 0.0  ;;  %v13051_v55 = vmul.f32 %v12913_v19, %v12913_v19  ;;  %vm12822_vm6 = vcmp.lt.s32.totalorder %v12790_v12, 300 }
 0x803   : > { %v12976_v52 = vadd.f32 %v12914_v25, %v12912_v22  ;;  %v13052_v49 = vmul.f32 %v12914_v25, %v12914_v25  ;;  %12688 = vst [vmem:[%s22290_s25 + $0x18] sm:$0xff] %v14717_v29  ;;  %v12915_v23 = vsel %vm12817_vm1, %v14717_v29, 0.0 }
 0x804   : > { %v13013_v46 = vadd.f32 %v12915_v23, %v12913_v19  ;;  %v13053_v9 = vmul.f32 %v12915_v23, %v12915_v23  ;;  %v12791_v19 = vadd.s32 %v22269_v4, %v12758_v45  ;;  %v12759_v23 = vadd.s32 64, %v21908_v0 }
 0x805   : > { %v13114_v43 = vadd.f32 %v13052_v49, %v13050_v63  ;;  %v12536_v32 = vpop.f32.mrb[68].mxu0 }
 0x806   : > { %v13151_v51 = vadd.f32 %v13053_v9, %v13051_v55  ;;  %v14718_v54 = vadd.f32 %v12536_v32, %v22280_v21  ;;  %v12538_v50 = vpop.f32.mrb[69].mxu0  ;;  %v12760_v32 = vadd.s32 72, %v21908_v0  ;;  %vm12823_vm7 = vcmp.lt.s32.totalorder %v12791_v19, 300 }
 0x807   : > { %v14719_v24 = vadd.f32 %v12538_v50, %v22284_v17  ;;  %v12540_v40 = vpop.f32.mrb[70].mxu0 }
 0x808   : > { %12689 = vst [vmem:[%s22290_s25 + $0x20] sm:$0xff] %v14718_v54  ;;  %v12916_v18 = vsel %vm12818_vm2, %v14718_v54, 0.0  ;;  %v14720_v48 = vadd.f32 %v12540_v40, %v22280_v21  ;;  %v12542_v42 = vpop.f32.mrb[71].mxu0  ;;  %v12792_v40 = vadd.s32 %v22269_v4, %v12759_v23 }
 0x809   : > { %v12977_v14 = vadd.f32 %v12976_v52, %v12916_v18  ;;  %v13054_v41 = vmul.f32 %v12916_v18, %v12916_v18  ;;  %12690 = vst [vmem:[%s22290_s25 + $0x28] sm:$0xff] %v14719_v24  ;;  %v12917_v15 = vsel %vm12818_vm2, %v14719_v24, 0.0  ;;  %v14721_v33 = vadd.f32 %v12542_v42, %v22284_v17 }
 0x80a   : > { %v13014_v28 = vadd.f32 %v13013_v46, %v12917_v15  ;;  %v13055_v7 = vmul.f32 %v12917_v15, %v12917_v15  ;;  %12691 = vst [vmem:[%s22290_s25 + $0x30] sm:$0xff] %v14720_v48  ;;  %v12918_v13 = vsel %vm12819_vm3, %v14720_v48, 0.0  ;;  %vm12824_vm8 = vcmp.lt.s32.totalorder %v12792_v40, 300 }
 0x80b   : > { %v13115_v1 = vadd.f32 %v13114_v43, %v13054_v41  ;;  %v12978_v5 = vadd.f32 %v12977_v14, %v12918_v13  ;;  %v13056_v37 = vmul.f32 %v12918_v13, %v12918_v13  ;;  %12692 = vst [vmem:[%s22290_s25 + $0x38] sm:$0xff] %v14721_v33  ;;  %v12919_v20 = vsel %vm12819_vm3, %v14721_v33, 0.0 }
 0x80c   : > { %v13152_v53 = vadd.f32 %v13151_v51, %v13055_v7  ;;  %v13015_v35 = vadd.f32 %v13014_v28, %v12919_v20  ;;  %v13057_v6 = vmul.f32 %v12919_v20, %v12919_v20  ;;  %v12793_v33 = vadd.s32 %v22269_v4, %v12760_v32 }
 0x80d   : > { %v13116_v36 = vadd.f32 %v13115_v1, %v13056_v37  ;;  %v12546_v61 = vpop.f32.mrb[72].mxu0  ;;  %v12761_v20 = vadd.s32 80, %v21908_v0 }
 0x80e   : > { %v13153_v26 = vadd.f32 %v13152_v53, %v13057_v6  ;;  %v14722_v3 = vadd.f32 %v12546_v61, %v22280_v21  ;;  %v12548_v58 = vpop.f32.mrb[73].mxu0  ;;  %v12762_v61 = vadd.s32 88, %v21908_v0  ;;  %vm12825_vm9 = vcmp.lt.s32.totalorder %v12793_v33, 300 }
 0x80f   : > { %v14723_v44 = vadd.f32 %v12548_v58, %v22284_v17  ;;  %v12550_v2 = vpop.f32.mrb[74].mxu0 }
 0x810   : > { %12693 = vst [vmem:[%s22290_s25 + $0x40] sm:$0xff] %v14722_v3  ;;  %v12920_v47 = vsel %vm12820_vm4, %v14722_v3, 0.0  ;;  %v14724_v60 = vadd.f32 %v12550_v2, %v22280_v21  ;;  %v12552_v56 = vpop.f32.mrb[75].mxu0  ;;  %v12794_v2 = vadd.s32 %v22269_v4, %v12761_v20 }
 0x811   : > { %v12979_v57 = vadd.f32 %v12978_v5, %v12920_v47  ;;  %v13058_v38 = vmul.f32 %v12920_v47, %v12920_v47  ;;  %12694 = vst [vmem:[%s22290_s25 + $0x48] sm:$0xff] %v14723_v44  ;;  %v12921_v59 = vsel %vm12820_vm4, %v14723_v44, 0.0  ;;  %v14725_v8 = vadd.f32 %v12552_v56, %v22284_v17 }
 0x812   : > { %v13016_v22 = vadd.f32 %v13015_v35, %v12921_v59  ;;  %v13059_v62 = vmul.f32 %v12921_v59, %v12921_v59  ;;  %12695 = vst [vmem:[%s22290_s25 + $0x50] sm:$0xff] %v14724_v60  ;;  %v12922_v30 = vsel %vm12821_vm5, %v14724_v60, 0.0  ;;  %vm12826_vm10 = vcmp.lt.s32.totalorder %v12794_v2, 300 }
 0x813   : > { %v13117_v29 = vadd.f32 %v13116_v36, %v13058_v38  ;;  %v12980_v27 = vadd.f32 %v12979_v57, %v12922_v30  ;;  %v13060_v25 = vmul.f32 %v12922_v30, %v12922_v30  ;;  %12696 = vst [vmem:[%s22290_s25 + $0x58] sm:$0xff] %v14725_v8  ;;  %v12923_v39 = vsel %vm12821_vm5, %v14725_v8, 0.0 }
 0x814   : > { %v13154_v63 = vadd.f32 %v13153_v26, %v13059_v62  ;;  %v13017_v52 = vadd.f32 %v13016_v22, %v12923_v39  ;;  %v13061_v49 = vmul.f32 %v12923_v39, %v12923_v39  ;;  %v12795_v8 = vadd.s32 %v22269_v4, %v12762_v61 }
 0x815   : > { %v13118_v55 = vadd.f32 %v13117_v29, %v13060_v25  ;;  %v12556_v46 = vpop.f32.mrb[76].mxu0  ;;  %v12763_v39 = vadd.s32 96, %v21908_v0 }
 0x816   : > { %v13155_v9 = vadd.f32 %v13154_v63, %v13061_v49  ;;  %v14726_v16 = vadd.f32 %v12556_v46, %v22280_v21  ;;  %v12558_v43 = vpop.f32.mrb[77].mxu0  ;;  %v12764_v46 = vadd.s32 104, %v21908_v0  ;;  %vm12827_vm11 = vcmp.lt.s32.totalorder %v12795_v8, 300 }
 0x817   : > { %v14727_v51 = vadd.f32 %v12558_v43, %v22284_v17  ;;  %v12560_v54 = vpop.f32.mrb[78].mxu0 }
 0x818   : > { %12697 = vst [vmem:[%s22290_s25 + $0x60] sm:$0xff] %v14726_v16  ;;  %v12924_v50 = vsel %vm12822_vm6, %v14726_v16, 0.0  ;;  %v14728_v10 = vadd.f32 %v12560_v54, %v22280_v21  ;;  %v12562_v24 = vpop.f32.mrb[79].mxu0  ;;  %v12796_v54 = vadd.s32 %v22269_v4, %v12763_v39 }
 0x819   : > { %v12981_v18 = vadd.f32 %v12980_v27, %v12924_v50  ;;  %v13062_v48 = vmul.f32 %v12924_v50, %v12924_v50  ;;  %12698 = vst [vmem:[%s22290_s25 + $0x68] sm:$0xff] %v14727_v51  ;;  %v12925_v42 = vsel %vm12822_vm6, %v14727_v51, 0.0  ;;  %v14729_v34 = vadd.f32 %v12562_v24, %v22284_v17 }
 0x81a   : > { %v13018_v14 = vadd.f32 %v13017_v52, %v12925_v42  ;;  %v13063_v41 = vmul.f32 %v12925_v42, %v12925_v42  ;;  %12699 = vst [vmem:[%s22290_s25 + $0x70] sm:$0xff] %v14728_v10  ;;  %v12926_v15 = vsel %vm12823_vm7, %v14728_v10, 0.0  ;;  %vm12828_vm12 = vcmp.lt.s32.totalorder %v12796_v54, 300 }
 0x81b   : > { %v13119_v28 = vadd.f32 %v13118_v55, %v13062_v48  ;;  %v12982_v7 = vadd.f32 %v12981_v18, %v12926_v15  ;;  %v13064_v13 = vmul.f32 %v12926_v15, %v12926_v15  ;;  %12700 = vst [vmem:[%s22290_s25 + $0x78] sm:$0xff] %v14729_v34  ;;  %v12927_v31 = vsel %vm12823_vm7, %v14729_v34, 0.0 }
 0x81c   : > { %v13156_v1 = vadd.f32 %v13155_v9, %v13063_v41  ;;  %v13019_v5 = vadd.f32 %v13018_v14, %v12927_v31  ;;  %v13065_v37 = vmul.f32 %v12927_v31, %v12927_v31  ;;  %v12797_v34 = vadd.s32 %v22269_v4, %v12764_v46 }
 0x81d   : > { %v13120_v53 = vadd.f32 %v13119_v28, %v13064_v13  ;;  %v12566_v35 = vpop.f32.mrb[80].mxu0  ;;  %v12765_v31 = vadd.s32 112, %v21908_v0 }
 0x81e   : > { %v13157_v6 = vadd.f32 %v13156_v1, %v13065_v37  ;;  %v14730_v11 = vadd.f32 %v12566_v35, %v22280_v21  ;;  %v12568_v36 = vpop.f32.mrb[81].mxu0  ;;  %v12766_v35 = vadd.s32 120, %v21908_v0  ;;  %vm12829_vm13 = vcmp.lt.s32.totalorder %v12797_v34, 300 }
 0x81f   : > { %v14731_v26 = vadd.f32 %v12568_v36, %v22284_v17  ;;  %v12570_v3 = vpop.f32.mrb[82].mxu0 }
 0x820   : > { %12701 = vst [vmem:[%s22290_s25 + $0x80] sm:$0xff] %v14730_v11  ;;  %v12928_v58 = vsel %vm12824_vm8, %v14730_v11, 0.0  ;;  %v14732_v45 = vadd.f32 %v12570_v3, %v22280_v21  ;;  %v12572_v44 = vpop.f32.mrb[83].mxu0  ;;  %v12798_v3 = vadd.s32 %v22269_v4, %v12765_v31 }
 0x821   : > { %v12983_v47 = vadd.f32 %v12982_v7, %v12928_v58  ;;  %v13066_v60 = vmul.f32 %v12928_v58, %v12928_v58  ;;  %12702 = vst [vmem:[%s22290_s25 + $0x88] sm:$0xff] %v14731_v26  ;;  %v12929_v56 = vsel %vm12824_vm8, %v14731_v26, 0.0  ;;  %v14733_v12 = vadd.f32 %v12572_v44, %v22284_v17 }
 0x822   : > { %v13020_v57 = vadd.f32 %v13019_v5, %v12929_v56  ;;  %v13067_v38 = vmul.f32 %v12929_v56, %v12929_v56  ;;  %12703 = vst [vmem:[%s22290_s25 + $0x90] sm:$0xff] %v14732_v45  ;;  %v12930_v59 = vsel %vm12825_vm9, %v14732_v45, 0.0  ;;  %vm12830_vm14 = vcmp.lt.s32.totalorder %v12798_v3, 300 }
 0x823   : > { %v13121_v22 = vadd.f32 %v13120_v53, %v13066_v60  ;;  %v12984_v62 = vadd.f32 %v12983_v47, %v12930_v59  ;;  %v13068_v30 = vmul.f32 %v12930_v59, %v12930_v59  ;;  %12704 = vst [vmem:[%s22290_s25 + $0x98] sm:$0xff] %v14733_v12  ;;  %v12931_v19 = vsel %vm12825_vm9, %v14733_v12, 0.0 }
 0x824   : > { %v13158_v29 = vadd.f32 %v13157_v6, %v13067_v38  ;;  %v13021_v27 = vadd.f32 %v13020_v57, %v12931_v19  ;;  %v13069_v25 = vmul.f32 %v12931_v19, %v12931_v19  ;;  %v12799_v12 = vadd.s32 %v22269_v4, %v12766_v35 }
 0x825   : > { %v13122_v63 = vadd.f32 %v13121_v22, %v13068_v30  ;;  %v12576_v52 = vpop.f32.mrb[84].mxu0  ;;  %v12767_v19 = vadd.s32 128, %v21908_v0 }
 0x826   : > { %v13159_v49 = vadd.f32 %v13158_v29, %v13069_v25  ;;  %v14734_v23 = vadd.f32 %v12576_v52, %v22280_v21  ;;  %v12578_v55 = vpop.f32.mrb[85].mxu0  ;;  %v12768_v52 = vadd.s32 136, %v21908_v0  ;;  %vm12831_vm15 = vcmp.lt.s32.totalorder %v12799_v12, 300 }
 0x827   : > { %v14735_v9 = vadd.f32 %v12578_v55, %v22284_v17  ;;  %v12580_v16 = vpop.f32.mrb[86].mxu0 }
 0x828   : > { %12705 = vst [vmem:[%s22290_s25 + $0xa0] sm:$0xff] %v14734_v23  ;;  %v12932_v43 = vsel %vm12826_vm10, %v14734_v23, 0.0  ;;  %v14736_v32 = vadd.f32 %v12580_v16, %v22280_v21  ;;  %v12582_v51 = vpop.f32.mrb[87].mxu0  ;;  %v12800_v16 = vadd.s32 %v22269_v4, %v12767_v19 }
 0x829   : > { %v12985_v50 = vadd.f32 %v12984_v62, %v12932_v43  ;;  %v13070_v10 = vmul.f32 %v12932_v43, %v12932_v43  ;;  %12706 = vst [vmem:[%s22290_s25 + $0xa8] sm:$0xff] %v14735_v9  ;;  %v12933_v24 = vsel %vm12826_vm10, %v14735_v9, 0.0  ;;  %v14737_v40 = vadd.f32 %v12582_v51, %v22284_v17 }
 0x82a   : > { %v13022_v18 = vadd.f32 %v13021_v27, %v12933_v24  ;;  %v13071_v48 = vmul.f32 %v12933_v24, %v12933_v24  ;;  %12707 = vst [vmem:[%s22290_s25 + $0xb0] sm:$0xff] %v14736_v32  ;;  %v12934_v42 = vsel %vm12827_vm11, %v14736_v32, 0.0  ;;  %vm12832_vm0 = vcmp.lt.s32.totalorder %v12800_v16, 300 }
 0x82b   : > { %v13123_v14 = vadd.f32 %v13122_v63, %v13070_v10  ;;  %v12986_v41 = vadd.f32 %v12985_v50, %v12934_v42  ;;  %v13072_v15 = vmul.f32 %v12934_v42, %v12934_v42  ;;  %12708 = vst [vmem:[%s22290_s25 + $0xb8] sm:$0xff] %v14737_v40  ;;  %v12935_v33 = vsel %vm12827_vm11, %v14737_v40, 0.0 }
 0x82c   : > { %v13160_v28 = vadd.f32 %v13159_v49, %v13071_v48  ;;  %v13023_v7 = vadd.f32 %v13022_v18, %v12935_v33  ;;  %v13073_v13 = vmul.f32 %v12935_v33, %v12935_v33  ;;  %v12801_v40 = vadd.s32 %v22269_v4, %v12768_v52 }
 0x82d   : > { %v13124_v1 = vadd.f32 %v13123_v14, %v13072_v15  ;;  %v12586_v5 = vpop.f32.mrb[88].mxu0  ;;  %v12769_v33 = vadd.s32 144, %v21908_v0 }
 0x82e   : > { %v13161_v37 = vadd.f32 %v13160_v28, %v13073_v13  ;;  %v14738_v20 = vadd.f32 %v12586_v5, %v22280_v21  ;;  %v12588_v53 = vpop.f32.mrb[89].mxu0  ;;  %v12770_v5 = vadd.s32 152, %v21908_v0  ;;  %vm12833_vm1 = vcmp.lt.s32.totalorder %v12801_v40, 300 }
 0x82f   : > { %v14739_v6 = vadd.f32 %v12588_v53, %v22284_v17  ;;  %v12590_v11 = vpop.f32.mrb[90].mxu0 }
 0x830   : > { %12709 = vst [vmem:[%s22290_s25 + $0xc0] sm:$0xff] %v14738_v20  ;;  %v12936_v36 = vsel %vm12828_vm12, %v14738_v20, 0.0  ;;  %v14740_v61 = vadd.f32 %v12590_v11, %v22280_v21  ;;  %v12592_v26 = vpop.f32.mrb[91].mxu0  ;;  %v12802_v11 = vadd.s32 %v22269_v4, %v12769_v33 }
 0x831   : > { %v12987_v58 = vadd.f32 %v12986_v41, %v12936_v36  ;;  %v13074_v45 = vmul.f32 %v12936_v36, %v12936_v36  ;;  %12710 = vst [vmem:[%s22290_s25 + $0xc8] sm:$0xff] %v14739_v6  ;;  %v12937_v44 = vsel %vm12828_vm12, %v14739_v6, 0.0  ;;  %v14741_v2 = vadd.f32 %v12592_v26, %v22284_v17 }
 0x832   : > { %v13024_v47 = vadd.f32 %v13023_v7, %v12937_v44  ;;  %v13075_v60 = vmul.f32 %v12937_v44, %v12937_v44  ;;  %12711 = vst [vmem:[%s22290_s25 + $0xd0] sm:$0xff] %v14740_v61  ;;  %v12938_v56 = vsel %vm12829_vm13, %v14740_v61, 0.0  ;;  %vm12834_vm2 = vcmp.lt.s32.totalorder %v12802_v11, 300 }
 0x833   : > { %v13125_v57 = vadd.f32 %v13124_v1, %v13074_v45  ;;  %v12988_v38 = vadd.f32 %v12987_v58, %v12938_v56  ;;  %v13076_v59 = vmul.f32 %v12938_v56, %v12938_v56  ;;  %12712 = vst [vmem:[%s22290_s25 + $0xd8] sm:$0xff] %v14741_v2  ;;  %v12939_v8 = vsel %vm12829_vm13, %v14741_v2, 0.0 }
 0x834   : > { %v13162_v22 = vadd.f32 %v13161_v37, %v13075_v60  ;;  %v13025_v62 = vadd.f32 %v13024_v47, %v12939_v8  ;;  %v13077_v30 = vmul.f32 %v12939_v8, %v12939_v8  ;;  %v12803_v2 = vadd.s32 %v22269_v4, %v12770_v5 }
 0x835   : > { %v13126_v29 = vadd.f32 %v13125_v57, %v13076_v59  ;;  %v12596_v27 = vpop.f32.mrb[92].mxu0  ;;  %v12771_v8 = vadd.s32 160, %v21908_v0 }
 0x836   : > { %v13163_v25 = vadd.f32 %v13162_v22, %v13077_v30  ;;  %v14742_v39 = vadd.f32 %v12596_v27, %v22280_v21  ;;  %v12598_v63 = vpop.f32.mrb[93].mxu0  ;;  %v12772_v27 = vadd.s32 168, %v21908_v0  ;;  %vm12835_vm3 = vcmp.lt.s32.totalorder %v12803_v2, 300 }
 0x837   : > { %v14743_v49 = vadd.f32 %v12598_v63, %v22284_v17  ;;  %v12600_v23 = vpop.f32.mrb[94].mxu0 }
 0x838   : > { %12713 = vst [vmem:[%s22290_s25 + $0xe0] sm:$0xff] %v14742_v39  ;;  %v12940_v55 = vsel %vm12830_vm14, %v14742_v39, 0.0  ;;  %v14744_v46 = vadd.f32 %v12600_v23, %v22280_v21  ;;  %v12602_v9 = vpop.f32.mrb[95].mxu0  ;;  %v12804_v23 = vadd.s32 %v22269_v4, %v12771_v8 }
 0x839   : > { %v12989_v43 = vadd.f32 %v12988_v38, %v12940_v55  ;;  %v13078_v32 = vmul.f32 %v12940_v55, %v12940_v55  ;;  %12714 = vst [vmem:[%s22290_s25 + $0xe8] sm:$0xff] %v14743_v49  ;;  %v12941_v51 = vsel %vm12830_vm14, %v14743_v49, 0.0  ;;  %v14745_v54 = vadd.f32 %v12602_v9, %v22284_v17 }
 0x83a   : > { %v13026_v50 = vadd.f32 %v13025_v62, %v12941_v51  ;;  %v13079_v10 = vmul.f32 %v12941_v51, %v12941_v51  ;;  %12715 = vst [vmem:[%s22290_s25 + $0xf0] sm:$0xff] %v14744_v46  ;;  %v12942_v24 = vsel %vm12831_vm15, %v14744_v46, 0.0  ;;  %vm12836_vm4 = vcmp.lt.s32.totalorder %v12804_v23, 300 }
 0x83b   : > { %v13127_v18 = vadd.f32 %v13126_v29, %v13078_v32  ;;  %v12990_v48 = vadd.f32 %v12989_v43, %v12942_v24  ;;  %v13080_v42 = vmul.f32 %v12942_v24, %v12942_v24  ;;  %12716 = vst [vmem:[%s22290_s25 + $0xf8] sm:$0xff] %v14745_v54  ;;  %v12943_v34 = vsel %vm12831_vm15, %v14745_v54, 0.0 }
 0x83c   : > { %v13164_v14 = vadd.f32 %v13163_v25, %v13079_v10  ;;  %v13027_v41 = vadd.f32 %v13026_v50, %v12943_v34  ;;  %v13081_v15 = vmul.f32 %v12943_v34, %v12943_v34  ;;  %v12805_v54 = vadd.s32 %v22269_v4, %v12772_v27 }
 0x83d   : > { %v13128_v28 = vadd.f32 %v13127_v18, %v13080_v42  ;;  %v12606_v7 = vpop.f32.mrb[96].mxu0  ;;  %v12773_v34 = vadd.s32 176, %v21908_v0 }
 0x83e   : > { %v13165_v13 = vadd.f32 %v13164_v14, %v13081_v15  ;;  %v14746_v31 = vadd.f32 %v12606_v7, %v22280_v21  ;;  %v12608_v1 = vpop.f32.mrb[97].mxu0  ;;  %v12774_v7 = vadd.s32 184, %v21908_v0  ;;  %vm12837_vm5 = vcmp.lt.s32.totalorder %v12805_v54, 300 }
 0x83f   : > { %v14747_v37 = vadd.f32 %v12608_v1, %v22284_v17  ;;  %v12610_v20 = vpop.f32.mrb[98].mxu0 }
 0x840   : > { %12717 = vst [vmem:[%s22290_s25 + $0x100] sm:$0xff] %v14746_v31  ;;  %v12944_v53 = vsel %vm12832_vm0, %v14746_v31, 0.0  ;;  %v14748_v35 = vadd.f32 %v12610_v20, %v22280_v21  ;;  %v12612_v6 = vpop.f32.mrb[99].mxu0  ;;  %v12806_v20 = vadd.s32 %v22269_v4, %v12773_v34 }
 0x841   : > { %v12991_v36 = vadd.f32 %v12990_v48, %v12944_v53  ;;  %v13082_v61 = vmul.f32 %v12944_v53, %v12944_v53  ;;  %12718 = vst [vmem:[%s22290_s25 + $0x108] sm:$0xff] %v14747_v37  ;;  %v12945_v26 = vsel %vm12832_vm0, %v14747_v37, 0.0  ;;  %v14749_v3 = vadd.f32 %v12612_v6, %v22284_v17 }
 0x842   : > { %v13028_v58 = vadd.f32 %v13027_v41, %v12945_v26  ;;  %v13083_v45 = vmul.f32 %v12945_v26, %v12945_v26  ;;  %12719 = vst [vmem:[%s22290_s25 + $0x110] sm:$0xff] %v14748_v35  ;;  %v12946_v44 = vsel %vm12833_vm1, %v14748_v35, 0.0  ;;  %vm12838_vm6 = vcmp.lt.s32.totalorder %v12806_v20, 300 }
 0x843   : > { %v13129_v47 = vadd.f32 %v13128_v28, %v13082_v61  ;;  %v12992_v60 = vadd.f32 %v12991_v36, %v12946_v44  ;;  %v13084_v56 = vmul.f32 %v12946_v44, %v12946_v44  ;;  %12720 = vst [vmem:[%s22290_s25 + $0x118] sm:$0xff] %v14749_v3  ;;  %v12947_v12 = vsel %vm12833_vm1, %v14749_v3, 0.0 }
 0x844   : > { %v13166_v57 = vadd.f32 %v13165_v13, %v13083_v45  ;;  %v13029_v38 = vadd.f32 %v13028_v58, %v12947_v12  ;;  %v13085_v59 = vmul.f32 %v12947_v12, %v12947_v12  ;;  %v12807_v3 = vadd.s32 %v22269_v4, %v12774_v7 }
 0x845   : > { %v13130_v22 = vadd.f32 %v13129_v47, %v13084_v56  ;;  %v12616_v62 = vpop.f32.mrb[100].mxu0  ;;  %v12775_v12 = vadd.s32 192, %v21908_v0  ;;  %vm13188_vm0 = vcmp.eq.s32.totalorder %v21908_v0, 0  ;;  %vm13191_vm1 = vcmp.eq.s32.totalorder %v21908_v0, 1 }
 0x846   : > { %v13167_v30 = vadd.f32 %v13166_v57, %v13085_v59  ;;  %v14750_v19 = vadd.f32 %v12616_v62, %v22280_v21  ;;  %v12618_v29 = vpop.f32.mrb[101].mxu0  ;;  %v12776_v62 = vadd.s32 200, %v21908_v0  ;;  %vm12839_vm7 = vcmp.lt.s32.totalorder %v12807_v3, 300 }
 0x847   : > { %v14751_v25 = vadd.f32 %v12618_v29, %v22284_v17  ;;  %v12620_v39 = vpop.f32.mrb[102].mxu0 }
 0x848   : > { %12721 = vst [vmem:[%s22290_s25 + $0x120] sm:$0xff] %v14750_v19  ;;  %v12948_v63 = vsel %vm12834_vm2, %v14750_v19, 0.0  ;;  %v14752_v52 = vadd.f32 %v12620_v39, %v22280_v21  ;;  %v12622_v49 = vpop.f32.mrb[103].mxu0  ;;  %v12808_v39 = vadd.s32 %v22269_v4, %v12775_v12 }
 0x849   : > { %v12993_v55 = vadd.f32 %v12992_v60, %v12948_v63  ;;  %v13086_v46 = vmul.f32 %v12948_v63, %v12948_v63  ;;  %12722 = vst [vmem:[%s22290_s25 + $0x128] sm:$0xff] %v14751_v25  ;;  %v12949_v9 = vsel %vm12834_vm2, %v14751_v25, 0.0  ;;  %v14753_v16 = vadd.f32 %v12622_v49, %v22284_v17 }
 0x84a   : > { %v13030_v43 = vadd.f32 %v13029_v38, %v12949_v9  ;;  %v13087_v32 = vmul.f32 %v12949_v9, %v12949_v9  ;;  %12723 = vst [vmem:[%s22290_s25 + $0x130] sm:$0xff] %v14752_v52  ;;  %v12950_v51 = vsel %vm12835_vm3, %v14752_v52, 0.0  ;;  %vm12840_vm8 = vcmp.lt.s32.totalorder %v12808_v39, 300 }
 0x84b   : > { %v13131_v50 = vadd.f32 %v13130_v22, %v13086_v46  ;;  %v12994_v10 = vadd.f32 %v12993_v55, %v12950_v51  ;;  %v13088_v24 = vmul.f32 %v12950_v51, %v12950_v51  ;;  %12724 = vst [vmem:[%s22290_s25 + $0x138] sm:$0xff] %v14753_v16  ;;  %v12951_v40 = vsel %vm12835_vm3, %v14753_v16, 0.0 }
 0x84c   : > { %v13168_v18 = vadd.f32 %v13167_v30, %v13087_v32  ;;  %v13031_v48 = vadd.f32 %v13030_v43, %v12951_v40  ;;  %v13089_v42 = vmul.f32 %v12951_v40, %v12951_v40  ;;  %v12809_v16 = vadd.s32 %v22269_v4, %v12776_v62 }
 0x84d   : > { %v13132_v14 = vadd.f32 %v13131_v50, %v13088_v24  ;;  %v12626_v41 = vpop.f32.mrb[104].mxu0  ;;  %v12777_v40 = vadd.s32 208, %v21908_v0 }
 0x84e   : > { %v13169_v15 = vadd.f32 %v13168_v18, %v13089_v42  ;;  %v14754_v33 = vadd.f32 %v12626_v41, %v22280_v21  ;;  %v12628_v28 = vpop.f32.mrb[105].mxu0  ;;  %v12778_v41 = vadd.s32 216, %v21908_v0  ;;  %vm12841_vm9 = vcmp.lt.s32.totalorder %v12809_v16, 300 }
 0x84f   : > { %v14755_v13 = vadd.f32 %v12628_v28, %v22284_v17  ;;  %v12630_v31 = vpop.f32.mrb[106].mxu0 }
 0x850   : > { %12725 = vst [vmem:[%s22290_s25 + $0x140] sm:$0xff] %v14754_v33  ;;  %v12952_v1 = vsel %vm12836_vm4, %v14754_v33, 0.0  ;;  %v14756_v5 = vadd.f32 %v12630_v31, %v22280_v21  ;;  %v12632_v37 = vpop.f32.mrb[107].mxu0  ;;  %v12810_v31 = vadd.s32 %v22269_v4, %v12777_v40 }
 0x851   : > { %v12995_v53 = vadd.f32 %v12994_v10, %v12952_v1  ;;  %v13090_v35 = vmul.f32 %v12952_v1, %v12952_v1  ;;  %12726 = vst [vmem:[%s22290_s25 + $0x148] sm:$0xff] %v14755_v13  ;;  %v12953_v6 = vsel %vm12836_vm4, %v14755_v13, 0.0  ;;  %v14757_v11 = vadd.f32 %v12632_v37, %v22284_v17 }
 0x852   : > { %v13032_v36 = vadd.f32 %v13031_v48, %v12953_v6  ;;  %v13091_v61 = vmul.f32 %v12953_v6, %v12953_v6  ;;  %12727 = vst [vmem:[%s22290_s25 + $0x150] sm:$0xff] %v14756_v5  ;;  %v12954_v26 = vsel %vm12837_vm5, %v14756_v5, 0.0  ;;  %vm12842_vm10 = vcmp.lt.s32.totalorder %v12810_v31, 300 }
 0x853   : > { %v13133_v58 = vadd.f32 %v13132_v14, %v13090_v35  ;;  %v12996_v45 = vadd.f32 %v12995_v53, %v12954_v26  ;;  %v13092_v44 = vmul.f32 %v12954_v26, %v12954_v26  ;;  %12728 = vst [vmem:[%s22290_s25 + $0x158] sm:$0xff] %v14757_v11  ;;  %v12955_v2 = vsel %vm12837_vm5, %v14757_v11, 0.0 }
 0x854   : > { %v13170_v47 = vadd.f32 %v13169_v15, %v13091_v61  ;;  %v13033_v60 = vadd.f32 %v13032_v36, %v12955_v2  ;;  %v13093_v56 = vmul.f32 %v12955_v2, %v12955_v2  ;;  %v12811_v11 = vadd.s32 %v22269_v4, %v12778_v41 }
 0x855   : > { %v13134_v57 = vadd.f32 %v13133_v58, %v13092_v44  ;;  %v12636_v38 = vpop.f32.mrb[108].mxu0  ;;  %v12779_v2 = vadd.s32 224, %v21908_v0 }
 0x856   : > { %v13171_v59 = vadd.f32 %v13170_v47, %v13093_v56  ;;  %v14758_v8 = vadd.f32 %v12636_v38, %v22280_v21  ;;  %v12638_v22 = vpop.f32.mrb[109].mxu0  ;;  %v12780_v38 = vadd.s32 232, %v21908_v0  ;;  %vm12843_vm11 = vcmp.lt.s32.totalorder %v12811_v11, 300 }
 0x857   : > { %v14759_v30 = vadd.f32 %v12638_v22, %v22284_v17  ;;  %v12640_v19 = vpop.f32.mrb[110].mxu0 }
 0x858   : > { %12729 = vst [vmem:[%s22290_s25 + $0x160] sm:$0xff] %v14758_v8  ;;  %v12956_v29 = vsel %vm12838_vm6, %v14758_v8, 0.0  ;;  %v14760_v27 = vadd.f32 %v12640_v19, %v22280_v21  ;;  %v12642_v25 = vpop.f32.mrb[111].mxu0  ;;  %v12812_v19 = vadd.s32 %v22269_v4, %v12779_v2 }
 0x859   : > { %v12997_v63 = vadd.f32 %v12996_v45, %v12956_v29  ;;  %v13094_v52 = vmul.f32 %v12956_v29, %v12956_v29  ;;  %12730 = vst [vmem:[%s22290_s25 + $0x168] sm:$0xff] %v14759_v30  ;;  %v12957_v49 = vsel %vm12838_vm6, %v14759_v30, 0.0  ;;  %v14761_v23 = vadd.f32 %v12642_v25, %v22284_v17 }
 0x85a   : > { %v13034_v55 = vadd.f32 %v13033_v60, %v12957_v49  ;;  %v13095_v46 = vmul.f32 %v12957_v49, %v12957_v49  ;;  %12731 = vst [vmem:[%s22290_s25 + $0x170] sm:$0xff] %v14760_v27  ;;  %v12958_v9 = vsel %vm12839_vm7, %v14760_v27, 0.0  ;;  %vm12844_vm12 = vcmp.lt.s32.totalorder %v12812_v19, 300 }
 0x85b   : > { %v13135_v43 = vadd.f32 %v13134_v57, %v13094_v52  ;;  %v12998_v32 = vadd.f32 %v12997_v63, %v12958_v9  ;;  %v13096_v51 = vmul.f32 %v12958_v9, %v12958_v9  ;;  %12732 = vst [vmem:[%s22290_s25 + $0x178] sm:$0xff] %v14761_v23  ;;  %v12959_v54 = vsel %vm12839_vm7, %v14761_v23, 0.0 }
 0x85c   : > { %v13172_v50 = vadd.f32 %v13171_v59, %v13095_v46  ;;  %v13035_v10 = vadd.f32 %v13034_v55, %v12959_v54  ;;  %v13097_v24 = vmul.f32 %v12959_v54, %v12959_v54  ;;  %v12813_v23 = vadd.s32 %v22269_v4, %v12780_v38 }
 0x85d   : > { %v13136_v18 = vadd.f32 %v13135_v43, %v13096_v51  ;;  %v12646_v48 = vpop.f32.mrb[112].mxu0  ;;  %v12781_v54 = vadd.s32 240, %v21908_v0 }
 0x85e   : > { %v13173_v42 = vadd.f32 %v13172_v50, %v13097_v24  ;;  %v14762_v34 = vadd.f32 %v12646_v48, %v22280_v21  ;;  %v12648_v14 = vpop.f32.mrb[113].mxu0  ;;  %v12782_v48 = vadd.s32 248, %v21908_v0  ;;  %vm12845_vm13 = vcmp.lt.s32.totalorder %v12813_v23, 300 }
 0x85f   : > { %v14763_v15 = vadd.f32 %v12648_v14, %v22284_v17  ;;  %v12650_v33 = vpop.f32.mrb[114].mxu0 }
 0x860   : > { %12733 = vst [vmem:[%s22290_s25 + $0x180] sm:$0xff] %v14762_v34  ;;  %v12960_v28 = vsel %vm12840_vm8, %v14762_v34, 0.0  ;;  %v14764_v7 = vadd.f32 %v12650_v33, %v22280_v21  ;;  %v12652_v13 = vpop.f32.mrb[115].mxu0  ;;  %v12814_v33 = vadd.s32 %v22269_v4, %v12781_v54 }
 0x861   : > { %v12999_v1 = vadd.f32 %v12998_v32, %v12960_v28  ;;  %v13098_v5 = vmul.f32 %v12960_v28, %v12960_v28  ;;  %12734 = vst [vmem:[%s22290_s25 + $0x188] sm:$0xff] %v14763_v15  ;;  %v12961_v37 = vsel %vm12840_vm8, %v14763_v15, 0.0  ;;  %v14765_v20 = vadd.f32 %v12652_v13, %v22284_v17 }
 0x862   : > { %v13036_v53 = vadd.f32 %v13035_v10, %v12961_v37  ;;  %v13099_v35 = vmul.f32 %v12961_v37, %v12961_v37  ;;  %12735 = vst [vmem:[%s22290_s25 + $0x190] sm:$0xff] %v14764_v7  ;;  %v12962_v6 = vsel %vm12841_vm9, %v14764_v7, 0.0  ;;  %vm12846_vm14 = vcmp.lt.s32.totalorder %v12814_v33, 300 }
 0x863   : > { %v13137_v36 = vadd.f32 %v13136_v18, %v13098_v5  ;;  %v13000_v61 = vadd.f32 %v12999_v1, %v12962_v6  ;;  %v13100_v26 = vmul.f32 %v12962_v6, %v12962_v6  ;;  %12736 = vst [vmem:[%s22290_s25 + $0x198] sm:$0xff] %v14765_v20  ;;  %v12963_v3 = vsel %vm12841_vm9, %v14765_v20, 0.0 }
 0x864   : > { %v13174_v58 = vadd.f32 %v13173_v42, %v13099_v35  ;;  %v13037_v45 = vadd.f32 %v13036_v53, %v12963_v3  ;;  %v13101_v44 = vmul.f32 %v12963_v3, %v12963_v3  ;;  %v12815_v20 = vadd.s32 %v22269_v4, %v12782_v48 }
 0x865   : > { %v13138_v47 = vadd.f32 %v13137_v36, %v13100_v26  ;;  %v12656_v60 = vpop.f32.mrb[116].mxu0 }
 0x866   : > { %v13175_v56 = vadd.f32 %v13174_v58, %v13101_v44  ;;  %v14766_v12 = vadd.f32 %v12656_v60, %v22280_v21  ;;  %v12658_v57 = vpop.f32.mrb[117].mxu0  ;;  %vm12847_vm15 = vcmp.lt.s32.totalorder %v12815_v20, 300 }
 0x867   : > { %v14767_v59 = vadd.f32 %v12658_v57, %v22284_v17  ;;  %v12660_v8 = vpop.f32.mrb[118].mxu0 }
 0x868   : > { %12737 = vst [vmem:[%s22290_s25 + $0x1a0] sm:$0xff] %v14766_v12  ;;  %v12964_v22 = vsel %vm12842_vm10, %v14766_v12, 0.0  ;;  %v14768_v62 = vadd.f32 %v12660_v8, %v22280_v21  ;;  %v12662_v30 = vpop.f32.mrb[119].mxu0 }
 0x869   : > { %v13001_v29 = vadd.f32 %v13000_v61, %v12964_v22  ;;  %v13102_v27 = vmul.f32 %v12964_v22, %v12964_v22  ;;  %12738 = vst [vmem:[%s22290_s25 + $0x1a8] sm:$0xff] %v14767_v59  ;;  %v12965_v25 = vsel %vm12842_vm10, %v14767_v59, 0.0  ;;  %v14769_v39 = vadd.f32 %v12662_v30, %v22284_v17 }
 0x86a   : > { %v13038_v63 = vadd.f32 %v13037_v45, %v12965_v25  ;;  %v13103_v52 = vmul.f32 %v12965_v25, %v12965_v25  ;;  %12739 = vst [vmem:[%s22290_s25 + $0x1b0] sm:$0xff] %v14768_v62  ;;  %v12966_v49 = vsel %vm12843_vm11, %v14768_v62, 0.0 }
 0x86b   : > { %v13139_v55 = vadd.f32 %v13138_v47, %v13102_v27  ;;  %v13002_v46 = vadd.f32 %v13001_v29, %v12966_v49  ;;  %v13104_v9 = vmul.f32 %v12966_v49, %v12966_v49  ;;  %12740 = vst [vmem:[%s22290_s25 + $0x1b8] sm:$0xff] %v14769_v39  ;;  %v12967_v16 = vsel %vm12843_vm11, %v14769_v39, 0.0 }
 0x86c   : > { %v13176_v43 = vadd.f32 %v13175_v56, %v13103_v52  ;;  %v13039_v32 = vadd.f32 %v13038_v63, %v12967_v16  ;;  %v13105_v51 = vmul.f32 %v12967_v16, %v12967_v16 }
 0x86d   : > { %v13140_v50 = vadd.f32 %v13139_v55, %v13104_v9  ;;  %v12666_v10 = vpop.f32.mrb[120].mxu0 }
 0x86e   : > { %v13177_v24 = vadd.f32 %v13176_v43, %v13105_v51  ;;  %v14770_v40 = vadd.f32 %v12666_v10, %v22280_v21  ;;  %v12668_v18 = vpop.f32.mrb[121].mxu0 }
 0x86f   : > { %v14771_v42 = vadd.f32 %v12668_v18, %v22284_v17  ;;  %v12670_v34 = vpop.f32.mrb[122].mxu0 }
 0x870   : > { %12741 = vst [vmem:[%s22290_s25 + $0x1c0] sm:$0xff] %v14770_v40  ;;  %v12968_v14 = vsel %vm12844_vm12, %v14770_v40, 0.0  ;;  %v14772_v41 = vadd.f32 %v12670_v34, %v22280_v21  ;;  %v12672_v15 = vpop.f32.mrb[123].mxu0 }
 0x871   : > { %v13003_v28 = vadd.f32 %v13002_v46, %v12968_v14  ;;  %v13106_v7 = vmul.f32 %v12968_v14, %v12968_v14  ;;  %12742 = vst [vmem:[%s22290_s25 + $0x1c8] sm:$0xff] %v14771_v42  ;;  %v12969_v13 = vsel %vm12844_vm12, %v14771_v42, 0.0  ;;  %v14773_v31 = vadd.f32 %v12672_v15, %v22284_v17 }
 0x872   : > { %v13040_v1 = vadd.f32 %v13039_v32, %v12969_v13  ;;  %v13107_v5 = vmul.f32 %v12969_v13, %v12969_v13  ;;  %12743 = vst [vmem:[%s22290_s25 + $0x1d0] sm:$0xff] %v14772_v41  ;;  %v12970_v37 = vsel %vm12845_vm13, %v14772_v41, 0.0 }
 0x873   : > { %v13141_v53 = vadd.f32 %v13140_v50, %v13106_v7  ;;  %v13004_v35 = vadd.f32 %v13003_v28, %v12970_v37  ;;  %v13108_v6 = vmul.f32 %v12970_v37, %v12970_v37  ;;  %12744 = vst [vmem:[%s22290_s25 + $0x1d8] sm:$0xff] %v14773_v31  ;;  %v12971_v11 = vsel %vm12845_vm13, %v14773_v31, 0.0 }
 0x874   : > { %v13178_v36 = vadd.f32 %v13177_v24, %v13107_v5  ;;  %v13041_v61 = vadd.f32 %v13040_v1, %v12971_v11  ;;  %v13109_v26 = vmul.f32 %v12971_v11, %v12971_v11 }
 0x875   : > { %v13142_v3 = vadd.f32 %v13141_v53, %v13108_v6  ;;  %v12676_v58 = vpop.f32.mrb[124].mxu0 }
 0x876   : > { %v13179_v45 = vadd.f32 %v13178_v36, %v13109_v26  ;;  %v14774_v44 = vadd.f32 %v12676_v58, %v22280_v21  ;;  %v12678_v2 = vpop.f32.mrb[125].mxu0 }
 0x877   : > { %v14775_v4 = vadd.f32 %v12678_v2, %v22284_v17  ;;  %v12680_v47 = vpop.f32.mrb[126].mxu0 }
 0x878   : > { %12745 = vst [vmem:[%s22290_s25 + $0x1e0] sm:$0xff] %v14774_v44  ;;  %v12972_v60 = vsel %vm12846_vm14, %v14774_v44, 0.0  ;;  %v14776_v56 = vadd.f32 %v12680_v47, %v22280_v21  ;;  %v12682_v12 = vpop.f32.mrb[127].mxu0 }
 0x879   : > { %v13005_v57 = vadd.f32 %v13004_v35, %v12972_v60  ;;  %v13110_v38 = vmul.f32 %v12972_v60, %v12972_v60  ;;  %12746 = vst [vmem:[%s22290_s25 + $0x1e8] sm:$0xff] %v14775_v4  ;;  %v12973_v59 = vsel %vm12846_vm14, %v14775_v4, 0.0  ;;  %v14777_v8 = vadd.f32 %v12682_v12, %v22284_v17 }
 0x87a   : > { %v13042_v22 = vadd.f32 %v13041_v61, %v12973_v59  ;;  %v13111_v62 = vmul.f32 %v12973_v59, %v12973_v59  ;;  %12747 = vst [vmem:[%s22290_s25 + $0x1f0] sm:$0xff] %v14776_v56  ;;  %v12974_v30 = vsel %vm12847_vm15, %v14776_v56, 0.0 }
 0x87b   : > { %v13143_v19 = vadd.f32 %v13142_v3, %v13110_v38  ;;  %v13006_v29 = vadd.f32 %v13005_v57, %v12974_v30  ;;  %v13112_v27 = vmul.f32 %v12974_v30, %v12974_v30  ;;  %12748 = vst [vmem:[%s22290_s25 + $0x1f8] sm:$0xff] %v14777_v8  ;;  %v12975_v25 = vsel %vm12847_vm15, %v14777_v8, 0.0 }
 0x87c   : > { %v13180_v21 = vadd.f32 %v13179_v45, %v13111_v62  ;;  %v13043_v39 = vadd.f32 %v13042_v22, %v12975_v25  ;;  %v13113_v63 = vmul.f32 %v12975_v25, %v12975_v25 }
 0x87d   : > { %v13007_v52 = vrot.slane %v13006_v29, 4  ;;  %v13144_v49 = vadd.f32 %v13143_v19, %v13112_v27 }
 0x87e   : > { %v13044_v23 = vrot.slane %v13043_v39, 4  ;;  %v13181_v17 = vadd.f32 %v13180_v21, %v13113_v63 }
 0x87f   : > { %v13008_v55 = vadd.f32 %v13007_v52, %v13006_v29  ;;  %v13145_v46 = vrot.slane %v13144_v49, 4 }
 0x880   : > { %v13045_v9 = vadd.f32 %v13044_v23, %v13043_v39  ;;  %v13182_v16 = vrot.slane %v13181_v17, 4 }
 0x881   : > { %v13009_v43 = vrot.slane %v13008_v55, 2  ;;  %v13146_v32 = vadd.f32 %v13145_v46, %v13144_v49 }
 0x882   : > { %v13046_v51 = vrot.slane %v13045_v9, 2  ;;  %v13183_v54 = vadd.f32 %v13182_v16, %v13181_v17 }
 0x883   : > { %v13010_v50 = vadd.f32 %v13009_v43, %v13008_v55  ;;  %v13147_v10 = vrot.slane %v13146_v32, 2 }
 0x884   : > { %v13047_v24 = vadd.f32 %v13046_v51, %v13045_v9  ;;  %v13184_v40 = vrot.slane %v13183_v54, 2 }
 0x885   : > { %v13011_v18 = vrot.slane %v13010_v50, 1  ;;  %v13148_v48 = vadd.f32 %v13147_v10, %v13146_v32 }
 0x886   : > { %v13048_v42 = vrot.slane %v13047_v24, 1  ;;  %v13185_v34 = vadd.f32 %v13184_v40, %v13183_v54 }
 0x887   : > { %v13012_v14 = vadd.f32 %v13011_v18, %v13010_v50  ;;  %v13149_v41 = vrot.slane %v13148_v48, 1 }
 0x888   : > { %v13049_v15 = vadd.f32 %v13048_v42, %v13047_v24  ;;  %v13186_v33 = vrot.slane %v13185_v34, 1 }
 0x889   : > { %v13150_v28 = vadd.f32 %v13149_v41, %v13148_v48  ;;  %v13189_v13 = vsel %vm13188_vm0, %v13012_v14, 0.0 }
 0x88a   : > { %v13187_v7 = vadd.f32 %v13186_v33, %v13185_v34  ;;  %v13190_v5 = vsel %vm13188_vm0, %v13049_v15, 0.0 }
 0x88b   : > { %v13192_v31 = vsel %vm13191_vm1, %v13150_v28, 0.0 }
 0x88c   : > { %v13194_v1 = vadd.f32 %v13192_v31, %v13189_v13  ;;  %v13193_v37 = vsel %vm13191_vm1, %v13187_v7, 0.0 }
 0x88d   : > { %v13195_v20 = vadd.f32 %v13193_v37, %v13190_v5 }
 0x88e   : > { %13196 = vst [vmem:[%s272_s29] sm:$0xff] %v13194_v1 }
 0x88f   : > { %13197 = vst [vmem:[%s272_s29 + $0x8] sm:$0xff] %v13195_v20 }
 0x890 PF: > { %s17_s21 = sadd.s32 1, %s17449_s21  }
 0x891   : > { %p14_p5 = scmp.ge.s32.totalorder %s17_s21, 4  }
 0x893   :  { %16 = sbr.rel (!%p14_p5) target bundleno = 1 (0x1), region = 82 }

</bundles_post_ra>
